<compile_context>
chip_gen: v5e
topology: v5e:2x2
jax: 0.10.0
libtpu: 0.0.40
codegen_flags: <defaults>
</compile_context>

<pallas_src>
import jax
import jax.numpy as jnp
from jax.experimental import pallas as pl
from jax.experimental.pallas import tpu as pltpu


# ----------------------------- Pallas kernels -----------------------------

def _conv_relu_pool_kernel_flat(x_ref, w_ref, b_ref, o_ref):
    """Fused 3x3 conv (single im2col matmul) + bias + ReLU + 2x2 maxpool.

    x_ref: (4*Np, K) bf16 -- pool-position-major im2col patches (p slowest).
    w_ref: (K, N)    bf16 -- conv weight reshaped to (9*Cin, Cout).
    b_ref: (1, N)    f32
    o_ref: (Np, N)   bf16
    One jnp.dot => a single MXU weight push covering all 4 pool positions; the
    pool max is taken over the 4 contiguous row groups of the accumulator.
    relu(max_p(z_p) + b) == max_p(relu(z_p + b)), so the max is done on raw
    matmul accumulators.
    """
    np_ = o_ref.shape[0]
    y = jnp.dot(x_ref[...], w_ref[...], preferred_element_type=jnp.float32)
    m = jnp.maximum(jnp.maximum(y[0:np_], y[np_:2 * np_]),
                    jnp.maximum(y[2 * np_:3 * np_], y[3 * np_:4 * np_]))
    o_ref[...] = jnp.maximum(m + b_ref[...], 0.0).astype(o_ref.dtype)


def _conv_relu_pool_kernel_tiled(x_ref, w_ref, b_ref, o_ref):
    """Same fusion, M-tiled variant: x_ref (4, tm, K); 4 dots + running max.

    Used for stage 1 only (K=27, so the 3 extra weight pushes are negligible);
    tiling lets the patch DMA pipeline across grid steps and gives v7x's two
    TensorCores independent work.
    """
    acc = jnp.dot(x_ref[0], w_ref[...], preferred_element_type=jnp.float32)
    for p in range(1, 4):
        acc = jnp.maximum(
            acc, jnp.dot(x_ref[p], w_ref[...], preferred_element_type=jnp.float32))
    o_ref[...] = jnp.maximum(acc + b_ref[...], 0.0).astype(o_ref.dtype)


def _fc_head_kernel(x_ref, w1_ref, b1_ref, w2_ref, b2_ref, o_ref, acc_ref):
    """Linear(4608->256) + ReLU + Linear(256->nc) + Sigmoid.

    fc1 is streamed over a K-reduction grid: per step, accumulate
    (B, kt) @ (kt, 256) into the f32 VMEM scratch; the epilogue (bias, ReLU,
    fc2, sigmoid) runs only at the last step.
    """
    k = pl.program_id(0)

    @pl.when(k == 0)
    def _():
        acc_ref[...] = jnp.zeros_like(acc_ref)

    acc_ref[...] += jnp.dot(x_ref[...], w1_ref[...],
                            preferred_element_type=jnp.float32)

    @pl.when(k == pl.num_programs(0) - 1)
    def _():
        h = jnp.maximum(acc_ref[...] + b1_ref[...], 0.0)
        z = jnp.dot(h.astype(w2_ref.dtype), w2_ref[...],
                    preferred_element_type=jnp.float32)
        o_ref[...] = jax.nn.sigmoid(z + b2_ref[...])


# ----------------------------- kernel wrappers -----------------------------

def conv_relu_pool(patches, w, b, *, m_tiles=1):
    """patches: (4, Npool, K) bf16 -> pooled activations (Npool, N) bf16."""
    _, M, K = patches.shape
    N = w.shape[1]

    if m_tiles > 1 and M % m_tiles == 0 and (M // m_tiles) % 8 == 0:
        tm = M // m_tiles
        return pl.pallas_call(
            _conv_relu_pool_kernel_tiled,
            out_shape=jax.ShapeDtypeStruct((M, N), jnp.bfloat16),
            grid=(m_tiles,),
            in_specs=[
                pl.BlockSpec((4, tm, K), lambda i: (0, i, 0)),
                pl.BlockSpec((K, N), lambda i: (0, 0)),
                pl.BlockSpec((1, N), lambda i: (0, 0)),
            ],
            out_specs=pl.BlockSpec((tm, N), lambda i: (i, 0)),
            compiler_params=pltpu.CompilerParams(
                dimension_semantics=("parallel",)),
        )(patches, w, b)

    # Single-block, pool-position-major layout: one MXU weight push total.
    flat = patches.reshape(4 * M, K)
    return pl.pallas_call(
        _conv_relu_pool_kernel_flat,
        out_shape=jax.ShapeDtypeStruct((M, N), jnp.bfloat16),
        grid=(1,),
        in_specs=[
            pl.BlockSpec((4 * M, K), lambda i: (0, 0)),
            pl.BlockSpec((K, N), lambda i: (0, 0)),
            pl.BlockSpec((1, N), lambda i: (0, 0)),
        ],
        out_specs=pl.BlockSpec((M, N), lambda i: (0, 0)),
        compiler_params=pltpu.CompilerParams(
            dimension_semantics=("arbitrary",)),
    )(flat, w, b)


def fc_head(x, w1, b1, w2, b2, *, kt=1152):
    """x: (B, 4608) bf16 -> (B, num_classes) f32; fc1 weight streamed over K."""
    B, K = x.shape
    H = w1.shape[1]
    nc = w2.shape[1]
    if K % kt != 0:
        kt = K
    nk = K // kt
    return pl.pallas_call(
        _fc_head_kernel,
        out_shape=jax.ShapeDtypeStruct((B, nc), jnp.float32),
        grid=(nk,),
        in_specs=[
            pl.BlockSpec((B, kt), lambda k: (0, k)),
            pl.BlockSpec((kt, H), lambda k: (k, 0)),
            pl.BlockSpec((1, H), lambda k: (0, 0)),
            pl.BlockSpec((H, nc), lambda k: (0, 0)),
            pl.BlockSpec((1, nc), lambda k: (0, 0)),
        ],
        out_specs=pl.BlockSpec((B, nc), lambda k: (0, 0)),
        scratch_shapes=[pltpu.VMEM((B, H), jnp.float32)],
        compiler_params=pltpu.CompilerParams(
            dimension_semantics=("arbitrary",)),
    )(x, w1, b1, w2, b2)


# ----------------------------- JAX glue -----------------------------

def _pool_patches(x):
    """Build pool-grouped im2col patches for a VALID 3x3 conv + 2x2/2 maxpool.

    x: (B, H, W, Cin) NHWC.  Returns (patches, (B, Hp, Wp)) where
    patches[p, (b*Hp+i)*Wp+j, (kh*3+kw)*Cin+c] = x[b, 2i+p//2+kh, 2j+p%2+kw, c].
    Pure slices/concat/reshape/transpose -> one XLA fusion per stage.
    """
    B, H, W, C = x.shape
    Ho, Wo = H - 2, W - 2
    Hp, Wp = Ho // 2, Wo // 2
    Hc, Wc = 2 * Hp, 2 * Wp
    taps = []
    for kh in range(3):
        for kw in range(3):
            taps.append(x[:, kh:kh + Hc, kw:kw + Wc, :])
    pat = jnp.concatenate(taps, axis=-1)                       # (B, Hc, Wc, 9C)
    pat = pat.reshape(B, Hp, 2, Wp, 2, 9 * C)
    pat = pat.transpose(2, 4, 0, 1, 3, 5).reshape(4, B * Hp * Wp, 9 * C)
    return pat, (B, Hp, Wp)


# --------------------------- parameter preparation ---------------------------

def _conv_w2d(w_pt):
    """PyTorch (Cout, Cin, 3, 3) -> ((kh*3+kw)*Cin+c, Cout)."""
    return jnp.transpose(w_pt, (2, 3, 1, 0)).reshape(-1, w_pt.shape[0])


def prepare_params(P, eps=1e-5):
    """One-time prep: BN folding, weight reshapes/transposes, bf16 casts."""
    Q = {}
    Q["w1"] = _conv_w2d(P["conv1_w"]).astype(jnp.bfloat16)
    Q["b1"] = P["conv1_b"].reshape(1, -1)
    Q["w2"] = _conv_w2d(P["conv2_w"]).astype(jnp.bfloat16)
    Q["b2"] = P["conv2_b"].reshape(1, -1)

    # Fold BN1 (applied to conv2's pooled output) into conv3.
    s1 = P["bn1_g"] / jnp.sqrt(P["bn1_v"] + eps)
    t1 = P["bn1_b"] - P["bn1_m"] * s1
    w3 = P["conv3_w"] * s1[None, :, None, None]
    b3 = P["conv3_b"] + jnp.einsum(
        "ncij->n", P["conv3_w"] * t1[None, :, None, None])
    Q["w3"] = _conv_w2d(w3).astype(jnp.bfloat16)
    Q["b3"] = b3.reshape(1, -1)

    # Fold BN2 (applied to conv3's pooled output) into fc1, and permute fc1's
    # columns from PyTorch NCHW-flatten order to NHWC-flatten order so the
    # forward pass needs no activation transpose before the classifier.
    s2 = P["bn2_g"] / jnp.sqrt(P["bn2_v"] + eps)
    t2 = P["bn2_b"] - P["bn2_m"] * s2
    C3, S3 = 128, 36                                   # channels, 6*6 spatial
    W1 = P["fc1_w"]                                    # (256, C3*S3), cols = c*36 + s
    s2_cols = jnp.repeat(s2, S3)
    t2_cols = jnp.repeat(t2, S3)
    W1f = W1 * s2_cols[None, :]
    b1f = P["fc1_b"] + W1 @ t2_cols
    W1f = W1f.reshape(-1, C3, S3).transpose(0, 2, 1).reshape(-1, C3 * S3)
    Q["fc1_w"] = W1f.T.astype(jnp.bfloat16)            # (4608, 256), NHWC cols
    Q["fc1_b"] = b1f.reshape(1, -1)
    Q["fc2_w"] = P["fc2_w"].T.astype(jnp.bfloat16)     # (256, num_classes)
    Q["fc2_b"] = P["fc2_b"].reshape(1, -1)
    return Q


# ------------------------------- forward -------------------------------

def asthecitiy_forward(x_nchw, Q):
    # TODO(synk): Dropout layers are identity in eval mode; training-mode
    # dropout (and training-mode BatchNorm batch statistics) are not implemented.
    x = jnp.transpose(x_nchw, (0, 2, 3, 1)).astype(jnp.bfloat16)   # NCHW -> NHWC

    # Stage 1: Conv(3->32) + ReLU + MaxPool2  (M-tiled, "parallel" grid)
    p, (B, Hp, Wp) = _pool_patches(x)
    y = conv_relu_pool(p, Q["w1"], Q["b1"], m_tiles=3)
    x = y.reshape(B, Hp, Wp, 32)

    # Stage 2: Conv(32->64) + ReLU + MaxPool2 (+ Dropout id; BN1 folded into conv3)
    p, (B, Hp, Wp) = _pool_patches(x)
    y = conv_relu_pool(p, Q["w2"], Q["b2"])
    x = y.reshape(B, Hp, Wp, 64)

    # Stage 3: Conv(64->128, BN1-folded) + ReLU + MaxPool2 (+ Dropout id; BN2 folded into fc1)
    p, (B, Hp, Wp) = _pool_patches(x)
    y = conv_relu_pool(p, Q["w3"], Q["b3"])                # (B*6*6, 128)

    # Classifier: fc1 columns were permuted so the NHWC flatten is consumed directly.
    flat = y.reshape(B, Hp * Wp * 128)
    return fc_head(flat, Q["fc1_w"], Q["fc1_b"], Q["fc2_w"], Q["fc2_b"])


# --------------------------- parameter init (synthetic) ---------------------------

def init_params(key, num_classes=2):
    ks = jax.random.split(key, 18)

    def w_init(k, shape, fan_in):
        return jax.random.normal(k, shape, jnp.float32) / jnp.sqrt(float(fan_in))

    P = {}
    P["conv1_w"] = w_init(ks[0], (32, 3, 3, 3), 3 * 9)
    P["conv1_b"] = 0.05 * jax.random.normal(ks[1], (32,), jnp.float32)
    P["conv2_w"] = w_init(ks[2], (64, 32, 3, 3), 32 * 9)
    P["conv2_b"] = 0.05 * jax.random.normal(ks[3], (64,), jnp.float32)
    P["conv3_w"] = w_init(ks[4], (128, 64, 3, 3), 64 * 9)
    P["conv3_b"] = 0.05 * jax.random.normal(ks[5], (128,), jnp.float32)
    P["bn1_g"] = 1.0 + 0.1 * jax.random.normal(ks[6], (64,), jnp.float32)
    P["bn1_b"] = 0.1 * jax.random.normal(ks[7], (64,), jnp.float32)
    P["bn1_m"] = 0.1 * jax.random.normal(ks[8], (64,), jnp.float32)
    P["bn1_v"] = 1.0 + 0.5 * jax.random.uniform(ks[9], (64,), jnp.float32)
    P["bn2_g"] = 1.0 + 0.1 * jax.random.normal(ks[10], (128,), jnp.float32)
    P["bn2_b"] = 0.1 * jax.random.normal(ks[11], (128,), jnp.float32)
    P["bn2_m"] = 0.1 * jax.random.normal(ks[12], (128,), jnp.float32)
    P["bn2_v"] = 1.0 + 0.5 * jax.random.uniform(ks[13], (128,), jnp.float32)
    P["fc1_w"] = w_init(ks[14], (256, 128 * 6 * 6), 128 * 6 * 6)
    P["fc1_b"] = 0.05 * jax.random.normal(ks[15], (256,), jnp.float32)
    P["fc2_w"] = w_init(ks[16], (num_classes, 256), 256)
    P["fc2_b"] = 0.05 * jax.random.normal(ks[17], (num_classes,), jnp.float32)
    return P


# ------------------------------ pure-JAX reference ------------------------------

def reference_forward(x_nchw, P):
    hp = jax.lax.Precision.HIGHEST

    def conv(x, w, b):
        y = jax.lax.conv_general_dilated(
            x, w, window_strides=(1, 1), padding="VALID",
            dimension_numbers=("NCHW", "OIHW", "NCHW"), precision=hp)
        return y + b[None, :, None, None]

    def pool(x):
        return jax.lax.reduce_window(x, -jnp.inf, jax.lax.max,
                                     (1, 1, 2, 2), (1, 1, 2, 2), "VALID")

    def bn(x, g, b, m, v):
        s = g / jnp.sqrt(v + 1e-5)
        return (x - m[None, :, None, None]) * s[None, :, None, None] + b[None, :, None, None]

    x = pool(jax.nn.relu(conv(x_nchw, P["conv1_w"], P["conv1_b"])))
    x = bn(pool(jax.nn.relu(conv(x, P["conv2_w"], P["conv2_b"]))),
           P["bn1_g"], P["bn1_b"], P["bn1_m"], P["bn1_v"])
    x = bn(pool(jax.nn.relu(conv(x, P["conv3_w"], P["conv3_b"]))),
           P["bn2_g"], P["bn2_b"], P["bn2_m"], P["bn2_v"])
    x = x.reshape(x.shape[0], 128 * 6 * 6)
    x = jax.nn.relu(jnp.dot(x, P["fc1_w"].T, precision=hp) + P["fc1_b"])
    x = jax.nn.sigmoid(jnp.dot(x, P["fc2_w"].T, precision=hp) + P["fc2_b"])
    return x


# ------------------------------------ main ------------------------------------

if __name__ == "__main__":
    key = jax.random.PRNGKey(0)
    kx, kp = jax.random.split(key)
    # Spatial size 62 is forced by the module: 62->60->30->28->14->12->6, flatten = 128*6*6.
    x = jax.random.normal(kx, (2, 3, 62, 62), jnp.float32)
    P = init_params(kp, num_classes=2)
    Q = prepare_params(P)

    fwd = jax.jit(asthecitiy_forward)
    out = jax.block_until_ready(fwd(x, Q))

    ref = reference_forward(x, P)
    assert out.shape == (2, 2)
    # bf16 MXU inputs (f32 accumulation): small extra tolerance vs the f32 reference.
    assert float(jnp.max(jnp.abs(out - ref))) < 2e-2

    print("KERNEL_OK")
</pallas_src>

<mosaic_0001>
module attributes {stable_mosaic.version = 11 : i64} {
  func.func @_conv_relu_pool_kernel_tiled(%arg0: i32, %arg1: memref<4x600x27xbf16, #tpu.memory_space<vmem>>, %arg2: memref<27x32xbf16, #tpu.memory_space<vmem>>, %arg3: memref<1x32xf32, #tpu.memory_space<vmem>>, %arg4: memref<600x32xbf16, #tpu.memory_space<vmem>>) attributes {dimension_semantics = [#tpu.dimension_semantics<parallel>], iteration_bounds = array<i64: 3>, scalar_prefetch = 0 : i64, scratch_operands = 0 : i64, tpu.core_type = #tpu.core_type<tc>, window_params = [{transform_indices = @transform_0, window_bounds = array<i64: 4, 600, 27>}, {pipeline_mode = #tpu.pipeline_mode<synchronous>, transform_indices = @transform_1, window_bounds = array<i64: 27, 32>}, {pipeline_mode = #tpu.pipeline_mode<synchronous>, transform_indices = @transform_2, window_bounds = array<i64: 1, 32>}, {transform_indices = @transform_3, window_bounds = array<i64: 600, 32>}]} {
    %c0 = arith.constant 0 : index
    %c0_0 = arith.constant 0 : index
    %c0_1 = arith.constant 0 : index
    %0 = vector.load %arg1[%c0, %c0_0, %c0_1] : memref<4x600x27xbf16, #tpu.memory_space<vmem>>, vector<1x600x27xbf16>
    %1 = vector.shape_cast %0 : vector<1x600x27xbf16> to vector<600x27xbf16>
    %c0_2 = arith.constant 0 : index
    %c0_3 = arith.constant 0 : index
    %2 = vector.load %arg2[%c0_2, %c0_3] : memref<27x32xbf16, #tpu.memory_space<vmem>>, vector<27x32xbf16>
    %cst = arith.constant dense<0.000000e+00> : vector<600x32xf32>
    %3 = tpu.matmul %1, %2, %cst {dimension_numbers = #tpu.dot_dimension_numbers<[1], [0], [0], [1], [0, 0, 1, 1], [], []>} : vector<600x27xbf16>, vector<27x32xbf16>, vector<600x32xf32> -> vector<600x32xf32>
    %c1 = arith.constant 1 : index
    %c0_4 = arith.constant 0 : index
    %c0_5 = arith.constant 0 : index
    %4 = vector.load %arg1[%c1, %c0_4, %c0_5] : memref<4x600x27xbf16, #tpu.memory_space<vmem>>, vector<1x600x27xbf16>
    %5 = vector.shape_cast %4 : vector<1x600x27xbf16> to vector<600x27xbf16>
    %c0_6 = arith.constant 0 : index
    %c0_7 = arith.constant 0 : index
    %6 = vector.load %arg2[%c0_6, %c0_7] : memref<27x32xbf16, #tpu.memory_space<vmem>>, vector<27x32xbf16>
    %cst_8 = arith.constant dense<0.000000e+00> : vector<600x32xf32>
    %7 = tpu.matmul %5, %6, %cst_8 {dimension_numbers = #tpu.dot_dimension_numbers<[1], [0], [0], [1], [0, 0, 1, 1], [], []>} : vector<600x27xbf16>, vector<27x32xbf16>, vector<600x32xf32> -> vector<600x32xf32>
    %8 = arith.maximumf %3, %7 : vector<600x32xf32>
    %c2 = arith.constant 2 : index
    %c0_9 = arith.constant 0 : index
    %c0_10 = arith.constant 0 : index
    %9 = vector.load %arg1[%c2, %c0_9, %c0_10] : memref<4x600x27xbf16, #tpu.memory_space<vmem>>, vector<1x600x27xbf16>
    %10 = vector.shape_cast %9 : vector<1x600x27xbf16> to vector<600x27xbf16>
    %c0_11 = arith.constant 0 : index
    %c0_12 = arith.constant 0 : index
    %11 = vector.load %arg2[%c0_11, %c0_12] : memref<27x32xbf16, #tpu.memory_space<vmem>>, vector<27x32xbf16>
    %cst_13 = arith.constant dense<0.000000e+00> : vector<600x32xf32>
    %12 = tpu.matmul %10, %11, %cst_13 {dimension_numbers = #tpu.dot_dimension_numbers<[1], [0], [0], [1], [0, 0, 1, 1], [], []>} : vector<600x27xbf16>, vector<27x32xbf16>, vector<600x32xf32> -> vector<600x32xf32>
    %13 = arith.maximumf %8, %12 : vector<600x32xf32>
    %c3 = arith.constant 3 : index
    %c0_14 = arith.constant 0 : index
    %c0_15 = arith.constant 0 : index
    %14 = vector.load %arg1[%c3, %c0_14, %c0_15] : memref<4x600x27xbf16, #tpu.memory_space<vmem>>, vector<1x600x27xbf16>
    %15 = vector.shape_cast %14 : vector<1x600x27xbf16> to vector<600x27xbf16>
    %c0_16 = arith.constant 0 : index
    %c0_17 = arith.constant 0 : index
    %16 = vector.load %arg2[%c0_16, %c0_17] : memref<27x32xbf16, #tpu.memory_space<vmem>>, vector<27x32xbf16>
    %cst_18 = arith.constant dense<0.000000e+00> : vector<600x32xf32>
    %17 = tpu.matmul %15, %16, %cst_18 {dimension_numbers = #tpu.dot_dimension_numbers<[1], [0], [0], [1], [0, 0, 1, 1], [], []>} : vector<600x27xbf16>, vector<27x32xbf16>, vector<600x32xf32> -> vector<600x32xf32>
    %18 = arith.maximumf %13, %17 : vector<600x32xf32>
    %c0_19 = arith.constant 0 : index
    %c0_20 = arith.constant 0 : index
    %19 = vector.load %arg3[%c0_19, %c0_20] : memref<1x32xf32, #tpu.memory_space<vmem>>, vector<1x32xf32>
    %20 = vector.broadcast %19 : vector<1x32xf32> to vector<600x32xf32>
    %21 = arith.addf %18, %20 : vector<600x32xf32>
    %cst_21 = arith.constant 0.000000e+00 : f32
    %22 = vector.broadcast %cst_21 : f32 to vector<600x32xf32>
    %23 = arith.maximumf %21, %22 : vector<600x32xf32>
    %24 = arith.truncf %23 : vector<600x32xf32> to vector<600x32xbf16>
    %c0_22 = arith.constant 0 : index
    %c0_23 = arith.constant 0 : index
    %25 = vector.load %arg4[%c0_22, %c0_23] : memref<600x32xbf16, #tpu.memory_space<vmem>>, vector<600x32xbf16>
    tpu.vector_store %arg4[%c0_22, %c0_23], %24 {strides = array<i32>} : memref<600x32xbf16, #tpu.memory_space<vmem>>, vector<600x32xbf16>,
    return
  }
  func.func @transform_0(%arg0: i32) -> (i32, i32, i32) {
    %c0_i32 = arith.constant 0 : i32
    %c0_i32_0 = arith.constant 0 : i32
    %c0_i32_1 = arith.constant 0 : i32
    return %c0_i32, %arg0, %c0_i32_0 : i32, i32, i32
  }
  func.func @transform_1(%arg0: i32) -> (i32, i32) {
    %c0_i32 = arith.constant 0 : i32
    %c0_i32_0 = arith.constant 0 : i32
    %c0_i32_1 = arith.constant 0 : i32
    return %c0_i32, %c0_i32_0 : i32, i32
  }
  func.func @transform_2(%arg0: i32) -> (i32, i32) {
    %c0_i32 = arith.constant 0 : i32
    %c0_i32_0 = arith.constant 0 : i32
    %c0_i32_1 = arith.constant 0 : i32
    return %c0_i32, %c0_i32_0 : i32, i32
  }
  func.func @transform_3(%arg0: i32) -> (i32, i32) {
    %c0_i32 = arith.constant 0 : i32
    %c0_i32_0 = arith.constant 0 : i32
    return %arg0, %c0_i32 : i32, i32
  }
}

module attributes {stable_mosaic.version = 11 : i64} {
  func.func @_conv_relu_pool_kernel_flat(%arg0: i32, %arg1: memref<1568x288xbf16, #tpu.memory_space<vmem>>, %arg2: memref<288x64xbf16, #tpu.memory_space<vmem>>, %arg3: memref<1x64xf32, #tpu.memory_space<vmem>>, %arg4: memref<392x64xbf16, #tpu.memory_space<vmem>>) attributes {dimension_semantics = [#tpu.dimension_semantics<arbitrary>], iteration_bounds = array<i64: 1>, scalar_prefetch = 0 : i64, scratch_operands = 0 : i64, tpu.core_type = #tpu.core_type<tc>, window_params = [{pipeline_mode = #tpu.pipeline_mode<synchronous>, transform_indices = @transform_0, window_bounds = array<i64: 1568, 288>}, {pipeline_mode = #tpu.pipeline_mode<synchronous>, transform_indices = @transform_1, window_bounds = array<i64: 288, 64>}, {pipeline_mode = #tpu.pipeline_mode<synchronous>, transform_indices = @transform_2, window_bounds = array<i64: 1, 64>}, {pipeline_mode = #tpu.pipeline_mode<synchronous>, transform_indices = @transform_3, window_bounds = array<i64: 392, 64>}]} {
    %c0 = arith.constant 0 : index
    %c0_0 = arith.constant 0 : index
    %0 = vector.load %arg1[%c0, %c0_0] : memref<1568x288xbf16, #tpu.memory_space<vmem>>, vector<1568x288xbf16>
    %c0_1 = arith.constant 0 : index
    %c0_2 = arith.constant 0 : index
    %1 = vector.load %arg2[%c0_1, %c0_2] : memref<288x64xbf16, #tpu.memory_space<vmem>>, vector<288x64xbf16>
    %cst = arith.constant dense<0.000000e+00> : vector<1568x64xf32>
    %2 = tpu.matmul %0, %1, %cst {dimension_numbers = #tpu.dot_dimension_numbers<[1], [0], [0], [1], [0, 0, 1, 1], [], []>} : vector<1568x288xbf16>, vector<288x64xbf16>, vector<1568x64xf32> -> vector<1568x64xf32>
    %3 = vector.extract_strided_slice %2 {offsets = [0, 0], sizes = [392, 64], strides = [1, 1]} : vector<1568x64xf32> to vector<392x64xf32>
    %4 = vector.extract_strided_slice %2 {offsets = [392, 0], sizes = [392, 64], strides = [1, 1]} : vector<1568x64xf32> to vector<392x64xf32>
    %5 = arith.maximumf %3, %4 : vector<392x64xf32>
    %6 = vector.extract_strided_slice %2 {offsets = [784, 0], sizes = [392, 64], strides = [1, 1]} : vector<1568x64xf32> to vector<392x64xf32>
    %7 = vector.extract_strided_slice %2 {offsets = [1176, 0], sizes = [392, 64], strides = [1, 1]} : vector<1568x64xf32> to vector<392x64xf32>
    %8 = arith.maximumf %6, %7 : vector<392x64xf32>
    %9 = arith.maximumf %5, %8 : vector<392x64xf32>
    %c0_3 = arith.constant 0 : index
    %c0_4 = arith.constant 0 : index
    %10 = vector.load %arg3[%c0_3, %c0_4] : memref<1x64xf32, #tpu.memory_space<vmem>>, vector<1x64xf32>
    %11 = vector.broadcast %10 : vector<1x64xf32> to vector<392x64xf32>
    %12 = arith.addf %9, %11 : vector<392x64xf32>
    %cst_5 = arith.constant 0.000000e+00 : f32
    %13 = vector.broadcast %cst_5 : f32 to vector<392x64xf32>
    %14 = arith.maximumf %12, %13 : vector<392x64xf32>
    %15 = arith.truncf %14 : vector<392x64xf32> to vector<392x64xbf16>
    %c0_6 = arith.constant 0 : index
    %c0_7 = arith.constant 0 : index
    %16 = vector.load %arg4[%c0_6, %c0_7] : memref<392x64xbf16, #tpu.memory_space<vmem>>, vector<392x64xbf16>
    tpu.vector_store %arg4[%c0_6, %c0_7], %15 {strides = array<i32>} : memref<392x64xbf16, #tpu.memory_space<vmem>>, vector<392x64xbf16>,
    return
  }
  func.func @transform_0(%arg0: i32) -> (i32, i32) {
    %c0_i32 = arith.constant 0 : i32
    %c0_i32_0 = arith.constant 0 : i32
    %c0_i32_1 = arith.constant 0 : i32
    return %c0_i32, %c0_i32_0 : i32, i32
  }
  func.func @transform_1(%arg0: i32) -> (i32, i32) {
    %c0_i32 = arith.constant 0 : i32
    %c0_i32_0 = arith.constant 0 : i32
    %c0_i32_1 = arith.constant 0 : i32
    return %c0_i32, %c0_i32_0 : i32, i32
  }
  func.func @transform_2(%arg0: i32) -> (i32, i32) {
    %c0_i32 = arith.constant 0 : i32
    %c0_i32_0 = arith.constant 0 : i32
    %c0_i32_1 = arith.constant 0 : i32
    return %c0_i32, %c0_i32_0 : i32, i32
  }
  func.func @transform_3(%arg0: i32) -> (i32, i32) {
    %c0_i32 = arith.constant 0 : i32
    %c0_i32_0 = arith.constant 0 : i32
    %c0_i32_1 = arith.constant 0 : i32
    return %c0_i32, %c0_i32_0 : i32, i32
  }
}

module attributes {stable_mosaic.version = 11 : i64} {
  func.func @_conv_relu_pool_kernel_flat(%arg0: i32, %arg1: memref<288x576xbf16, #tpu.memory_space<vmem>>, %arg2: memref<576x128xbf16, #tpu.memory_space<vmem>>, %arg3: memref<1x128xf32, #tpu.memory_space<vmem>>, %arg4: memref<72x128xbf16, #tpu.memory_space<vmem>>) attributes {dimension_semantics = [#tpu.dimension_semantics<arbitrary>], iteration_bounds = array<i64: 1>, scalar_prefetch = 0 : i64, scratch_operands = 0 : i64, tpu.core_type = #tpu.core_type<tc>, window_params = [{pipeline_mode = #tpu.pipeline_mode<synchronous>, transform_indices = @transform_0, window_bounds = array<i64: 288, 576>}, {pipeline_mode = #tpu.pipeline_mode<synchronous>, transform_indices = @transform_1, window_bounds = array<i64: 576, 128>}, {pipeline_mode = #tpu.pipeline_mode<synchronous>, transform_indices = @transform_2, window_bounds = array<i64: 1, 128>}, {pipeline_mode = #tpu.pipeline_mode<synchronous>, transform_indices = @transform_3, window_bounds = array<i64: 72, 128>}]} {
    %c0 = arith.constant 0 : index
    %c0_0 = arith.constant 0 : index
    %0 = vector.load %arg1[%c0, %c0_0] : memref<288x576xbf16, #tpu.memory_space<vmem>>, vector<288x576xbf16>
    %c0_1 = arith.constant 0 : index
    %c0_2 = arith.constant 0 : index
    %1 = vector.load %arg2[%c0_1, %c0_2] : memref<576x128xbf16, #tpu.memory_space<vmem>>, vector<576x128xbf16>
    %cst = arith.constant dense<0.000000e+00> : vector<288x128xf32>
    %2 = tpu.matmul %0, %1, %cst {dimension_numbers = #tpu.dot_dimension_numbers<[1], [0], [0], [1], [0, 0, 1, 1], [], []>} : vector<288x576xbf16>, vector<576x128xbf16>, vector<288x128xf32> -> vector<288x128xf32>
    %3 = vector.extract_strided_slice %2 {offsets = [0, 0], sizes = [72, 128], strides = [1, 1]} : vector<288x128xf32> to vector<72x128xf32>
    %4 = vector.extract_strided_slice %2 {offsets = [72, 0], sizes = [72, 128], strides = [1, 1]} : vector<288x128xf32> to vector<72x128xf32>
    %5 = arith.maximumf %3, %4 : vector<72x128xf32>
    %6 = vector.extract_strided_slice %2 {offsets = [144, 0], sizes = [72, 128], strides = [1, 1]} : vector<288x128xf32> to vector<72x128xf32>
    %7 = vector.extract_strided_slice %2 {offsets = [216, 0], sizes = [72, 128], strides = [1, 1]} : vector<288x128xf32> to vector<72x128xf32>
    %8 = arith.maximumf %6, %7 : vector<72x128xf32>
    %9 = arith.maximumf %5, %8 : vector<72x128xf32>
    %c0_3 = arith.constant 0 : index
    %c0_4 = arith.constant 0 : index
    %10 = vector.load %arg3[%c0_3, %c0_4] : memref<1x128xf32, #tpu.memory_space<vmem>>, vector<1x128xf32>
    %11 = vector.broadcast %10 : vector<1x128xf32> to vector<72x128xf32>
    %12 = arith.addf %9, %11 : vector<72x128xf32>
    %cst_5 = arith.constant 0.000000e+00 : f32
    %13 = vector.broadcast %cst_5 : f32 to vector<72x128xf32>
    %14 = arith.maximumf %12, %13 : vector<72x128xf32>
    %15 = arith.truncf %14 : vector<72x128xf32> to vector<72x128xbf16>
    %c0_6 = arith.constant 0 : index
    %c0_7 = arith.constant 0 : index
    %16 = vector.load %arg4[%c0_6, %c0_7] : memref<72x128xbf16, #tpu.memory_space<vmem>>, vector<72x128xbf16>
    tpu.vector_store %arg4[%c0_6, %c0_7], %15 {strides = array<i32>} : memref<72x128xbf16, #tpu.memory_space<vmem>>, vector<72x128xbf16>,
    return
  }
  func.func @transform_0(%arg0: i32) -> (i32, i32) {
    %c0_i32 = arith.constant 0 : i32
    %c0_i32_0 = arith.constant 0 : i32
    %c0_i32_1 = arith.constant 0 : i32
    return %c0_i32, %c0_i32_0 : i32, i32
  }
  func.func @transform_1(%arg0: i32) -> (i32, i32) {
    %c0_i32 = arith.constant 0 : i32
    %c0_i32_0 = arith.constant 0 : i32
    %c0_i32_1 = arith.constant 0 : i32
    return %c0_i32, %c0_i32_0 : i32, i32
  }
  func.func @transform_2(%arg0: i32) -> (i32, i32) {
    %c0_i32 = arith.constant 0 : i32
    %c0_i32_0 = arith.constant 0 : i32
    %c0_i32_1 = arith.constant 0 : i32
    return %c0_i32, %c0_i32_0 : i32, i32
  }
  func.func @transform_3(%arg0: i32) -> (i32, i32) {
    %c0_i32 = arith.constant 0 : i32
    %c0_i32_0 = arith.constant 0 : i32
    %c0_i32_1 = arith.constant 0 : i32
    return %c0_i32, %c0_i32_0 : i32, i32
  }
}

module attributes {stable_mosaic.version = 11 : i64} {
  func.func @_fc_head_kernel(%arg0: i32, %arg1: memref<2x1152xbf16, #tpu.memory_space<vmem>>, %arg2: memref<1152x256xbf16, #tpu.memory_space<vmem>>, %arg3: memref<1x256xf32, #tpu.memory_space<vmem>>, %arg4: memref<256x2xbf16, #tpu.memory_space<vmem>>, %arg5: memref<1x2xf32, #tpu.memory_space<vmem>>, %arg6: memref<2x2xf32, #tpu.memory_space<vmem>>, %arg7: memref<2x256xf32, #tpu.memory_space<vmem>>) attributes {dimension_semantics = [#tpu.dimension_semantics<arbitrary>], iteration_bounds = array<i64: 4>, scalar_prefetch = 0 : i64, scratch_operands = 1 : i64, tpu.core_type = #tpu.core_type<tc>, window_params = [{transform_indices = @transform_0, window_bounds = array<i64: 2, 1152>}, {transform_indices = @transform_1, window_bounds = array<i64: 1152, 256>}, {pipeline_mode = #tpu.pipeline_mode<synchronous>, transform_indices = @transform_2, window_bounds = array<i64: 1, 256>}, {pipeline_mode = #tpu.pipeline_mode<synchronous>, transform_indices = @transform_3, window_bounds = array<i64: 256, 2>}, {pipeline_mode = #tpu.pipeline_mode<synchronous>, transform_indices = @transform_4, window_bounds = array<i64: 1, 2>}, {pipeline_mode = #tpu.pipeline_mode<synchronous>, transform_indices = @transform_5, window_bounds = array<i64: 2, 2>}]} {
    %c0_i32 = arith.constant 0 : i32
    %0 = arith.cmpi eq, %arg0, %c0_i32 : i32
    %1 = arith.extui %0 : i1 to i32
    %c0_i32_0 = arith.constant 0 : i32
    %2 = arith.cmpi ne, %1, %c0_i32_0 : i32
    scf.if %2 {
      %cst_9 = arith.constant 0.000000e+00 : f32
      %12 = vector.broadcast %cst_9 : f32 to vector<2x256xf32>
      %c0_10 = arith.constant 0 : index
      %c0_11 = arith.constant 0 : index
      %13 = vector.load %arg7[%c0_10, %c0_11] : memref<2x256xf32, #tpu.memory_space<vmem>>, vector<2x256xf32>
      tpu.vector_store %arg7[%c0_10, %c0_11], %12 {strides = array<i32>} : memref<2x256xf32, #tpu.memory_space<vmem>>, vector<2x256xf32>,
    } else {
    }
    %c0 = arith.constant 0 : index
    %c0_1 = arith.constant 0 : index
    %3 = vector.load %arg7[%c0, %c0_1] : memref<2x256xf32, #tpu.memory_space<vmem>>, vector<2x256xf32>
    %c0_2 = arith.constant 0 : index
    %c0_3 = arith.constant 0 : index
    %4 = vector.load %arg1[%c0_2, %c0_3] : memref<2x1152xbf16, #tpu.memory_space<vmem>>, vector<2x1152xbf16>
    %c0_4 = arith.constant 0 : index
    %c0_5 = arith.constant 0 : index
    %5 = vector.load %arg2[%c0_4, %c0_5] : memref<1152x256xbf16, #tpu.memory_space<vmem>>, vector<1152x256xbf16>
    %cst = arith.constant dense<0.000000e+00> : vector<2x256xf32>
    %6 = tpu.matmul %4, %5, %cst {dimension_numbers = #tpu.dot_dimension_numbers<[1], [0], [0], [1], [0, 0, 1, 1], [], []>} : vector<2x1152xbf16>, vector<1152x256xbf16>, vector<2x256xf32> -> vector<2x256xf32>
    %7 = arith.addf %3, %6 : vector<2x256xf32>
    %c0_6 = arith.constant 0 : index
    %c0_7 = arith.constant 0 : index
    %8 = vector.load %arg7[%c0_6, %c0_7] : memref<2x256xf32, #tpu.memory_space<vmem>>, vector<2x256xf32>
    tpu.vector_store %arg7[%c0_6, %c0_7], %7 {strides = array<i32>} : memref<2x256xf32, #tpu.memory_space<vmem>>, vector<2x256xf32>,
    %c3_i32 = arith.constant 3 : i32
    %9 = arith.cmpi eq, %arg0, %c3_i32 : i32
    %10 = arith.extui %9 : i1 to i32
    %c0_i32_8 = arith.constant 0 : i32
    %11 = arith.cmpi ne, %10, %c0_i32_8 : i32
    scf.if %11 {
      %c0_9 = arith.constant 0 : index
      %c0_10 = arith.constant 0 : index
      %12 = vector.load %arg7[%c0_9, %c0_10] : memref<2x256xf32, #tpu.memory_space<vmem>>, vector<2x256xf32>
      %c0_11 = arith.constant 0 : index
      %c0_12 = arith.constant 0 : index
      %13 = vector.load %arg3[%c0_11, %c0_12] : memref<1x256xf32, #tpu.memory_space<vmem>>, vector<1x256xf32>
      %14 = vector.broadcast %13 : vector<1x256xf32> to vector<2x256xf32>
      %15 = arith.addf %12, %14 : vector<2x256xf32>
      %cst_13 = arith.constant 0.000000e+00 : f32
      %16 = vector.broadcast %cst_13 : f32 to vector<2x256xf32>
      %17 = arith.maximumf %15, %16 : vector<2x256xf32>
      %18 = arith.truncf %17 : vector<2x256xf32> to vector<2x256xbf16>
      %c0_14 = arith.constant 0 : index
      %c0_15 = arith.constant 0 : index
      %19 = vector.load %arg4[%c0_14, %c0_15] : memref<256x2xbf16, #tpu.memory_space<vmem>>, vector<256x2xbf16>
      %cst_16 = arith.constant dense<0.000000e+00> : vector<2x2xf32>
      %20 = tpu.matmul %18, %19, %cst_16 {dimension_numbers = #tpu.dot_dimension_numbers<[1], [0], [0], [1], [0, 0, 1, 1], [], []>} : vector<2x256xbf16>, vector<256x2xbf16>, vector<2x2xf32> -> vector<2x2xf32>
      %c0_17 = arith.constant 0 : index
      %c0_18 = arith.constant 0 : index
      %21 = vector.load %arg5[%c0_17, %c0_18] : memref<1x2xf32, #tpu.memory_space<vmem>>, vector<1x2xf32>
      %22 = vector.broadcast %21 : vector<1x2xf32> to vector<2x2xf32>
      %23 = arith.addf %20, %22 : vector<2x2xf32>
      %24 = arith.negf %23 : vector<2x2xf32>
      %25 = math.exp %24 : vector<2x2xf32>
      %cst_19 = arith.constant 1.000000e+00 : f32
      %26 = vector.broadcast %cst_19 : f32 to vector<2x2xf32>
      %27 = arith.addf %26, %25 : vector<2x2xf32>
      %28 = arith.divf %26, %27 : vector<2x2xf32>
      %c0_20 = arith.constant 0 : index
      %c0_21 = arith.constant 0 : index
      %29 = vector.load %arg6[%c0_20, %c0_21] : memref<2x2xf32, #tpu.memory_space<vmem>>, vector<2x2xf32>
      tpu.vector_store %arg6[%c0_20, %c0_21], %28 {strides = array<i32>} : memref<2x2xf32, #tpu.memory_space<vmem>>, vector<2x2xf32>,
    } else {
    }
    return
  }
  func.func @transform_0(%arg0: i32) -> (i32, i32) {
    %c0_i32 = arith.constant 0 : i32
    %c0_i32_0 = arith.constant 0 : i32
    return %c0_i32, %arg0 : i32, i32
  }
  func.func @transform_1(%arg0: i32) -> (i32, i32) {
    %c0_i32 = arith.constant 0 : i32
    %c0_i32_0 = arith.constant 0 : i32
    return %arg0, %c0_i32 : i32, i32
  }
  func.func @transform_2(%arg0: i32) -> (i32, i32) {
    %c0_i32 = arith.constant 0 : i32
    %c0_i32_0 = arith.constant 0 : i32
    %c0_i32_1 = arith.constant 0 : i32
    return %c0_i32, %c0_i32_0 : i32, i32
  }
  func.func @transform_3(%arg0: i32) -> (i32, i32) {
    %c0_i32 = arith.constant 0 : i32
    %c0_i32_0 = arith.constant 0 : i32
    %c0_i32_1 = arith.constant 0 : i32
    return %c0_i32, %c0_i32_0 : i32, i32
  }
  func.func @transform_4(%arg0: i32) -> (i32, i32) {
    %c0_i32 = arith.constant 0 : i32
    %c0_i32_0 = arith.constant 0 : i32
    %c0_i32_1 = arith.constant 0 : i32
    return %c0_i32, %c0_i32_0 : i32, i32
  }
  func.func @transform_5(%arg0: i32) -> (i32, i32) {
    %c0_i32 = arith.constant 0 : i32
    %c0_i32_0 = arith.constant 0 : i32
    %c0_i32_1 = arith.constant 0 : i32
    return %c0_i32, %c0_i32_0 : i32, i32
  }
}

</mosaic_0001>

<bundles_post_ra>
// kernel: asthecitiy_forward.4
= control target key start
LH: loop header
LB: loop body
LE: loop exit
PB: predicated region body
PF: predicated region fallthrough
CT: control target
= control target key end

     0   :  { %s6778_s12 = smov 0   ;;  %s6780_s13 = smov 0   ;;  %s7690_s0 = inlined_call_operand.vmem [shape: bf16[4,1800,27], index: 0, kind: input, shape index: {}]   ;;  %s7691_s1 = inlined_call_operand.vmem [shape: bf16[27,32], index: 1, kind: input, shape index: {}]   ;;  %s7692_s2 = inlined_call_operand.vmem [shape: f32[1,32], index: 2, kind: input, shape index: {}]   ;;  %s7693_s3 = inlined_call_operand.vmem [shape: bf16[1800,32], index: 3, kind: output, shape index: {}]  }
   0x1   :  { %s6782_s14 = smov 0  }
   0x2 LB: > { %s5566_s15 = sadd.s32 4294967295, %s6755_s14   ;;  %s6795_s16 = sadd.s32 1, %s6755_s14   ;;  %s6755_s14 = sphi %s6782_s14, %s7696_s14   ;;  %s6751_s13 = sphi %s6780_s13, %s7695_s13   ;;  %s6747_s12 = sphi %s6778_s12, %s7694_s12  }
   0x3   : > { %s17_s17 = ssub.s32 %s6755_s14, %s6795_s16  ;;  %s20_s18 = sadd.s32 1, %s6751_s13 }
   0x4   : > { %p18_p0 = scmp.eq.s32.totalorder %s17_s17, 0  ;;  %p27_p1 = scmp.ne.s32.totalorder %s6751_s13, %s6747_s12 }
   0x5   : > { %p28_p2 = scmp.eq.s32.totalorder %s6755_s14, 0  ;;  %p5569_p4 = scmp.ge.s32.totalorder %s6755_s14, 3 }
   0x6   : > { %s6804_s19 = scalar_select %p18_p0, %s6751_s13, %s20_s18  }
   0x7   : > { %p29_p3 = por %p28_p2, %p27_p1  ;;  %127 = sbr.rel (%p5569_p4) target bundleno = 169 (0xa9), region = 24 }
   0xc   : > { %130 = sbr.rel (!%p29_p3) target bundleno = 169 (0xa9), region = 28  ;;  %s132_s20 = sand.u32 (%p29_p3), 1, %s6751_s13  }
   0xd   : > { %s6552_s21 = smul.u32 (%p29_p3), 300, %s6755_s14 }
   0xe   : > { %s6703_s22 = smul.u32 (%p29_p3), 1200, %s132_s20 }
   0xf   : > { %s6812_s25 = scalar_lea.vmem (%p29_p3), %s7690_s0, %s6552_s21 }
  0x10   : > { %v154_v0 = vld [vmem:[%s6812_s25] sm:$0xff] (%p29_p3)   ;;  %v158_v1 = vld [vmem:[%s6812_s25 + $0x8] sm:$0xff] (%p29_p3)   ;;  %v162_v2 = vld [vmem:[%s6812_s25 + $0x10] sm:$0xff] (%p29_p3)   ;;  %s6817_s26 = scalar_lea.vmem (%p29_p3), [#allocation2], %s6703_s22 }
  0x11   : > { %155 = vst [vmem:[%s6817_s26] sm:$0xff] %v154_v0   ;;  %v166_v3 = vld [vmem:[%s6812_s25 + $0x18] sm:$0xff]   ;;  %v170_v4 = vld [vmem:[%s6812_s25 + $0x20] sm:$0xff]   ;;  %v174_v5 = vld [vmem:[%s6812_s25 + $0x28] sm:$0xff]  }
  0x12   : > { %159 = vst [vmem:[%s6817_s26 + $0x8] sm:$0xff] %v158_v1   ;;  %v178_v6 = vld [vmem:[%s6812_s25 + $0x30] sm:$0xff]   ;;  %v182_v7 = vld [vmem:[%s6812_s25 + $0x38] sm:$0xff]   ;;  %v186_v8 = vld [vmem:[%s6812_s25 + $0x40] sm:$0xff]  }
  0x13   : > { %163 = vst [vmem:[%s6817_s26 + $0x10] sm:$0xff] %v162_v2   ;;  %v190_v9 = vld [vmem:[%s6812_s25 + $0x48] sm:$0xff]   ;;  %v194_v10 = vld [vmem:[%s6812_s25 + $0x50] sm:$0xff]   ;;  %v198_v11 = vld [vmem:[%s6812_s25 + $0x58] sm:$0xff]  }
  0x14   : > { %167 = vst [vmem:[%s6817_s26 + $0x18] sm:$0xff] %v166_v3   ;;  %v202_v12 = vld [vmem:[%s6812_s25 + $0x60] sm:$0xff]   ;;  %v206_v13 = vld [vmem:[%s6812_s25 + $0x68] sm:$0xff]   ;;  %v210_v14 = vld [vmem:[%s6812_s25 + $0x70] sm:$0xff]  }
  0x15   : > { %171 = vst [vmem:[%s6817_s26 + $0x20] sm:$0xff] %v170_v4   ;;  %v214_v15 = vld [vmem:[%s6812_s25 + $0x78] sm:$0xff]   ;;  %v218_v16 = vld [vmem:[%s6812_s25 + $0x80] sm:$0xff]   ;;  %v222_v17 = vld [vmem:[%s6812_s25 + $0x88] sm:$0xff]  }
  0x16   : > { %175 = vst [vmem:[%s6817_s26 + $0x28] sm:$0xff] %v174_v5   ;;  %v226_v18 = vld [vmem:[%s6812_s25 + $0x90] sm:$0xff]   ;;  %v230_v19 = vld [vmem:[%s6812_s25 + $0x98] sm:$0xff]   ;;  %v234_v20 = vld [vmem:[%s6812_s25 + $0xa0] sm:$0xff]  }
  0x17   : > { %179 = vst [vmem:[%s6817_s26 + $0x30] sm:$0xff] %v178_v6   ;;  %v238_v21 = vld [vmem:[%s6812_s25 + $0xa8] sm:$0xff]   ;;  %v242_v22 = vld [vmem:[%s6812_s25 + $0xb0] sm:$0xff]   ;;  %v246_v23 = vld [vmem:[%s6812_s25 + $0xb8] sm:$0xff]  }
  0x18   : > { %183 = vst [vmem:[%s6817_s26 + $0x38] sm:$0xff] %v182_v7   ;;  %v250_v24 = vld [vmem:[%s6812_s25 + $0xc0] sm:$0xff]   ;;  %v254_v25 = vld [vmem:[%s6812_s25 + $0xc8] sm:$0xff]   ;;  %v258_v26 = vld [vmem:[%s6812_s25 + $0xd0] sm:$0xff]  }
  0x19   : > { %187 = vst [vmem:[%s6817_s26 + $0x40] sm:$0xff] %v186_v8   ;;  %v262_v27 = vld [vmem:[%s6812_s25 + $0xd8] sm:$0xff]   ;;  %v266_v28 = vld [vmem:[%s6812_s25 + $0xe0] sm:$0xff]   ;;  %v270_v29 = vld [vmem:[%s6812_s25 + $0xe8] sm:$0xff]  }
  0x1a   : > { %191 = vst [vmem:[%s6817_s26 + $0x48] sm:$0xff] %v190_v9   ;;  %v274_v30 = vld [vmem:[%s6812_s25 + $0xf0] sm:$0xff]   ;;  %v278_v31 = vld [vmem:[%s6812_s25 + $0xf8] sm:$0xff]   ;;  %v282_v32 = vld [vmem:[%s6812_s25 + $0x100] sm:$0xff]  }
  0x1b   : > { %195 = vst [vmem:[%s6817_s26 + $0x50] sm:$0xff] %v194_v10   ;;  %v286_v33 = vld [vmem:[%s6812_s25 + $0x108] sm:$0xff]   ;;  %v290_v34 = vld [vmem:[%s6812_s25 + $0x110] sm:$0xff]   ;;  %v294_v35 = vld [vmem:[%s6812_s25 + $0x118] sm:$0xff]  }
  0x1c   : > { %199 = vst [vmem:[%s6817_s26 + $0x58] sm:$0xff] %v198_v11   ;;  %v298_v36 = vld [vmem:[%s6812_s25 + $0x120] sm:$0xff]   ;;  %v302_v37 = vld [vmem:[%s6812_s25 + $0x128] sm:$0xf]  ;;  %v308_v39 = vld [vmem:[%s6812_s25 + $0x38c] sm:$0xff]  }
  0x1d   : > { %203 = vst [vmem:[%s6817_s26 + $0x60] sm:$0xff] %v202_v12   ;;  %v304_v38 = vld [vmem:[%s6812_s25 + $0x384] sm:$0xff]   ;;  %v312_v40 = vld [vmem:[%s6812_s25 + $0x394] sm:$0xff]   ;;  %v316_v41 = vld [vmem:[%s6812_s25 + $0x39c] sm:$0xff]  }
  0x1e   : > { %207 = vst [vmem:[%s6817_s26 + $0x68] sm:$0xff] %v206_v13   ;;  %v320_v42 = vld [vmem:[%s6812_s25 + $0x3a4] sm:$0xff]   ;;  %v324_v43 = vld [vmem:[%s6812_s25 + $0x3ac] sm:$0xff]   ;;  %v328_v44 = vld [vmem:[%s6812_s25 + $0x3b4] sm:$0xff]  }
  0x1f   : > { %211 = vst [vmem:[%s6817_s26 + $0x70] sm:$0xff] %v210_v14   ;;  %v332_v45 = vld [vmem:[%s6812_s25 + $0x3bc] sm:$0xff]   ;;  %v336_v46 = vld [vmem:[%s6812_s25 + $0x3c4] sm:$0xff]   ;;  %v340_v47 = vld [vmem:[%s6812_s25 + $0x3cc] sm:$0xff]  }
  0x20   : > { %215 = vst [vmem:[%s6817_s26 + $0x78] sm:$0xff] %v214_v15   ;;  %v344_v48 = vld [vmem:[%s6812_s25 + $0x3d4] sm:$0xff]   ;;  %v348_v49 = vld [vmem:[%s6812_s25 + $0x3dc] sm:$0xff]   ;;  %v352_v50 = vld [vmem:[%s6812_s25 + $0x3e4] sm:$0xff]  }
  0x21   : > { %219 = vst [vmem:[%s6817_s26 + $0x80] sm:$0xff] %v218_v16   ;;  %v356_v51 = vld [vmem:[%s6812_s25 + $0x3ec] sm:$0xff]   ;;  %v360_v52 = vld [vmem:[%s6812_s25 + $0x3f4] sm:$0xff]   ;;  %v364_v53 = vld [vmem:[%s6812_s25 + $0x3fc] sm:$0xff]  }
  0x22   : > { %223 = vst [vmem:[%s6817_s26 + $0x88] sm:$0xff] %v222_v17   ;;  %v368_v54 = vld [vmem:[%s6812_s25 + $0x404] sm:$0xff]   ;;  %v372_v55 = vld [vmem:[%s6812_s25 + $0x40c] sm:$0xff]   ;;  %v376_v56 = vld [vmem:[%s6812_s25 + $0x414] sm:$0xff]  }
  0x23   : > { %227 = vst [vmem:[%s6817_s26 + $0x90] sm:$0xff] %v226_v18   ;;  %v380_v57 = vld [vmem:[%s6812_s25 + $0x41c] sm:$0xff]   ;;  %v384_v58 = vld [vmem:[%s6812_s25 + $0x424] sm:$0xff]   ;;  %v388_v59 = vld [vmem:[%s6812_s25 + $0x42c] sm:$0xff]  }
  0x24   : > { %231 = vst [vmem:[%s6817_s26 + $0x98] sm:$0xff] %v230_v19   ;;  %v392_v60 = vld [vmem:[%s6812_s25 + $0x434] sm:$0xff]   ;;  %v396_v61 = vld [vmem:[%s6812_s25 + $0x43c] sm:$0xff]   ;;  %v400_v62 = vld [vmem:[%s6812_s25 + $0x444] sm:$0xff]  }
  0x25   : > { %235 = vst [vmem:[%s6817_s26 + $0xa0] sm:$0xff] %v234_v20   ;;  %v404_v63 = vld [vmem:[%s6812_s25 + $0x44c] sm:$0xff]   ;;  %v408_v0 = vld [vmem:[%s6812_s25 + $0x454] sm:$0xff]   ;;  %v412_v1 = vld [vmem:[%s6812_s25 + $0x45c] sm:$0xff]  }
  0x26   : > { %239 = vst [vmem:[%s6817_s26 + $0xa8] sm:$0xff] %v238_v21   ;;  %v416_v2 = vld [vmem:[%s6812_s25 + $0x464] sm:$0xff]   ;;  %v420_v3 = vld [vmem:[%s6812_s25 + $0x46c] sm:$0xff]   ;;  %v424_v4 = vld [vmem:[%s6812_s25 + $0x474] sm:$0xff]  }
  0x27   : > { %243 = vst [vmem:[%s6817_s26 + $0xb0] sm:$0xff] %v242_v22   ;;  %v428_v5 = vld [vmem:[%s6812_s25 + $0x47c] sm:$0xff]   ;;  %v432_v6 = vld [vmem:[%s6812_s25 + $0x484] sm:$0xff]   ;;  %v436_v7 = vld [vmem:[%s6812_s25 + $0x48c] sm:$0xff]  }
  0x28   : > { %247 = vst [vmem:[%s6817_s26 + $0xb8] sm:$0xff] %v246_v23   ;;  %v440_v8 = vld [vmem:[%s6812_s25 + $0x494] sm:$0xff]   ;;  %v444_v9 = vld [vmem:[%s6812_s25 + $0x49c] sm:$0xff]   ;;  %v448_v10 = vld [vmem:[%s6812_s25 + $0x4a4] sm:$0xff]  }
  0x29   : > { %251 = vst [vmem:[%s6817_s26 + $0xc0] sm:$0xff] %v250_v24   ;;  %v452_v11 = vld [vmem:[%s6812_s25 + $0x4ac] sm:$0xf]  ;;  %v458_v13 = vld [vmem:[%s6812_s25 + $0x710] sm:$0xff]   ;;  %v462_v14 = vld [vmem:[%s6812_s25 + $0x718] sm:$0xff]  }
  0x2a   : > { %255 = vst [vmem:[%s6817_s26 + $0xc8] sm:$0xff] %v254_v25   ;;  %v454_v12 = vld [vmem:[%s6812_s25 + $0x708] sm:$0xff]   ;;  %v466_v15 = vld [vmem:[%s6812_s25 + $0x720] sm:$0xff]   ;;  %v474_v17 = vld [vmem:[%s6812_s25 + $0x730] sm:$0xff]  }
  0x2b   : > { %259 = vst [vmem:[%s6817_s26 + $0xd0] sm:$0xff] %v258_v26   ;;  %v470_v16 = vld [vmem:[%s6812_s25 + $0x728] sm:$0xff]   ;;  %v478_v18 = vld [vmem:[%s6812_s25 + $0x738] sm:$0xff]   ;;  %v482_v19 = vld [vmem:[%s6812_s25 + $0x740] sm:$0xff]  }
  0x2c   : > { %263 = vst [vmem:[%s6817_s26 + $0xd8] sm:$0xff] %v262_v27   ;;  %v486_v20 = vld [vmem:[%s6812_s25 + $0x748] sm:$0xff]   ;;  %v490_v21 = vld [vmem:[%s6812_s25 + $0x750] sm:$0xff]   ;;  %v494_v22 = vld [vmem:[%s6812_s25 + $0x758] sm:$0xff]  }
  0x2d   : > { %267 = vst [vmem:[%s6817_s26 + $0xe0] sm:$0xff] %v266_v28   ;;  %v498_v23 = vld [vmem:[%s6812_s25 + $0x760] sm:$0xff]   ;;  %v502_v24 = vld [vmem:[%s6812_s25 + $0x768] sm:$0xff]   ;;  %v506_v25 = vld [vmem:[%s6812_s25 + $0x770] sm:$0xff]  }
  0x2e   : > { %271 = vst [vmem:[%s6817_s26 + $0xe8] sm:$0xff] %v270_v29   ;;  %v510_v26 = vld [vmem:[%s6812_s25 + $0x778] sm:$0xff]   ;;  %v514_v27 = vld [vmem:[%s6812_s25 + $0x780] sm:$0xff]   ;;  %v518_v28 = vld [vmem:[%s6812_s25 + $0x788] sm:$0xff]  }
  0x2f   : > { %275 = vst [vmem:[%s6817_s26 + $0xf0] sm:$0xff] %v274_v30   ;;  %v522_v29 = vld [vmem:[%s6812_s25 + $0x790] sm:$0xff]   ;;  %v526_v30 = vld [vmem:[%s6812_s25 + $0x798] sm:$0xff]  }
  0x30   : > { %279 = vst [vmem:[%s6817_s26 + $0xf8] sm:$0xff] %v278_v31   ;;  %v530_v31 = vld [vmem:[%s6812_s25 + $0x7a0] sm:$0xff]  }
  0x31   : > { %283 = vst [vmem:[%s6817_s26 + $0x100] sm:$0xff] %v282_v32   ;;  %v534_v32 = vld [vmem:[%s6812_s25 + $0x7a8] sm:$0xff]  }
  0x32   : > { %287 = vst [vmem:[%s6817_s26 + $0x108] sm:$0xff] %v286_v33   ;;  %v538_v33 = vld [vmem:[%s6812_s25 + $0x7b0] sm:$0xff]  }
  0x33   : > { %291 = vst [vmem:[%s6817_s26 + $0x110] sm:$0xff] %v290_v34   ;;  %v542_v34 = vld [vmem:[%s6812_s25 + $0x7b8] sm:$0xff]  }
  0x34   : > { %295 = vst [vmem:[%s6817_s26 + $0x118] sm:$0xff] %v294_v35   ;;  %v546_v35 = vld [vmem:[%s6812_s25 + $0x7c0] sm:$0xff]  }
  0x35   : > { %299 = vst [vmem:[%s6817_s26 + $0x120] sm:$0xff] %v298_v36   ;;  %v550_v36 = vld [vmem:[%s6812_s25 + $0x7c8] sm:$0xff]  }
  0x36   : > { %303 = vst [vmem:[%s6817_s26 + $0x128] sm:$0xf] %v302_v37  ;;  %v554_v37 = vld [vmem:[%s6812_s25 + $0x7d0] sm:$0xff]  }
  0x37   : > { %305 = vst [vmem:[%s6817_s26 + $0x12c] sm:$0xff] %v304_v38   ;;  %v558_v38 = vld [vmem:[%s6812_s25 + $0x7d8] sm:$0xff]  }
  0x38   : > { %309 = vst [vmem:[%s6817_s26 + $0x134] sm:$0xff] %v308_v39   ;;  %v562_v39 = vld [vmem:[%s6812_s25 + $0x7e0] sm:$0xff]  }
  0x39   : > { %313 = vst [vmem:[%s6817_s26 + $0x13c] sm:$0xff] %v312_v40   ;;  %v566_v40 = vld [vmem:[%s6812_s25 + $0x7e8] sm:$0xff]  }
  0x3a   : > { %317 = vst [vmem:[%s6817_s26 + $0x144] sm:$0xff] %v316_v41   ;;  %v570_v41 = vld [vmem:[%s6812_s25 + $0x7f0] sm:$0xff]  }
  0x3b   : > { %321 = vst [vmem:[%s6817_s26 + $0x14c] sm:$0xff] %v320_v42   ;;  %v574_v42 = vld [vmem:[%s6812_s25 + $0x7f8] sm:$0xff]  }
  0x3c   : > { %325 = vst [vmem:[%s6817_s26 + $0x154] sm:$0xff] %v324_v43   ;;  %v578_v43 = vld [vmem:[%s6812_s25 + $0x800] sm:$0xff]  }
  0x3d   : > { %329 = vst [vmem:[%s6817_s26 + $0x15c] sm:$0xff] %v328_v44   ;;  %v582_v44 = vld [vmem:[%s6812_s25 + $0x808] sm:$0xff]  }
  0x3e   : > { %333 = vst [vmem:[%s6817_s26 + $0x164] sm:$0xff] %v332_v45   ;;  %v586_v45 = vld [vmem:[%s6812_s25 + $0x810] sm:$0xff]  }
  0x3f   : > { %337 = vst [vmem:[%s6817_s26 + $0x16c] sm:$0xff] %v336_v46   ;;  %v590_v46 = vld [vmem:[%s6812_s25 + $0x818] sm:$0xff]  }
  0x40   : > { %341 = vst [vmem:[%s6817_s26 + $0x174] sm:$0xff] %v340_v47   ;;  %v594_v47 = vld [vmem:[%s6812_s25 + $0x820] sm:$0xff]  }
  0x41   : > { %345 = vst [vmem:[%s6817_s26 + $0x17c] sm:$0xff] %v344_v48   ;;  %v598_v48 = vld [vmem:[%s6812_s25 + $0x828] sm:$0xff]  }
  0x42   : > { %349 = vst [vmem:[%s6817_s26 + $0x184] sm:$0xff] %v348_v49   ;;  %v602_v49 = vld [vmem:[%s6812_s25 + $0x830] sm:$0xf] }
  0x43   : > { %353 = vst [vmem:[%s6817_s26 + $0x18c] sm:$0xff] %v352_v50   ;;  %v604_v50 = vld [vmem:[%s6812_s25 + $0xa8c] sm:$0xff]  }
  0x44   : > { %357 = vst [vmem:[%s6817_s26 + $0x194] sm:$0xff] %v356_v51   ;;  %v608_v51 = vld [vmem:[%s6812_s25 + $0xa94] sm:$0xff]  }
  0x45   : > { %361 = vst [vmem:[%s6817_s26 + $0x19c] sm:$0xff] %v360_v52   ;;  %v612_v52 = vld [vmem:[%s6812_s25 + $0xa9c] sm:$0xff]  }
  0x46   : > { %365 = vst [vmem:[%s6817_s26 + $0x1a4] sm:$0xff] %v364_v53   ;;  %v616_v53 = vld [vmem:[%s6812_s25 + $0xaa4] sm:$0xff]  }
  0x47   : > { %369 = vst [vmem:[%s6817_s26 + $0x1ac] sm:$0xff] %v368_v54   ;;  %v620_v54 = vld [vmem:[%s6812_s25 + $0xaac] sm:$0xff]  }
  0x48   : > { %373 = vst [vmem:[%s6817_s26 + $0x1b4] sm:$0xff] %v372_v55   ;;  %v624_v55 = vld [vmem:[%s6812_s25 + $0xab4] sm:$0xff]  }
  0x49   : > { %377 = vst [vmem:[%s6817_s26 + $0x1bc] sm:$0xff] %v376_v56   ;;  %v628_v56 = vld [vmem:[%s6812_s25 + $0xabc] sm:$0xff]  }
  0x4a   : > { %381 = vst [vmem:[%s6817_s26 + $0x1c4] sm:$0xff] %v380_v57   ;;  %v632_v57 = vld [vmem:[%s6812_s25 + $0xac4] sm:$0xff]  }
  0x4b   : > { %385 = vst [vmem:[%s6817_s26 + $0x1cc] sm:$0xff] %v384_v58   ;;  %v636_v58 = vld [vmem:[%s6812_s25 + $0xacc] sm:$0xff]  }
  0x4c   : > { %389 = vst [vmem:[%s6817_s26 + $0x1d4] sm:$0xff] %v388_v59   ;;  %v640_v59 = vld [vmem:[%s6812_s25 + $0xad4] sm:$0xff]  }
  0x4d   : > { %393 = vst [vmem:[%s6817_s26 + $0x1dc] sm:$0xff] %v392_v60   ;;  %v644_v60 = vld [vmem:[%s6812_s25 + $0xadc] sm:$0xff]  }
  0x4e   : > { %397 = vst [vmem:[%s6817_s26 + $0x1e4] sm:$0xff] %v396_v61   ;;  %v648_v61 = vld [vmem:[%s6812_s25 + $0xae4] sm:$0xff]  }
  0x4f   : > { %401 = vst [vmem:[%s6817_s26 + $0x1ec] sm:$0xff] %v400_v62   ;;  %v652_v62 = vld [vmem:[%s6812_s25 + $0xaec] sm:$0xff]  }
  0x50   : > { %405 = vst [vmem:[%s6817_s26 + $0x1f4] sm:$0xff] %v404_v63   ;;  %v656_v63 = vld [vmem:[%s6812_s25 + $0xaf4] sm:$0xff]  }
  0x51   : > { %409 = vst [vmem:[%s6817_s26 + $0x1fc] sm:$0xff] %v408_v0   ;;  %v660_v0 = vld [vmem:[%s6812_s25 + $0xafc] sm:$0xff]  }
  0x52   : > { %413 = vst [vmem:[%s6817_s26 + $0x204] sm:$0xff] %v412_v1   ;;  %v664_v1 = vld [vmem:[%s6812_s25 + $0xb04] sm:$0xff]  }
  0x53   : > { %417 = vst [vmem:[%s6817_s26 + $0x20c] sm:$0xff] %v416_v2   ;;  %v668_v2 = vld [vmem:[%s6812_s25 + $0xb0c] sm:$0xff]  }
  0x54   : > { %421 = vst [vmem:[%s6817_s26 + $0x214] sm:$0xff] %v420_v3   ;;  %v672_v3 = vld [vmem:[%s6812_s25 + $0xb14] sm:$0xff]  }
  0x55   : > { %425 = vst [vmem:[%s6817_s26 + $0x21c] sm:$0xff] %v424_v4   ;;  %v676_v4 = vld [vmem:[%s6812_s25 + $0xb1c] sm:$0xff]  }
  0x56   : > { %429 = vst [vmem:[%s6817_s26 + $0x224] sm:$0xff] %v428_v5   ;;  %v680_v5 = vld [vmem:[%s6812_s25 + $0xb24] sm:$0xff]  }
  0x57   : > { %433 = vst [vmem:[%s6817_s26 + $0x22c] sm:$0xff] %v432_v6   ;;  %v684_v6 = vld [vmem:[%s6812_s25 + $0xb2c] sm:$0xff]  }
  0x58   : > { %437 = vst [vmem:[%s6817_s26 + $0x234] sm:$0xff] %v436_v7   ;;  %v688_v7 = vld [vmem:[%s6812_s25 + $0xb34] sm:$0xff]  }
  0x59   : > { %441 = vst [vmem:[%s6817_s26 + $0x23c] sm:$0xff] %v440_v8   ;;  %v692_v8 = vld [vmem:[%s6812_s25 + $0xb3c] sm:$0xff]  }
  0x5a   : > { %445 = vst [vmem:[%s6817_s26 + $0x244] sm:$0xff] %v444_v9   ;;  %v696_v9 = vld [vmem:[%s6812_s25 + $0xb44] sm:$0xff]  }
  0x5b   : > { %449 = vst [vmem:[%s6817_s26 + $0x24c] sm:$0xff] %v448_v10   ;;  %v700_v10 = vld [vmem:[%s6812_s25 + $0xb4c] sm:$0xff]  }
  0x5c   : > { %453 = vst [vmem:[%s6817_s26 + $0x254] sm:$0xf] %v452_v11  ;;  %v704_v11 = vld [vmem:[%s6812_s25 + $0xb54] sm:$0xff]  }
  0x5d   : > { %455 = vst [vmem:[%s6817_s26 + $0x258] sm:$0xff] %v454_v12   ;;  %v708_v12 = vld [vmem:[%s6812_s25 + $0xb5c] sm:$0xff]  }
  0x5e   : > { %459 = vst [vmem:[%s6817_s26 + $0x260] sm:$0xff] %v458_v13   ;;  %v712_v13 = vld [vmem:[%s6812_s25 + $0xb64] sm:$0xff]  }
  0x5f   : > { %463 = vst [vmem:[%s6817_s26 + $0x268] sm:$0xff] %v462_v14   ;;  %v716_v14 = vld [vmem:[%s6812_s25 + $0xb6c] sm:$0xff]  }
  0x60   : > { %467 = vst [vmem:[%s6817_s26 + $0x270] sm:$0xff] %v466_v15   ;;  %v720_v15 = vld [vmem:[%s6812_s25 + $0xb74] sm:$0xff]  }
  0x61   : > { %471 = vst [vmem:[%s6817_s26 + $0x278] sm:$0xff] %v470_v16   ;;  %v724_v16 = vld [vmem:[%s6812_s25 + $0xb7c] sm:$0xff]  }
  0x62   : > { %475 = vst [vmem:[%s6817_s26 + $0x280] sm:$0xff] %v474_v17   ;;  %v728_v17 = vld [vmem:[%s6812_s25 + $0xb84] sm:$0xff]  }
  0x63   : > { %479 = vst [vmem:[%s6817_s26 + $0x288] sm:$0xff] %v478_v18   ;;  %v732_v18 = vld [vmem:[%s6812_s25 + $0xb8c] sm:$0xff]  }
  0x64   : > { %483 = vst [vmem:[%s6817_s26 + $0x290] sm:$0xff] %v482_v19   ;;  %v736_v19 = vld [vmem:[%s6812_s25 + $0xb94] sm:$0xff]  }
  0x65   : > { %487 = vst [vmem:[%s6817_s26 + $0x298] sm:$0xff] %v486_v20   ;;  %v740_v20 = vld [vmem:[%s6812_s25 + $0xb9c] sm:$0xff]  }
  0x66   : > { %491 = vst [vmem:[%s6817_s26 + $0x2a0] sm:$0xff] %v490_v21   ;;  %v744_v21 = vld [vmem:[%s6812_s25 + $0xba4] sm:$0xff]  }
  0x67   : > { %495 = vst [vmem:[%s6817_s26 + $0x2a8] sm:$0xff] %v494_v22   ;;  %v748_v22 = vld [vmem:[%s6812_s25 + $0xbac] sm:$0xff]  }
  0x68   : > { %499 = vst [vmem:[%s6817_s26 + $0x2b0] sm:$0xff] %v498_v23   ;;  %v752_v23 = vld [vmem:[%s6812_s25 + $0xbb4] sm:$0xf] }
  0x69   : > { %503 = vst [vmem:[%s6817_s26 + $0x2b8] sm:$0xff] %v502_v24  }
  0x6a   : > { %507 = vst [vmem:[%s6817_s26 + $0x2c0] sm:$0xff] %v506_v25  }
  0x6b   : > { %511 = vst [vmem:[%s6817_s26 + $0x2c8] sm:$0xff] %v510_v26  }
  0x6c   : > { %515 = vst [vmem:[%s6817_s26 + $0x2d0] sm:$0xff] %v514_v27  }
  0x6d   : > { %519 = vst [vmem:[%s6817_s26 + $0x2d8] sm:$0xff] %v518_v28  }
  0x6e   : > { %523 = vst [vmem:[%s6817_s26 + $0x2e0] sm:$0xff] %v522_v29  }
  0x6f   : > { %527 = vst [vmem:[%s6817_s26 + $0x2e8] sm:$0xff] %v526_v30  }
  0x70   : > { %531 = vst [vmem:[%s6817_s26 + $0x2f0] sm:$0xff] %v530_v31  }
  0x71   : > { %535 = vst [vmem:[%s6817_s26 + $0x2f8] sm:$0xff] %v534_v32  }
  0x72   : > { %539 = vst [vmem:[%s6817_s26 + $0x300] sm:$0xff] %v538_v33  }
  0x73   : > { %543 = vst [vmem:[%s6817_s26 + $0x308] sm:$0xff] %v542_v34  }
  0x74   : > { %547 = vst [vmem:[%s6817_s26 + $0x310] sm:$0xff] %v546_v35  }
  0x75   : > { %551 = vst [vmem:[%s6817_s26 + $0x318] sm:$0xff] %v550_v36  }
  0x76   : > { %555 = vst [vmem:[%s6817_s26 + $0x320] sm:$0xff] %v554_v37  }
  0x77   : > { %559 = vst [vmem:[%s6817_s26 + $0x328] sm:$0xff] %v558_v38  }
  0x78   : > { %563 = vst [vmem:[%s6817_s26 + $0x330] sm:$0xff] %v562_v39  }
  0x79   : > { %567 = vst [vmem:[%s6817_s26 + $0x338] sm:$0xff] %v566_v40  }
  0x7a   : > { %571 = vst [vmem:[%s6817_s26 + $0x340] sm:$0xff] %v570_v41  }
  0x7b   : > { %575 = vst [vmem:[%s6817_s26 + $0x348] sm:$0xff] %v574_v42  }
  0x7c   : > { %579 = vst [vmem:[%s6817_s26 + $0x350] sm:$0xff] %v578_v43  }
  0x7d   : > { %583 = vst [vmem:[%s6817_s26 + $0x358] sm:$0xff] %v582_v44  }
  0x7e   : > { %587 = vst [vmem:[%s6817_s26 + $0x360] sm:$0xff] %v586_v45  }
  0x7f   : > { %591 = vst [vmem:[%s6817_s26 + $0x368] sm:$0xff] %v590_v46  }
  0x80   : > { %595 = vst [vmem:[%s6817_s26 + $0x370] sm:$0xff] %v594_v47  }
  0x81   : > { %599 = vst [vmem:[%s6817_s26 + $0x378] sm:$0xff] %v598_v48  }
  0x82   : > { %603 = vst [vmem:[%s6817_s26 + $0x380] sm:$0xf] %v602_v49 }
  0x83   : > { %605 = vst [vmem:[%s6817_s26 + $0x384] sm:$0xff] %v604_v50  }
  0x84   : > { %609 = vst [vmem:[%s6817_s26 + $0x38c] sm:$0xff] %v608_v51  }
  0x85   : > { %613 = vst [vmem:[%s6817_s26 + $0x394] sm:$0xff] %v612_v52  }
  0x86   : > { %617 = vst [vmem:[%s6817_s26 + $0x39c] sm:$0xff] %v616_v53  }
  0x87   : > { %621 = vst [vmem:[%s6817_s26 + $0x3a4] sm:$0xff] %v620_v54  }
  0x88   : > { %625 = vst [vmem:[%s6817_s26 + $0x3ac] sm:$0xff] %v624_v55  }
  0x89   : > { %629 = vst [vmem:[%s6817_s26 + $0x3b4] sm:$0xff] %v628_v56  }
  0x8a   : > { %633 = vst [vmem:[%s6817_s26 + $0x3bc] sm:$0xff] %v632_v57  }
  0x8b   : > { %637 = vst [vmem:[%s6817_s26 + $0x3c4] sm:$0xff] %v636_v58  }
  0x8c   : > { %641 = vst [vmem:[%s6817_s26 + $0x3cc] sm:$0xff] %v640_v59  }
  0x8d   : > { %645 = vst [vmem:[%s6817_s26 + $0x3d4] sm:$0xff] %v644_v60  }
  0x8e   : > { %649 = vst [vmem:[%s6817_s26 + $0x3dc] sm:$0xff] %v648_v61  }
  0x8f   : > { %653 = vst [vmem:[%s6817_s26 + $0x3e4] sm:$0xff] %v652_v62  }
  0x90   : > { %657 = vst [vmem:[%s6817_s26 + $0x3ec] sm:$0xff] %v656_v63  }
  0x91   : > { %661 = vst [vmem:[%s6817_s26 + $0x3f4] sm:$0xff] %v660_v0  }
  0x92   : > { %665 = vst [vmem:[%s6817_s26 + $0x3fc] sm:$0xff] %v664_v1  }
  0x93   : > { %669 = vst [vmem:[%s6817_s26 + $0x404] sm:$0xff] %v668_v2  }
  0x94   : > { %673 = vst [vmem:[%s6817_s26 + $0x40c] sm:$0xff] %v672_v3  }
  0x95   : > { %677 = vst [vmem:[%s6817_s26 + $0x414] sm:$0xff] %v676_v4  }
  0x96   : > { %681 = vst [vmem:[%s6817_s26 + $0x41c] sm:$0xff] %v680_v5  }
  0x97   : > { %685 = vst [vmem:[%s6817_s26 + $0x424] sm:$0xff] %v684_v6  }
  0x98   : > { %689 = vst [vmem:[%s6817_s26 + $0x42c] sm:$0xff] %v688_v7  }
  0x99   : > { %693 = vst [vmem:[%s6817_s26 + $0x434] sm:$0xff] %v692_v8  }
  0x9a   : > { %697 = vst [vmem:[%s6817_s26 + $0x43c] sm:$0xff] %v696_v9  }
  0x9b   : > { %701 = vst [vmem:[%s6817_s26 + $0x444] sm:$0xff] %v700_v10  }
  0x9c   : > { %705 = vst [vmem:[%s6817_s26 + $0x44c] sm:$0xff] %v704_v11  }
  0x9d   : > { %709 = vst [vmem:[%s6817_s26 + $0x454] sm:$0xff] %v708_v12  }
  0x9e   : > { %713 = vst [vmem:[%s6817_s26 + $0x45c] sm:$0xff] %v712_v13  }
  0x9f   : > { %717 = vst [vmem:[%s6817_s26 + $0x464] sm:$0xff] %v716_v14  }
  0xa0   : > { %721 = vst [vmem:[%s6817_s26 + $0x46c] sm:$0xff] %v720_v15  }
  0xa1   : > { %725 = vst [vmem:[%s6817_s26 + $0x474] sm:$0xff] %v724_v16  }
  0xa2   : > { %729 = vst [vmem:[%s6817_s26 + $0x47c] sm:$0xff] %v728_v17  }
  0xa3   : > { %733 = vst [vmem:[%s6817_s26 + $0x484] sm:$0xff] %v732_v18  }
  0xa4   : > { %737 = vst [vmem:[%s6817_s26 + $0x48c] sm:$0xff] %v736_v19  }
  0xa5   : > { %741 = vst [vmem:[%s6817_s26 + $0x494] sm:$0xff] %v740_v20  }
  0xa6   : > { %745 = vst [vmem:[%s6817_s26 + $0x49c] sm:$0xff] %v744_v21  }
  0xa7   : > { %749 = vst [vmem:[%s6817_s26 + $0x4a4] sm:$0xff] %v748_v22  }
  0xa8   : > { %753 = vst [vmem:[%s6817_s26 + $0x4ac] sm:$0xf] %v752_v23 }
  0xa9 PF: > { %p5571_p5 = scmp.ge.s32.totalorder %s6755_s14, 1  ;;  %p2602_p6 = scmp.lt.s32.totalorder %s6755_s14, 4 }
  0xab   : > { %p2603_p7 = pnand %p5571_p5, %p2602_p6 }
  0xac   : > { %s2609_s4 = sand.u32 (!%p2603_p7), 1, %s6747_s12   ;;  %s2633_s9 = smul.u32 (!%p2603_p7), 75, %s5566_s15 }
  0xad   : > { %2606 = sbr.rel (%p2603_p7) target bundleno = 927 (0x39f), region = 80 }
  0xae   : > { %s6704_s5 = smul.u32 (!%p2603_p7), 1200, %s2609_s4  ;;  %p2634_p8 = scmp.lt.s32.totalorder (!%p2603_p7), %s2633_s9, 224 }
  0xb0   : > { %s7132_s8 = scalar_lea.vmem (!%p2603_p7), [#allocation2], %s6704_s5 }
  0xb2   : > { %v5727_v24 = vld [vmem:[%s7691_s1 + $0x8] sm:$0xf]  ;;  %v6591_v25 = vld [vmem:[%s7691_s1 + $0x8] sm:$0x30]  ;;  %vm3033_vm0 = vcmask 1044480   ;;  %vm3034_vm1 = vcmask 1045504  }
  0xb3   : > { %v5728_v26 = vor.u32 %v6591_v25, %v5727_v24  ;;  %v6757_v27 = vmov 65535   ;;  %v6590_v31 = vld [vmem:[%s7691_s1] sm:$0xff]  ;;  %vm2918_vm2 = vcmask 220160   ;;  %v6629_v34 = vld [vmem:[%s7132_s8 + $0x258] sm:$0xff]  ;;  %v6554_v36 = vld [vmem:[%s7132_s8 + $0x8] sm:$0xff]  ;;  %s7698_s9 = smov (!%p2634_p8, %s2633_s9), 224 }
  0xb4   : > { %v3035_v28 = vsel %vm3033_vm0, 4294967295, %v6757_v27  ;;  %v6553_v32 = vld [vmem:[%s7132_s8] sm:$0xff]  ;;  %v6592_v33 = vld [vmem:[%s7132_s8 + $0x12c] sm:$0xff]  ;;  %v6593_v37 = vld [vmem:[%s7132_s8 + $0x134] sm:$0xff]  ;;  %s5572_s12 = sshll.u32 %s7698_s9, 2  ;;  %vm5420_vm3 = vcmask 257024  }
  0xb5   : > { %v3036_v29 = vsel %vm3034_vm1, %v3035_v28, 0  ;;  %v6666_v35 = vld [vmem:[%s7132_s8 + $0x384] sm:$0xff]  ;;  %v6667_v39 = vld [vmem:[%s7132_s8 + $0x38c] sm:$0xff]  ;;  %v6594_v41 = vld [vmem:[%s7132_s8 + $0x13c] sm:$0xff]  ;;  %s7217_s17 = scalar_lea.vmem %s7693_s3, %s5572_s12 }
  0xb6   : > { %v3038_v30 = vand.u32 %v5728_v26, %v3036_v29  ;;  %v6630_v38 = vld [vmem:[%s7132_s8 + $0x260] sm:$0xff]  ;;  %v6555_v40 = vld [vmem:[%s7132_s8 + $0x10] sm:$0xff]  ;;  %v6631_v42 = vld [vmem:[%s7132_s8 + $0x268] sm:$0xff] }
  0xb7   : > { %v6668_v43 = vld [vmem:[%s7132_s8 + $0x394] sm:$0xff]  ;;  %v6595_v45 = vld [vmem:[%s7132_s8 + $0x144] sm:$0xff]  ;;  %v6669_v47 = vld [vmem:[%s7132_s8 + $0x39c] sm:$0xff] }
  0xb8   : > { %3046 = vmatpush.bf16.msra.mxu0 %v3038_v30  ;;  %3622 = vmatpush.bf16.msra.mxu1 %v3038_v30  ;;  %v6556_v44 = vld [vmem:[%s7132_s8 + $0x18] sm:$0xff]  ;;  %v6632_v46 = vld [vmem:[%s7132_s8 + $0x270] sm:$0xff]  ;;  %v6557_v48 = vld [vmem:[%s7132_s8 + $0x20] sm:$0xff] }
  0xb9   : > { %4273 = vmatpush.bf16.msra.mxu2 %v3038_v30  ;;  %4924 = vmatpush.bf16.msra.mxu3 %v3038_v30  ;;  %v6596_v49 = vld [vmem:[%s7132_s8 + $0x14c] sm:$0xff]  ;;  %v6633_v50 = vld [vmem:[%s7132_s8 + $0x278] sm:$0xff]  ;;  %v6670_v51 = vld [vmem:[%s7132_s8 + $0x3a4] sm:$0xff] }
  0xba   : > { %v6558_v52 = vld [vmem:[%s7132_s8 + $0x28] sm:$0xff]  ;;  %v6597_v53 = vld [vmem:[%s7132_s8 + $0x154] sm:$0xff]  ;;  %v6634_v54 = vld [vmem:[%s7132_s8 + $0x280] sm:$0xff] }
  0xbb   : > { %v6671_v55 = vld [vmem:[%s7132_s8 + $0x3ac] sm:$0xff]  ;;  %v6598_v57 = vld [vmem:[%s7132_s8 + $0x15c] sm:$0xff]  ;;  %v6672_v59 = vld [vmem:[%s7132_s8 + $0x3b4] sm:$0xff] }
  0xbc   : > { %3047 = vmatpush.bf16.msra.mxu0 %v6590_v31  ;;  %3623 = vmatpush.bf16.msra.mxu1 %v6590_v31  ;;  %v6559_v56 = vld [vmem:[%s7132_s8 + $0x30] sm:$0xff]  ;;  %v6635_v58 = vld [vmem:[%s7132_s8 + $0x288] sm:$0xff]  ;;  %v6560_v60 = vld [vmem:[%s7132_s8 + $0x38] sm:$0xff] }
  0xbd   : > { %4274 = vmatpush.bf16.msra.mxu2 %v6590_v31  ;;  %4925 = vmatpush.bf16.msra.mxu3 %v6590_v31  ;;  %v6599_v61 = vld [vmem:[%s7132_s8 + $0x164] sm:$0xff]  ;;  %v6636_v62 = vld [vmem:[%s7132_s8 + $0x290] sm:$0xff]  ;;  %v6673_v63 = vld [vmem:[%s7132_s8 + $0x3bc] sm:$0xff] }
  0xbe   : > { %v6561_v0 = vld [vmem:[%s7132_s8 + $0x40] sm:$0xff]  ;;  %v6600_v1 = vld [vmem:[%s7132_s8 + $0x16c] sm:$0xff]  ;;  %v6637_v4 = vld [vmem:[%s7132_s8 + $0x298] sm:$0xff] }
  0xbf   : > { %5729 = vmatmul.msk.bf16.vlgmr.msra.gmra.mxu0 %vm2918_vm2, %v6553_v32  ;;  %5990 = vmatmul.msk.bf16.vlgmr.msra.gmra.mxu1 %vm2918_vm2, %v6592_v33  ;;  %v6674_v5 = vld [vmem:[%s7132_s8 + $0x3c4] sm:$0xff]  ;;  %v7211_v10 = vld [vmem:[%s7692_s2] ss:$0 sm:$0xff]  ;;  %v6601_v20 = vld [vmem:[%s7132_s8 + $0x174] sm:$0xff] }
  0xc0   : > { %6251 = vmatmul.msk.bf16.vlgmr.msra.gmra.mxu2 %vm2918_vm2, %v6629_v34  ;;  %6512 = vmatmul.msk.bf16.vlgmr.msra.gmra.mxu3 %vm2918_vm2, %v6666_v35  ;;  %v6562_v19 = vld [vmem:[%s7132_s8 + $0x48] sm:$0xff]  ;;  %v6638_v25 = vld [vmem:[%s7132_s8 + $0x2a0] sm:$0xff] }
  0xc1   : > { %v6675_v26 = vld [vmem:[%s7132_s8 + $0x3cc] sm:$0xff] }
  0xcf   : > { %5730 = vmatmul.msk.bf16.gmra.mxu0 %vm2918_vm2, %v6554_v36  ;;  %5991 = vmatmul.msk.bf16.gmra.mxu1 %vm2918_vm2, %v6593_v37 }
  0xd0   : > { %6252 = vmatmul.msk.bf16.gmra.mxu2 %vm2918_vm2, %v6630_v38  ;;  %6513 = vmatmul.msk.bf16.gmra.mxu3 %vm2918_vm2, %v6667_v39 }
  0xdf   : > { %5731 = vmatmul.msk.bf16.gmra.mxu0 %vm2918_vm2, %v6555_v40  ;;  %5992 = vmatmul.msk.bf16.gmra.mxu1 %vm2918_vm2, %v6594_v41 }
  0xe0   : > { %6253 = vmatmul.msk.bf16.gmra.mxu2 %vm2918_vm2, %v6631_v42  ;;  %6514 = vmatmul.msk.bf16.gmra.mxu3 %vm2918_vm2, %v6668_v43  ;;  %v6563_v43 = vld [vmem:[%s7132_s8 + $0x50] sm:$0xff] }
  0xef   : > { %5732 = vmatmul.msk.bf16.gmra.mxu0 %vm2918_vm2, %v6556_v44  ;;  %5993 = vmatmul.msk.bf16.gmra.mxu1 %vm2918_vm2, %v6595_v45  ;;  %v6602_v44 = vld [vmem:[%s7132_s8 + $0x17c] sm:$0xff] }
  0xf0   : > { %6254 = vmatmul.msk.bf16.gmra.mxu2 %vm2918_vm2, %v6632_v46  ;;  %6515 = vmatmul.msk.bf16.gmra.mxu3 %vm2918_vm2, %v6669_v47 }
  0xff   : > { %5733 = vmatmul.msk.bf16.gmra.mxu0 %vm2918_vm2, %v6557_v48  ;;  %5994 = vmatmul.msk.bf16.gmra.mxu1 %vm2918_vm2, %v6596_v49  ;;  %v6639_v49 = vld [vmem:[%s7132_s8 + $0x2a8] sm:$0xff] }
 0x100   : > { %6255 = vmatmul.msk.bf16.gmra.mxu2 %vm2918_vm2, %v6633_v50  ;;  %6516 = vmatmul.msk.bf16.gmra.mxu3 %vm2918_vm2, %v6670_v51  ;;  %v6676_v50 = vld [vmem:[%s7132_s8 + $0x3d4] sm:$0xff] }
 0x10f   : > { %5734 = vmatmul.msk.bf16.gmra.mxu0 %vm2918_vm2, %v6558_v52  ;;  %5995 = vmatmul.msk.bf16.gmra.mxu1 %vm2918_vm2, %v6597_v53 }
 0x110   : > { %6256 = vmatmul.msk.bf16.gmra.mxu2 %vm2918_vm2, %v6634_v54  ;;  %6517 = vmatmul.msk.bf16.gmra.mxu3 %vm2918_vm2, %v6671_v55 }
 0x11f   : > { %5735 = vmatmul.msk.bf16.gmra.mxu0 %vm2918_vm2, %v6559_v56  ;;  %5996 = vmatmul.msk.bf16.gmra.mxu1 %vm2918_vm2, %v6598_v57 }
 0x120   : > { %6257 = vmatmul.msk.bf16.gmra.mxu2 %vm2918_vm2, %v6635_v58  ;;  %6518 = vmatmul.msk.bf16.gmra.mxu3 %vm2918_vm2, %v6672_v59 }
 0x12f   : > { %5736 = vmatmul.msk.bf16.gmra.mxu0 %vm2918_vm2, %v6560_v60  ;;  %5997 = vmatmul.msk.bf16.gmra.mxu1 %vm2918_vm2, %v6599_v61 }
 0x130   : > { %6258 = vmatmul.msk.bf16.gmra.mxu2 %vm2918_vm2, %v6636_v62  ;;  %6519 = vmatmul.msk.bf16.gmra.mxu3 %vm2918_vm2, %v6673_v63 }
 0x13c   : > { %v3049_v2 = vpop.f32.mrf.mxu0  ;;  %v3625_v3 = vpop.f32.mrf.mxu1 }
 0x13d   : > { %v3814_v6 = vmax.f32 %v3049_v2, %v3625_v3  ;;  %v6564_v3 = vld [vmem:[%s7132_s8 + $0x58] sm:$0xff] }
 0x13f   : > { %5737 = vmatmul.msk.bf16.gmra.mxu0 %vm2918_vm2, %v6561_v0  ;;  %5998 = vmatmul.msk.bf16.gmra.mxu1 %vm2918_vm2, %v6600_v1 }
 0x140   : > { %6259 = vmatmul.msk.bf16.gmra.mxu2 %vm2918_vm2, %v6637_v4  ;;  %6520 = vmatmul.msk.bf16.gmra.mxu3 %vm2918_vm2, %v6674_v5  ;;  %v6603_v4 = vld [vmem:[%s7132_s8 + $0x184] sm:$0xff] }
 0x143   : > { %v4276_v7 = vpop.f32.mrf.mxu2  ;;  %v4927_v8 = vpop.f32.mrf.mxu3 }
 0x144   : > { %v4465_v9 = vmax.f32 %v3814_v6, %v4276_v7  ;;  %v3051_v11 = vpop.f32.mrf.mxu0  ;;  %v3627_v12 = vpop.f32.mrf.mxu1 }
 0x145   : > { %v3815_v16 = vmax.f32 %v3051_v11, %v3627_v12  ;;  %v6677_v11 = vld [vmem:[%s7132_s8 + $0x3dc] sm:$0xff] }
 0x146   : > { %v5116_v13 = vmax.f32 %v4465_v9, %v4927_v8  ;;  %v6640_v9 = vld [vmem:[%s7132_s8 + $0x2b0] sm:$0xff] }
 0x148   : > { %v5195_v14 = vadd.f32 %v7211_v10, %v5116_v13 }
 0x14a   : > { %v5270_v15 = vmax.f32 %v5195_v14, 0.0 }
 0x14b   : > { %v4278_v17 = vpop.f32.mrf.mxu2  ;;  %v4929_v18 = vpop.f32.mrf.mxu3 }
 0x14c   : > { %v5345_v21 = vpack.c.bf16 %v5270_v15, %v5270_v15  ;;  %v4466_v22 = vmax.f32 %v3815_v16, %v4278_v17  ;;  %v3054_v23 = vpop.f32.mrf.mxu0  ;;  %v3630_v24 = vpop.f32.mrf.mxu1 }
 0x14d   : > { %v3816_v29 = vmax.f32 %v3054_v23, %v3630_v24 }
 0x14e   : > { %5421 = vst.msk [vmem:[%s7217_s17] sm:$0xf] %vm5420_vm3, %v5345_v21  ;;  %v5117_v27 = vmax.f32 %v4466_v22, %v4929_v18 }
 0x14f   : > { %5738 = vmatmul.msk.bf16.gmra.mxu0 %vm2918_vm2, %v6562_v19  ;;  %5999 = vmatmul.msk.bf16.gmra.mxu1 %vm2918_vm2, %v6601_v20 }
 0x150   : > { %v5196_v28 = vadd.f32 %v7211_v10, %v5117_v27  ;;  %6260 = vmatmul.msk.bf16.gmra.mxu2 %vm2918_vm2, %v6638_v25  ;;  %6521 = vmatmul.msk.bf16.gmra.mxu3 %vm2918_vm2, %v6675_v26 }
 0x152   : > { %v5271_v30 = vmax.f32 %v5196_v28, 0.0  ;;  %v6565_v28 = vld [vmem:[%s7132_s8 + $0x60] sm:$0xff] }
 0x153   : > { %v4281_v31 = vpop.f32.mrf.mxu2  ;;  %v4932_v32 = vpop.f32.mrf.mxu3 }
 0x154   : > { %v5346_v33 = vpack.c.bf16 %v5271_v30, %v5271_v30  ;;  %v4467_v34 = vmax.f32 %v3816_v29, %v4281_v31  ;;  %v3056_v35 = vpop.f32.mrf.mxu0  ;;  %v3632_v36 = vpop.f32.mrf.mxu1  ;;  %v6604_v29 = vld [vmem:[%s7132_s8 + $0x18c] sm:$0xff] }
 0x155   : > { %v3817_v40 = vmax.f32 %v3056_v35, %v3632_v36  ;;  %v6678_v35 = vld [vmem:[%s7132_s8 + $0x3e4] sm:$0xff] }
 0x156   : > { %5422 = vst.msk [vmem:[%s7217_s17 + $0x4] sm:$0xf] %vm5420_vm3, %v5346_v33  ;;  %v5118_v37 = vmax.f32 %v4467_v34, %v4932_v32  ;;  %v6641_v34 = vld [vmem:[%s7132_s8 + $0x2b8] sm:$0xff] }
 0x158   : > { %v5197_v38 = vadd.f32 %v7211_v10, %v5118_v37 }
 0x15a   : > { %v5272_v39 = vmax.f32 %v5197_v38, 0.0 }
 0x15b   : > { %v4283_v41 = vpop.f32.mrf.mxu2  ;;  %v4934_v42 = vpop.f32.mrf.mxu3 }
 0x15c   : > { %v5347_v45 = vpack.c.bf16 %v5272_v39, %v5272_v39  ;;  %v4468_v46 = vmax.f32 %v3817_v40, %v4283_v41  ;;  %v3059_v47 = vpop.f32.mrf.mxu0  ;;  %v3635_v48 = vpop.f32.mrf.mxu1 }
 0x15d   : > { %v3818_v53 = vmax.f32 %v3059_v47, %v3635_v48 }
 0x15e   : > { %5423 = vst.msk [vmem:[%s7217_s17 + $0x8] sm:$0xf] %vm5420_vm3, %v5347_v45  ;;  %v5119_v51 = vmax.f32 %v4468_v46, %v4934_v42 }
 0x15f   : > { %5739 = vmatmul.msk.bf16.gmra.mxu0 %vm2918_vm2, %v6563_v43  ;;  %6000 = vmatmul.msk.bf16.gmra.mxu1 %vm2918_vm2, %v6602_v44 }
 0x160   : > { %v5198_v52 = vadd.f32 %v7211_v10, %v5119_v51  ;;  %6261 = vmatmul.msk.bf16.gmra.mxu2 %vm2918_vm2, %v6639_v49  ;;  %6522 = vmatmul.msk.bf16.gmra.mxu3 %vm2918_vm2, %v6676_v50 }
 0x162   : > { %v5273_v54 = vmax.f32 %v5198_v52, 0.0  ;;  %v6566_v52 = vld [vmem:[%s7132_s8 + $0x68] sm:$0xff] }
 0x163   : > { %v4286_v55 = vpop.f32.mrf.mxu2  ;;  %v4937_v56 = vpop.f32.mrf.mxu3 }
 0x164   : > { %v5348_v57 = vpack.c.bf16 %v5273_v54, %v5273_v54  ;;  %v4469_v58 = vmax.f32 %v3818_v53, %v4286_v55  ;;  %v3061_v59 = vpop.f32.mrf.mxu0  ;;  %v3637_v60 = vpop.f32.mrf.mxu1  ;;  %v6605_v53 = vld [vmem:[%s7132_s8 + $0x194] sm:$0xff] }
 0x165   : > { %v3819_v0 = vmax.f32 %v3061_v59, %v3637_v60  ;;  %v6679_v59 = vld [vmem:[%s7132_s8 + $0x3ec] sm:$0xff] }
 0x166   : > { %5424 = vst.msk [vmem:[%s7217_s17 + $0xc] sm:$0xf] %vm5420_vm3, %v5348_v57  ;;  %v5120_v61 = vmax.f32 %v4469_v58, %v4937_v56  ;;  %v6642_v58 = vld [vmem:[%s7132_s8 + $0x2c0] sm:$0xff] }
 0x168   : > { %v5199_v62 = vadd.f32 %v7211_v10, %v5120_v61 }
 0x16a   : > { %v5274_v63 = vmax.f32 %v5199_v62, 0.0 }
 0x16b   : > { %v4288_v1 = vpop.f32.mrf.mxu2  ;;  %v4939_v2 = vpop.f32.mrf.mxu3 }
 0x16c   : > { %v5349_v5 = vpack.c.bf16 %v5274_v63, %v5274_v63  ;;  %v4470_v6 = vmax.f32 %v3819_v0, %v4288_v1  ;;  %v3064_v7 = vpop.f32.mrf.mxu0  ;;  %v3640_v8 = vpop.f32.mrf.mxu1 }
 0x16d   : > { %v3820_v14 = vmax.f32 %v3064_v7, %v3640_v8 }
 0x16e   : > { %5425 = vst.msk [vmem:[%s7217_s17 + $0x10] sm:$0xf] %vm5420_vm3, %v5349_v5  ;;  %v5121_v12 = vmax.f32 %v4470_v6, %v4939_v2 }
 0x16f   : > { %5740 = vmatmul.msk.bf16.gmra.mxu0 %vm2918_vm2, %v6564_v3  ;;  %6001 = vmatmul.msk.bf16.gmra.mxu1 %vm2918_vm2, %v6603_v4 }
 0x170   : > { %v5200_v13 = vadd.f32 %v7211_v10, %v5121_v12  ;;  %6262 = vmatmul.msk.bf16.gmra.mxu2 %vm2918_vm2, %v6640_v9  ;;  %6523 = vmatmul.msk.bf16.gmra.mxu3 %vm2918_vm2, %v6677_v11 }
 0x172   : > { %v5275_v15 = vmax.f32 %v5200_v13, 0.0  ;;  %v6567_v13 = vld [vmem:[%s7132_s8 + $0x70] sm:$0xff] }
 0x173   : > { %v4291_v16 = vpop.f32.mrf.mxu2  ;;  %v4942_v17 = vpop.f32.mrf.mxu3 }
 0x174   : > { %v5350_v18 = vpack.c.bf16 %v5275_v15, %v5275_v15  ;;  %v4471_v19 = vmax.f32 %v3820_v14, %v4291_v16  ;;  %v3066_v20 = vpop.f32.mrf.mxu0  ;;  %v3642_v21 = vpop.f32.mrf.mxu1  ;;  %v6606_v14 = vld [vmem:[%s7132_s8 + $0x19c] sm:$0xff] }
 0x175   : > { %v3821_v25 = vmax.f32 %v3066_v20, %v3642_v21  ;;  %v6680_v20 = vld [vmem:[%s7132_s8 + $0x3f4] sm:$0xff] }
 0x176   : > { %5426 = vst.msk [vmem:[%s7217_s17 + $0x14] sm:$0xf] %vm5420_vm3, %v5350_v18  ;;  %v5122_v22 = vmax.f32 %v4471_v19, %v4942_v17  ;;  %v6643_v19 = vld [vmem:[%s7132_s8 + $0x2c8] sm:$0xff] }
 0x178   : > { %v5201_v23 = vadd.f32 %v7211_v10, %v5122_v22 }
 0x17a   : > { %v5276_v24 = vmax.f32 %v5201_v23, 0.0 }
 0x17b   : > { %v4293_v26 = vpop.f32.mrf.mxu2  ;;  %v4944_v27 = vpop.f32.mrf.mxu3 }
 0x17c   : > { %v5351_v30 = vpack.c.bf16 %v5276_v24, %v5276_v24  ;;  %v4472_v31 = vmax.f32 %v3821_v25, %v4293_v26  ;;  %v3069_v32 = vpop.f32.mrf.mxu0  ;;  %v3645_v33 = vpop.f32.mrf.mxu1 }
 0x17d   : > { %v3822_v38 = vmax.f32 %v3069_v32, %v3645_v33 }
 0x17e   : > { %5427 = vst.msk [vmem:[%s7217_s17 + $0x18] sm:$0xf] %vm5420_vm3, %v5351_v30  ;;  %v5123_v36 = vmax.f32 %v4472_v31, %v4944_v27 }
 0x17f   : > { %5741 = vmatmul.msk.bf16.gmra.mxu0 %vm2918_vm2, %v6565_v28  ;;  %6002 = vmatmul.msk.bf16.gmra.mxu1 %vm2918_vm2, %v6604_v29 }
 0x180   : > { %v5202_v37 = vadd.f32 %v7211_v10, %v5123_v36  ;;  %6263 = vmatmul.msk.bf16.gmra.mxu2 %vm2918_vm2, %v6641_v34  ;;  %6524 = vmatmul.msk.bf16.gmra.mxu3 %vm2918_vm2, %v6678_v35 }
 0x182   : > { %v5277_v39 = vmax.f32 %v5202_v37, 0.0  ;;  %v6568_v37 = vld [vmem:[%s7132_s8 + $0x78] sm:$0xff] }
 0x183   : > { %v4296_v40 = vpop.f32.mrf.mxu2  ;;  %v4947_v41 = vpop.f32.mrf.mxu3 }
 0x184   : > { %v5352_v42 = vpack.c.bf16 %v5277_v39, %v5277_v39  ;;  %v4473_v43 = vmax.f32 %v3822_v38, %v4296_v40  ;;  %v3071_v44 = vpop.f32.mrf.mxu0  ;;  %v3647_v45 = vpop.f32.mrf.mxu1  ;;  %v6607_v38 = vld [vmem:[%s7132_s8 + $0x1a4] sm:$0xff] }
 0x185   : > { %v3823_v49 = vmax.f32 %v3071_v44, %v3647_v45  ;;  %v6681_v44 = vld [vmem:[%s7132_s8 + $0x3fc] sm:$0xff] }
 0x186   : > { %5428 = vst.msk [vmem:[%s7217_s17 + $0x1c] sm:$0xf] %vm5420_vm3, %v5352_v42  ;;  %v5124_v46 = vmax.f32 %v4473_v43, %v4947_v41  ;;  %v6644_v43 = vld [vmem:[%s7132_s8 + $0x2d0] sm:$0xff] }
 0x188   : > { %v5203_v47 = vadd.f32 %v7211_v10, %v5124_v46 }
 0x18a   : > { %v5278_v48 = vmax.f32 %v5203_v47, 0.0 }
 0x18b   : > { %v4298_v50 = vpop.f32.mrf.mxu2  ;;  %v4949_v51 = vpop.f32.mrf.mxu3 }
 0x18c   : > { %v5353_v54 = vpack.c.bf16 %v5278_v48, %v5278_v48  ;;  %v4474_v55 = vmax.f32 %v3823_v49, %v4298_v50  ;;  %v3074_v56 = vpop.f32.mrf.mxu0  ;;  %v3650_v57 = vpop.f32.mrf.mxu1 }
 0x18d   : > { %v3824_v62 = vmax.f32 %v3074_v56, %v3650_v57 }
 0x18e   : > { %5429 = vst.msk [vmem:[%s7217_s17 + $0x20] sm:$0xf] %vm5420_vm3, %v5353_v54  ;;  %v5125_v60 = vmax.f32 %v4474_v55, %v4949_v51 }
 0x18f   : > { %5742 = vmatmul.msk.bf16.gmra.mxu0 %vm2918_vm2, %v6566_v52  ;;  %6003 = vmatmul.msk.bf16.gmra.mxu1 %vm2918_vm2, %v6605_v53 }
 0x190   : > { %v5204_v61 = vadd.f32 %v7211_v10, %v5125_v60  ;;  %6264 = vmatmul.msk.bf16.gmra.mxu2 %vm2918_vm2, %v6642_v58  ;;  %6525 = vmatmul.msk.bf16.gmra.mxu3 %vm2918_vm2, %v6679_v59 }
 0x192   : > { %v5279_v63 = vmax.f32 %v5204_v61, 0.0  ;;  %v6569_v61 = vld [vmem:[%s7132_s8 + $0x80] sm:$0xff] }
 0x193   : > { %v4301_v0 = vpop.f32.mrf.mxu2  ;;  %v4952_v1 = vpop.f32.mrf.mxu3 }
 0x194   : > { %v5354_v2 = vpack.c.bf16 %v5279_v63, %v5279_v63  ;;  %v4475_v3 = vmax.f32 %v3824_v62, %v4301_v0  ;;  %v3076_v4 = vpop.f32.mrf.mxu0  ;;  %v3652_v5 = vpop.f32.mrf.mxu1  ;;  %v6608_v62 = vld [vmem:[%s7132_s8 + $0x1ac] sm:$0xff] }
 0x195   : > { %v3825_v9 = vmax.f32 %v3076_v4, %v3652_v5  ;;  %v6682_v4 = vld [vmem:[%s7132_s8 + $0x404] sm:$0xff] }
 0x196   : > { %5430 = vst.msk [vmem:[%s7217_s17 + $0x24] sm:$0xf] %vm5420_vm3, %v5354_v2  ;;  %v5126_v6 = vmax.f32 %v4475_v3, %v4952_v1  ;;  %v6645_v3 = vld [vmem:[%s7132_s8 + $0x2d8] sm:$0xff] }
 0x198   : > { %v5205_v7 = vadd.f32 %v7211_v10, %v5126_v6 }
 0x19a   : > { %v5280_v8 = vmax.f32 %v5205_v7, 0.0 }
 0x19b   : > { %v4303_v11 = vpop.f32.mrf.mxu2  ;;  %v4954_v12 = vpop.f32.mrf.mxu3 }
 0x19c   : > { %v5355_v15 = vpack.c.bf16 %v5280_v8, %v5280_v8  ;;  %v4476_v16 = vmax.f32 %v3825_v9, %v4303_v11  ;;  %v3079_v17 = vpop.f32.mrf.mxu0  ;;  %v3655_v18 = vpop.f32.mrf.mxu1 }
 0x19d   : > { %v3826_v23 = vmax.f32 %v3079_v17, %v3655_v18 }
 0x19e   : > { %5431 = vst.msk [vmem:[%s7217_s17 + $0x28] sm:$0xf] %vm5420_vm3, %v5355_v15  ;;  %v5127_v21 = vmax.f32 %v4476_v16, %v4954_v12 }
 0x19f   : > { %5743 = vmatmul.msk.bf16.gmra.mxu0 %vm2918_vm2, %v6567_v13  ;;  %6004 = vmatmul.msk.bf16.gmra.mxu1 %vm2918_vm2, %v6606_v14 }
 0x1a0   : > { %v5206_v22 = vadd.f32 %v7211_v10, %v5127_v21  ;;  %6265 = vmatmul.msk.bf16.gmra.mxu2 %vm2918_vm2, %v6643_v19  ;;  %6526 = vmatmul.msk.bf16.gmra.mxu3 %vm2918_vm2, %v6680_v20 }
 0x1a2   : > { %v5281_v24 = vmax.f32 %v5206_v22, 0.0  ;;  %v6570_v22 = vld [vmem:[%s7132_s8 + $0x88] sm:$0xff] }
 0x1a3   : > { %v4306_v25 = vpop.f32.mrf.mxu2  ;;  %v4957_v26 = vpop.f32.mrf.mxu3 }
 0x1a4   : > { %v5356_v27 = vpack.c.bf16 %v5281_v24, %v5281_v24  ;;  %v4477_v28 = vmax.f32 %v3826_v23, %v4306_v25  ;;  %v3081_v29 = vpop.f32.mrf.mxu0  ;;  %v3657_v30 = vpop.f32.mrf.mxu1  ;;  %v6609_v23 = vld [vmem:[%s7132_s8 + $0x1b4] sm:$0xff] }
 0x1a5   : > { %v3827_v34 = vmax.f32 %v3081_v29, %v3657_v30  ;;  %v6683_v29 = vld [vmem:[%s7132_s8 + $0x40c] sm:$0xff] }
 0x1a6   : > { %5432 = vst.msk [vmem:[%s7217_s17 + $0x2c] sm:$0xf] %vm5420_vm3, %v5356_v27  ;;  %v5128_v31 = vmax.f32 %v4477_v28, %v4957_v26  ;;  %v6646_v28 = vld [vmem:[%s7132_s8 + $0x2e0] sm:$0xff] }
 0x1a8   : > { %v5207_v32 = vadd.f32 %v7211_v10, %v5128_v31 }
 0x1aa   : > { %v5282_v33 = vmax.f32 %v5207_v32, 0.0 }
 0x1ab   : > { %v4308_v35 = vpop.f32.mrf.mxu2  ;;  %v4959_v36 = vpop.f32.mrf.mxu3 }
 0x1ac   : > { %v5357_v39 = vpack.c.bf16 %v5282_v33, %v5282_v33  ;;  %v4478_v40 = vmax.f32 %v3827_v34, %v4308_v35  ;;  %v3084_v41 = vpop.f32.mrf.mxu0  ;;  %v3660_v42 = vpop.f32.mrf.mxu1 }
 0x1ad   : > { %v3828_v47 = vmax.f32 %v3084_v41, %v3660_v42 }
 0x1ae   : > { %5433 = vst.msk [vmem:[%s7217_s17 + $0x30] sm:$0xf] %vm5420_vm3, %v5357_v39  ;;  %v5129_v45 = vmax.f32 %v4478_v40, %v4959_v36 }
 0x1af   : > { %5744 = vmatmul.msk.bf16.gmra.mxu0 %vm2918_vm2, %v6568_v37  ;;  %6005 = vmatmul.msk.bf16.gmra.mxu1 %vm2918_vm2, %v6607_v38 }
 0x1b0   : > { %v5208_v46 = vadd.f32 %v7211_v10, %v5129_v45  ;;  %6266 = vmatmul.msk.bf16.gmra.mxu2 %vm2918_vm2, %v6644_v43  ;;  %6527 = vmatmul.msk.bf16.gmra.mxu3 %vm2918_vm2, %v6681_v44 }
 0x1b2   : > { %v5283_v48 = vmax.f32 %v5208_v46, 0.0  ;;  %v6571_v46 = vld [vmem:[%s7132_s8 + $0x90] sm:$0xff] }
 0x1b3   : > { %v4311_v49 = vpop.f32.mrf.mxu2  ;;  %v4962_v50 = vpop.f32.mrf.mxu3 }
 0x1b4   : > { %v5358_v51 = vpack.c.bf16 %v5283_v48, %v5283_v48  ;;  %v4479_v52 = vmax.f32 %v3828_v47, %v4311_v49  ;;  %v3086_v53 = vpop.f32.mrf.mxu0  ;;  %v3662_v54 = vpop.f32.mrf.mxu1  ;;  %v6610_v47 = vld [vmem:[%s7132_s8 + $0x1bc] sm:$0xff] }
 0x1b5   : > { %v3829_v58 = vmax.f32 %v3086_v53, %v3662_v54  ;;  %v6684_v53 = vld [vmem:[%s7132_s8 + $0x414] sm:$0xff] }
 0x1b6   : > { %5434 = vst.msk [vmem:[%s7217_s17 + $0x34] sm:$0xf] %vm5420_vm3, %v5358_v51  ;;  %v5130_v55 = vmax.f32 %v4479_v52, %v4962_v50  ;;  %v6647_v52 = vld [vmem:[%s7132_s8 + $0x2e8] sm:$0xff] }
 0x1b8   : > { %v5209_v56 = vadd.f32 %v7211_v10, %v5130_v55 }
 0x1ba   : > { %v5284_v57 = vmax.f32 %v5209_v56, 0.0 }
 0x1bb   : > { %v4313_v59 = vpop.f32.mrf.mxu2  ;;  %v4964_v60 = vpop.f32.mrf.mxu3 }
 0x1bc   : > { %v5359_v63 = vpack.c.bf16 %v5284_v57, %v5284_v57  ;;  %v4480_v0 = vmax.f32 %v3829_v58, %v4313_v59  ;;  %v3089_v1 = vpop.f32.mrf.mxu0  ;;  %v3665_v2 = vpop.f32.mrf.mxu1 }
 0x1bd   : > { %v3830_v7 = vmax.f32 %v3089_v1, %v3665_v2 }
 0x1be   : > { %5435 = vst.msk [vmem:[%s7217_s17 + $0x38] sm:$0xf] %vm5420_vm3, %v5359_v63  ;;  %v5131_v5 = vmax.f32 %v4480_v0, %v4964_v60 }
 0x1bf   : > { %5745 = vmatmul.msk.bf16.gmra.mxu0 %vm2918_vm2, %v6569_v61  ;;  %6006 = vmatmul.msk.bf16.gmra.mxu1 %vm2918_vm2, %v6608_v62 }
 0x1c0   : > { %v5210_v6 = vadd.f32 %v7211_v10, %v5131_v5  ;;  %6267 = vmatmul.msk.bf16.gmra.mxu2 %vm2918_vm2, %v6645_v3  ;;  %6528 = vmatmul.msk.bf16.gmra.mxu3 %vm2918_vm2, %v6682_v4 }
 0x1c2   : > { %v5285_v8 = vmax.f32 %v5210_v6, 0.0  ;;  %v6572_v6 = vld [vmem:[%s7132_s8 + $0x98] sm:$0xff] }
 0x1c3   : > { %v4316_v9 = vpop.f32.mrf.mxu2  ;;  %v4967_v11 = vpop.f32.mrf.mxu3 }
 0x1c4   : > { %v5360_v12 = vpack.c.bf16 %v5285_v8, %v5285_v8  ;;  %v4481_v13 = vmax.f32 %v3830_v7, %v4316_v9  ;;  %v3091_v14 = vpop.f32.mrf.mxu0  ;;  %v3667_v15 = vpop.f32.mrf.mxu1  ;;  %v6611_v7 = vld [vmem:[%s7132_s8 + $0x1c4] sm:$0xff] }
 0x1c5   : > { %v3831_v19 = vmax.f32 %v3091_v14, %v3667_v15  ;;  %v6685_v14 = vld [vmem:[%s7132_s8 + $0x41c] sm:$0xff] }
 0x1c6   : > { %5436 = vst.msk [vmem:[%s7217_s17 + $0x3c] sm:$0xf] %vm5420_vm3, %v5360_v12  ;;  %v5132_v16 = vmax.f32 %v4481_v13, %v4967_v11  ;;  %v6648_v13 = vld [vmem:[%s7132_s8 + $0x2f0] sm:$0xff] }
 0x1c8   : > { %v5211_v17 = vadd.f32 %v7211_v10, %v5132_v16 }
 0x1ca   : > { %v5286_v18 = vmax.f32 %v5211_v17, 0.0 }
 0x1cb   : > { %v4318_v20 = vpop.f32.mrf.mxu2  ;;  %v4969_v21 = vpop.f32.mrf.mxu3 }
 0x1cc   : > { %v5361_v24 = vpack.c.bf16 %v5286_v18, %v5286_v18  ;;  %v4482_v25 = vmax.f32 %v3831_v19, %v4318_v20  ;;  %v3094_v26 = vpop.f32.mrf.mxu0  ;;  %v3670_v27 = vpop.f32.mrf.mxu1 }
 0x1cd   : > { %v3832_v32 = vmax.f32 %v3094_v26, %v3670_v27 }
 0x1ce   : > { %5437 = vst.msk [vmem:[%s7217_s17 + $0x40] sm:$0xf] %vm5420_vm3, %v5361_v24  ;;  %v5133_v30 = vmax.f32 %v4482_v25, %v4969_v21 }
 0x1cf   : > { %5746 = vmatmul.msk.bf16.gmra.mxu0 %vm2918_vm2, %v6570_v22  ;;  %6007 = vmatmul.msk.bf16.gmra.mxu1 %vm2918_vm2, %v6609_v23 }
 0x1d0   : > { %v5212_v31 = vadd.f32 %v7211_v10, %v5133_v30  ;;  %6268 = vmatmul.msk.bf16.gmra.mxu2 %vm2918_vm2, %v6646_v28  ;;  %6529 = vmatmul.msk.bf16.gmra.mxu3 %vm2918_vm2, %v6683_v29 }
 0x1d2   : > { %v5287_v33 = vmax.f32 %v5212_v31, 0.0  ;;  %v6573_v31 = vld [vmem:[%s7132_s8 + $0xa0] sm:$0xff] }
 0x1d3   : > { %v4321_v34 = vpop.f32.mrf.mxu2  ;;  %v4972_v35 = vpop.f32.mrf.mxu3 }
 0x1d4   : > { %v5362_v36 = vpack.c.bf16 %v5287_v33, %v5287_v33  ;;  %v4483_v37 = vmax.f32 %v3832_v32, %v4321_v34  ;;  %v3096_v38 = vpop.f32.mrf.mxu0  ;;  %v3672_v39 = vpop.f32.mrf.mxu1  ;;  %v6612_v32 = vld [vmem:[%s7132_s8 + $0x1cc] sm:$0xff] }
 0x1d5   : > { %v3833_v43 = vmax.f32 %v3096_v38, %v3672_v39  ;;  %v6686_v38 = vld [vmem:[%s7132_s8 + $0x424] sm:$0xff] }
 0x1d6   : > { %5438 = vst.msk [vmem:[%s7217_s17 + $0x44] sm:$0xf] %vm5420_vm3, %v5362_v36  ;;  %v5134_v40 = vmax.f32 %v4483_v37, %v4972_v35  ;;  %v6649_v37 = vld [vmem:[%s7132_s8 + $0x2f8] sm:$0xff] }
 0x1d8   : > { %v5213_v41 = vadd.f32 %v7211_v10, %v5134_v40 }
 0x1da   : > { %v5288_v42 = vmax.f32 %v5213_v41, 0.0 }
 0x1db   : > { %v4323_v44 = vpop.f32.mrf.mxu2  ;;  %v4974_v45 = vpop.f32.mrf.mxu3 }
 0x1dc   : > { %v5363_v48 = vpack.c.bf16 %v5288_v42, %v5288_v42  ;;  %v4484_v49 = vmax.f32 %v3833_v43, %v4323_v44  ;;  %v3099_v50 = vpop.f32.mrf.mxu0  ;;  %v3675_v51 = vpop.f32.mrf.mxu1 }
 0x1dd   : > { %v3834_v56 = vmax.f32 %v3099_v50, %v3675_v51 }
 0x1de   : > { %5439 = vst.msk [vmem:[%s7217_s17 + $0x48] sm:$0xf] %vm5420_vm3, %v5363_v48  ;;  %v5135_v54 = vmax.f32 %v4484_v49, %v4974_v45 }
 0x1df   : > { %5747 = vmatmul.msk.bf16.gmra.mxu0 %vm2918_vm2, %v6571_v46  ;;  %6008 = vmatmul.msk.bf16.gmra.mxu1 %vm2918_vm2, %v6610_v47 }
 0x1e0   : > { %v5214_v55 = vadd.f32 %v7211_v10, %v5135_v54  ;;  %6269 = vmatmul.msk.bf16.gmra.mxu2 %vm2918_vm2, %v6647_v52  ;;  %6530 = vmatmul.msk.bf16.gmra.mxu3 %vm2918_vm2, %v6684_v53 }
 0x1e2   : > { %v5289_v57 = vmax.f32 %v5214_v55, 0.0  ;;  %v6574_v55 = vld [vmem:[%s7132_s8 + $0xa8] sm:$0xff] }
 0x1e3   : > { %v4326_v58 = vpop.f32.mrf.mxu2  ;;  %v4977_v59 = vpop.f32.mrf.mxu3 }
 0x1e4   : > { %v5364_v60 = vpack.c.bf16 %v5289_v57, %v5289_v57  ;;  %v4485_v61 = vmax.f32 %v3834_v56, %v4326_v58  ;;  %v3101_v62 = vpop.f32.mrf.mxu0  ;;  %v3677_v63 = vpop.f32.mrf.mxu1  ;;  %v6613_v56 = vld [vmem:[%s7132_s8 + $0x1d4] sm:$0xff] }
 0x1e5   : > { %v3835_v3 = vmax.f32 %v3101_v62, %v3677_v63  ;;  %v6687_v62 = vld [vmem:[%s7132_s8 + $0x42c] sm:$0xff] }
 0x1e6   : > { %5440 = vst.msk [vmem:[%s7217_s17 + $0x4c] sm:$0xf] %vm5420_vm3, %v5364_v60  ;;  %v5136_v0 = vmax.f32 %v4485_v61, %v4977_v59  ;;  %v6650_v61 = vld [vmem:[%s7132_s8 + $0x300] sm:$0xff] }
 0x1e8   : > { %v5215_v1 = vadd.f32 %v7211_v10, %v5136_v0 }
 0x1ea   : > { %v5290_v2 = vmax.f32 %v5215_v1, 0.0 }
 0x1eb   : > { %v4328_v4 = vpop.f32.mrf.mxu2  ;;  %v4979_v5 = vpop.f32.mrf.mxu3 }
 0x1ec   : > { %v5365_v8 = vpack.c.bf16 %v5290_v2, %v5290_v2  ;;  %v4486_v9 = vmax.f32 %v3835_v3, %v4328_v4  ;;  %v3104_v11 = vpop.f32.mrf.mxu0  ;;  %v3680_v12 = vpop.f32.mrf.mxu1 }
 0x1ed   : > { %v3836_v17 = vmax.f32 %v3104_v11, %v3680_v12 }
 0x1ee   : > { %5441 = vst.msk [vmem:[%s7217_s17 + $0x50] sm:$0xf] %vm5420_vm3, %v5365_v8  ;;  %v5137_v15 = vmax.f32 %v4486_v9, %v4979_v5 }
 0x1ef   : > { %5748 = vmatmul.msk.bf16.gmra.mxu0 %vm2918_vm2, %v6572_v6  ;;  %6009 = vmatmul.msk.bf16.gmra.mxu1 %vm2918_vm2, %v6611_v7 }
 0x1f0   : > { %v5216_v16 = vadd.f32 %v7211_v10, %v5137_v15  ;;  %6270 = vmatmul.msk.bf16.gmra.mxu2 %vm2918_vm2, %v6648_v13  ;;  %6531 = vmatmul.msk.bf16.gmra.mxu3 %vm2918_vm2, %v6685_v14 }
 0x1f2   : > { %v5291_v18 = vmax.f32 %v5216_v16, 0.0  ;;  %v6575_v16 = vld [vmem:[%s7132_s8 + $0xb0] sm:$0xff] }
 0x1f3   : > { %v4331_v19 = vpop.f32.mrf.mxu2  ;;  %v4982_v20 = vpop.f32.mrf.mxu3 }
 0x1f4   : > { %v5366_v21 = vpack.c.bf16 %v5291_v18, %v5291_v18  ;;  %v4487_v22 = vmax.f32 %v3836_v17, %v4331_v19  ;;  %v3106_v23 = vpop.f32.mrf.mxu0  ;;  %v3682_v24 = vpop.f32.mrf.mxu1  ;;  %v6614_v17 = vld [vmem:[%s7132_s8 + $0x1dc] sm:$0xff] }
 0x1f5   : > { %v3837_v28 = vmax.f32 %v3106_v23, %v3682_v24  ;;  %v6688_v23 = vld [vmem:[%s7132_s8 + $0x434] sm:$0xff] }
 0x1f6   : > { %5442 = vst.msk [vmem:[%s7217_s17 + $0x54] sm:$0xf] %vm5420_vm3, %v5366_v21  ;;  %v5138_v25 = vmax.f32 %v4487_v22, %v4982_v20  ;;  %v6651_v22 = vld [vmem:[%s7132_s8 + $0x308] sm:$0xff] }
 0x1f8   : > { %v5217_v26 = vadd.f32 %v7211_v10, %v5138_v25 }
 0x1fa   : > { %v5292_v27 = vmax.f32 %v5217_v26, 0.0 }
 0x1fb   : > { %v4333_v29 = vpop.f32.mrf.mxu2  ;;  %v4984_v30 = vpop.f32.mrf.mxu3 }
 0x1fc   : > { %v5367_v33 = vpack.c.bf16 %v5292_v27, %v5292_v27  ;;  %v4488_v34 = vmax.f32 %v3837_v28, %v4333_v29  ;;  %v3109_v35 = vpop.f32.mrf.mxu0  ;;  %v3685_v36 = vpop.f32.mrf.mxu1 }
 0x1fd   : > { %v3838_v41 = vmax.f32 %v3109_v35, %v3685_v36 }
 0x1fe   : > { %5443 = vst.msk [vmem:[%s7217_s17 + $0x58] sm:$0xf] %vm5420_vm3, %v5367_v33  ;;  %v5139_v39 = vmax.f32 %v4488_v34, %v4984_v30 }
 0x1ff   : > { %5749 = vmatmul.msk.bf16.gmra.mxu0 %vm2918_vm2, %v6573_v31  ;;  %6010 = vmatmul.msk.bf16.gmra.mxu1 %vm2918_vm2, %v6612_v32 }
 0x200   : > { %v5218_v40 = vadd.f32 %v7211_v10, %v5139_v39  ;;  %6271 = vmatmul.msk.bf16.gmra.mxu2 %vm2918_vm2, %v6649_v37  ;;  %6532 = vmatmul.msk.bf16.gmra.mxu3 %vm2918_vm2, %v6686_v38 }
 0x202   : > { %v5293_v42 = vmax.f32 %v5218_v40, 0.0  ;;  %v6576_v40 = vld [vmem:[%s7132_s8 + $0xb8] sm:$0xff] }
 0x203   : > { %v4336_v43 = vpop.f32.mrf.mxu2  ;;  %v4987_v44 = vpop.f32.mrf.mxu3 }
 0x204   : > { %v5368_v45 = vpack.c.bf16 %v5293_v42, %v5293_v42  ;;  %v4489_v46 = vmax.f32 %v3838_v41, %v4336_v43  ;;  %v3111_v47 = vpop.f32.mrf.mxu0  ;;  %v3687_v48 = vpop.f32.mrf.mxu1  ;;  %v6615_v41 = vld [vmem:[%s7132_s8 + $0x1e4] sm:$0xff] }
 0x205   : > { %v3839_v52 = vmax.f32 %v3111_v47, %v3687_v48  ;;  %v6689_v47 = vld [vmem:[%s7132_s8 + $0x43c] sm:$0xff] }
 0x206   : > { %5444 = vst.msk [vmem:[%s7217_s17 + $0x5c] sm:$0xf] %vm5420_vm3, %v5368_v45  ;;  %v5140_v49 = vmax.f32 %v4489_v46, %v4987_v44  ;;  %v6652_v46 = vld [vmem:[%s7132_s8 + $0x310] sm:$0xff] }
 0x208   : > { %v5219_v50 = vadd.f32 %v7211_v10, %v5140_v49 }
 0x20a   : > { %v5294_v51 = vmax.f32 %v5219_v50, 0.0 }
 0x20b   : > { %v4338_v53 = vpop.f32.mrf.mxu2  ;;  %v4989_v54 = vpop.f32.mrf.mxu3 }
 0x20c   : > { %v5369_v57 = vpack.c.bf16 %v5294_v51, %v5294_v51  ;;  %v4490_v58 = vmax.f32 %v3839_v52, %v4338_v53  ;;  %v3114_v59 = vpop.f32.mrf.mxu0  ;;  %v3690_v60 = vpop.f32.mrf.mxu1 }
 0x20d   : > { %v3840_v1 = vmax.f32 %v3114_v59, %v3690_v60 }
 0x20e   : > { %5445 = vst.msk [vmem:[%s7217_s17 + $0x60] sm:$0xf] %vm5420_vm3, %v5369_v57  ;;  %v5141_v63 = vmax.f32 %v4490_v58, %v4989_v54 }
 0x20f   : > { %5750 = vmatmul.msk.bf16.gmra.mxu0 %vm2918_vm2, %v6574_v55  ;;  %6011 = vmatmul.msk.bf16.gmra.mxu1 %vm2918_vm2, %v6613_v56 }
 0x210   : > { %v5220_v0 = vadd.f32 %v7211_v10, %v5141_v63  ;;  %6272 = vmatmul.msk.bf16.gmra.mxu2 %vm2918_vm2, %v6650_v61  ;;  %6533 = vmatmul.msk.bf16.gmra.mxu3 %vm2918_vm2, %v6687_v62 }
 0x212   : > { %v5295_v2 = vmax.f32 %v5220_v0, 0.0  ;;  %v6577_v0 = vld [vmem:[%s7132_s8 + $0xc0] sm:$0xff] }
 0x213   : > { %v4341_v3 = vpop.f32.mrf.mxu2  ;;  %v4992_v4 = vpop.f32.mrf.mxu3 }
 0x214   : > { %v5370_v5 = vpack.c.bf16 %v5295_v2, %v5295_v2  ;;  %v4491_v6 = vmax.f32 %v3840_v1, %v4341_v3  ;;  %v3116_v7 = vpop.f32.mrf.mxu0  ;;  %v3692_v8 = vpop.f32.mrf.mxu1  ;;  %v6616_v1 = vld [vmem:[%s7132_s8 + $0x1ec] sm:$0xff] }
 0x215   : > { %v3841_v13 = vmax.f32 %v3116_v7, %v3692_v8  ;;  %v6690_v7 = vld [vmem:[%s7132_s8 + $0x444] sm:$0xff] }
 0x216   : > { %5446 = vst.msk [vmem:[%s7217_s17 + $0x64] sm:$0xf] %vm5420_vm3, %v5370_v5  ;;  %v5142_v9 = vmax.f32 %v4491_v6, %v4992_v4  ;;  %v6653_v6 = vld [vmem:[%s7132_s8 + $0x318] sm:$0xff] }
 0x218   : > { %v5221_v11 = vadd.f32 %v7211_v10, %v5142_v9 }
 0x21a   : > { %v5296_v12 = vmax.f32 %v5221_v11, 0.0 }
 0x21b   : > { %v4343_v14 = vpop.f32.mrf.mxu2  ;;  %v4994_v15 = vpop.f32.mrf.mxu3 }
 0x21c   : > { %v5371_v18 = vpack.c.bf16 %v5296_v12, %v5296_v12  ;;  %v4492_v19 = vmax.f32 %v3841_v13, %v4343_v14  ;;  %v3119_v20 = vpop.f32.mrf.mxu0  ;;  %v3695_v21 = vpop.f32.mrf.mxu1 }
 0x21d   : > { %v3842_v26 = vmax.f32 %v3119_v20, %v3695_v21 }
 0x21e   : > { %5447 = vst.msk [vmem:[%s7217_s17 + $0x68] sm:$0xf] %vm5420_vm3, %v5371_v18  ;;  %v5143_v24 = vmax.f32 %v4492_v19, %v4994_v15 }
 0x21f   : > { %5751 = vmatmul.msk.bf16.gmra.mxu0 %vm2918_vm2, %v6575_v16  ;;  %6012 = vmatmul.msk.bf16.gmra.mxu1 %vm2918_vm2, %v6614_v17 }
 0x220   : > { %v5222_v25 = vadd.f32 %v7211_v10, %v5143_v24  ;;  %6273 = vmatmul.msk.bf16.gmra.mxu2 %vm2918_vm2, %v6651_v22  ;;  %6534 = vmatmul.msk.bf16.gmra.mxu3 %vm2918_vm2, %v6688_v23 }
 0x222   : > { %v5297_v27 = vmax.f32 %v5222_v25, 0.0  ;;  %v6578_v25 = vld [vmem:[%s7132_s8 + $0xc8] sm:$0xff] }
 0x223   : > { %v4346_v28 = vpop.f32.mrf.mxu2  ;;  %v4997_v29 = vpop.f32.mrf.mxu3 }
 0x224   : > { %v5372_v30 = vpack.c.bf16 %v5297_v27, %v5297_v27  ;;  %v4493_v31 = vmax.f32 %v3842_v26, %v4346_v28  ;;  %v3121_v32 = vpop.f32.mrf.mxu0  ;;  %v3697_v33 = vpop.f32.mrf.mxu1  ;;  %v6617_v26 = vld [vmem:[%s7132_s8 + $0x1f4] sm:$0xff] }
 0x225   : > { %v3843_v37 = vmax.f32 %v3121_v32, %v3697_v33  ;;  %v6691_v32 = vld [vmem:[%s7132_s8 + $0x44c] sm:$0xff] }
 0x226   : > { %5448 = vst.msk [vmem:[%s7217_s17 + $0x6c] sm:$0xf] %vm5420_vm3, %v5372_v30  ;;  %v5144_v34 = vmax.f32 %v4493_v31, %v4997_v29  ;;  %v6654_v31 = vld [vmem:[%s7132_s8 + $0x320] sm:$0xff] }
 0x228   : > { %v5223_v35 = vadd.f32 %v7211_v10, %v5144_v34 }
 0x22a   : > { %v5298_v36 = vmax.f32 %v5223_v35, 0.0 }
 0x22b   : > { %v4348_v38 = vpop.f32.mrf.mxu2  ;;  %v4999_v39 = vpop.f32.mrf.mxu3 }
 0x22c   : > { %v5373_v42 = vpack.c.bf16 %v5298_v36, %v5298_v36  ;;  %v4494_v43 = vmax.f32 %v3843_v37, %v4348_v38  ;;  %v3124_v44 = vpop.f32.mrf.mxu0  ;;  %v3700_v45 = vpop.f32.mrf.mxu1 }
 0x22d   : > { %v3844_v50 = vmax.f32 %v3124_v44, %v3700_v45 }
 0x22e   : > { %5449 = vst.msk [vmem:[%s7217_s17 + $0x70] sm:$0xf] %vm5420_vm3, %v5373_v42  ;;  %v5145_v48 = vmax.f32 %v4494_v43, %v4999_v39  ;;  %v7459_v43 = vld [vmem:[%s7692_s2] ss:$0 sm:$0xff] }
 0x22f   : > { %5752 = vmatmul.msk.bf16.gmra.mxu0 %vm2918_vm2, %v6576_v40  ;;  %6013 = vmatmul.msk.bf16.gmra.mxu1 %vm2918_vm2, %v6615_v41 }
 0x230   : > { %v5224_v49 = vadd.f32 %v7211_v10, %v5145_v48  ;;  %6274 = vmatmul.msk.bf16.gmra.mxu2 %vm2918_vm2, %v6652_v46  ;;  %6535 = vmatmul.msk.bf16.gmra.mxu3 %vm2918_vm2, %v6689_v47 }
 0x232   : > { %v5299_v51 = vmax.f32 %v5224_v49, 0.0  ;;  %v6579_v49 = vld [vmem:[%s7132_s8 + $0xd0] sm:$0xff] }
 0x233   : > { %v4351_v52 = vpop.f32.mrf.mxu2  ;;  %v5002_v53 = vpop.f32.mrf.mxu3 }
 0x234   : > { %v5374_v54 = vpack.c.bf16 %v5299_v51, %v5299_v51  ;;  %v4495_v55 = vmax.f32 %v3844_v50, %v4351_v52  ;;  %v3126_v56 = vpop.f32.mrf.mxu0  ;;  %v3702_v57 = vpop.f32.mrf.mxu1  ;;  %v6618_v50 = vld [vmem:[%s7132_s8 + $0x1fc] sm:$0xff] }
 0x235   : > { %v3845_v61 = vmax.f32 %v3126_v56, %v3702_v57  ;;  %v6692_v56 = vld [vmem:[%s7132_s8 + $0x454] sm:$0xff] }
 0x236   : > { %5450 = vst.msk [vmem:[%s7217_s17 + $0x74] sm:$0xf] %vm5420_vm3, %v5374_v54  ;;  %v5146_v58 = vmax.f32 %v4495_v55, %v5002_v53  ;;  %v6655_v55 = vld [vmem:[%s7132_s8 + $0x328] sm:$0xff] }
 0x238   : > { %v5225_v59 = vadd.f32 %v7211_v10, %v5146_v58 }
 0x23a   : > { %v5300_v60 = vmax.f32 %v5225_v59, 0.0 }
 0x23b   : > { %v4353_v62 = vpop.f32.mrf.mxu2  ;;  %v5004_v63 = vpop.f32.mrf.mxu3 }
 0x23c   : > { %v5375_v2 = vpack.c.bf16 %v5300_v60, %v5300_v60  ;;  %v4496_v3 = vmax.f32 %v3845_v61, %v4353_v62  ;;  %v3129_v4 = vpop.f32.mrf.mxu0  ;;  %v3705_v5 = vpop.f32.mrf.mxu1 }
 0x23d   : > { %v3846_v11 = vmax.f32 %v3129_v4, %v3705_v5 }
 0x23e   : > { %5451 = vst.msk [vmem:[%s7217_s17 + $0x78] sm:$0xf] %vm5420_vm3, %v5375_v2  ;;  %v5147_v8 = vmax.f32 %v4496_v3, %v5004_v63 }
 0x23f   : > { %5753 = vmatmul.msk.bf16.gmra.mxu0 %vm2918_vm2, %v6577_v0  ;;  %6014 = vmatmul.msk.bf16.gmra.mxu1 %vm2918_vm2, %v6616_v1 }
 0x240   : > { %v5226_v9 = vadd.f32 %v7211_v10, %v5147_v8  ;;  %6275 = vmatmul.msk.bf16.gmra.mxu2 %vm2918_vm2, %v6653_v6  ;;  %6536 = vmatmul.msk.bf16.gmra.mxu3 %vm2918_vm2, %v6690_v7 }
 0x242   : > { %v5301_v12 = vmax.f32 %v5226_v9, 0.0  ;;  %v6580_v9 = vld [vmem:[%s7132_s8 + $0xd8] sm:$0xff] }
 0x243   : > { %v4356_v13 = vpop.f32.mrf.mxu2  ;;  %v5007_v14 = vpop.f32.mrf.mxu3 }
 0x244   : > { %v5376_v15 = vpack.c.bf16 %v5301_v12, %v5301_v12  ;;  %v4497_v16 = vmax.f32 %v3846_v11, %v4356_v13  ;;  %v3131_v17 = vpop.f32.mrf.mxu0  ;;  %v3707_v18 = vpop.f32.mrf.mxu1  ;;  %v6619_v11 = vld [vmem:[%s7132_s8 + $0x204] sm:$0xff] }
 0x245   : > { %v3847_v22 = vmax.f32 %v3131_v17, %v3707_v18  ;;  %v6693_v17 = vld [vmem:[%s7132_s8 + $0x45c] sm:$0xff] }
 0x246   : > { %5452 = vst.msk [vmem:[%s7217_s17 + $0x7c] sm:$0xf] %vm5420_vm3, %v5376_v15  ;;  %v5148_v19 = vmax.f32 %v4497_v16, %v5007_v14  ;;  %v6656_v16 = vld [vmem:[%s7132_s8 + $0x330] sm:$0xff] }
 0x248   : > { %v5227_v20 = vadd.f32 %v7211_v10, %v5148_v19 }
 0x24a   : > { %v5302_v21 = vmax.f32 %v5227_v20, 0.0 }
 0x24b   : > { %v4358_v23 = vpop.f32.mrf.mxu2  ;;  %v5009_v24 = vpop.f32.mrf.mxu3 }
 0x24c   : > { %v5377_v27 = vpack.c.bf16 %v5302_v21, %v5302_v21  ;;  %v4498_v28 = vmax.f32 %v3847_v22, %v4358_v23  ;;  %v3134_v29 = vpop.f32.mrf.mxu0  ;;  %v3710_v30 = vpop.f32.mrf.mxu1 }
 0x24d   : > { %v3848_v35 = vmax.f32 %v3134_v29, %v3710_v30 }
 0x24e   : > { %5453 = vst.msk [vmem:[%s7217_s17 + $0x80] sm:$0xf] %vm5420_vm3, %v5377_v27  ;;  %v5149_v33 = vmax.f32 %v4498_v28, %v5009_v24 }
 0x24f   : > { %5754 = vmatmul.msk.bf16.gmra.mxu0 %vm2918_vm2, %v6578_v25  ;;  %6015 = vmatmul.msk.bf16.gmra.mxu1 %vm2918_vm2, %v6617_v26 }
 0x250   : > { %v5228_v34 = vadd.f32 %v7211_v10, %v5149_v33  ;;  %6276 = vmatmul.msk.bf16.gmra.mxu2 %vm2918_vm2, %v6654_v31  ;;  %6537 = vmatmul.msk.bf16.gmra.mxu3 %vm2918_vm2, %v6691_v32 }
 0x252   : > { %v5303_v36 = vmax.f32 %v5228_v34, 0.0  ;;  %v6581_v34 = vld [vmem:[%s7132_s8 + $0xe0] sm:$0xff] }
 0x253   : > { %v4361_v37 = vpop.f32.mrf.mxu2  ;;  %v5012_v38 = vpop.f32.mrf.mxu3 }
 0x254   : > { %v5378_v39 = vpack.c.bf16 %v5303_v36, %v5303_v36  ;;  %v4499_v40 = vmax.f32 %v3848_v35, %v4361_v37  ;;  %v3136_v41 = vpop.f32.mrf.mxu0  ;;  %v3712_v42 = vpop.f32.mrf.mxu1  ;;  %v6620_v35 = vld [vmem:[%s7132_s8 + $0x20c] sm:$0xff] }
 0x255   : > { %v3849_v46 = vmax.f32 %v3136_v41, %v3712_v42  ;;  %v6694_v41 = vld [vmem:[%s7132_s8 + $0x464] sm:$0xff] }
 0x256   : > { %5454 = vst.msk [vmem:[%s7217_s17 + $0x84] sm:$0xf] %vm5420_vm3, %v5378_v39  ;;  %v5150_v10 = vmax.f32 %v4499_v40, %v5012_v38  ;;  %v6657_v40 = vld [vmem:[%s7132_s8 + $0x338] sm:$0xff] }
 0x258   : > { %v5229_v44 = vadd.f32 %v7459_v43, %v5150_v10 }
 0x25a   : > { %v5304_v45 = vmax.f32 %v5229_v44, 0.0 }
 0x25b   : > { %v4363_v47 = vpop.f32.mrf.mxu2  ;;  %v5014_v48 = vpop.f32.mrf.mxu3 }
 0x25c   : > { %v5379_v51 = vpack.c.bf16 %v5304_v45, %v5304_v45  ;;  %v4500_v52 = vmax.f32 %v3849_v46, %v4363_v47  ;;  %v3139_v53 = vpop.f32.mrf.mxu0  ;;  %v3715_v54 = vpop.f32.mrf.mxu1 }
 0x25d   : > { %v3850_v59 = vmax.f32 %v3139_v53, %v3715_v54 }
 0x25e   : > { %5455 = vst.msk [vmem:[%s7217_s17 + $0x88] sm:$0xf] %vm5420_vm3, %v5379_v51  ;;  %v5151_v57 = vmax.f32 %v4500_v52, %v5014_v48 }
 0x25f   : > { %5755 = vmatmul.msk.bf16.gmra.mxu0 %vm2918_vm2, %v6579_v49  ;;  %6016 = vmatmul.msk.bf16.gmra.mxu1 %vm2918_vm2, %v6618_v50 }
 0x260   : > { %v5230_v58 = vadd.f32 %v7459_v43, %v5151_v57  ;;  %6277 = vmatmul.msk.bf16.gmra.mxu2 %vm2918_vm2, %v6655_v55  ;;  %6538 = vmatmul.msk.bf16.gmra.mxu3 %vm2918_vm2, %v6692_v56 }
 0x262   : > { %v5305_v60 = vmax.f32 %v5230_v58, 0.0  ;;  %v6582_v58 = vld [vmem:[%s7132_s8 + $0xe8] sm:$0xff] }
 0x263   : > { %v4366_v61 = vpop.f32.mrf.mxu2  ;;  %v5017_v62 = vpop.f32.mrf.mxu3 }
 0x264   : > { %v5380_v63 = vpack.c.bf16 %v5305_v60, %v5305_v60  ;;  %v4501_v0 = vmax.f32 %v3850_v59, %v4366_v61  ;;  %v3141_v1 = vpop.f32.mrf.mxu0  ;;  %v3717_v2 = vpop.f32.mrf.mxu1  ;;  %v6621_v59 = vld [vmem:[%s7132_s8 + $0x214] sm:$0xff] }
 0x265   : > { %v3851_v6 = vmax.f32 %v3141_v1, %v3717_v2  ;;  %v6695_v1 = vld [vmem:[%s7132_s8 + $0x46c] sm:$0xff] }
 0x266   : > { %5456 = vst.msk [vmem:[%s7217_s17 + $0x8c] sm:$0xf] %vm5420_vm3, %v5380_v63  ;;  %v5152_v3 = vmax.f32 %v4501_v0, %v5017_v62  ;;  %v6658_v0 = vld [vmem:[%s7132_s8 + $0x340] sm:$0xff] }
 0x268   : > { %v5231_v4 = vadd.f32 %v7459_v43, %v5152_v3 }
 0x26a   : > { %v5306_v5 = vmax.f32 %v5231_v4, 0.0 }
 0x26b   : > { %v4368_v7 = vpop.f32.mrf.mxu2  ;;  %v5019_v8 = vpop.f32.mrf.mxu3 }
 0x26c   : > { %v5381_v12 = vpack.c.bf16 %v5306_v5, %v5306_v5  ;;  %v4502_v13 = vmax.f32 %v3851_v6, %v4368_v7  ;;  %v3144_v14 = vpop.f32.mrf.mxu0  ;;  %v3720_v15 = vpop.f32.mrf.mxu1 }
 0x26d   : > { %v3852_v20 = vmax.f32 %v3144_v14, %v3720_v15 }
 0x26e   : > { %5457 = vst.msk [vmem:[%s7217_s17 + $0x90] sm:$0xf] %vm5420_vm3, %v5381_v12  ;;  %v5153_v18 = vmax.f32 %v4502_v13, %v5019_v8 }
 0x26f   : > { %5756 = vmatmul.msk.bf16.gmra.mxu0 %vm2918_vm2, %v6580_v9  ;;  %6017 = vmatmul.msk.bf16.gmra.mxu1 %vm2918_vm2, %v6619_v11 }
 0x270   : > { %v5232_v19 = vadd.f32 %v7459_v43, %v5153_v18  ;;  %6278 = vmatmul.msk.bf16.gmra.mxu2 %vm2918_vm2, %v6656_v16  ;;  %6539 = vmatmul.msk.bf16.gmra.mxu3 %vm2918_vm2, %v6693_v17 }
 0x272   : > { %v5307_v21 = vmax.f32 %v5232_v19, 0.0  ;;  %v6583_v19 = vld [vmem:[%s7132_s8 + $0xf0] sm:$0xff] }
 0x273   : > { %v4371_v22 = vpop.f32.mrf.mxu2  ;;  %v5022_v23 = vpop.f32.mrf.mxu3 }
 0x274   : > { %v5382_v24 = vpack.c.bf16 %v5307_v21, %v5307_v21  ;;  %v4503_v25 = vmax.f32 %v3852_v20, %v4371_v22  ;;  %v3146_v26 = vpop.f32.mrf.mxu0  ;;  %v3722_v27 = vpop.f32.mrf.mxu1  ;;  %v6622_v20 = vld [vmem:[%s7132_s8 + $0x21c] sm:$0xff] }
 0x275   : > { %v3853_v31 = vmax.f32 %v3146_v26, %v3722_v27  ;;  %v6696_v26 = vld [vmem:[%s7132_s8 + $0x474] sm:$0xff] }
 0x276   : > { %5458 = vst.msk [vmem:[%s7217_s17 + $0x94] sm:$0xf] %vm5420_vm3, %v5382_v24  ;;  %v5154_v28 = vmax.f32 %v4503_v25, %v5022_v23  ;;  %v6659_v25 = vld [vmem:[%s7132_s8 + $0x348] sm:$0xff] }
 0x278   : > { %v5233_v29 = vadd.f32 %v7459_v43, %v5154_v28 }
 0x27a   : > { %v5308_v30 = vmax.f32 %v5233_v29, 0.0 }
 0x27b   : > { %v4373_v32 = vpop.f32.mrf.mxu2  ;;  %v5024_v33 = vpop.f32.mrf.mxu3 }
 0x27c   : > { %v5383_v36 = vpack.c.bf16 %v5308_v30, %v5308_v30  ;;  %v4504_v37 = vmax.f32 %v3853_v31, %v4373_v32  ;;  %v3149_v38 = vpop.f32.mrf.mxu0  ;;  %v3725_v39 = vpop.f32.mrf.mxu1 }
 0x27d   : > { %v3854_v44 = vmax.f32 %v3149_v38, %v3725_v39 }
 0x27e   : > { %5459 = vst.msk [vmem:[%s7217_s17 + $0x98] sm:$0xf] %vm5420_vm3, %v5383_v36  ;;  %v5155_v42 = vmax.f32 %v4504_v37, %v5024_v33 }
 0x27f   : > { %5757 = vmatmul.msk.bf16.gmra.mxu0 %vm2918_vm2, %v6581_v34  ;;  %6018 = vmatmul.msk.bf16.gmra.mxu1 %vm2918_vm2, %v6620_v35 }
 0x280   : > { %v5234_v10 = vadd.f32 %v7459_v43, %v5155_v42  ;;  %6279 = vmatmul.msk.bf16.gmra.mxu2 %vm2918_vm2, %v6657_v40  ;;  %6540 = vmatmul.msk.bf16.gmra.mxu3 %vm2918_vm2, %v6694_v41 }
 0x282   : > { %v5309_v45 = vmax.f32 %v5234_v10, 0.0  ;;  %v6584_v10 = vld [vmem:[%s7132_s8 + $0xf8] sm:$0xff] }
 0x283   : > { %v4376_v46 = vpop.f32.mrf.mxu2  ;;  %v5027_v47 = vpop.f32.mrf.mxu3 }
 0x284   : > { %v5384_v48 = vpack.c.bf16 %v5309_v45, %v5309_v45  ;;  %v4505_v49 = vmax.f32 %v3854_v44, %v4376_v46  ;;  %v3151_v50 = vpop.f32.mrf.mxu0  ;;  %v3727_v51 = vpop.f32.mrf.mxu1  ;;  %v6623_v44 = vld [vmem:[%s7132_s8 + $0x224] sm:$0xff] }
 0x285   : > { %v3855_v55 = vmax.f32 %v3151_v50, %v3727_v51  ;;  %v6697_v50 = vld [vmem:[%s7132_s8 + $0x47c] sm:$0xff] }
 0x286   : > { %5460 = vst.msk [vmem:[%s7217_s17 + $0x9c] sm:$0xf] %vm5420_vm3, %v5384_v48  ;;  %v5156_v52 = vmax.f32 %v4505_v49, %v5027_v47  ;;  %v6660_v49 = vld [vmem:[%s7132_s8 + $0x350] sm:$0xff] }
 0x288   : > { %v5235_v53 = vadd.f32 %v7459_v43, %v5156_v52 }
 0x28a   : > { %v5310_v54 = vmax.f32 %v5235_v53, 0.0 }
 0x28b   : > { %v4378_v56 = vpop.f32.mrf.mxu2  ;;  %v5029_v57 = vpop.f32.mrf.mxu3 }
 0x28c   : > { %v5385_v60 = vpack.c.bf16 %v5310_v54, %v5310_v54  ;;  %v4506_v61 = vmax.f32 %v3855_v55, %v4378_v56  ;;  %v3154_v62 = vpop.f32.mrf.mxu0  ;;  %v3730_v63 = vpop.f32.mrf.mxu1 }
 0x28d   : > { %v3856_v4 = vmax.f32 %v3154_v62, %v3730_v63 }
 0x28e   : > { %5461 = vst.msk [vmem:[%s7217_s17 + $0xa0] sm:$0xf] %vm5420_vm3, %v5385_v60  ;;  %v5157_v2 = vmax.f32 %v4506_v61, %v5029_v57 }
 0x28f   : > { %5758 = vmatmul.msk.bf16.gmra.mxu0 %vm2918_vm2, %v6582_v58  ;;  %6019 = vmatmul.msk.bf16.gmra.mxu1 %vm2918_vm2, %v6621_v59 }
 0x290   : > { %v5236_v3 = vadd.f32 %v7459_v43, %v5157_v2  ;;  %6280 = vmatmul.msk.bf16.gmra.mxu2 %vm2918_vm2, %v6658_v0  ;;  %6541 = vmatmul.msk.bf16.gmra.mxu3 %vm2918_vm2, %v6695_v1 }
 0x292   : > { %v5311_v5 = vmax.f32 %v5236_v3, 0.0  ;;  %v6585_v3 = vld [vmem:[%s7132_s8 + $0x100] sm:$0xff] }
 0x293   : > { %v4381_v6 = vpop.f32.mrf.mxu2  ;;  %v5032_v7 = vpop.f32.mrf.mxu3 }
 0x294   : > { %v5386_v8 = vpack.c.bf16 %v5311_v5, %v5311_v5  ;;  %v4507_v9 = vmax.f32 %v3856_v4, %v4381_v6  ;;  %v3156_v11 = vpop.f32.mrf.mxu0  ;;  %v3732_v12 = vpop.f32.mrf.mxu1  ;;  %v6624_v4 = vld [vmem:[%s7132_s8 + $0x22c] sm:$0xff] }
 0x295   : > { %v3857_v16 = vmax.f32 %v3156_v11, %v3732_v12  ;;  %v6698_v11 = vld [vmem:[%s7132_s8 + $0x484] sm:$0xff] }
 0x296   : > { %5462 = vst.msk [vmem:[%s7217_s17 + $0xa4] sm:$0xf] %vm5420_vm3, %v5386_v8  ;;  %v5158_v13 = vmax.f32 %v4507_v9, %v5032_v7  ;;  %v6661_v9 = vld [vmem:[%s7132_s8 + $0x358] sm:$0xff] }
 0x298   : > { %v5237_v14 = vadd.f32 %v7459_v43, %v5158_v13 }
 0x29a   : > { %v5312_v15 = vmax.f32 %v5237_v14, 0.0 }
 0x29b   : > { %v4383_v17 = vpop.f32.mrf.mxu2  ;;  %v5034_v18 = vpop.f32.mrf.mxu3 }
 0x29c   : > { %v5387_v21 = vpack.c.bf16 %v5312_v15, %v5312_v15  ;;  %v4508_v22 = vmax.f32 %v3857_v16, %v4383_v17  ;;  %v3159_v23 = vpop.f32.mrf.mxu0  ;;  %v3735_v24 = vpop.f32.mrf.mxu1 }
 0x29d   : > { %v3858_v29 = vmax.f32 %v3159_v23, %v3735_v24 }
 0x29e   : > { %5463 = vst.msk [vmem:[%s7217_s17 + $0xa8] sm:$0xf] %vm5420_vm3, %v5387_v21  ;;  %v5159_v27 = vmax.f32 %v4508_v22, %v5034_v18 }
 0x29f   : > { %5759 = vmatmul.msk.bf16.gmra.mxu0 %vm2918_vm2, %v6583_v19  ;;  %6020 = vmatmul.msk.bf16.gmra.mxu1 %vm2918_vm2, %v6622_v20 }
 0x2a0   : > { %v5238_v28 = vadd.f32 %v7459_v43, %v5159_v27  ;;  %6281 = vmatmul.msk.bf16.gmra.mxu2 %vm2918_vm2, %v6659_v25  ;;  %6542 = vmatmul.msk.bf16.gmra.mxu3 %vm2918_vm2, %v6696_v26 }
 0x2a2   : > { %v5313_v30 = vmax.f32 %v5238_v28, 0.0  ;;  %v6586_v28 = vld [vmem:[%s7132_s8 + $0x108] sm:$0xff] }
 0x2a3   : > { %v4386_v31 = vpop.f32.mrf.mxu2  ;;  %v5037_v32 = vpop.f32.mrf.mxu3 }
 0x2a4   : > { %v5388_v33 = vpack.c.bf16 %v5313_v30, %v5313_v30  ;;  %v4509_v34 = vmax.f32 %v3858_v29, %v4386_v31  ;;  %v3161_v35 = vpop.f32.mrf.mxu0  ;;  %v3737_v36 = vpop.f32.mrf.mxu1  ;;  %v6625_v29 = vld [vmem:[%s7132_s8 + $0x234] sm:$0xff] }
 0x2a5   : > { %v3859_v40 = vmax.f32 %v3161_v35, %v3737_v36  ;;  %v6699_v35 = vld [vmem:[%s7132_s8 + $0x48c] sm:$0xff] }
 0x2a6   : > { %5464 = vst.msk [vmem:[%s7217_s17 + $0xac] sm:$0xf] %vm5420_vm3, %v5388_v33  ;;  %v5160_v37 = vmax.f32 %v4509_v34, %v5037_v32  ;;  %v6662_v34 = vld [vmem:[%s7132_s8 + $0x360] sm:$0xff] }
 0x2a8   : > { %v5239_v38 = vadd.f32 %v7459_v43, %v5160_v37 }
 0x2aa   : > { %v5314_v39 = vmax.f32 %v5239_v38, 0.0 }
 0x2ab   : > { %v4388_v41 = vpop.f32.mrf.mxu2  ;;  %v5039_v42 = vpop.f32.mrf.mxu3 }
 0x2ac   : > { %v5389_v45 = vpack.c.bf16 %v5314_v39, %v5314_v39  ;;  %v4510_v46 = vmax.f32 %v3859_v40, %v4388_v41  ;;  %v3164_v47 = vpop.f32.mrf.mxu0  ;;  %v3740_v48 = vpop.f32.mrf.mxu1 }
 0x2ad   : > { %v3860_v53 = vmax.f32 %v3164_v47, %v3740_v48 }
 0x2ae   : > { %5465 = vst.msk [vmem:[%s7217_s17 + $0xb0] sm:$0xf] %vm5420_vm3, %v5389_v45  ;;  %v5161_v51 = vmax.f32 %v4510_v46, %v5039_v42 }
 0x2af   : > { %5760 = vmatmul.msk.bf16.gmra.mxu0 %vm2918_vm2, %v6584_v10  ;;  %6021 = vmatmul.msk.bf16.gmra.mxu1 %vm2918_vm2, %v6623_v44 }
 0x2b0   : > { %v5240_v52 = vadd.f32 %v7459_v43, %v5161_v51  ;;  %6282 = vmatmul.msk.bf16.gmra.mxu2 %vm2918_vm2, %v6660_v49  ;;  %6543 = vmatmul.msk.bf16.gmra.mxu3 %vm2918_vm2, %v6697_v50 }
 0x2b2   : > { %v5315_v54 = vmax.f32 %v5240_v52, 0.0  ;;  %v6587_v52 = vld [vmem:[%s7132_s8 + $0x110] sm:$0xff] }
 0x2b3   : > { %v4391_v55 = vpop.f32.mrf.mxu2  ;;  %v5042_v56 = vpop.f32.mrf.mxu3 }
 0x2b4   : > { %v5390_v57 = vpack.c.bf16 %v5315_v54, %v5315_v54  ;;  %v4511_v58 = vmax.f32 %v3860_v53, %v4391_v55  ;;  %v3166_v59 = vpop.f32.mrf.mxu0  ;;  %v3742_v60 = vpop.f32.mrf.mxu1  ;;  %v6626_v53 = vld [vmem:[%s7132_s8 + $0x23c] sm:$0xff] }
 0x2b5   : > { %v3861_v0 = vmax.f32 %v3166_v59, %v3742_v60  ;;  %v6700_v59 = vld [vmem:[%s7132_s8 + $0x494] sm:$0xff] }
 0x2b6   : > { %5466 = vst.msk [vmem:[%s7217_s17 + $0xb4] sm:$0xf] %vm5420_vm3, %v5390_v57  ;;  %v5162_v61 = vmax.f32 %v4511_v58, %v5042_v56  ;;  %v6663_v58 = vld [vmem:[%s7132_s8 + $0x368] sm:$0xff] }
 0x2b8   : > { %v5241_v62 = vadd.f32 %v7459_v43, %v5162_v61 }
 0x2ba   : > { %v5316_v63 = vmax.f32 %v5241_v62, 0.0 }
 0x2bb   : > { %v4393_v1 = vpop.f32.mrf.mxu2  ;;  %v5044_v2 = vpop.f32.mrf.mxu3 }
 0x2bc   : > { %v5391_v5 = vpack.c.bf16 %v5316_v63, %v5316_v63  ;;  %v4512_v6 = vmax.f32 %v3861_v0, %v4393_v1  ;;  %v3169_v7 = vpop.f32.mrf.mxu0  ;;  %v3745_v8 = vpop.f32.mrf.mxu1 }
 0x2bd   : > { %v3862_v14 = vmax.f32 %v3169_v7, %v3745_v8 }
 0x2be   : > { %5467 = vst.msk [vmem:[%s7217_s17 + $0xb8] sm:$0xf] %vm5420_vm3, %v5391_v5  ;;  %v5163_v12 = vmax.f32 %v4512_v6, %v5044_v2 }
 0x2bf   : > { %5761 = vmatmul.msk.bf16.gmra.mxu0 %vm2918_vm2, %v6585_v3  ;;  %6022 = vmatmul.msk.bf16.gmra.mxu1 %vm2918_vm2, %v6624_v4 }
 0x2c0   : > { %v5242_v13 = vadd.f32 %v7459_v43, %v5163_v12  ;;  %6283 = vmatmul.msk.bf16.gmra.mxu2 %vm2918_vm2, %v6661_v9  ;;  %6544 = vmatmul.msk.bf16.gmra.mxu3 %vm2918_vm2, %v6698_v11 }
 0x2c2   : > { %v5317_v15 = vmax.f32 %v5242_v13, 0.0  ;;  %v6588_v13 = vld [vmem:[%s7132_s8 + $0x118] sm:$0xff] }
 0x2c3   : > { %v4396_v16 = vpop.f32.mrf.mxu2  ;;  %v5047_v17 = vpop.f32.mrf.mxu3 }
 0x2c4   : > { %v5392_v18 = vpack.c.bf16 %v5317_v15, %v5317_v15  ;;  %v4513_v19 = vmax.f32 %v3862_v14, %v4396_v16  ;;  %v3171_v20 = vpop.f32.mrf.mxu0  ;;  %v3747_v21 = vpop.f32.mrf.mxu1  ;;  %v6627_v14 = vld [vmem:[%s7132_s8 + $0x244] sm:$0xff] }
 0x2c5   : > { %v3863_v25 = vmax.f32 %v3171_v20, %v3747_v21  ;;  %v6701_v20 = vld [vmem:[%s7132_s8 + $0x49c] sm:$0xff] }
 0x2c6   : > { %5468 = vst.msk [vmem:[%s7217_s17 + $0xbc] sm:$0xf] %vm5420_vm3, %v5392_v18  ;;  %v5164_v22 = vmax.f32 %v4513_v19, %v5047_v17  ;;  %v6664_v19 = vld [vmem:[%s7132_s8 + $0x370] sm:$0xff] }
 0x2c8   : > { %v5243_v23 = vadd.f32 %v7459_v43, %v5164_v22 }
 0x2ca   : > { %v5318_v24 = vmax.f32 %v5243_v23, 0.0 }
 0x2cb   : > { %v4398_v26 = vpop.f32.mrf.mxu2  ;;  %v5049_v27 = vpop.f32.mrf.mxu3 }
 0x2cc   : > { %v5393_v30 = vpack.c.bf16 %v5318_v24, %v5318_v24  ;;  %v4514_v31 = vmax.f32 %v3863_v25, %v4398_v26  ;;  %v3174_v32 = vpop.f32.mrf.mxu0  ;;  %v3750_v33 = vpop.f32.mrf.mxu1 }
 0x2cd   : > { %v3864_v38 = vmax.f32 %v3174_v32, %v3750_v33 }
 0x2ce   : > { %5469 = vst.msk [vmem:[%s7217_s17 + $0xc0] sm:$0xf] %vm5420_vm3, %v5393_v30  ;;  %v5165_v36 = vmax.f32 %v4514_v31, %v5049_v27 }
 0x2cf   : > { %5762 = vmatmul.msk.bf16.gmra.mxu0 %vm2918_vm2, %v6586_v28  ;;  %6023 = vmatmul.msk.bf16.gmra.mxu1 %vm2918_vm2, %v6625_v29 }
 0x2d0   : > { %v5244_v37 = vadd.f32 %v7459_v43, %v5165_v36  ;;  %6284 = vmatmul.msk.bf16.gmra.mxu2 %vm2918_vm2, %v6662_v34  ;;  %6545 = vmatmul.msk.bf16.gmra.mxu3 %vm2918_vm2, %v6699_v35 }
 0x2d2   : > { %v5319_v39 = vmax.f32 %v5244_v37, 0.0  ;;  %v6589_v37 = vld [vmem:[%s7132_s8 + $0x120] sm:$0xff] }
 0x2d3   : > { %v4401_v40 = vpop.f32.mrf.mxu2  ;;  %v5052_v41 = vpop.f32.mrf.mxu3 }
 0x2d4   : > { %v5394_v42 = vpack.c.bf16 %v5319_v39, %v5319_v39  ;;  %v4515_v10 = vmax.f32 %v3864_v38, %v4401_v40  ;;  %v3176_v44 = vpop.f32.mrf.mxu0  ;;  %v3752_v45 = vpop.f32.mrf.mxu1  ;;  %v6628_v38 = vld [vmem:[%s7132_s8 + $0x24c] sm:$0xff] }
 0x2d5   : > { %v3865_v49 = vmax.f32 %v3176_v44, %v3752_v45  ;;  %v6702_v44 = vld [vmem:[%s7132_s8 + $0x4a4] sm:$0xff] }
 0x2d6   : > { %5470 = vst.msk [vmem:[%s7217_s17 + $0xc4] sm:$0xf] %vm5420_vm3, %v5394_v42  ;;  %v5166_v46 = vmax.f32 %v4515_v10, %v5052_v41  ;;  %v6665_v10 = vld [vmem:[%s7132_s8 + $0x378] sm:$0xff] }
 0x2d8   : > { %v5245_v47 = vadd.f32 %v7459_v43, %v5166_v46 }
 0x2da   : > { %v5320_v48 = vmax.f32 %v5245_v47, 0.0 }
 0x2db   : > { %v4403_v50 = vpop.f32.mrf.mxu2  ;;  %v5054_v51 = vpop.f32.mrf.mxu3 }
 0x2dc   : > { %v5395_v54 = vpack.c.bf16 %v5320_v48, %v5320_v48  ;;  %v4516_v55 = vmax.f32 %v3865_v49, %v4403_v50  ;;  %v3179_v56 = vpop.f32.mrf.mxu0  ;;  %v3755_v57 = vpop.f32.mrf.mxu1 }
 0x2dd   : > { %v3866_v62 = vmax.f32 %v3179_v56, %v3755_v57  ;;  %v5841_v56 = vld [vmem:[%s7132_s8 + $0x254] sm:$0xf]  ;;  %v6102_v57 = vld [vmem:[%s7132_s8 + $0x380] sm:$0xf] }
 0x2de   : > { %5471 = vst.msk [vmem:[%s7217_s17 + $0xc8] sm:$0xf] %vm5420_vm3, %v5395_v54  ;;  %v5167_v60 = vmax.f32 %v4516_v55, %v5054_v51  ;;  %v2714_v55 = vld [vmem:[%s7132_s8 + $0x128] sm:$0xf] }
 0x2df   : > { %5763 = vmatmul.msk.bf16.gmra.mxu0 %vm2918_vm2, %v6587_v52  ;;  %6024 = vmatmul.msk.bf16.gmra.mxu1 %vm2918_vm2, %v6626_v53 }
 0x2e0   : > { %v5246_v61 = vadd.f32 %v7459_v43, %v5167_v60  ;;  %6285 = vmatmul.msk.bf16.gmra.mxu2 %vm2918_vm2, %v6663_v58  ;;  %6546 = vmatmul.msk.bf16.gmra.mxu3 %vm2918_vm2, %v6700_v59  ;;  %v6363_v58 = vld [vmem:[%s7132_s8 + $0x4ac] sm:$0xf]  ;;  %v2868_v60 = vunpack.c.l.b16 %v2714_v55 }
 0x2e2   : > { %v5321_v63 = vmax.f32 %v5246_v61, 0.0  ;;  %v3463_v61 = vunpack.c.l.b16 %v5841_v56 }
 0x2e3   : > { %v4406_v0 = vpop.f32.mrf.mxu2  ;;  %v5057_v1 = vpop.f32.mrf.mxu3 }
 0x2e4   : > { %v5396_v2 = vpack.c.bf16 %v5321_v63, %v5321_v63  ;;  %v4517_v3 = vmax.f32 %v3866_v62, %v4406_v0  ;;  %v3181_v4 = vpop.f32.mrf.mxu0  ;;  %v3757_v5 = vpop.f32.mrf.mxu1  ;;  %v4114_v63 = vunpack.c.l.b16 %v6102_v57  ;;  %v4765_v0 = vunpack.c.l.b16 %v6363_v58 }
 0x2e5   : > { %v3867_v9 = vmax.f32 %v3181_v4, %v3757_v5  ;;  %v2906_v5 = vpack.c.b16 %v2868_v60, %v2868_v60 }
 0x2e6   : > { %5472 = vst.msk [vmem:[%s7217_s17 + $0xcc] sm:$0xf] %vm5420_vm3, %v5396_v2  ;;  %v5168_v6 = vmax.f32 %v4517_v3, %v5057_v1 }
 0x2e8   : > { %v5247_v7 = vadd.f32 %v7459_v43, %v5168_v6  ;;  %v3501_v6 = vpack.c.b16 %v3463_v61, %v3463_v61 }
 0x2ea   : > { %v5322_v8 = vmax.f32 %v5247_v7, 0.0 }
 0x2eb   : > { %v4408_v11 = vpop.f32.mrf.mxu2  ;;  %v5059_v12 = vpop.f32.mrf.mxu3 }
 0x2ec   : > { %v5397_v15 = vpack.c.bf16 %v5322_v8, %v5322_v8  ;;  %v4518_v16 = vmax.f32 %v3867_v9, %v4408_v11  ;;  %v3184_v17 = vpop.f32.mrf.mxu0  ;;  %v3760_v18 = vpop.f32.mrf.mxu1 }
 0x2ed   : > { %v3868_v23 = vmax.f32 %v3184_v17, %v3760_v18 }
 0x2ee   : > { %5473 = vst.msk [vmem:[%s7217_s17 + $0xd0] sm:$0xf] %vm5420_vm3, %v5397_v15  ;;  %v5169_v21 = vmax.f32 %v4518_v16, %v5059_v12  ;;  %v4152_v12 = vpack.c.b16 %v4114_v63, %v4114_v63 }
 0x2ef   : > { %5764 = vmatmul.msk.bf16.gmra.mxu0 %vm2918_vm2, %v6588_v13  ;;  %6025 = vmatmul.msk.bf16.gmra.mxu1 %vm2918_vm2, %v6627_v14  ;;  %v4803_v13 = vpack.c.b16 %v4765_v0, %v4765_v0 }
 0x2f0   : > { %v5248_v22 = vadd.f32 %v7459_v43, %v5169_v21  ;;  %6286 = vmatmul.msk.bf16.gmra.mxu2 %vm2918_vm2, %v6664_v19  ;;  %6547 = vmatmul.msk.bf16.gmra.mxu3 %vm2918_vm2, %v6701_v20 }
 0x2f2   : > { %v5323_v24 = vmax.f32 %v5248_v22, 0.0 }
 0x2f3   : > { %v4411_v25 = vpop.f32.mrf.mxu2  ;;  %v5062_v26 = vpop.f32.mrf.mxu3 }
 0x2f4   : > { %v5398_v27 = vpack.c.bf16 %v5323_v24, %v5323_v24  ;;  %v4519_v28 = vmax.f32 %v3868_v23, %v4411_v25  ;;  %v3186_v29 = vpop.f32.mrf.mxu0  ;;  %v3762_v30 = vpop.f32.mrf.mxu1 }
 0x2f5   : > { %v3869_v34 = vmax.f32 %v3186_v29, %v3762_v30 }
 0x2f6   : > { %5474 = vst.msk [vmem:[%s7217_s17 + $0xd4] sm:$0xf] %vm5420_vm3, %v5398_v27  ;;  %v5170_v31 = vmax.f32 %v4519_v28, %v5062_v26 }
 0x2f8   : > { %v5249_v32 = vadd.f32 %v7459_v43, %v5170_v31 }
 0x2fa   : > { %v5324_v33 = vmax.f32 %v5249_v32, 0.0 }
 0x2fb   : > { %v4413_v35 = vpop.f32.mrf.mxu2  ;;  %v5064_v36 = vpop.f32.mrf.mxu3 }
 0x2fc   : > { %v5399_v39 = vpack.c.bf16 %v5324_v33, %v5324_v33  ;;  %v4520_v40 = vmax.f32 %v3869_v34, %v4413_v35  ;;  %v3189_v41 = vpop.f32.mrf.mxu0  ;;  %v3765_v42 = vpop.f32.mrf.mxu1 }
 0x2fd   : > { %v3870_v47 = vmax.f32 %v3189_v41, %v3765_v42 }
 0x2fe   : > { %5475 = vst.msk [vmem:[%s7217_s17 + $0xd8] sm:$0xf] %vm5420_vm3, %v5399_v39  ;;  %v5171_v45 = vmax.f32 %v4520_v40, %v5064_v36 }
 0x2ff   : > { %5765 = vmatmul.msk.bf16.gmra.mxu0 %vm2918_vm2, %v6589_v37  ;;  %6026 = vmatmul.msk.bf16.gmra.mxu1 %vm2918_vm2, %v6628_v38 }
 0x300   : > { %v5250_v46 = vadd.f32 %v7459_v43, %v5171_v45  ;;  %6287 = vmatmul.msk.bf16.gmra.mxu2 %vm2918_vm2, %v6665_v10  ;;  %6548 = vmatmul.msk.bf16.gmra.mxu3 %vm2918_vm2, %v6702_v44 }
 0x302   : > { %v5325_v48 = vmax.f32 %v5250_v46, 0.0 }
 0x303   : > { %v4416_v49 = vpop.f32.mrf.mxu2  ;;  %v5067_v50 = vpop.f32.mrf.mxu3 }
 0x304   : > { %v5400_v51 = vpack.c.bf16 %v5325_v48, %v5325_v48  ;;  %v4521_v52 = vmax.f32 %v3870_v47, %v4416_v49  ;;  %v3191_v53 = vpop.f32.mrf.mxu0  ;;  %v3767_v54 = vpop.f32.mrf.mxu1 }
 0x305   : > { %v3871_v2 = vmax.f32 %v3191_v53, %v3767_v54 }
 0x306   : > { %5476 = vst.msk [vmem:[%s7217_s17 + $0xdc] sm:$0xf] %vm5420_vm3, %v5400_v51  ;;  %v5172_v59 = vmax.f32 %v4521_v52, %v5067_v50 }
 0x308   : > { %v5251_v62 = vadd.f32 %v7459_v43, %v5172_v59 }
 0x30a   : > { %v5326_v1 = vmax.f32 %v5251_v62, 0.0 }
 0x30b   : > { %v4418_v3 = vpop.f32.mrf.mxu2  ;;  %v5069_v4 = vpop.f32.mrf.mxu3 }
 0x30c   : > { %v5401_v7 = vpack.c.bf16 %v5326_v1, %v5326_v1  ;;  %v4522_v8 = vmax.f32 %v3871_v2, %v4418_v3  ;;  %v3194_v9 = vpop.f32.mrf.mxu0  ;;  %v3770_v11 = vpop.f32.mrf.mxu1 }
 0x30d   : > { %v3872_v16 = vmax.f32 %v3194_v9, %v3770_v11 }
 0x30e   : > { %5477 = vst.msk [vmem:[%s7217_s17 + $0xe0] sm:$0xf] %vm5420_vm3, %v5401_v7  ;;  %v5173_v14 = vmax.f32 %v4522_v8, %v5069_v4 }
 0x30f   : > { %5766 = vmatmul.msk.bf16.gmra.mxu0 %vm2918_vm2, %v2906_v5  ;;  %6027 = vmatmul.msk.bf16.gmra.mxu1 %vm2918_vm2, %v3501_v6 }
 0x310   : > { %v5252_v15 = vadd.f32 %v7459_v43, %v5173_v14  ;;  %6288 = vmatmul.msk.bf16.gmra.mxu2 %vm2918_vm2, %v4152_v12  ;;  %6549 = vmatmul.msk.bf16.gmra.mxu3 %vm2918_vm2, %v4803_v13 }
 0x312   : > { %v5327_v17 = vmax.f32 %v5252_v15, 0.0 }
 0x313   : > { %v4421_v18 = vpop.f32.mrf.mxu2  ;;  %v5072_v19 = vpop.f32.mrf.mxu3 }
 0x314   : > { %v5402_v20 = vpack.c.bf16 %v5327_v17, %v5327_v17  ;;  %v4523_v21 = vmax.f32 %v3872_v16, %v4421_v18  ;;  %v3196_v22 = vpop.f32.mrf.mxu0  ;;  %v3772_v23 = vpop.f32.mrf.mxu1 }
 0x315   : > { %v3873_v27 = vmax.f32 %v3196_v22, %v3772_v23 }
 0x316   : > { %5478 = vst.msk [vmem:[%s7217_s17 + $0xe4] sm:$0xf] %vm5420_vm3, %v5402_v20  ;;  %v5174_v24 = vmax.f32 %v4523_v21, %v5072_v19 }
 0x318   : > { %v5253_v25 = vadd.f32 %v7459_v43, %v5174_v24 }
 0x31a   : > { %v5328_v26 = vmax.f32 %v5253_v25, 0.0 }
 0x31b   : > { %v4423_v28 = vpop.f32.mrf.mxu2  ;;  %v5074_v29 = vpop.f32.mrf.mxu3 }
 0x31c   : > { %v5403_v30 = vpack.c.bf16 %v5328_v26, %v5328_v26  ;;  %v4524_v31 = vmax.f32 %v3873_v27, %v4423_v28  ;;  %v3199_v32 = vpop.f32.mrf.mxu0  ;;  %v3775_v33 = vpop.f32.mrf.mxu1 }
 0x31d   : > { %v3874_v36 = vmax.f32 %v3199_v32, %v3775_v33 }
 0x31e   : > { %5479 = vst.msk [vmem:[%s7217_s17 + $0xe8] sm:$0xf] %vm5420_vm3, %v5403_v30  ;;  %v5175_v34 = vmax.f32 %v4524_v31, %v5074_v29 }
 0x320   : > { %v5254_v35 = vadd.f32 %v7459_v43, %v5175_v34 }
 0x322   : > { %v5329_v37 = vmax.f32 %v5254_v35, 0.0 }
 0x323   : > { %v4426_v38 = vpop.f32.mrf.mxu2  ;;  %v5077_v39 = vpop.f32.mrf.mxu3 }
 0x324   : > { %v5404_v40 = vpack.c.bf16 %v5329_v37, %v5329_v37  ;;  %v4525_v41 = vmax.f32 %v3874_v36, %v4426_v38  ;;  %v3201_v42 = vpop.f32.mrf.mxu0  ;;  %v3777_v10 = vpop.f32.mrf.mxu1 }
 0x325   : > { %v3875_v47 = vmax.f32 %v3201_v42, %v3777_v10 }
 0x326   : > { %5480 = vst.msk [vmem:[%s7217_s17 + $0xec] sm:$0xf] %vm5420_vm3, %v5404_v40  ;;  %v5176_v44 = vmax.f32 %v4525_v41, %v5077_v39 }
 0x328   : > { %v5255_v45 = vadd.f32 %v7459_v43, %v5176_v44 }
 0x32a   : > { %v5330_v46 = vmax.f32 %v5255_v45, 0.0 }
 0x32b   : > { %v4428_v48 = vpop.f32.mrf.mxu2  ;;  %v5079_v49 = vpop.f32.mrf.mxu3 }
 0x32c   : > { %v5405_v50 = vpack.c.bf16 %v5330_v46, %v5330_v46  ;;  %v4526_v51 = vmax.f32 %v3875_v47, %v4428_v48  ;;  %v3204_v52 = vpop.f32.mrf.mxu0  ;;  %v3780_v53 = vpop.f32.mrf.mxu1 }
 0x32d   : > { %v3876_v56 = vmax.f32 %v3204_v52, %v3780_v53 }
 0x32e   : > { %5481 = vst.msk [vmem:[%s7217_s17 + $0xf0] sm:$0xf] %vm5420_vm3, %v5405_v50  ;;  %v5177_v54 = vmax.f32 %v4526_v51, %v5079_v49 }
 0x330   : > { %v5256_v55 = vadd.f32 %v7459_v43, %v5177_v54 }
 0x332   : > { %v5331_v57 = vmax.f32 %v5256_v55, 0.0 }
 0x333   : > { %v4431_v58 = vpop.f32.mrf.mxu2  ;;  %v5082_v59 = vpop.f32.mrf.mxu3 }
 0x334   : > { %v5406_v60 = vpack.c.bf16 %v5331_v57, %v5331_v57  ;;  %v4527_v61 = vmax.f32 %v3876_v56, %v4431_v58  ;;  %v3206_v62 = vpop.f32.mrf.mxu0  ;;  %v3782_v63 = vpop.f32.mrf.mxu1 }
 0x335   : > { %v3877_v3 = vmax.f32 %v3206_v62, %v3782_v63 }
 0x336   : > { %5482 = vst.msk [vmem:[%s7217_s17 + $0xf4] sm:$0xf] %vm5420_vm3, %v5406_v60  ;;  %v5178_v0 = vmax.f32 %v4527_v61, %v5082_v59 }
 0x338   : > { %v5257_v1 = vadd.f32 %v7459_v43, %v5178_v0 }
 0x33a   : > { %v5332_v2 = vmax.f32 %v5257_v1, 0.0 }
 0x33b   : > { %v4433_v4 = vpop.f32.mrf.mxu2  ;;  %v5084_v5 = vpop.f32.mrf.mxu3 }
 0x33c   : > { %v5407_v6 = vpack.c.bf16 %v5332_v2, %v5332_v2  ;;  %v4528_v7 = vmax.f32 %v3877_v3, %v4433_v4  ;;  %v3209_v8 = vpop.f32.mrf.mxu0  ;;  %v3785_v9 = vpop.f32.mrf.mxu1 }
 0x33d   : > { %v3878_v13 = vmax.f32 %v3209_v8, %v3785_v9 }
 0x33e   : > { %5483 = vst.msk [vmem:[%s7217_s17 + $0xf8] sm:$0xf] %vm5420_vm3, %v5407_v6  ;;  %v5179_v11 = vmax.f32 %v4528_v7, %v5084_v5 }
 0x340   : > { %v5258_v12 = vadd.f32 %v7459_v43, %v5179_v11 }
 0x342   : > { %v5333_v14 = vmax.f32 %v5258_v12, 0.0 }
 0x343   : > { %v4436_v15 = vpop.f32.mrf.mxu2  ;;  %v5087_v16 = vpop.f32.mrf.mxu3 }
 0x344   : > { %v5408_v17 = vpack.c.bf16 %v5333_v14, %v5333_v14  ;;  %v4529_v18 = vmax.f32 %v3878_v13, %v4436_v15  ;;  %v3211_v19 = vpop.f32.mrf.mxu0  ;;  %v3787_v20 = vpop.f32.mrf.mxu1 }
 0x345   : > { %v3879_v24 = vmax.f32 %v3211_v19, %v3787_v20 }
 0x346   : > { %5484 = vst.msk [vmem:[%s7217_s17 + $0xfc] sm:$0xf] %vm5420_vm3, %v5408_v17  ;;  %v5180_v21 = vmax.f32 %v4529_v18, %v5087_v16 }
 0x348   : > { %v5259_v22 = vadd.f32 %v7459_v43, %v5180_v21 }
 0x34a   : > { %v5334_v23 = vmax.f32 %v5259_v22, 0.0 }
 0x34b   : > { %v4438_v25 = vpop.f32.mrf.mxu2  ;;  %v5089_v26 = vpop.f32.mrf.mxu3 }
 0x34c   : > { %v5409_v27 = vpack.c.bf16 %v5334_v23, %v5334_v23  ;;  %v4530_v28 = vmax.f32 %v3879_v24, %v4438_v25  ;;  %v3214_v29 = vpop.f32.mrf.mxu0  ;;  %v3790_v30 = vpop.f32.mrf.mxu1 }
 0x34d   : > { %v3880_v33 = vmax.f32 %v3214_v29, %v3790_v30 }
 0x34e   : > { %5485 = vst.msk [vmem:[%s7217_s17 + $0x100] sm:$0xf] %vm5420_vm3, %v5409_v27  ;;  %v5181_v31 = vmax.f32 %v4530_v28, %v5089_v26 }
 0x350   : > { %v5260_v32 = vadd.f32 %v7459_v43, %v5181_v31 }
 0x352   : > { %v5335_v34 = vmax.f32 %v5260_v32, 0.0 }
 0x353   : > { %v4441_v35 = vpop.f32.mrf.mxu2  ;;  %v5092_v36 = vpop.f32.mrf.mxu3 }
 0x354   : > { %v5410_v37 = vpack.c.bf16 %v5335_v34, %v5335_v34  ;;  %v4531_v38 = vmax.f32 %v3880_v33, %v4441_v35  ;;  %v3216_v39 = vpop.f32.mrf.mxu0  ;;  %v3792_v40 = vpop.f32.mrf.mxu1 }
 0x355   : > { %v3881_v44 = vmax.f32 %v3216_v39, %v3792_v40  ;;  %v6732_v39 = vld [vmem:[%s7692_s2] ss:$0 sm:$0xff] }
 0x356   : > { %5486 = vst.msk [vmem:[%s7217_s17 + $0x104] sm:$0xf] %vm5420_vm3, %v5410_v37  ;;  %v5182_v41 = vmax.f32 %v4531_v38, %v5092_v36 }
 0x358   : > { %v5261_v42 = vadd.f32 %v7459_v43, %v5182_v41 }
 0x35a   : > { %v5336_v10 = vmax.f32 %v5261_v42, 0.0 }
 0x35b   : > { %v4443_v45 = vpop.f32.mrf.mxu2  ;;  %v5094_v46 = vpop.f32.mrf.mxu3 }
 0x35c   : > { %v5411_v47 = vpack.c.bf16 %v5336_v10, %v5336_v10  ;;  %v4532_v48 = vmax.f32 %v3881_v44, %v4443_v45  ;;  %v3219_v49 = vpop.f32.mrf.mxu0  ;;  %v3795_v50 = vpop.f32.mrf.mxu1 }
 0x35d   : > { %v3882_v53 = vmax.f32 %v3219_v49, %v3795_v50 }
 0x35e   : > { %5487 = vst.msk [vmem:[%s7217_s17 + $0x108] sm:$0xf] %vm5420_vm3, %v5411_v47  ;;  %v5183_v51 = vmax.f32 %v4532_v48, %v5094_v46 }
 0x360   : > { %v5262_v52 = vadd.f32 %v7459_v43, %v5183_v51 }
 0x362   : > { %v5337_v54 = vmax.f32 %v5262_v52, 0.0 }
 0x363   : > { %v4446_v55 = vpop.f32.mrf.mxu2  ;;  %v5097_v56 = vpop.f32.mrf.mxu3 }
 0x364   : > { %v5412_v57 = vpack.c.bf16 %v5337_v54, %v5337_v54  ;;  %v4533_v58 = vmax.f32 %v3882_v53, %v4446_v55  ;;  %v3221_v59 = vpop.f32.mrf.mxu0  ;;  %v3797_v60 = vpop.f32.mrf.mxu1 }
 0x365   : > { %v3883_v0 = vmax.f32 %v3221_v59, %v3797_v60 }
 0x366   : > { %5488 = vst.msk [vmem:[%s7217_s17 + $0x10c] sm:$0xf] %vm5420_vm3, %v5412_v57  ;;  %v5184_v61 = vmax.f32 %v4533_v58, %v5097_v56 }
 0x368   : > { %v5263_v62 = vadd.f32 %v7459_v43, %v5184_v61 }
 0x36a   : > { %v5338_v63 = vmax.f32 %v5263_v62, 0.0 }
 0x36b   : > { %v4448_v1 = vpop.f32.mrf.mxu2  ;;  %v5099_v2 = vpop.f32.mrf.mxu3 }
 0x36c   : > { %v5413_v3 = vpack.c.bf16 %v5338_v63, %v5338_v63  ;;  %v4534_v4 = vmax.f32 %v3883_v0, %v4448_v1  ;;  %v3224_v5 = vpop.f32.mrf.mxu0  ;;  %v3800_v6 = vpop.f32.mrf.mxu1 }
 0x36d   : > { %v3884_v9 = vmax.f32 %v3224_v5, %v3800_v6 }
 0x36e   : > { %5489 = vst.msk [vmem:[%s7217_s17 + $0x110] sm:$0xf] %vm5420_vm3, %v5413_v3  ;;  %v5185_v7 = vmax.f32 %v4534_v4, %v5099_v2 }
 0x370   : > { %v5264_v8 = vadd.f32 %v7459_v43, %v5185_v7 }
 0x372   : > { %v5339_v11 = vmax.f32 %v5264_v8, 0.0 }
 0x373   : > { %v4451_v12 = vpop.f32.mrf.mxu2  ;;  %v5102_v13 = vpop.f32.mrf.mxu3 }
 0x374   : > { %v5414_v14 = vpack.c.bf16 %v5339_v11, %v5339_v11  ;;  %v4535_v15 = vmax.f32 %v3884_v9, %v4451_v12  ;;  %v3226_v16 = vpop.f32.mrf.mxu0  ;;  %v3802_v17 = vpop.f32.mrf.mxu1 }
 0x375   : > { %v3885_v21 = vmax.f32 %v3226_v16, %v3802_v17 }
 0x376   : > { %5490 = vst.msk [vmem:[%s7217_s17 + $0x114] sm:$0xf] %vm5420_vm3, %v5414_v14  ;;  %v5186_v18 = vmax.f32 %v4535_v15, %v5102_v13 }
 0x378   : > { %v5265_v19 = vadd.f32 %v7459_v43, %v5186_v18 }
 0x37a   : > { %v5340_v20 = vmax.f32 %v5265_v19, 0.0 }
 0x37b   : > { %v4453_v22 = vpop.f32.mrf.mxu2  ;;  %v5104_v23 = vpop.f32.mrf.mxu3 }
 0x37c   : > { %v5415_v24 = vpack.c.bf16 %v5340_v20, %v5340_v20  ;;  %v4536_v25 = vmax.f32 %v3885_v21, %v4453_v22  ;;  %v3229_v26 = vpop.f32.mrf.mxu0  ;;  %v3805_v27 = vpop.f32.mrf.mxu1 }
 0x37d   : > { %v3886_v30 = vmax.f32 %v3229_v26, %v3805_v27 }
 0x37e   : > { %5491 = vst.msk [vmem:[%s7217_s17 + $0x118] sm:$0xf] %vm5420_vm3, %v5415_v24  ;;  %v5187_v28 = vmax.f32 %v4536_v25, %v5104_v23 }
 0x380   : > { %v5266_v29 = vadd.f32 %v7459_v43, %v5187_v28 }
 0x382   : > { %v5341_v31 = vmax.f32 %v5266_v29, 0.0 }
 0x383   : > { %v4456_v32 = vpop.f32.mrf.mxu2  ;;  %v5107_v33 = vpop.f32.mrf.mxu3 }
 0x384   : > { %v5416_v34 = vpack.c.bf16 %v5341_v31, %v5341_v31  ;;  %v4537_v35 = vmax.f32 %v3886_v30, %v4456_v32  ;;  %v3231_v36 = vpop.f32.mrf.mxu0  ;;  %v3807_v37 = vpop.f32.mrf.mxu1 }
 0x385   : > { %v3887_v42 = vmax.f32 %v3231_v36, %v3807_v37 }
 0x386   : > { %5492 = vst.msk [vmem:[%s7217_s17 + $0x11c] sm:$0xf] %vm5420_vm3, %v5416_v34  ;;  %v5188_v38 = vmax.f32 %v4537_v35, %v5107_v33 }
 0x388   : > { %v5267_v40 = vadd.f32 %v6732_v39, %v5188_v38 }
 0x38a   : > { %v5342_v41 = vmax.f32 %v5267_v40, 0.0 }
 0x38b   : > { %v4458_v43 = vpop.f32.mrf.mxu2  ;;  %v5109_v10 = vpop.f32.mrf.mxu3 }
 0x38c   : > { %v5417_v44 = vpack.c.bf16 %v5342_v41, %v5342_v41  ;;  %v4538_v45 = vmax.f32 %v3887_v42, %v4458_v43  ;;  %v3234_v46 = vpop.f32.mrf.mxu0  ;;  %v3810_v47 = vpop.f32.mrf.mxu1 }
 0x38d   : > { %v3888_v50 = vmax.f32 %v3234_v46, %v3810_v47 }
 0x38e   : > { %5493 = vst.msk [vmem:[%s7217_s17 + $0x120] sm:$0xf] %vm5420_vm3, %v5417_v44  ;;  %v5189_v48 = vmax.f32 %v4538_v45, %v5109_v10 }
 0x390   : > { %v5268_v49 = vadd.f32 %v6732_v39, %v5189_v48 }
 0x392   : > { %v5343_v51 = vmax.f32 %v5268_v49, 0.0 }
 0x393   : > { %v4461_v52 = vpop.f32.mrf.mxu2  ;;  %v5112_v53 = vpop.f32.mrf.mxu3 }
 0x394   : > { %v5418_v54 = vpack.c.bf16 %v5343_v51, %v5343_v51  ;;  %v4539_v55 = vmax.f32 %v3888_v50, %v4461_v52  ;;  %v3236_v56 = vpop.f32.mrf.mxu0  ;;  %v3812_v57 = vpop.f32.mrf.mxu1 }
 0x396   : > { %5494 = vst.msk [vmem:[%s7217_s17 + $0x124] sm:$0xf] %vm5420_vm3, %v5418_v54  ;;  %v5190_v58 = vmax.f32 %v4539_v55, %v5112_v53 }
 0x398   : > { %v5269_v59 = vadd.f32 %v6732_v39, %v5190_v58 }
 0x39a   : > { %v5344_v60 = vmax.f32 %v5269_v59, 0.0 }
 0x39b   : > { %v4463_v61 = vpop.f32.mrf.mxu2  ;;  %v5114_v62 = vpop.f32.mrf.mxu3 }
 0x39c   : > { %v5419_v63 = vpack.c.bf16 %v5344_v60, %v5344_v60 }
 0x39e   : > { %5495 = vst.msk [vmem:[%s7217_s17 + $0x128] sm:$0xf] %vm5420_vm3, %v5419_v63 }
 0x39f PF: > { %p10_p9 = scmp.ge.s32.totalorder %s6795_s16, 5   ;;  %s7694_s12 = smov %s6751_s13 }
 0x3a0   : > { %s7695_s13 = smov %s6804_s19  ;;  %s7696_s14 = smov %s6795_s16 }
 0x3a1   :  { %12 = sbr.rel (!%p10_p9) target bundleno = 2 (0x2), region = 126 }

// kernel: asthecitiy_forward.5
= control target key start
LH: loop header
LB: loop body
LE: loop exit
PB: predicated region body
PF: predicated region fallthrough
CT: control target
= control target key end

     0   :  { %vm2021_vm0 = vcmask 261120   ;;  %vm4111_vm1 = vcmask 519168   ;;  %s8876_s1 = inlined_call_operand.vmem [shape: bf16[288,64], index: 1, kind: input, shape index: {}]   ;;  %s8877_s0 = inlined_call_operand.vmem [shape: bf16[1568,288], index: 0, kind: input, shape index: {}]   ;;  %s8878_s2 = inlined_call_operand.vmem [shape: f32[1,64], index: 2, kind: input, shape index: {}]   ;;  %s8879_s3 = inlined_call_operand.vmem [shape: bf16[392,64], index: 3, kind: output, shape index: {}]  }
   0x1   :  { %v5812_v0 = vld [vmem:[%s8876_s1 + $0x38] sm:$0xff]  ;;  %v5872_v2 = vld [vmem:[%s8876_s1 + $0x88] sm:$0xff]  ;;  %v5811_v3 = vld [vmem:[%s8876_s1 + $0x30] sm:$0xff] }
   0x2   :  { %v5820_v1 = vld [vmem:[%s8876_s1 + $0x78] sm:$0xff]  ;;  %2316 = vmatpush.bf16.msra.mxu0 %v5812_v0  ;;  %5823 = vmatpush.bf16.msra.mxu3 %v5812_v0  ;;  %v5819_v4 = vld [vmem:[%s8876_s1 + $0x70] sm:$0xff]  ;;  %v5884_v5 = vld [vmem:[%s8876_s1 + $0x80] sm:$0xff] }
   0x3   :  { %2815 = vmatpush.bf16.msra.mxu1 %v5820_v1  ;;  %3320 = vmatpush.bf16.msra.mxu2 %v5872_v2  ;;  %v4175_v6 = vld [vmem:[%s8877_s0 + $0x8] sm:$0xf]  ;;  %v5513_v7 = vld [vmem:[%s8877_s0 + $0x10] sm:$0xf0]  ;;  %v5809_v11 = vld [vmem:[%s8876_s1 + $0x20] sm:$0xff] }
   0x4   :  { %v4176_v8 = vor.u32 %v5513_v7, %v4175_v6  ;;  %v5810_v9 = vld [vmem:[%s8876_s1 + $0x28] sm:$0xff]  ;;  %v5817_v12 = vld [vmem:[%s8876_s1 + $0x60] sm:$0xff]  ;;  %v5808_v13 = vld [vmem:[%s8876_s1 + $0x18] sm:$0xff] }
   0x5   :  { %v5818_v10 = vld [vmem:[%s8876_s1 + $0x68] sm:$0xff]  ;;  %v5816_v14 = vld [vmem:[%s8876_s1 + $0x58] sm:$0xff]  ;;  %v5807_v15 = vld [vmem:[%s8876_s1 + $0x10] sm:$0xff] }
   0x6   :  { %2317 = vmatpush.bf16.msra.mxu0 %v5811_v3  ;;  %5824 = vmatpush.bf16.msra.mxu3 %v5811_v3  ;;  %v5815_v16 = vld [vmem:[%s8876_s1 + $0x50] sm:$0xff]  ;;  %v4187_v17 = vld [vmem:[%s8877_s0 + $0x20] sm:$0xf]  ;;  %v5516_v18 = vld [vmem:[%s8877_s0 + $0x28] sm:$0xf0] }
   0x7   :  { %2816 = vmatpush.bf16.msra.mxu1 %v5819_v4  ;;  %3321 = vmatpush.bf16.msra.mxu2 %v5884_v5  ;;  %v4188_v19 = vor.u32 %v5516_v18, %v4187_v17  ;;  %v5806_v20 = vld [vmem:[%s8876_s1 + $0x8] sm:$0xff]  ;;  %v5805_v22 = vld [vmem:[%s8876_s1] sm:$0xff]  ;;  %v5055_v26 = vld [vmem:[%s8877_s0 + $0x6f0] sm:$0xf] }
   0x8   :  { %v5814_v21 = vld [vmem:[%s8876_s1 + $0x48] sm:$0xff]  ;;  %v5813_v23 = vld [vmem:[%s8876_s1 + $0x40] sm:$0xff]  ;;  %v5734_v27 = vld [vmem:[%s8877_s0 + $0x6f8] sm:$0xf0] }
   0x9   :  { %v4167_v24 = vld [vmem:[%s8877_s0] sm:$0xf]  ;;  %v5512_v25 = vld [vmem:[%s8877_s0 + $0x8] sm:$0xf0]  ;;  %v5511_v28 = vld [vmem:[%s8877_s0 + $0x4] sm:$0xf]  ;;  %v5056_v31 = vor.u32 %v5734_v27, %v5055_v26 }
   0xa   :  { %5413 = vmatmul.msk.bf16.vlgmr.msra.gmra.mxu2 %vm2021_vm0, %v4176_v8  ;;  %2318 = vmatpush.bf16.msra.mxu0 %v5810_v9  ;;  %v4169_v29 = vld [vmem:[%s8877_s0 + $0xc] sm:$0xf0]  ;;  %v4168_v30 = vor.u32 %v5512_v25, %v4167_v24  ;;  %v4199_v33 = vld [vmem:[%s8877_s0 + $0x38] sm:$0xf]  ;;  %v5519_v34 = vld [vmem:[%s8877_s0 + $0x40] sm:$0xf0] }
   0xb   :  { %5825 = vmatpush.bf16.msra.mxu3 %v5810_v9  ;;  %2817 = vmatpush.bf16.msra.mxu1 %v5818_v10  ;;  %v4172_v32 = vor.u32 %v5511_v28, %v4169_v29  ;;  %v4200_v35 = vor.u32 %v5519_v34, %v4199_v33  ;;  %v4179_v36 = vld [vmem:[%s8877_s0 + $0x18] sm:$0xf]  ;;  %v5515_v37 = vld [vmem:[%s8877_s0 + $0x20] sm:$0xf0]  ;;  %v5067_v38 = vld [vmem:[%s8877_s0 + $0x708] sm:$0xf] }
   0xc   :  { %v5737_v39 = vld [vmem:[%s8877_s0 + $0x710] sm:$0xf0]  ;;  %v5514_v40 = vld [vmem:[%s8877_s0 + $0x1c] sm:$0xf]  ;;  %v4181_v41 = vld [vmem:[%s8877_s0 + $0x24] sm:$0xf0]  ;;  %v4180_v42 = vor.u32 %v5515_v37, %v4179_v36 }
   0xd   :  { %v5068_v43 = vor.u32 %v5737_v39, %v5067_v38  ;;  %v4184_v44 = vor.u32 %v5514_v40, %v4181_v41  ;;  %v4211_v45 = vld [vmem:[%s8877_s0 + $0x50] sm:$0xf]  ;;  %v5522_v46 = vld [vmem:[%s8877_s0 + $0x58] sm:$0xf0]  ;;  %v5079_v50 = vld [vmem:[%s8877_s0 + $0x720] sm:$0xf] }
   0xe   :  { %2319 = vmatpush.bf16.msra.mxu0 %v5809_v11  ;;  %v4212_v47 = vor.u32 %v5522_v46, %v4211_v45  ;;  %v4191_v48 = vld [vmem:[%s8877_s0 + $0x30] sm:$0xf]  ;;  %v5518_v49 = vld [vmem:[%s8877_s0 + $0x38] sm:$0xf0]  ;;  %v5740_v51 = vld [vmem:[%s8877_s0 + $0x728] sm:$0xf0] }
   0xf   :  { %5826 = vmatpush.bf16.msra.mxu3 %v5809_v11  ;;  %2818 = vmatpush.bf16.msra.mxu1 %v5817_v12  ;;  %v5517_v52 = vld [vmem:[%s8877_s0 + $0x34] sm:$0xf]  ;;  %v4193_v53 = vld [vmem:[%s8877_s0 + $0x3c] sm:$0xf0]  ;;  %v4192_v54 = vor.u32 %v5518_v49, %v4191_v48  ;;  %v5080_v55 = vor.u32 %v5740_v51, %v5079_v50  ;;  %v4223_v57 = vld [vmem:[%s8877_s0 + $0x68] sm:$0xf] }
  0x10   :  { %v4196_v56 = vor.u32 %v5517_v52, %v4193_v53  ;;  %v5525_v58 = vld [vmem:[%s8877_s0 + $0x70] sm:$0xf0]  ;;  %v4203_v60 = vld [vmem:[%s8877_s0 + $0x48] sm:$0xf]  ;;  %v5091_v62 = vld [vmem:[%s8877_s0 + $0x738] sm:$0xf] }
  0x11   :  { %v4224_v59 = vor.u32 %v5525_v58, %v4223_v57  ;;  %v5521_v61 = vld [vmem:[%s8877_s0 + $0x50] sm:$0xf0]  ;;  %v5743_v63 = vld [vmem:[%s8877_s0 + $0x740] sm:$0xf0]  ;;  %v5520_v0 = vld [vmem:[%s8877_s0 + $0x4c] sm:$0xf] }
  0x12   :  { %2320 = vmatpush.bf16.msra.mxu0 %v5808_v13  ;;  %v5092_v3 = vor.u32 %v5743_v63, %v5091_v62  ;;  %v5528_v6 = vld [vmem:[%s8877_s0 + $0x88] sm:$0xf0]  ;;  %v4215_v8 = vld [vmem:[%s8877_s0 + $0x60] sm:$0xf]  ;;  %v5746_v11 = vld [vmem:[%s8877_s0 + $0x758] sm:$0xf0] }
  0x13   :  { %5827 = vmatpush.bf16.msra.mxu3 %v5808_v13  ;;  %2819 = vmatpush.bf16.msra.mxu1 %v5816_v14  ;;  %v5524_v9 = vld [vmem:[%s8877_s0 + $0x68] sm:$0xf0]  ;;  %v4217_v13 = vld [vmem:[%s8877_s0 + $0x6c] sm:$0xf0]  ;;  %v4247_v17 = vld [vmem:[%s8877_s0 + $0x98] sm:$0xf] }
  0x14   :  { %v5531_v18 = vld [vmem:[%s8877_s0 + $0xa0] sm:$0xf0]  ;;  %v5526_v24 = vld [vmem:[%s8877_s0 + $0x7c] sm:$0xf]  ;;  %v4229_v25 = vld [vmem:[%s8877_s0 + $0x84] sm:$0xf0] }
  0x15   :  { %v4232_v28 = vor.u32 %v5526_v24, %v4229_v25  ;;  %v4259_v29 = vld [vmem:[%s8877_s0 + $0xb0] sm:$0xf]  ;;  %v5530_v33 = vld [vmem:[%s8877_s0 + $0x98] sm:$0xf0]  ;;  %v5127_v34 = vld [vmem:[%s8877_s0 + $0x780] sm:$0xf] }
  0x16   :  { %2321 = vmatpush.bf16.msra.mxu0 %v5807_v15  ;;  %v5529_v36 = vld [vmem:[%s8877_s0 + $0x94] sm:$0xf]  ;;  %v4241_v37 = vld [vmem:[%s8877_s0 + $0x9c] sm:$0xf0]  ;;  %v4271_v41 = vld [vmem:[%s8877_s0 + $0xc8] sm:$0xf] }
  0x17   :  { %5828 = vmatpush.bf16.msra.mxu3 %v5807_v15  ;;  %2820 = vmatpush.bf16.msra.mxu1 %v5815_v16  ;;  %v4244_v40 = vor.u32 %v5529_v36, %v4241_v37  ;;  %v5533_v45 = vld [vmem:[%s8877_s0 + $0xb0] sm:$0xf0]  ;;  %v5139_v46 = vld [vmem:[%s8877_s0 + $0x798] sm:$0xf]  ;;  %v5532_v48 = vld [vmem:[%s8877_s0 + $0xac] sm:$0xf] }
  0x18   :  { %v4253_v49 = vld [vmem:[%s8877_s0 + $0xb4] sm:$0xf0]  ;;  %v4263_v58 = vld [vmem:[%s8877_s0 + $0xc0] sm:$0xf]  ;;  %v5535_v62 = vld [vmem:[%s8877_s0 + $0xc4] sm:$0xf] }
  0x19   :  { %v4256_v53 = vor.u32 %v5532_v48, %v4253_v49  ;;  %v4265_v63 = vld [vmem:[%s8877_s0 + $0xcc] sm:$0xf0] }
  0x1a   :  { %5414 = vmatmul.msk.bf16.gmra.mxu2 %vm2021_vm0, %v4188_v19  ;;  %2322 = vmatpush.bf16.msra.mxu0 %v5806_v20  ;;  %v4248_v19 = vor.u32 %v5531_v18, %v4247_v17  ;;  %v4275_v17 = vld [vmem:[%s8877_s0 + $0xd8] sm:$0xf]  ;;  %v5539_v18 = vld [vmem:[%s8877_s0 + $0xe0] sm:$0xf0] }
  0x1b   :  { %5829 = vmatpush.bf16.msra.mxu3 %v5806_v20  ;;  %2821 = vmatpush.bf16.msra.mxu1 %v5814_v21  ;;  %v4227_v20 = vld [vmem:[%s8877_s0 + $0x78] sm:$0xf]  ;;  %v4276_v25 = vor.u32 %v5539_v18, %v4275_v17 }
  0x1e   :  { %2323 = vmatpush.bf16.msra.mxu0 %v5805_v22 }
  0x1f   :  { %5830 = vmatpush.bf16.msra.mxu3 %v5805_v22  ;;  %2822 = vmatpush.bf16.msra.mxu1 %v5813_v23  ;;  %v5115_v22 = vld [vmem:[%s8877_s0 + $0x768] sm:$0xf] }
  0x21   :  { %2324 = vmatmul.bf16.vlgmr.msra.gmra.mxu0 %v4168_v30  ;;  %v5534_v30 = vld [vmem:[%s8877_s0 + $0xb8] sm:$0xf0] }
  0x22   :  { %2694 = vmatmul.bf16.vlgmr.msra.gmra.mxu3 %v5056_v31  ;;  %2823 = vmatmul.bf16.vlgmr.msra.gmra.mxu1 %v4172_v32  ;;  %v4260_v31 = vor.u32 %v5534_v30, %v4259_v29  ;;  %v4239_v32 = vld [vmem:[%s8877_s0 + $0x90] sm:$0xf] }
  0x23   :  { %5831 = vmatpush.bf16.msrb.mxu3 %v5820_v1  ;;  %v4205_v1 = vld [vmem:[%s8877_s0 + $0x54] sm:$0xf0]  ;;  %v4240_v38 = vor.u32 %v5530_v33, %v4239_v32  ;;  %v4307_v32 = vld [vmem:[%s8877_s0 + $0x110] sm:$0xf]  ;;  %v5546_v33 = vld [vmem:[%s8877_s0 + $0x118] sm:$0xf0] }
  0x24   :  { %v4308_v37 = vor.u32 %v5546_v33, %v4307_v32  ;;  %v5199_v32 = vld [vmem:[%s8877_s0 + $0x810] sm:$0xf]  ;;  %v5770_v33 = vld [vmem:[%s8877_s0 + $0x818] sm:$0xf0] }
  0x27   :  { %5832 = vmatpush.bf16.msrb.mxu3 %v5819_v4  ;;  %v4208_v4 = vor.u32 %v5520_v0, %v4205_v1 }
  0x2a   :  { %5415 = vmatmul.msk.bf16.gmra.mxu2 %vm2021_vm0, %v4200_v35  ;;  %v5752_v35 = vld [vmem:[%s8877_s0 + $0x788] sm:$0xf0] }
  0x2b   :  { %5833 = vmatpush.bf16.msrb.mxu3 %v5818_v10  ;;  %v5103_v10 = vld [vmem:[%s8877_s0 + $0x750] sm:$0xf]  ;;  %v5128_v39 = vor.u32 %v5752_v35, %v5127_v34 }
  0x2c   :  { %v5104_v15 = vor.u32 %v5746_v11, %v5103_v10 }
  0x2f   :  { %5834 = vmatpush.bf16.msrb.mxu3 %v5817_v12  ;;  %v5523_v12 = vld [vmem:[%s8877_s0 + $0x64] sm:$0xf] }
  0x31   :  { %2329 = vmatmul.bf16.gmra.mxu0 %v4180_v42  ;;  %v5537_v42 = vld [vmem:[%s8877_s0 + $0xd0] sm:$0xf0] }
  0x32   :  { %2699 = vmatmul.bf16.gmra.mxu3 %v5068_v43  ;;  %2828 = vmatmul.bf16.gmra.mxu1 %v4184_v44  ;;  %v4272_v43 = vor.u32 %v5537_v42, %v4271_v41  ;;  %v4251_v44 = vld [vmem:[%s8877_s0 + $0xa8] sm:$0xf]  ;;  %v4287_v41 = vld [vmem:[%s8877_s0 + $0xf0] sm:$0xf]  ;;  %v5542_v42 = vld [vmem:[%s8877_s0 + $0xf8] sm:$0xf0] }
  0x33   :  { %5835 = vmatpush.bf16.msrb.mxu3 %v5816_v14  ;;  %v4216_v14 = vor.u32 %v5524_v9, %v4215_v8  ;;  %v4252_v51 = vor.u32 %v5533_v45, %v4251_v44  ;;  %v4295_v8 = vld [vmem:[%s8877_s0 + $0xf8] sm:$0xf]  ;;  %v5543_v9 = vld [vmem:[%s8877_s0 + $0x100] sm:$0xf0]  ;;  %v5764_v44 = vld [vmem:[%s8877_s0 + $0x7e8] sm:$0xf0]  ;;  %v4288_v49 = vor.u32 %v5542_v42, %v4287_v41  ;;  %v5200_v42 = vor.u32 %v5770_v33, %v5199_v32 }
  0x34   :  { %v5541_v45 = vld [vmem:[%s8877_s0 + $0xf4] sm:$0xf]  ;;  %v5776_v32 = vld [vmem:[%s8877_s0 + $0x848] sm:$0xf0] }
  0x35   :  { %v5553_v33 = vld [vmem:[%s8877_s0 + $0x154] sm:$0xf] }
  0x37   :  { %5836 = vmatpush.bf16.msrb.mxu3 %v5815_v16  ;;  %v4220_v16 = vor.u32 %v5523_v12, %v4217_v13  ;;  %v4296_v13 = vor.u32 %v5543_v9, %v4295_v8 }
  0x3a   :  { %5416 = vmatmul.msk.bf16.gmra.mxu2 %vm2021_vm0, %v4212_v47  ;;  %v5755_v47 = vld [vmem:[%s8877_s0 + $0x7a0] sm:$0xf0] }
  0x3b   :  { %5837 = vmatpush.bf16.msrb.mxu3 %v5814_v21  ;;  %v5527_v21 = vld [vmem:[%s8877_s0 + $0x80] sm:$0xf0]  ;;  %v5140_v52 = vor.u32 %v5755_v47, %v5139_v46  ;;  %v4289_v46 = vld [vmem:[%s8877_s0 + $0xfc] sm:$0xf0] }
  0x3c   :  { %v4228_v26 = vor.u32 %v5527_v21, %v4227_v20  ;;  %v5761_v20 = vld [vmem:[%s8877_s0 + $0x7d0] sm:$0xf0]  ;;  %v5538_v21 = vld [vmem:[%s8877_s0 + $0xdc] sm:$0xf] }
  0x3f   :  { %5838 = vmatpush.bf16.msrb.mxu3 %v5813_v23  ;;  %v5749_v23 = vld [vmem:[%s8877_s0 + $0x770] sm:$0xf0] }
  0x40   :  { %v5116_v27 = vor.u32 %v5749_v23, %v5115_v22  ;;  %v4277_v22 = vld [vmem:[%s8877_s0 + $0xe4] sm:$0xf0] }
  0x41   :  { %2334 = vmatmul.bf16.gmra.mxu0 %v4192_v54  ;;  %v4283_v54 = vld [vmem:[%s8877_s0 + $0xe0] sm:$0xf] }
  0x42   :  { %2704 = vmatmul.bf16.gmra.mxu3 %v5080_v55  ;;  %2833 = vmatmul.bf16.gmra.mxu1 %v4196_v56  ;;  %v5540_v55 = vld [vmem:[%s8877_s0 + $0xe8] sm:$0xf0] }
  0x43   :  { %5839 = vmatpush.bf16.msra.mxu3 %v5872_v2  ;;  %v4204_v2 = vor.u32 %v5521_v61, %v4203_v60  ;;  %v4284_v57 = vor.u32 %v5540_v55, %v4283_v54  ;;  %v5151_v60 = vld [vmem:[%s8877_s0 + $0x7b0] sm:$0xf]  ;;  %v5758_v61 = vld [vmem:[%s8877_s0 + $0x7b8] sm:$0xf0] }
  0x47   :  { %5840 = vmatpush.bf16.msra.mxu3 %v5884_v5  ;;  %v4235_v5 = vld [vmem:[%s8877_s0 + $0x80] sm:$0xf] }
  0x48   :  { %v4236_v7 = vor.u32 %v5528_v6, %v4235_v5 }
  0x4a   :  { %5417 = vmatmul.msk.bf16.gmra.mxu2 %vm2021_vm0, %v4224_v59  ;;  %v5536_v59 = vld [vmem:[%s8877_s0 + $0xc8] sm:$0xf0] }
  0x4b   :  { %v4264_v1 = vor.u32 %v5536_v59, %v4263_v58 }
  0x51   :  { %2339 = vmatmul.bf16.gmra.mxu0 %v4204_v2 }
  0x52   :  { %2709 = vmatmul.bf16.gmra.mxu3 %v5092_v3  ;;  %2838 = vmatmul.bf16.gmra.mxu1 %v4208_v4  ;;  %v5152_v3 = vor.u32 %v5758_v61, %v5151_v60  ;;  %v4268_v4 = vor.u32 %v5535_v62, %v4265_v63 }
  0x5a   :  { %5418 = vmatmul.msk.bf16.gmra.mxu2 %vm2021_vm0, %v4236_v7 }
  0x61   :  { %2344 = vmatmul.bf16.gmra.mxu0 %v4216_v14 }
  0x62   :  { %2714 = vmatmul.bf16.gmra.mxu3 %v5104_v15  ;;  %2843 = vmatmul.bf16.gmra.mxu1 %v4220_v16 }
  0x6a   :  { %5419 = vmatmul.msk.bf16.gmra.mxu2 %vm2021_vm0, %v4248_v19  ;;  %v5163_v19 = vld [vmem:[%s8877_s0 + $0x7c8] sm:$0xf] }
  0x71   :  { %2349 = vmatmul.bf16.gmra.mxu0 %v4228_v26 }
  0x72   :  { %2719 = vmatmul.bf16.gmra.mxu3 %v5116_v27  ;;  %2848 = vmatmul.bf16.gmra.mxu1 %v4232_v28  ;;  %v5164_v27 = vor.u32 %v5761_v20, %v5163_v19  ;;  %v4280_v28 = vor.u32 %v5538_v21, %v4277_v22  ;;  %v4331_v19 = vld [vmem:[%s8877_s0 + $0x140] sm:$0xf]  ;;  %v5552_v20 = vld [vmem:[%s8877_s0 + $0x148] sm:$0xf0] }
  0x7a   :  { %5420 = vmatmul.msk.bf16.gmra.mxu2 %vm2021_vm0, %v4260_v31 }
  0x81   :  { %2354 = vmatmul.bf16.gmra.mxu0 %v4240_v38 }
  0x82   :  { %2724 = vmatmul.bf16.gmra.mxu3 %v5128_v39  ;;  %2853 = vmatmul.bf16.gmra.mxu1 %v4244_v40 }
  0x8a   :  { %5421 = vmatmul.msk.bf16.gmra.mxu2 %vm2021_vm0, %v4272_v43  ;;  %v5175_v43 = vld [vmem:[%s8877_s0 + $0x7e0] sm:$0xf] }
  0x8d   :  { %v3323_v50 = vpop.f32.mrf.mxu2 }
  0x91   :  { %2359 = vmatmul.bf16.gmra.mxu0 %v4252_v51  ;;  %v5176_v51 = vor.u32 %v5764_v44, %v5175_v43 }
  0x92   :  { %2729 = vmatmul.bf16.gmra.mxu3 %v5140_v52  ;;  %2858 = vmatmul.bf16.gmra.mxu1 %v4256_v53  ;;  %v4292_v52 = vor.u32 %v5541_v45, %v4289_v46 }
  0x95   :  { %v3325_v56 = vpop.f32.mrf.mxu2 }
  0x9a   :  { %5422 = vmatmul.msk.bf16.gmra.mxu2 %vm2021_vm0, %v4284_v57  ;;  %v5549_v57 = vld [vmem:[%s8877_s0 + $0x130] sm:$0xf0] }
  0x9d   :  { %v3328_v0 = vpop.f32.mrf.mxu2 }
  0x9e   :  { %v2325_v2 = vpop.f32.mrf.mxu0 }
  0x9f   :  { %v2824_v5 = vpop.f32.mrf.mxu1 }
  0xa0   :  { %v2825_v6 = vadd.f32 %v2824_v5, %v2325_v2  ;;  %v5545_v2 = vld [vmem:[%s8877_s0 + $0x110] sm:$0xf0]  ;;  %v5544_v5 = vld [vmem:[%s8877_s0 + $0x10c] sm:$0xf] }
  0xa1   :  { %2364 = vmatmul.bf16.gmra.mxu0 %v4264_v1  ;;  %v4299_v1 = vld [vmem:[%s8877_s0 + $0x108] sm:$0xf] }
  0xa2   :  { %v6157_v7 = vadd.f32 %v3323_v50, %v2825_v6  ;;  %2734 = vmatmul.bf16.gmra.mxu3 %v5152_v3  ;;  %2863 = vmatmul.bf16.gmra.mxu1 %v4268_v4  ;;  %v5187_v3 = vld [vmem:[%s8877_s0 + $0x7f8] sm:$0xf]  ;;  %v5767_v4 = vld [vmem:[%s8877_s0 + $0x800] sm:$0xf0] }
  0xa3   :  { %v4301_v6 = vld [vmem:[%s8877_s0 + $0x114] sm:$0xf0] }
  0xa4   :  { %8945 = vst [vmem:[#allocation2_spill] sm:$0xff] %v6157_v7 }
  0xa5   :  { %v6165_v10 = vpop.f32.mrf.mxu3  ;;  %v3330_v11 = vpop.f32.mrf.mxu2 }
  0xa6   :  { %8946 = vst [vmem:[#allocation3_spill] sm:$0xff] %v6165_v10  ;;  %v2327_v12 = vpop.f32.mrf.mxu0  ;;  %v5579_v10 = vld [vmem:[%s8877_s0 + $0x220] sm:$0xf0] }
  0xa7   :  { %v2826_v14 = vpop.f32.mrf.mxu1 }
  0xa8   :  { %v2827_v15 = vadd.f32 %v2826_v14, %v2327_v12  ;;  %v4304_v14 = vor.u32 %v5544_v5, %v4301_v6 }
  0xaa   :  { %v6167_v16 = vadd.f32 %v3325_v56, %v2827_v15  ;;  %5423 = vmatmul.msk.bf16.gmra.mxu2 %vm2021_vm0, %v4296_v13  ;;  %v4319_v56 = vld [vmem:[%s8877_s0 + $0x128] sm:$0xf]  ;;  %v5188_v13 = vor.u32 %v5767_v4, %v5187_v3 }
  0xab   :  { %v4320_v61 = vor.u32 %v5549_v57, %v4319_v56 }
  0xac   :  { %8947 = vst [vmem:[#allocation4_spill] sm:$0xff] %v6167_v16 }
  0xad   :  { %v6188_v23 = vpop.f32.mrf.mxu3  ;;  %v3333_v24 = vpop.f32.mrf.mxu2 }
  0xae   :  { %8948 = vst [vmem:[#allocation5_spill] sm:$0xff] %v6188_v23  ;;  %v2330_v26 = vpop.f32.mrf.mxu0  ;;  %v4439_v23 = vld [vmem:[%s8877_s0 + $0x218] sm:$0xf] }
  0xaf   :  { %v2829_v29 = vpop.f32.mrf.mxu1 }
  0xb0   :  { %v2830_v30 = vadd.f32 %v2829_v29, %v2330_v26  ;;  %v4311_v29 = vld [vmem:[%s8877_s0 + $0x120] sm:$0xf] }
  0xb1   :  { %2369 = vmatmul.bf16.gmra.mxu0 %v4276_v25  ;;  %v4332_v25 = vor.u32 %v5552_v20, %v4331_v19 }
  0xb2   :  { %v6190_v31 = vadd.f32 %v3328_v0, %v2830_v30  ;;  %2739 = vmatmul.bf16.gmra.mxu3 %v5164_v27  ;;  %2868 = vmatmul.bf16.gmra.mxu1 %v4280_v28  ;;  %v5548_v30 = vld [vmem:[%s8877_s0 + $0x128] sm:$0xf0] }
  0xb4   :  { %8949 = vst [vmem:[#allocation6_spill] sm:$0xff] %v6190_v31 }
  0xb5   :  { %v6198_v34 = vpop.f32.mrf.mxu3  ;;  %v3335_v35 = vpop.f32.mrf.mxu2 }
  0xb6   :  { %8950 = vst [vmem:[#allocation7_spill] sm:$0xff] %v6198_v34  ;;  %v2332_v36 = vpop.f32.mrf.mxu0  ;;  %v4571_v34 = vld [vmem:[%s8877_s0 + $0x320] sm:$0xf] }
  0xb7   :  { %v2831_v38 = vpop.f32.mrf.mxu1 }
  0xb8   :  { %v2832_v39 = vadd.f32 %v2831_v38, %v2332_v36  ;;  %v4313_v36 = vld [vmem:[%s8877_s0 + $0x12c] sm:$0xf0] }
  0xba   :  { %v6200_v40 = vadd.f32 %v3330_v11, %v2832_v39  ;;  %5424 = vmatmul.msk.bf16.gmra.mxu2 %vm2021_vm0, %v4308_v37  ;;  %v4300_v11 = vor.u32 %v5545_v2, %v4299_v1  ;;  %v4312_v39 = vor.u32 %v5548_v30, %v4311_v29  ;;  %v4325_v1 = vld [vmem:[%s8877_s0 + $0x144] sm:$0xf0]  ;;  %v5554_v29 = vld [vmem:[%s8877_s0 + $0x158] sm:$0xf0]  ;;  %v5223_v30 = vld [vmem:[%s8877_s0 + $0x840] sm:$0xf] }
  0xbd   :  { %v6221_v47 = vpop.f32.mrf.mxu3  ;;  %v3338_v48 = vpop.f32.mrf.mxu2 }
  0xbe   :  { %8951 = vst [vmem:[#allocation8_spill] sm:$0xff] %v6221_v47  ;;  %v2335_v50 = vpop.f32.mrf.mxu0 }
  0xbf   :  { %v2834_v53 = vpop.f32.mrf.mxu1 }
  0xc0   :  { %v2835_v54 = vadd.f32 %v2834_v53, %v2335_v50 }
  0xc1   :  { %2374 = vmatmul.bf16.gmra.mxu0 %v4288_v49  ;;  %v5555_v49 = vld [vmem:[%s8877_s0 + $0x160] sm:$0xf0] }
  0xc2   :  { %v6223_v55 = vadd.f32 %v3333_v24, %v2835_v54  ;;  %2744 = vmatmul.bf16.gmra.mxu3 %v5176_v51  ;;  %2873 = vmatmul.bf16.gmra.mxu1 %v4292_v52 }
  0xc5   :  { %v6231_v58 = vpop.f32.mrf.mxu3  ;;  %v3340_v59 = vpop.f32.mrf.mxu2 }
  0xc6   :  { %8952 = vst [vmem:[#allocation9_spill] sm:$0xff] %v6231_v58  ;;  %v2337_v60 = vpop.f32.mrf.mxu0  ;;  %v4559_v58 = vld [vmem:[%s8877_s0 + $0x308] sm:$0xf] }
  0xc7   :  { %v2836_v62 = vpop.f32.mrf.mxu1 }
  0xc8   :  { %v2837_v63 = vadd.f32 %v2836_v62, %v2337_v60  ;;  %v5551_v60 = vld [vmem:[%s8877_s0 + $0x140] sm:$0xf0]  ;;  %v5773_v62 = vld [vmem:[%s8877_s0 + $0x830] sm:$0xf0] }
  0xca   :  { %v6233_v0 = vadd.f32 %v3335_v35, %v2837_v63  ;;  %5425 = vmatmul.msk.bf16.gmra.mxu2 %vm2021_vm0, %v4320_v61  ;;  %v5547_v35 = vld [vmem:[%s8877_s0 + $0x124] sm:$0xf]  ;;  %v5211_v61 = vld [vmem:[%s8877_s0 + $0x828] sm:$0xf]  ;;  %v5550_v63 = vld [vmem:[%s8877_s0 + $0x13c] sm:$0xf] }
  0xcb   :  { %v4316_v43 = vor.u32 %v5547_v35, %v4313_v36  ;;  %v5212_v6 = vor.u32 %v5773_v62, %v5211_v61  ;;  %v4337_v35 = vld [vmem:[%s8877_s0 + $0x15c] sm:$0xf0]  ;;  %v4347_v62 = vld [vmem:[%s8877_s0 + $0x168] sm:$0xf] }
  0xcc   :  { %8953 = vst [vmem:[#allocation10_spill] sm:$0xff] %v6233_v0  ;;  %v4631_v0 = vld [vmem:[%s8877_s0 + $0x398] sm:$0xf] }
  0xcd   :  { %v6254_v8 = vpop.f32.mrf.mxu3  ;;  %v3343_v9 = vpop.f32.mrf.mxu2 }
  0xce   :  { %8954 = vst [vmem:[#allocation11_spill] sm:$0xff] %v6254_v8  ;;  %v2340_v12 = vpop.f32.mrf.mxu0 }
  0xcf   :  { %v2839_v15 = vpop.f32.mrf.mxu1 }
  0xd0   :  { %v2840_v17 = vadd.f32 %v2839_v15, %v2340_v12  ;;  %v5558_v15 = vld [vmem:[%s8877_s0 + $0x178] sm:$0xf0] }
  0xd1   :  { %2379 = vmatmul.bf16.gmra.mxu0 %v4300_v11 }
  0xd2   :  { %v6256_v18 = vadd.f32 %v3338_v48, %v2840_v17  ;;  %2749 = vmatmul.bf16.gmra.mxu3 %v5188_v13  ;;  %2878 = vmatmul.bf16.gmra.mxu1 %v4304_v14  ;;  %v4343_v48 = vld [vmem:[%s8877_s0 + $0x158] sm:$0xf]  ;;  %v4355_v14 = vld [vmem:[%s8877_s0 + $0x170] sm:$0xf] }
  0xd3   :  { %v4344_v53 = vor.u32 %v5555_v49, %v4343_v48  ;;  %v4367_v49 = vld [vmem:[%s8877_s0 + $0x188] sm:$0xf] }
  0xd5   :  { %v6264_v21 = vpop.f32.mrf.mxu3  ;;  %v3345_v22 = vpop.f32.mrf.mxu2 }
  0xd6   :  { %8955 = vst [vmem:[#allocation12_spill] sm:$0xff] %v6264_v21  ;;  %v2342_v24 = vpop.f32.mrf.mxu0  ;;  %v4547_v21 = vld [vmem:[%s8877_s0 + $0x2f0] sm:$0xf] }
  0xd7   :  { %v2841_v26 = vpop.f32.mrf.mxu1 }
  0xd8   :  { %v2842_v27 = vadd.f32 %v2841_v26, %v2342_v24 }
  0xda   :  { %v6266_v28 = vadd.f32 %v3340_v59, %v2842_v27  ;;  %5426 = vmatmul.msk.bf16.gmra.mxu2 %vm2021_vm0, %v4332_v25  ;;  %v4323_v59 = vld [vmem:[%s8877_s0 + $0x138] sm:$0xf]  ;;  %v4335_v27 = vld [vmem:[%s8877_s0 + $0x150] sm:$0xf] }
  0xdb   :  { %v4324_v4 = vor.u32 %v5551_v60, %v4323_v59 }
  0xdc   :  { %8956 = vst [vmem:[#allocation13_spill] sm:$0xff] %v6266_v28  ;;  %v4643_v28 = vld [vmem:[%s8877_s0 + $0x3b0] sm:$0xf] }
  0xdd   :  { %v6287_v37 = vpop.f32.mrf.mxu3  ;;  %v3348_v38 = vpop.f32.mrf.mxu2 }
  0xde   :  { %8957 = vst [vmem:[#allocation14_spill] sm:$0xff] %v6287_v37  ;;  %v2345_v41 = vpop.f32.mrf.mxu0 }
  0xdf   :  { %v2844_v44 = vpop.f32.mrf.mxu1 }
  0xe0   :  { %v2845_v45 = vadd.f32 %v2844_v44, %v2345_v41 }
  0xe1   :  { %2384 = vmatmul.bf16.gmra.mxu0 %v4312_v39  ;;  %v4336_v39 = vor.u32 %v5554_v29, %v4335_v27 }
  0xe2   :  { %v6289_v46 = vadd.f32 %v3343_v9, %v2845_v45  ;;  %2754 = vmatmul.bf16.gmra.mxu3 %v5200_v42  ;;  %2883 = vmatmul.bf16.gmra.mxu1 %v4316_v43  ;;  %v4328_v9 = vor.u32 %v5550_v63, %v4325_v1  ;;  %v5224_v42 = vor.u32 %v5776_v32, %v5223_v30  ;;  %v5557_v63 = vld [vmem:[%s8877_s0 + $0x170] sm:$0xf0]  ;;  %v5235_v1 = vld [vmem:[%s8877_s0 + $0x858] sm:$0xf] }
  0xe3   :  { %v4340_v43 = vor.u32 %v5553_v33, %v4337_v35 }
  0xe5   :  { %v6297_v50 = vpop.f32.mrf.mxu3  ;;  %v3350_v51 = vpop.f32.mrf.mxu2 }
  0xe6   :  { %8958 = vst [vmem:[#allocation15_spill] sm:$0xff] %v6297_v50  ;;  %v2347_v52 = vpop.f32.mrf.mxu0  ;;  %v4535_v50 = vld [vmem:[%s8877_s0 + $0x2d8] sm:$0xf] }
  0xe7   :  { %v2846_v54 = vpop.f32.mrf.mxu1 }
  0xe8   :  { %v2847_v56 = vadd.f32 %v2846_v54, %v2347_v52 }
  0xea   :  { %v6299_v57 = vadd.f32 %v3345_v22, %v2847_v56  ;;  %5427 = vmatmul.msk.bf16.gmra.mxu2 %vm2021_vm0, %v4344_v53  ;;  %v4356_v22 = vor.u32 %v5558_v15, %v4355_v14 }
  0xec   :  { %8959 = vst [vmem:[#allocation16_spill] sm:$0xff] %v6299_v57  ;;  %v4655_v57 = vld [vmem:[%s8877_s0 + $0x3c8] sm:$0xf] }
  0xed   :  { %v6320_v2 = vpop.f32.mrf.mxu3  ;;  %v3353_v3 = vpop.f32.mrf.mxu2 }
  0xee   :  { %8960 = vst [vmem:[#allocation17_spill] sm:$0xff] %v6320_v2  ;;  %v2350_v5 = vpop.f32.mrf.mxu0 }
  0xef   :  { %v2849_v11 = vpop.f32.mrf.mxu1 }
  0xf0   :  { %v2850_v12 = vadd.f32 %v2849_v11, %v2350_v5  ;;  %v4349_v5 = vld [vmem:[%s8877_s0 + $0x174] sm:$0xf0]  ;;  %v4348_v11 = vor.u32 %v5557_v63, %v4347_v62 }
  0xf1   :  { %2389 = vmatmul.bf16.gmra.mxu0 %v4324_v4  ;;  %v5556_v4 = vld [vmem:[%s8877_s0 + $0x16c] sm:$0xf] }
  0xf2   :  { %v6322_v13 = vadd.f32 %v3348_v38, %v2850_v12  ;;  %2759 = vmatmul.bf16.gmra.mxu3 %v5212_v6  ;;  %2888 = vmatmul.bf16.gmra.mxu1 %v4328_v9  ;;  %v4352_v15 = vor.u32 %v5556_v4, %v4349_v5 }
  0xf5   :  { %v6330_v17 = vpop.f32.mrf.mxu3  ;;  %v3355_v19 = vpop.f32.mrf.mxu2 }
  0xf6   :  { %8961 = vst [vmem:[#allocation18_spill] sm:$0xff] %v6330_v17  ;;  %v2352_v20 = vpop.f32.mrf.mxu0  ;;  %v4523_v17 = vld [vmem:[%s8877_s0 + $0x2c0] sm:$0xf] }
  0xf7   :  { %v2851_v24 = vpop.f32.mrf.mxu1 }
  0xf8   :  { %v2852_v25 = vadd.f32 %v2851_v24, %v2352_v20  ;;  %v4379_v24 = vld [vmem:[%s8877_s0 + $0x1a0] sm:$0xf] }
  0xfa   :  { %v6332_v26 = vadd.f32 %v3350_v51, %v2852_v25  ;;  %5428 = vmatmul.msk.bf16.gmra.mxu2 %vm2021_vm0, %v4356_v22  ;;  %v5561_v51 = vld [vmem:[%s8877_s0 + $0x190] sm:$0xf0]  ;;  %v5564_v25 = vld [vmem:[%s8877_s0 + $0x1a8] sm:$0xf0] }
  0xfb   :  { %v4368_v56 = vor.u32 %v5561_v51, %v4367_v49  ;;  %v4380_v32 = vor.u32 %v5564_v25, %v4379_v24  ;;  %v5259_v24 = vld [vmem:[%s8877_s0 + $0x888] sm:$0xf]  ;;  %v5785_v25 = vld [vmem:[%s8877_s0 + $0x890] sm:$0xf0] }
  0xfc   :  { %8962 = vst [vmem:[#allocation19_spill] sm:$0xff] %v6332_v26  ;;  %v4667_v26 = vld [vmem:[%s8877_s0 + $0x3e0] sm:$0xf] }
  0xfd   :  { %v6353_v36 = vpop.f32.mrf.mxu3  ;;  %v3358_v38 = vpop.f32.mrf.mxu2 }
  0xfe   :  { %8963 = vst [vmem:[#allocation20_spill] sm:$0xff] %v6353_v36  ;;  %v2355_v41 = vpop.f32.mrf.mxu0 }
  0xff   :  { %v2854_v44 = vpop.f32.mrf.mxu1 }
 0x100   :  { %v2855_v45 = vadd.f32 %v2854_v44, %v2355_v41  ;;  %v5560_v41 = vld [vmem:[%s8877_s0 + $0x188] sm:$0xf0]  ;;  %v5559_v44 = vld [vmem:[%s8877_s0 + $0x184] sm:$0xf] }
 0x101   :  { %2394 = vmatmul.bf16.gmra.mxu0 %v4336_v39 }
 0x102   :  { %v6355_v48 = vadd.f32 %v3353_v3, %v2855_v45  ;;  %2764 = vmatmul.bf16.gmra.mxu3 %v5224_v42  ;;  %2893 = vmatmul.bf16.gmra.mxu1 %v4340_v43  ;;  %v5779_v3 = vld [vmem:[%s8877_s0 + $0x860] sm:$0xf0]  ;;  %v5247_v42 = vld [vmem:[%s8877_s0 + $0x870] sm:$0xf]  ;;  %v5782_v43 = vld [vmem:[%s8877_s0 + $0x878] sm:$0xf0] }
 0x103   :  { %v5236_v14 = vor.u32 %v5779_v3, %v5235_v1  ;;  %v4361_v45 = vld [vmem:[%s8877_s0 + $0x18c] sm:$0xf0]  ;;  %v4391_v1 = vld [vmem:[%s8877_s0 + $0x1b8] sm:$0xf]  ;;  %v5567_v3 = vld [vmem:[%s8877_s0 + $0x1c0] sm:$0xf0] }
 0x105   :  { %v6363_v52 = vpop.f32.mrf.mxu3  ;;  %v3360_v53 = vpop.f32.mrf.mxu2 }
 0x106   :  { %8964 = vst [vmem:[#allocation21_spill] sm:$0xff] %v6363_v52  ;;  %v2357_v54 = vpop.f32.mrf.mxu0  ;;  %v4511_v52 = vld [vmem:[%s8877_s0 + $0x2a8] sm:$0xf] }
 0x107   :  { %v2856_v59 = vpop.f32.mrf.mxu1 }
 0x108   :  { %v2857_v60 = vadd.f32 %v2856_v59, %v2357_v54  ;;  %v4364_v59 = vor.u32 %v5559_v44, %v4361_v45 }
 0x10a   :  { %v6365_v61 = vadd.f32 %v3355_v19, %v2857_v60  ;;  %5429 = vmatmul.msk.bf16.gmra.mxu2 %vm2021_vm0, %v4368_v56  ;;  %v5248_v56 = vor.u32 %v5782_v43, %v5247_v42 }
 0x10c   :  { %8965 = vst [vmem:[#allocation22_spill] sm:$0xff] %v6365_v61  ;;  %v4679_v61 = vld [vmem:[%s8877_s0 + $0x3f8] sm:$0xf] }
 0x10d   :  { %v6386_v6 = vpop.f32.mrf.mxu3  ;;  %v3363_v9 = vpop.f32.mrf.mxu2 }
 0x10e   :  { %8966 = vst [vmem:[#allocation23_spill] sm:$0xff] %v6386_v6  ;;  %v2360_v12 = vpop.f32.mrf.mxu0 }
 0x10f   :  { %v2859_v19 = vpop.f32.mrf.mxu1 }
 0x110   :  { %v2860_v20 = vadd.f32 %v2859_v19, %v2360_v12  ;;  %v4392_v12 = vor.u32 %v5567_v3, %v4391_v1 }
 0x111   :  { %2399 = vmatmul.bf16.gmra.mxu0 %v4348_v11 }
 0x112   :  { %v6388_v22 = vadd.f32 %v3358_v38, %v2860_v20  ;;  %2769 = vmatmul.bf16.gmra.mxu3 %v5236_v14  ;;  %2898 = vmatmul.bf16.gmra.mxu1 %v4352_v15  ;;  %v4359_v38 = vld [vmem:[%s8877_s0 + $0x180] sm:$0xf]  ;;  %v5563_v20 = vld [vmem:[%s8877_s0 + $0x1a0] sm:$0xf0] }
 0x115   :  { %v6396_v27 = vpop.f32.mrf.mxu3  ;;  %v3365_v29 = vpop.f32.mrf.mxu2 }
 0x116   :  { %8967 = vst [vmem:[#allocation24_spill] sm:$0xff] %v6396_v27  ;;  %v2362_v30 = vpop.f32.mrf.mxu0  ;;  %v4499_v27 = vld [vmem:[%s8877_s0 + $0x290] sm:$0xf] }
 0x117   :  { %v2861_v33 = vpop.f32.mrf.mxu1 }
 0x118   :  { %v2862_v35 = vadd.f32 %v2861_v33, %v2362_v30  ;;  %v4373_v30 = vld [vmem:[%s8877_s0 + $0x1a4] sm:$0xf0] }
 0x11a   :  { %v6398_v39 = vadd.f32 %v3360_v53, %v2862_v35  ;;  %5430 = vmatmul.msk.bf16.gmra.mxu2 %vm2021_vm0, %v4380_v32  ;;  %v4360_v53 = vor.u32 %v5560_v41, %v4359_v38  ;;  %v5260_v41 = vor.u32 %v5785_v25, %v5259_v24 }
 0x11c   :  { %8968 = vst [vmem:[#allocation25_spill] sm:$0xff] %v6398_v39  ;;  %v4691_v39 = vld [vmem:[%s8877_s0 + $0x410] sm:$0xf] }
 0x11d   :  { %v6419_v49 = vpop.f32.mrf.mxu3  ;;  %v3368_v51 = vpop.f32.mrf.mxu2 }
 0x11e   :  { %8969 = vst [vmem:[#allocation26_spill] sm:$0xff] %v6419_v49  ;;  %v2365_v54 = vpop.f32.mrf.mxu0 }
 0x11f   :  { %v2864_v60 = vpop.f32.mrf.mxu1 }
 0x120   :  { %v2865_v62 = vadd.f32 %v2864_v60, %v2365_v54  ;;  %v5570_v54 = vld [vmem:[%s8877_s0 + $0x1d8] sm:$0xf0] }
 0x121   :  { %2404 = vmatmul.bf16.gmra.mxu0 %v4360_v53  ;;  %v4403_v53 = vld [vmem:[%s8877_s0 + $0x1d0] sm:$0xf] }
 0x122   :  { %v6421_v63 = vadd.f32 %v3363_v9, %v2865_v62  ;;  %2774 = vmatmul.bf16.gmra.mxu3 %v5248_v56  ;;  %2903 = vmatmul.bf16.gmra.mxu1 %v4364_v59  ;;  %v4371_v9 = vld [vmem:[%s8877_s0 + $0x198] sm:$0xf]  ;;  %v4404_v62 = vor.u32 %v5570_v54, %v4403_v53 }
 0x123   :  { %v4372_v35 = vor.u32 %v5563_v20, %v4371_v9  ;;  %v4385_v9 = vld [vmem:[%s8877_s0 + $0x1bc] sm:$0xf0] }
 0x125   :  { %v6429_v4 = vpop.f32.mrf.mxu3  ;;  %v3370_v5 = vpop.f32.mrf.mxu2 }
 0x126   :  { %8970 = vst [vmem:[#allocation27_spill] sm:$0xff] %v6429_v4  ;;  %v2367_v11 = vpop.f32.mrf.mxu0  ;;  %v4487_v4 = vld [vmem:[%s8877_s0 + $0x278] sm:$0xf] }
 0x127   :  { %v2866_v14 = vpop.f32.mrf.mxu1 }
 0x128   :  { %v2867_v15 = vadd.f32 %v2866_v14, %v2367_v11  ;;  %v5271_v14 = vld [vmem:[%s8877_s0 + $0x8a0] sm:$0xf] }
 0x12a   :  { %v6431_v19 = vadd.f32 %v3365_v29, %v2867_v15  ;;  %5431 = vmatmul.msk.bf16.gmra.mxu2 %vm2021_vm0, %v4392_v12  ;;  %v5562_v29 = vld [vmem:[%s8877_s0 + $0x19c] sm:$0xf]  ;;  %v5788_v15 = vld [vmem:[%s8877_s0 + $0x8a8] sm:$0xf0] }
 0x12b   :  { %v4376_v42 = vor.u32 %v5562_v29, %v4373_v30  ;;  %v5566_v12 = vld [vmem:[%s8877_s0 + $0x1b8] sm:$0xf0]  ;;  %v5272_v30 = vor.u32 %v5788_v15, %v5271_v14  ;;  %v5283_v14 = vld [vmem:[%s8877_s0 + $0x8b8] sm:$0xf]  ;;  %v5791_v15 = vld [vmem:[%s8877_s0 + $0x8c0] sm:$0xf0] }
 0x12c   :  { %8971 = vst [vmem:[#allocation28_spill] sm:$0xff] %v6431_v19  ;;  %v4703_v19 = vld [vmem:[%s8877_s0 + $0x428] sm:$0xf] }
 0x12d   :  { %v6452_v32 = vpop.f32.mrf.mxu3  ;;  %v3373_v33 = vpop.f32.mrf.mxu2 }
 0x12e   :  { %8972 = vst [vmem:[#allocation29_spill] sm:$0xff] %v6452_v32  ;;  %v2370_v38 = vpop.f32.mrf.mxu0 }
 0x12f   :  { %v2869_v43 = vpop.f32.mrf.mxu1 }
 0x130   :  { %v2870_v44 = vadd.f32 %v2869_v43, %v2370_v38  ;;  %v4415_v43 = vld [vmem:[%s8877_s0 + $0x1e8] sm:$0xf] }
 0x131   :  { %2409 = vmatmul.bf16.gmra.mxu0 %v4372_v35 }
 0x132   :  { %v6454_v45 = vadd.f32 %v3368_v51, %v2870_v44  ;;  %2779 = vmatmul.bf16.gmra.mxu3 %v5260_v41  ;;  %2908 = vmatmul.bf16.gmra.mxu1 %v4376_v42  ;;  %v4383_v51 = vld [vmem:[%s8877_s0 + $0x1b0] sm:$0xf]  ;;  %v5573_v44 = vld [vmem:[%s8877_s0 + $0x1f0] sm:$0xf0] }
 0x133   :  { %v4384_v25 = vor.u32 %v5566_v12, %v4383_v51  ;;  %v5569_v12 = vld [vmem:[%s8877_s0 + $0x1d0] sm:$0xf0] }
 0x135   :  { %v6462_v56 = vpop.f32.mrf.mxu3  ;;  %v3375_v59 = vpop.f32.mrf.mxu2 }
 0x136   :  { %8973 = vst [vmem:[#allocation30_spill] sm:$0xff] %v6462_v56  ;;  %v2372_v60 = vpop.f32.mrf.mxu0  ;;  %v4475_v56 = vld [vmem:[%s8877_s0 + $0x260] sm:$0xf] }
 0x137   :  { %v2871_v1 = vpop.f32.mrf.mxu1 }
 0x138   :  { %v2872_v3 = vadd.f32 %v2871_v1, %v2372_v60 }
 0x13a   :  { %v6464_v11 = vadd.f32 %v3370_v5, %v2872_v3  ;;  %5432 = vmatmul.msk.bf16.gmra.mxu2 %vm2021_vm0, %v4404_v62  ;;  %v5565_v5 = vld [vmem:[%s8877_s0 + $0x1b4] sm:$0xf]  ;;  %v4416_v62 = vor.u32 %v5573_v44, %v4415_v43 }
 0x13b   :  { %v4388_v35 = vor.u32 %v5565_v5, %v4385_v9  ;;  %v4397_v5 = vld [vmem:[%s8877_s0 + $0x1d4] sm:$0xf0] }
 0x13c   :  { %8974 = vst [vmem:[#allocation31_spill] sm:$0xff] %v6464_v11  ;;  %v4715_v11 = vld [vmem:[%s8877_s0 + $0x440] sm:$0xf] }
 0x13d   :  { %v6485_v20 = vpop.f32.mrf.mxu3  ;;  %v3378_v24 = vpop.f32.mrf.mxu2 }
 0x13e   :  { %8975 = vst [vmem:[#allocation32_spill] sm:$0xff] %v6485_v20  ;;  %v2375_v29 = vpop.f32.mrf.mxu0 }
 0x13f   :  { %v2874_v38 = vpop.f32.mrf.mxu1 }
 0x140   :  { %v2875_v41 = vadd.f32 %v2874_v38, %v2375_v29 }
 0x141   :  { %2414 = vmatmul.bf16.gmra.mxu0 %v4384_v25 }
 0x142   :  { %v6487_v42 = vadd.f32 %v3373_v33, %v2875_v41  ;;  %2784 = vmatmul.bf16.gmra.mxu3 %v5272_v30  ;;  %2913 = vmatmul.bf16.gmra.mxu1 %v4388_v35  ;;  %v4395_v33 = vld [vmem:[%s8877_s0 + $0x1c8] sm:$0xf]  ;;  %v5284_v35 = vor.u32 %v5791_v15, %v5283_v14 }
 0x143   :  { %v4396_v29 = vor.u32 %v5569_v12, %v4395_v33 }
 0x145   :  { %v6495_v53 = vpop.f32.mrf.mxu3  ;;  %v3380_v54 = vpop.f32.mrf.mxu2 }
 0x146   :  { %8976 = vst [vmem:[#allocation33_spill] sm:$0xff] %v6495_v53  ;;  %v2377_v60 = vpop.f32.mrf.mxu0  ;;  %v4463_v53 = vld [vmem:[%s8877_s0 + $0x248] sm:$0xf] }
 0x147   :  { %v2876_v1 = vpop.f32.mrf.mxu1 }
 0x148   :  { %v2877_v3 = vadd.f32 %v2876_v1, %v2377_v60  ;;  %v4427_v60 = vld [vmem:[%s8877_s0 + $0x200] sm:$0xf] }
 0x14a   :  { %v6497_v51 = vadd.f32 %v3375_v59, %v2877_v3  ;;  %5433 = vmatmul.msk.bf16.gmra.mxu2 %vm2021_vm0, %v4416_v62  ;;  %v5568_v59 = vld [vmem:[%s8877_s0 + $0x1cc] sm:$0xf] }
 0x14b   :  { %v4400_v38 = vor.u32 %v5568_v59, %v4397_v5  ;;  %v5576_v62 = vld [vmem:[%s8877_s0 + $0x208] sm:$0xf0] }
 0x14c   :  { %8977 = vst [vmem:[#allocation34_spill] sm:$0xff] %v6497_v51  ;;  %v4428_v12 = vor.u32 %v5576_v62, %v4427_v60  ;;  %v5572_v5 = vld [vmem:[%s8877_s0 + $0x1e8] sm:$0xf0]  ;;  %v4727_v51 = vld [vmem:[%s8877_s0 + $0x458] sm:$0xf] }
 0x14d   :  { %v6518_v9 = vpop.f32.mrf.mxu3  ;;  %v3383_v25 = vpop.f32.mrf.mxu2 }
 0x14e   :  { %8978 = vst [vmem:[#allocation35_spill] sm:$0xff] %v6518_v9  ;;  %v2380_v30 = vpop.f32.mrf.mxu0 }
 0x14f   :  { %v2879_v41 = vpop.f32.mrf.mxu1 }
 0x150   :  { %v2880_v43 = vadd.f32 %v2879_v41, %v2380_v30  ;;  %v5794_v30 = vld [vmem:[%s8877_s0 + $0x8d8] sm:$0xf0] }
 0x151   :  { %2419 = vmatmul.bf16.gmra.mxu0 %v4396_v29  ;;  %v5295_v29 = vld [vmem:[%s8877_s0 + $0x8d0] sm:$0xf] }
 0x152   :  { %v6520_v44 = vadd.f32 %v3378_v24, %v2880_v43  ;;  %2789 = vmatmul.bf16.gmra.mxu3 %v5284_v35  ;;  %2918 = vmatmul.bf16.gmra.mxu1 %v4400_v38  ;;  %v4407_v24 = vld [vmem:[%s8877_s0 + $0x1e0] sm:$0xf]  ;;  %v4409_v35 = vld [vmem:[%s8877_s0 + $0x1ec] sm:$0xf0]  ;;  %v5296_v62 = vor.u32 %v5794_v30, %v5295_v29  ;;  %v4440_v29 = vor.u32 %v5579_v10, %v4439_v23  ;;  %v5797_v10 = vld [vmem:[%s8877_s0 + $0x8f0] sm:$0xf0] }
 0x153   :  { %v4408_v43 = vor.u32 %v5572_v5, %v4407_v24  ;;  %v5574_v23 = vld [vmem:[%s8877_s0 + $0x1fc] sm:$0xf] }
 0x155   :  { %v6528_v1 = vpop.f32.mrf.mxu3  ;;  %v3385_v3 = vpop.f32.mrf.mxu2 }
 0x156   :  { %8979 = vst [vmem:[#allocation36_spill] sm:$0xff] %v6528_v1  ;;  %v2382_v33 = vpop.f32.mrf.mxu0  ;;  %v4451_v1 = vld [vmem:[%s8877_s0 + $0x230] sm:$0xf] }
 0x157   :  { %v2881_v14 = vpop.f32.mrf.mxu1 }
 0x158   :  { %v2882_v15 = vadd.f32 %v2881_v14, %v2382_v33 }
 0x15a   :  { %v6530_v59 = vadd.f32 %v3380_v54, %v2882_v15  ;;  %5434 = vmatmul.msk.bf16.gmra.mxu2 %vm2021_vm0, %v4428_v12  ;;  %v5571_v54 = vld [vmem:[%s8877_s0 + $0x1e4] sm:$0xf] }
 0x15b   :  { %v4412_v33 = vor.u32 %v5571_v54, %v4409_v35 }
 0x15c   :  { %8980 = vst [vmem:[#allocation37_spill] sm:$0xff] %v6530_v59  ;;  %v4739_v59 = vld [vmem:[%s8877_s0 + $0x470] sm:$0xf] }
 0x15d   :  { %v6551_v38 = vpop.f32.mrf.mxu3  ;;  %v3388_v41 = vpop.f32.mrf.mxu2 }
 0x15e   :  { %8981 = vst [vmem:[#allocation38_spill] sm:$0xff] %v6551_v38  ;;  %v2385_v60 = vpop.f32.mrf.mxu0 }
 0x15f   :  { %v2884_v12 = vpop.f32.mrf.mxu1 }
 0x160   :  { %v2885_v14 = vadd.f32 %v2884_v12, %v2385_v60  ;;  %v5307_v60 = vld [vmem:[%s8877_s0 + $0x8e8] sm:$0xf] }
 0x161   :  { %2424 = vmatmul.bf16.gmra.mxu0 %v4408_v43  ;;  %v5575_v43 = vld [vmem:[%s8877_s0 + $0x200] sm:$0xf0] }
 0x162   :  { %v6553_v15 = vadd.f32 %v3383_v25, %v2885_v14  ;;  %2794 = vmatmul.bf16.gmra.mxu3 %v5296_v62  ;;  %2923 = vmatmul.bf16.gmra.mxu1 %v4412_v33  ;;  %v4419_v25 = vld [vmem:[%s8877_s0 + $0x1f8] sm:$0xf] }
 0x163   :  { %v4420_v12 = vor.u32 %v5575_v43, %v4419_v25 }
 0x165   :  { %v6561_v38 = vpop.f32.mrf.mxu3  ;;  %v3390_v24 = vpop.f32.mrf.mxu2 }
 0x166   :  { %8982 = vst [vmem:[#allocation39_spill] sm:$0xff] %v6561_v38  ;;  %v2387_v5 = vpop.f32.mrf.mxu0 }
 0x167   :  { %v2886_v30 = vpop.f32.mrf.mxu1 }
 0x168   :  { %v2887_v54 = vadd.f32 %v2886_v30, %v2387_v5  ;;  %v5308_v5 = vor.u32 %v5797_v10, %v5307_v60 }
 0x16a   :  { %v6563_v35 = vadd.f32 %v3385_v3, %v2887_v54  ;;  %5435 = vmatmul.msk.bf16.gmra.mxu2 %vm2021_vm0, %v4440_v29  ;;  %v4421_v3 = vld [vmem:[%s8877_s0 + $0x204] sm:$0xf0] }
 0x16b   :  { %v4424_v29 = vor.u32 %v5574_v23, %v4421_v3 }
 0x16c   :  { %8983 = vst [vmem:[#allocation40_spill] sm:$0xff] %v6563_v35  ;;  %v4751_v35 = vld [vmem:[%s8877_s0 + $0x488] sm:$0xf] }
 0x16d   :  { %v6584_v62 = vpop.f32.mrf.mxu3  ;;  %v3393_v33 = vpop.f32.mrf.mxu2 }
 0x16e   :  { %8984 = vst [vmem:[#allocation41_spill] sm:$0xff] %v6584_v62  ;;  %v2390_v14 = vpop.f32.mrf.mxu0  ;;  %v5582_v62 = vld [vmem:[%s8877_s0 + $0x238] sm:$0xf0] }
 0x16f   :  { %v2889_v30 = vpop.f32.mrf.mxu1  ;;  %v4452_v60 = vor.u32 %v5582_v62, %v4451_v1  ;;  %v5800_v1 = vld [vmem:[%s8877_s0 + $0x908] sm:$0xf0]  ;;  %v4433_v62 = vld [vmem:[%s8877_s0 + $0x21c] sm:$0xf0] }
 0x170   :  { %v2890_v54 = vadd.f32 %v2889_v30, %v2390_v14  ;;  %v5319_v14 = vld [vmem:[%s8877_s0 + $0x900] sm:$0xf] }
 0x171   :  { %2429 = vmatmul.bf16.gmra.mxu0 %v4420_v12  ;;  %v5578_v12 = vld [vmem:[%s8877_s0 + $0x218] sm:$0xf0] }
 0x172   :  { %v6586_v38 = vadd.f32 %v3388_v41, %v2890_v54  ;;  %2799 = vmatmul.bf16.gmra.mxu3 %v5308_v5  ;;  %2928 = vmatmul.bf16.gmra.mxu1 %v4424_v29  ;;  %v4431_v41 = vld [vmem:[%s8877_s0 + $0x210] sm:$0xf] }
 0x173   :  { %v4432_v30 = vor.u32 %v5578_v12, %v4431_v41 }
 0x175   :  { %v6594_v9 = vpop.f32.mrf.mxu3  ;;  %v3395_v25 = vpop.f32.mrf.mxu2 }
 0x176   :  { %8985 = vst [vmem:[#allocation42_spill] sm:$0xff] %v6594_v9  ;;  %v2392_v43 = vpop.f32.mrf.mxu0 }
 0x177   :  { %v2891_v10 = vpop.f32.mrf.mxu1 }
 0x178   :  { %v2892_v23 = vadd.f32 %v2891_v10, %v2392_v43  ;;  %v5320_v43 = vor.u32 %v5800_v1, %v5319_v14 }
 0x17a   :  { %v6596_v3 = vadd.f32 %v3390_v24, %v2892_v23  ;;  %5436 = vmatmul.msk.bf16.gmra.mxu2 %vm2021_vm0, %v4452_v60  ;;  %v5577_v24 = vld [vmem:[%s8877_s0 + $0x214] sm:$0xf] }
 0x17b   :  { %v4436_v60 = vor.u32 %v5577_v24, %v4433_v62 }
 0x17c   :  { %8986 = vst [vmem:[#allocation43_spill] sm:$0xff] %v6596_v3  ;;  %v4763_v3 = vld [vmem:[%s8877_s0 + $0x4a0] sm:$0xf] }
 0x17d   :  { %v6617_v5 = vpop.f32.mrf.mxu3  ;;  %v3398_v29 = vpop.f32.mrf.mxu2 }
 0x17e   :  { %8987 = vst [vmem:[#allocation44_spill] sm:$0xff] %v6617_v5  ;;  %v2395_v54 = vpop.f32.mrf.mxu0  ;;  %v5585_v5 = vld [vmem:[%s8877_s0 + $0x250] sm:$0xf0] }
 0x17f   :  { %v2894_v10 = vpop.f32.mrf.mxu1  ;;  %v4464_v14 = vor.u32 %v5585_v5, %v4463_v53  ;;  %v5803_v53 = vld [vmem:[%s8877_s0 + $0x920] sm:$0xf0]  ;;  %v4445_v5 = vld [vmem:[%s8877_s0 + $0x234] sm:$0xf0] }
 0x180   :  { %v2895_v23 = vadd.f32 %v2894_v10, %v2395_v54  ;;  %v5331_v54 = vld [vmem:[%s8877_s0 + $0x918] sm:$0xf] }
 0x181   :  { %2434 = vmatmul.bf16.gmra.mxu0 %v4432_v30  ;;  %v5581_v30 = vld [vmem:[%s8877_s0 + $0x230] sm:$0xf0] }
 0x182   :  { %v6619_v9 = vadd.f32 %v3393_v33, %v2895_v23  ;;  %2804 = vmatmul.bf16.gmra.mxu3 %v5320_v43  ;;  %2933 = vmatmul.bf16.gmra.mxu1 %v4436_v60  ;;  %v4443_v33 = vld [vmem:[%s8877_s0 + $0x228] sm:$0xf] }
 0x183   :  { %v4444_v10 = vor.u32 %v5581_v30, %v4443_v33 }
 0x185   :  { %v6627_v20 = vpop.f32.mrf.mxu3  ;;  %v3400_v41 = vpop.f32.mrf.mxu2 }
 0x186   :  { %8988 = vst [vmem:[#allocation45_spill] sm:$0xff] %v6627_v20  ;;  %v2397_v12 = vpop.f32.mrf.mxu0 }
 0x187   :  { %v2896_v1 = vpop.f32.mrf.mxu1 }
 0x188   :  { %v2897_v24 = vadd.f32 %v2896_v1, %v2397_v12  ;;  %v5332_v12 = vor.u32 %v5803_v53, %v5331_v54 }
 0x18a   :  { %v6629_v62 = vadd.f32 %v3395_v25, %v2897_v24  ;;  %5437 = vmatmul.msk.bf16.gmra.mxu2 %vm2021_vm0, %v4464_v14  ;;  %v5580_v25 = vld [vmem:[%s8877_s0 + $0x22c] sm:$0xf] }
 0x18b   :  { %v4448_v14 = vor.u32 %v5580_v25, %v4445_v5 }
 0x18c   :  { %8989 = vst [vmem:[#allocation46_spill] sm:$0xff] %v6629_v62  ;;  %v4775_v62 = vld [vmem:[%s8877_s0 + $0x4b8] sm:$0xf] }
 0x18d   :  { %v6650_v43 = vpop.f32.mrf.mxu3  ;;  %v3403_v60 = vpop.f32.mrf.mxu2 }
 0x18e   :  { %8990 = vst [vmem:[#allocation47_spill] sm:$0xff] %v6650_v43  ;;  %v2400_v23 = vpop.f32.mrf.mxu0  ;;  %v5588_v43 = vld [vmem:[%s8877_s0 + $0x268] sm:$0xf0] }
 0x18f   :  { %v2899_v1 = vpop.f32.mrf.mxu1  ;;  %v4476_v54 = vor.u32 %v5588_v43, %v4475_v56  ;;  %v4457_v56 = vld [vmem:[%s8877_s0 + $0x24c] sm:$0xf0]  ;;  %v5057_v43 = vld [vmem:[%s8877_s0 + $0x6fc] sm:$0xf0] }
 0x190   :  { %v2900_v24 = vadd.f32 %v2899_v1, %v2400_v23  ;;  %v5583_v23 = vld [vmem:[%s8877_s0 + $0x244] sm:$0xf] }
 0x191   :  { %2439 = vmatmul.bf16.gmra.mxu0 %v4444_v10  ;;  %v5584_v10 = vld [vmem:[%s8877_s0 + $0x248] sm:$0xf0] }
 0x192   :  { %v6652_v20 = vadd.f32 %v3398_v29, %v2900_v24  ;;  %2809 = vmatmul.bf16.gmra.mxu3 %v5332_v12  ;;  %2938 = vmatmul.bf16.gmra.mxu1 %v4448_v14  ;;  %v4455_v29 = vld [vmem:[%s8877_s0 + $0x240] sm:$0xf] }
 0x193   :  { %v4456_v1 = vor.u32 %v5584_v10, %v4455_v29 }
 0x195   :  { %v6660_v32 = vpop.f32.mrf.mxu3  ;;  %v3405_v33 = vpop.f32.mrf.mxu2 }
 0x196   :  { %8991 = vst [vmem:[#allocation48_spill] sm:$0xff] %v6660_v32  ;;  %v2402_v30 = vpop.f32.mrf.mxu0 }
 0x197   :  { %v2901_v53 = vpop.f32.mrf.mxu1 }
 0x198   :  { %v2902_v25 = vadd.f32 %v2901_v53, %v2402_v30  ;;  %v4460_v30 = vor.u32 %v5583_v23, %v4457_v56 }
 0x19a   :  { %v6662_v5 = vadd.f32 %v3400_v41, %v2902_v25  ;;  %5438 = vmatmul.msk.bf16.gmra.mxu2 %vm2021_vm0, %v4476_v54  ;;  %v5733_v41 = vld [vmem:[%s8877_s0 + $0x6f4] sm:$0xf] }
 0x19b   :  { %v5060_v54 = vor.u32 %v5733_v41, %v5057_v43 }
 0x19c   :  { %8992 = vst [vmem:[#allocation49_spill] sm:$0xff] %v6662_v5  ;;  %v4787_v5 = vld [vmem:[%s8877_s0 + $0x4d0] sm:$0xf] }
 0x19d   :  { %v6683_v12 = vpop.f32.mrf.mxu3  ;;  %v3408_v14 = vpop.f32.mrf.mxu2 }
 0x19e   :  { %8993 = vst [vmem:[#allocation50_spill] sm:$0xff] %v6683_v12  ;;  %v2405_v24 = vpop.f32.mrf.mxu0  ;;  %v5591_v12 = vld [vmem:[%s8877_s0 + $0x280] sm:$0xf0] }
 0x19f   :  { %v2904_v53 = vpop.f32.mrf.mxu1  ;;  %v4488_v23 = vor.u32 %v5591_v12, %v4487_v4  ;;  %v4469_v4 = vld [vmem:[%s8877_s0 + $0x264] sm:$0xf0]  ;;  %v5069_v12 = vld [vmem:[%s8877_s0 + $0x714] sm:$0xf0] }
 0x1a0   :  { %v2905_v25 = vadd.f32 %v2904_v53, %v2405_v24  ;;  %v5586_v24 = vld [vmem:[%s8877_s0 + $0x25c] sm:$0xf] }
 0x1a1   :  { %2444 = vmatmul.bf16.gmra.mxu0 %v4456_v1  ;;  %v5587_v1 = vld [vmem:[%s8877_s0 + $0x260] sm:$0xf0] }
 0x1a2   :  { %v6685_v32 = vadd.f32 %v3403_v60, %v2905_v25  ;;  %2943 = vmatmul.bf16.gmra.mxu1 %v4460_v30  ;;  %3193 = vmatmul.bf16.vlgmr.msrb.gmra.mxu3 %v5060_v54  ;;  %v4467_v60 = vld [vmem:[%s8877_s0 + $0x258] sm:$0xf] }
 0x1a3   :  { %v4468_v53 = vor.u32 %v5587_v1, %v4467_v60 }
 0x1a5   :  { %v6693_v49 = vpop.f32.mrf.mxu3  ;;  %v3410_v29 = vpop.f32.mrf.mxu2 }
 0x1a6   :  { %8994 = vst [vmem:[#allocation51_spill] sm:$0xff] %v6693_v49  ;;  %v2407_v10 = vpop.f32.mrf.mxu0 }
 0x1a7   :  { %v2906_v56 = vpop.f32.mrf.mxu1 }
 0x1a8   :  { %v2907_v41 = vadd.f32 %v2906_v56, %v2407_v10  ;;  %v4472_v10 = vor.u32 %v5586_v24, %v4469_v4 }
 0x1aa   :  { %v6695_v43 = vadd.f32 %v3405_v33, %v2907_v41  ;;  %5439 = vmatmul.msk.bf16.gmra.mxu2 %vm2021_vm0, %v4488_v23  ;;  %v5736_v33 = vld [vmem:[%s8877_s0 + $0x70c] sm:$0xf] }
 0x1ab   :  { %v5072_v23 = vor.u32 %v5736_v33, %v5069_v12 }
 0x1ac   :  { %8995 = vst [vmem:[#allocation52_spill] sm:$0xff] %v6695_v43  ;;  %v4799_v43 = vld [vmem:[%s8877_s0 + $0x4e8] sm:$0xf] }
 0x1ad   :  { %v6716_v30 = vpop.f32.mrf.mxu3  ;;  %v3413_v54 = vpop.f32.mrf.mxu2 }
 0x1ae   :  { %8996 = vst [vmem:[#allocation53_spill] sm:$0xff] %v6716_v30  ;;  %v2410_v25 = vpop.f32.mrf.mxu0  ;;  %v5594_v30 = vld [vmem:[%s8877_s0 + $0x298] sm:$0xf0] }
 0x1af   :  { %v2909_v56 = vpop.f32.mrf.mxu1  ;;  %v4500_v24 = vor.u32 %v5594_v30, %v4499_v27  ;;  %v4481_v27 = vld [vmem:[%s8877_s0 + $0x27c] sm:$0xf0]  ;;  %v5081_v30 = vld [vmem:[%s8877_s0 + $0x72c] sm:$0xf0] }
 0x1b0   :  { %v2910_v41 = vadd.f32 %v2909_v56, %v2410_v25  ;;  %v5589_v25 = vld [vmem:[%s8877_s0 + $0x274] sm:$0xf] }
 0x1b1   :  { %2449 = vmatmul.bf16.gmra.mxu0 %v4468_v53  ;;  %v5590_v53 = vld [vmem:[%s8877_s0 + $0x278] sm:$0xf0] }
 0x1b2   :  { %v6718_v49 = vadd.f32 %v3408_v14, %v2910_v41  ;;  %2948 = vmatmul.bf16.gmra.mxu1 %v4472_v10  ;;  %3198 = vmatmul.bf16.gmra.mxu3 %v5072_v23  ;;  %v4479_v14 = vld [vmem:[%s8877_s0 + $0x270] sm:$0xf] }
 0x1b3   :  { %v4480_v56 = vor.u32 %v5590_v53, %v4479_v14 }
 0x1b5   :  { %v6726_v6 = vpop.f32.mrf.mxu3  ;;  %v3415_v60 = vpop.f32.mrf.mxu2 }
 0x1b6   :  { %8997 = vst [vmem:[#allocation54_spill] sm:$0xff] %v6726_v6  ;;  %v2412_v1 = vpop.f32.mrf.mxu0 }
 0x1b7   :  { %v2911_v4 = vpop.f32.mrf.mxu1 }
 0x1b8   :  { %v2912_v33 = vadd.f32 %v2911_v4, %v2412_v1  ;;  %v4484_v1 = vor.u32 %v5589_v25, %v4481_v27 }
 0x1ba   :  { %v6728_v12 = vadd.f32 %v3410_v29, %v2912_v33  ;;  %5440 = vmatmul.msk.bf16.gmra.mxu2 %vm2021_vm0, %v4500_v24  ;;  %v5739_v29 = vld [vmem:[%s8877_s0 + $0x724] sm:$0xf] }
 0x1bb   :  { %v5084_v24 = vor.u32 %v5739_v29, %v5081_v30 }
 0x1bc   :  { %8998 = vst [vmem:[#allocation55_spill] sm:$0xff] %v6728_v12  ;;  %v4811_v12 = vld [vmem:[%s8877_s0 + $0x500] sm:$0xf] }
 0x1bd   :  { %v6749_v10 = vpop.f32.mrf.mxu3  ;;  %v3418_v23 = vpop.f32.mrf.mxu2 }
 0x1be   :  { %8999 = vst [vmem:[#allocation56_spill] sm:$0xff] %v6749_v10  ;;  %v2415_v41 = vpop.f32.mrf.mxu0  ;;  %v5597_v10 = vld [vmem:[%s8877_s0 + $0x2b0] sm:$0xf0] }
 0x1bf   :  { %v2914_v4 = vpop.f32.mrf.mxu1  ;;  %v4512_v25 = vor.u32 %v5597_v10, %v4511_v52  ;;  %v4493_v52 = vld [vmem:[%s8877_s0 + $0x294] sm:$0xf0]  ;;  %v5093_v10 = vld [vmem:[%s8877_s0 + $0x744] sm:$0xf0] }
 0x1c0   :  { %v2915_v33 = vadd.f32 %v2914_v4, %v2415_v41  ;;  %v5592_v41 = vld [vmem:[%s8877_s0 + $0x28c] sm:$0xf] }
 0x1c1   :  { %2454 = vmatmul.bf16.gmra.mxu0 %v4480_v56  ;;  %v5593_v56 = vld [vmem:[%s8877_s0 + $0x290] sm:$0xf0] }
 0x1c2   :  { %v6751_v6 = vadd.f32 %v3413_v54, %v2915_v33  ;;  %2953 = vmatmul.bf16.gmra.mxu1 %v4484_v1  ;;  %3203 = vmatmul.bf16.gmra.mxu3 %v5084_v24  ;;  %v4491_v54 = vld [vmem:[%s8877_s0 + $0x288] sm:$0xf] }
 0x1c3   :  { %v4492_v4 = vor.u32 %v5593_v56, %v4491_v54 }
 0x1c4   :  { %9000 = vst [vmem:[#allocation57_spill] sm:$0xff] %v6751_v6 }
 0x1c5   :  { %v6759_v36 = vpop.f32.mrf.mxu3  ;;  %v3420_v14 = vpop.f32.mrf.mxu2 }
 0x1c6   :  { %9001 = vst [vmem:[#allocation58_spill] sm:$0xff] %v6759_v36  ;;  %v2417_v53 = vpop.f32.mrf.mxu0 }
 0x1c7   :  { %v2916_v27 = vpop.f32.mrf.mxu1 }
 0x1c8   :  { %v2917_v29 = vadd.f32 %v2916_v27, %v2417_v53  ;;  %v4496_v53 = vor.u32 %v5592_v41, %v4493_v52 }
 0x1ca   :  { %v6761_v30 = vadd.f32 %v3415_v60, %v2917_v29  ;;  %5441 = vmatmul.msk.bf16.gmra.mxu2 %vm2021_vm0, %v4512_v25  ;;  %v5742_v60 = vld [vmem:[%s8877_s0 + $0x73c] sm:$0xf] }
 0x1cb   :  { %v5096_v25 = vor.u32 %v5742_v60, %v5093_v10 }
 0x1cc   :  { %9002 = vst [vmem:[#allocation59_spill] sm:$0xff] %v6761_v30  ;;  %v4823_v30 = vld [vmem:[%s8877_s0 + $0x518] sm:$0xf] }
 0x1cd   :  { %v6782_v1 = vpop.f32.mrf.mxu3  ;;  %v3423_v24 = vpop.f32.mrf.mxu2 }
 0x1ce   :  { %9003 = vst [vmem:[#allocation60_spill] sm:$0xff] %v6782_v1  ;;  %v2420_v33 = vpop.f32.mrf.mxu0  ;;  %v5600_v1 = vld [vmem:[%s8877_s0 + $0x2c8] sm:$0xf0] }
 0x1cf   :  { %v2919_v27 = vpop.f32.mrf.mxu1  ;;  %v4524_v41 = vor.u32 %v5600_v1, %v4523_v17  ;;  %v4505_v17 = vld [vmem:[%s8877_s0 + $0x2ac] sm:$0xf0]  ;;  %v5105_v1 = vld [vmem:[%s8877_s0 + $0x75c] sm:$0xf0] }
 0x1d0   :  { %v2920_v29 = vadd.f32 %v2919_v27, %v2420_v33  ;;  %v5595_v33 = vld [vmem:[%s8877_s0 + $0x2a4] sm:$0xf] }
 0x1d1   :  { %2459 = vmatmul.bf16.gmra.mxu0 %v4492_v4  ;;  %v5596_v4 = vld [vmem:[%s8877_s0 + $0x2a8] sm:$0xf0] }
 0x1d2   :  { %v6784_v36 = vadd.f32 %v3418_v23, %v2920_v29  ;;  %2958 = vmatmul.bf16.gmra.mxu1 %v4496_v53  ;;  %3208 = vmatmul.bf16.gmra.mxu3 %v5096_v25  ;;  %v4503_v23 = vld [vmem:[%s8877_s0 + $0x2a0] sm:$0xf] }
 0x1d3   :  { %v4504_v27 = vor.u32 %v5596_v4, %v4503_v23 }
 0x1d4   :  { %9004 = vst [vmem:[#allocation61_spill] sm:$0xff] %v6784_v36 }
 0x1d5   :  { %v6792_v2 = vpop.f32.mrf.mxu3  ;;  %v3425_v54 = vpop.f32.mrf.mxu2 }
 0x1d6   :  { %9005 = vst [vmem:[#allocation62_spill] sm:$0xff] %v6792_v2  ;;  %v2422_v56 = vpop.f32.mrf.mxu0 }
 0x1d7   :  { %v2921_v52 = vpop.f32.mrf.mxu1 }
 0x1d8   :  { %v2922_v60 = vadd.f32 %v2921_v52, %v2422_v56  ;;  %v4508_v56 = vor.u32 %v5595_v33, %v4505_v17 }
 0x1da   :  { %v6794_v10 = vadd.f32 %v3420_v14, %v2922_v60  ;;  %5442 = vmatmul.msk.bf16.gmra.mxu2 %vm2021_vm0, %v4524_v41  ;;  %v5745_v14 = vld [vmem:[%s8877_s0 + $0x754] sm:$0xf] }
 0x1db   :  { %v5108_v41 = vor.u32 %v5745_v14, %v5105_v1 }
 0x1dc   :  { %9006 = vst [vmem:[#allocation63_spill] sm:$0xff] %v6794_v10  ;;  %v4835_v10 = vld [vmem:[%s8877_s0 + $0x530] sm:$0xf] }
 0x1dd   :  { %v6815_v53 = vpop.f32.mrf.mxu3  ;;  %v3428_v25 = vpop.f32.mrf.mxu2 }
 0x1de   :  { %9007 = vst [vmem:[#allocation64_spill] sm:$0xff] %v6815_v53  ;;  %v2425_v29 = vpop.f32.mrf.mxu0  ;;  %v5603_v53 = vld [vmem:[%s8877_s0 + $0x2e0] sm:$0xf0] }
 0x1df   :  { %v2924_v52 = vpop.f32.mrf.mxu1  ;;  %v4536_v33 = vor.u32 %v5603_v53, %v4535_v50  ;;  %v4517_v50 = vld [vmem:[%s8877_s0 + $0x2c4] sm:$0xf0]  ;;  %v5117_v53 = vld [vmem:[%s8877_s0 + $0x774] sm:$0xf0] }
 0x1e0   :  { %v2925_v60 = vadd.f32 %v2924_v52, %v2425_v29  ;;  %v5598_v29 = vld [vmem:[%s8877_s0 + $0x2bc] sm:$0xf] }
 0x1e1   :  { %2464 = vmatmul.bf16.gmra.mxu0 %v4504_v27  ;;  %v5599_v27 = vld [vmem:[%s8877_s0 + $0x2c0] sm:$0xf0] }
 0x1e2   :  { %v6817_v2 = vadd.f32 %v3423_v24, %v2925_v60  ;;  %2963 = vmatmul.bf16.gmra.mxu1 %v4508_v56  ;;  %3213 = vmatmul.bf16.gmra.mxu3 %v5108_v41  ;;  %v4515_v24 = vld [vmem:[%s8877_s0 + $0x2b8] sm:$0xf] }
 0x1e3   :  { %v4516_v52 = vor.u32 %v5599_v27, %v4515_v24 }
 0x1e4   :  { %9008 = vst [vmem:[#allocation65_spill] sm:$0xff] %v6817_v2 }
 0x1e5   :  { %v6825_v37 = vpop.f32.mrf.mxu3  ;;  %v3430_v23 = vpop.f32.mrf.mxu2 }
 0x1e6   :  { %9009 = vst [vmem:[#allocation66_spill] sm:$0xff] %v6825_v37  ;;  %v2427_v4 = vpop.f32.mrf.mxu0 }
 0x1e7   :  { %v2926_v17 = vpop.f32.mrf.mxu1 }
 0x1e8   :  { %v2927_v14 = vadd.f32 %v2926_v17, %v2427_v4  ;;  %v4520_v4 = vor.u32 %v5598_v29, %v4517_v50 }
 0x1ea   :  { %v6827_v1 = vadd.f32 %v3425_v54, %v2927_v14  ;;  %5443 = vmatmul.msk.bf16.gmra.mxu2 %vm2021_vm0, %v4536_v33  ;;  %v5748_v54 = vld [vmem:[%s8877_s0 + $0x76c] sm:$0xf] }
 0x1eb   :  { %v5120_v33 = vor.u32 %v5748_v54, %v5117_v53 }
 0x1ec   :  { %9010 = vst [vmem:[#allocation67_spill] sm:$0xff] %v6827_v1  ;;  %v4847_v1 = vld [vmem:[%s8877_s0 + $0x548] sm:$0xf] }
 0x1ed   :  { %v6848_v56 = vpop.f32.mrf.mxu3  ;;  %v3433_v41 = vpop.f32.mrf.mxu2 }
 0x1ee   :  { %9011 = vst [vmem:[#allocation68_spill] sm:$0xff] %v6848_v56  ;;  %v2430_v60 = vpop.f32.mrf.mxu0  ;;  %v5606_v56 = vld [vmem:[%s8877_s0 + $0x2f8] sm:$0xf0] }
 0x1ef   :  { %v2929_v17 = vpop.f32.mrf.mxu1  ;;  %v4548_v29 = vor.u32 %v5606_v56, %v4547_v21  ;;  %v4529_v21 = vld [vmem:[%s8877_s0 + $0x2dc] sm:$0xf0]  ;;  %v5129_v56 = vld [vmem:[%s8877_s0 + $0x78c] sm:$0xf0] }
 0x1f0   :  { %v2930_v14 = vadd.f32 %v2929_v17, %v2430_v60  ;;  %v5601_v60 = vld [vmem:[%s8877_s0 + $0x2d4] sm:$0xf] }
 0x1f1   :  { %2469 = vmatmul.bf16.gmra.mxu0 %v4516_v52  ;;  %v5602_v52 = vld [vmem:[%s8877_s0 + $0x2d8] sm:$0xf0] }
 0x1f2   :  { %v6850_v37 = vadd.f32 %v3428_v25, %v2930_v14  ;;  %2968 = vmatmul.bf16.gmra.mxu1 %v4520_v4  ;;  %3218 = vmatmul.bf16.gmra.mxu3 %v5120_v33  ;;  %v4527_v25 = vld [vmem:[%s8877_s0 + $0x2d0] sm:$0xf] }
 0x1f3   :  { %v4528_v17 = vor.u32 %v5602_v52, %v4527_v25 }
 0x1f4   :  { %9012 = vst [vmem:[#allocation69_spill] sm:$0xff] %v6850_v37  ;;  %v4883_v37 = vld [vmem:[%s8877_s0 + $0x590] sm:$0xf] }
 0x1f5   :  { %v6858_v8 = vpop.f32.mrf.mxu3  ;;  %v3435_v24 = vpop.f32.mrf.mxu2 }
 0x1f6   :  { %9013 = vst [vmem:[#allocation70_spill] sm:$0xff] %v6858_v8  ;;  %v2432_v27 = vpop.f32.mrf.mxu0 }
 0x1f7   :  { %v2931_v50 = vpop.f32.mrf.mxu1 }
 0x1f8   :  { %v2932_v54 = vadd.f32 %v2931_v50, %v2432_v27  ;;  %v4532_v27 = vor.u32 %v5601_v60, %v4529_v21 }
 0x1fa   :  { %v6860_v53 = vadd.f32 %v3430_v23, %v2932_v54  ;;  %5444 = vmatmul.msk.bf16.gmra.mxu2 %vm2021_vm0, %v4548_v29  ;;  %v5751_v23 = vld [vmem:[%s8877_s0 + $0x784] sm:$0xf] }
 0x1fb   :  { %v5132_v29 = vor.u32 %v5751_v23, %v5129_v56 }
 0x1fc   :  { %9014 = vst [vmem:[#allocation71_spill] sm:$0xff] %v6860_v53 }
 0x1fd   :  { %v6881_v4 = vpop.f32.mrf.mxu3  ;;  %v3438_v33 = vpop.f32.mrf.mxu2 }
 0x1fe   :  { %9015 = vst [vmem:[#allocation72_spill] sm:$0xff] %v6881_v4  ;;  %v2435_v14 = vpop.f32.mrf.mxu0  ;;  %v5609_v4 = vld [vmem:[%s8877_s0 + $0x310] sm:$0xf0] }
 0x1ff   :  { %v2934_v50 = vpop.f32.mrf.mxu1  ;;  %v4560_v60 = vor.u32 %v5609_v4, %v4559_v58  ;;  %v4541_v58 = vld [vmem:[%s8877_s0 + $0x2f4] sm:$0xf0]  ;;  %v5141_v4 = vld [vmem:[%s8877_s0 + $0x7a4] sm:$0xf0] }
 0x200   :  { %v2935_v54 = vadd.f32 %v2934_v50, %v2435_v14  ;;  %v5604_v14 = vld [vmem:[%s8877_s0 + $0x2ec] sm:$0xf] }
 0x201   :  { %2474 = vmatmul.bf16.gmra.mxu0 %v4528_v17  ;;  %v5605_v17 = vld [vmem:[%s8877_s0 + $0x2f0] sm:$0xf0] }
 0x202   :  { %v6883_v8 = vadd.f32 %v3433_v41, %v2935_v54  ;;  %2973 = vmatmul.bf16.gmra.mxu1 %v4532_v27  ;;  %3223 = vmatmul.bf16.gmra.mxu3 %v5132_v29  ;;  %v4539_v41 = vld [vmem:[%s8877_s0 + $0x2e8] sm:$0xf] }
 0x203   :  { %v4540_v50 = vor.u32 %v5605_v17, %v4539_v41 }
 0x204   :  { %9016 = vst [vmem:[#allocation73_spill] sm:$0xff] %v6883_v8  ;;  %v4595_v8 = vld [vmem:[%s8877_s0 + $0x350] sm:$0xf] }
 0x205   :  { %v6891_v47 = vpop.f32.mrf.mxu3  ;;  %v3440_v25 = vpop.f32.mrf.mxu2 }
 0x206   :  { %9017 = vst [vmem:[#allocation74_spill] sm:$0xff] %v6891_v47  ;;  %v2437_v52 = vpop.f32.mrf.mxu0 }
 0x207   :  { %v2936_v21 = vpop.f32.mrf.mxu1 }
 0x208   :  { %v2937_v23 = vadd.f32 %v2936_v21, %v2437_v52  ;;  %v4544_v52 = vor.u32 %v5604_v14, %v4541_v58 }
 0x20a   :  { %v6893_v56 = vadd.f32 %v3435_v24, %v2937_v23  ;;  %5445 = vmatmul.msk.bf16.gmra.mxu2 %vm2021_vm0, %v4560_v60  ;;  %v5754_v24 = vld [vmem:[%s8877_s0 + $0x79c] sm:$0xf] }
 0x20b   :  { %v5144_v60 = vor.u32 %v5754_v24, %v5141_v4 }
 0x20c   :  { %9018 = vst [vmem:[#allocation75_spill] sm:$0xff] %v6893_v56 }
 0x20d   :  { %v6914_v27 = vpop.f32.mrf.mxu3  ;;  %v3443_v29 = vpop.f32.mrf.mxu2 }
 0x20e   :  { %9019 = vst [vmem:[#allocation76_spill] sm:$0xff] %v6914_v27  ;;  %v2440_v54 = vpop.f32.mrf.mxu0  ;;  %v5612_v27 = vld [vmem:[%s8877_s0 + $0x328] sm:$0xf0] }
 0x20f   :  { %v2939_v21 = vpop.f32.mrf.mxu1  ;;  %v4572_v14 = vor.u32 %v5612_v27, %v4571_v34  ;;  %v4553_v34 = vld [vmem:[%s8877_s0 + $0x30c] sm:$0xf0]  ;;  %v5153_v27 = vld [vmem:[%s8877_s0 + $0x7bc] sm:$0xf0] }
 0x210   :  { %v2940_v23 = vadd.f32 %v2939_v21, %v2440_v54  ;;  %v5607_v54 = vld [vmem:[%s8877_s0 + $0x304] sm:$0xf] }
 0x211   :  { %2479 = vmatmul.bf16.gmra.mxu0 %v4540_v50  ;;  %v5608_v50 = vld [vmem:[%s8877_s0 + $0x308] sm:$0xf0] }
 0x212   :  { %v6916_v47 = vadd.f32 %v3438_v33, %v2940_v23  ;;  %2978 = vmatmul.bf16.gmra.mxu1 %v4544_v52  ;;  %3228 = vmatmul.bf16.gmra.mxu3 %v5144_v60  ;;  %v4551_v33 = vld [vmem:[%s8877_s0 + $0x300] sm:$0xf] }
 0x213   :  { %v4552_v21 = vor.u32 %v5608_v50, %v4551_v33 }
 0x214   :  { %9020 = vst [vmem:[#allocation77_spill] sm:$0xff] %v6916_v47 }
 0x215   :  { %v6924_v56 = vpop.f32.mrf.mxu3  ;;  %v3445_v41 = vpop.f32.mrf.mxu2 }
 0x216   :  { %9021 = vst [vmem:[#allocation78_spill] sm:$0xff] %v6924_v56  ;;  %v2442_v17 = vpop.f32.mrf.mxu0 }
 0x217   :  { %v2941_v58 = vpop.f32.mrf.mxu1 }
 0x218   :  { %v2942_v24 = vadd.f32 %v2941_v58, %v2442_v17  ;;  %v4556_v17 = vor.u32 %v5607_v54, %v4553_v34 }
 0x21a   :  { %v6926_v4 = vadd.f32 %v3440_v25, %v2942_v24  ;;  %5446 = vmatmul.msk.bf16.gmra.mxu2 %vm2021_vm0, %v4572_v14  ;;  %v5757_v25 = vld [vmem:[%s8877_s0 + $0x7b4] sm:$0xf] }
 0x21b   :  { %v5156_v14 = vor.u32 %v5757_v25, %v5153_v27 }
 0x21c   :  { %9022 = vst [vmem:[#allocation79_spill] sm:$0xff] %v6926_v4  ;;  %v4583_v4 = vld [vmem:[%s8877_s0 + $0x338] sm:$0xf] }
 0x21d   :  { %v6947_v52 = vpop.f32.mrf.mxu3  ;;  %v3448_v60 = vpop.f32.mrf.mxu2 }
 0x21e   :  { %9023 = vst [vmem:[#allocation80_spill] sm:$0xff] %v6947_v52  ;;  %v2445_v23 = vpop.f32.mrf.mxu0  ;;  %v5615_v52 = vld [vmem:[%s8877_s0 + $0x340] sm:$0xf0] }
 0x21f   :  { %v2944_v58 = vpop.f32.mrf.mxu1  ;;  %v4584_v54 = vor.u32 %v5615_v52, %v4583_v4  ;;  %v4565_v4 = vld [vmem:[%s8877_s0 + $0x324] sm:$0xf0]  ;;  %v5165_v52 = vld [vmem:[%s8877_s0 + $0x7d4] sm:$0xf0] }
 0x220   :  { %v2945_v24 = vadd.f32 %v2944_v58, %v2445_v23  ;;  %v5610_v23 = vld [vmem:[%s8877_s0 + $0x31c] sm:$0xf] }
 0x221   :  { %2484 = vmatmul.bf16.gmra.mxu0 %v4552_v21  ;;  %v5611_v21 = vld [vmem:[%s8877_s0 + $0x320] sm:$0xf0] }
 0x222   :  { %v6949_v56 = vadd.f32 %v3443_v29, %v2945_v24  ;;  %2983 = vmatmul.bf16.gmra.mxu1 %v4556_v17  ;;  %3233 = vmatmul.bf16.gmra.mxu3 %v5156_v14  ;;  %v4563_v29 = vld [vmem:[%s8877_s0 + $0x318] sm:$0xf]  ;;  %v5618_v17 = vld [vmem:[%s8877_s0 + $0x358] sm:$0xf0] }
 0x223   :  { %v4564_v24 = vor.u32 %v5611_v21, %v4563_v29 }
 0x224   :  { %9024 = vst [vmem:[#allocation81_spill] sm:$0xff] %v6949_v56 }
 0x225   :  { %v6957_v47 = vpop.f32.mrf.mxu3  ;;  %v3450_v33 = vpop.f32.mrf.mxu2 }
 0x226   :  { %9025 = vst [vmem:[#allocation82_spill] sm:$0xff] %v6957_v47  ;;  %v2447_v50 = vpop.f32.mrf.mxu0 }
 0x227   :  { %v2946_v34 = vpop.f32.mrf.mxu1 }
 0x228   :  { %v2947_v25 = vadd.f32 %v2946_v34, %v2447_v50 }
 0x22a   :  { %v6959_v27 = vadd.f32 %v3445_v41, %v2947_v25  ;;  %5447 = vmatmul.msk.bf16.gmra.mxu2 %vm2021_vm0, %v4584_v54  ;;  %v5760_v41 = vld [vmem:[%s8877_s0 + $0x7cc] sm:$0xf]  ;;  %v4568_v54 = vor.u32 %v5610_v23, %v4565_v4 }
 0x22b   :  { %v5168_v34 = vor.u32 %v5760_v41, %v5165_v52  ;;  %v4596_v41 = vor.u32 %v5618_v17, %v4595_v8  ;;  %v4577_v8 = vld [vmem:[%s8877_s0 + $0x33c] sm:$0xf0]  ;;  %v5177_v17 = vld [vmem:[%s8877_s0 + $0x7ec] sm:$0xf0] }
 0x22c   :  { %9026 = vst [vmem:[#allocation83_spill] sm:$0xff] %v6959_v27 }
 0x22d   :  { %v6982_v14 = vpop.f32.mrf.mxu3  ;;  %v3453_v58 = vpop.f32.mrf.mxu2 }
 0x22e   :  { %9027 = vst [vmem:[#allocation84_spill] sm:$0xff] %v6982_v14  ;;  %v2450_v50 = vpop.f32.mrf.mxu0 }
 0x22f   :  { %v2949_v25 = vpop.f32.mrf.mxu1 }
 0x230   :  { %v2950_v47 = vadd.f32 %v2949_v25, %v2450_v50  ;;  %v5614_v50 = vld [vmem:[%s8877_s0 + $0x338] sm:$0xf0] }
 0x231   :  { %2489 = vmatmul.bf16.gmra.mxu0 %v4564_v24  ;;  %v4575_v24 = vld [vmem:[%s8877_s0 + $0x330] sm:$0xf] }
 0x232   :  { %v6984_v56 = vadd.f32 %v3448_v60, %v2950_v47  ;;  %2988 = vmatmul.bf16.gmra.mxu1 %v4568_v54  ;;  %3238 = vmatmul.bf16.gmra.mxu3 %v5168_v34  ;;  %v5613_v54 = vld [vmem:[%s8877_s0 + $0x334] sm:$0xf] }
 0x233   :  { %v5621_v34 = vld [vmem:[%s8877_s0 + $0x370] sm:$0xf0] }
 0x234   :  { %9028 = vst [vmem:[#allocation85_spill] sm:$0xff] %v6984_v56  ;;  %v4607_v56 = vld [vmem:[%s8877_s0 + $0x368] sm:$0xf] }
 0x235   :  { %v6994_v21 = vpop.f32.mrf.mxu3  ;;  %v3455_v23 = vpop.f32.mrf.mxu2 }
 0x236   :  { %v2452_v4 = vpop.f32.mrf.mxu0 }
 0x237   :  { %v2951_v47 = vpop.f32.mrf.mxu1 }
 0x238   :  { %v2952_v60 = vadd.f32 %v2951_v47, %v2452_v4 }
 0x23a   :  { %v6996_v52 = vadd.f32 %v3450_v33, %v2952_v60  ;;  %5448 = vmatmul.msk.bf16.gmra.mxu2 %vm2021_vm0, %v4596_v41  ;;  %v5763_v33 = vld [vmem:[%s8877_s0 + $0x7e4] sm:$0xf]  ;;  %v4576_v41 = vor.u32 %v5614_v50, %v4575_v24  ;;  %v4580_v60 = vor.u32 %v5613_v54, %v4577_v8  ;;  %v4608_v8 = vor.u32 %v5621_v34, %v4607_v56  ;;  %v4589_v56 = vld [vmem:[%s8877_s0 + $0x354] sm:$0xf0]  ;;  %v5189_v34 = vld [vmem:[%s8877_s0 + $0x804] sm:$0xf0] }
 0x23b   :  { %v5180_v29 = vor.u32 %v5763_v33, %v5177_v17  ;;  %v5617_v17 = vld [vmem:[%s8877_s0 + $0x350] sm:$0xf0] }
 0x23c   :  { %9029 = vst [vmem:[#allocation86_spill] sm:$0xff] %v6996_v52 }
 0x23d   :  { %v7019_v25 = vpop.f32.mrf.mxu3  ;;  %v3458_v4 = vpop.f32.mrf.mxu2 }
 0x23e   :  { %v2455_v47 = vpop.f32.mrf.mxu0 }
 0x23f   :  { %v2954_v27 = vpop.f32.mrf.mxu1 }
 0x240   :  { %v2955_v7 = vadd.f32 %v2954_v27, %v2455_v47  ;;  %v5624_v47 = vld [vmem:[%s8877_s0 + $0x388] sm:$0xf0] }
 0x241   :  { %2494 = vmatmul.bf16.gmra.mxu0 %v4576_v41  ;;  %v5616_v41 = vld [vmem:[%s8877_s0 + $0x34c] sm:$0xf] }
 0x242   :  { %v7021_v14 = vadd.f32 %v3453_v58, %v2955_v7  ;;  %2993 = vmatmul.bf16.gmra.mxu1 %v4580_v60  ;;  %3243 = vmatmul.bf16.gmra.mxu3 %v5180_v29  ;;  %v4587_v29 = vld [vmem:[%s8877_s0 + $0x348] sm:$0xf] }
 0x245   :  { %v7031_v50 = vpop.f32.mrf.mxu3  ;;  %v3460_v54 = vpop.f32.mrf.mxu2 }
 0x246   :  { %9030 = vst [vmem:[#allocation87_spill] sm:$0xff] %v7031_v50  ;;  %v2457_v27 = vpop.f32.mrf.mxu0  ;;  %v4619_v50 = vld [vmem:[%s8877_s0 + $0x380] sm:$0xf] }
 0x247   :  { %v2956_v7 = vpop.f32.mrf.mxu1 }
 0x248   :  { %v2957_v58 = vadd.f32 %v2956_v7, %v2457_v27 }
 0x24a   :  { %v7033_v33 = vadd.f32 %v3455_v23, %v2957_v58  ;;  %5449 = vmatmul.msk.bf16.gmra.mxu2 %vm2021_vm0, %v4608_v8  ;;  %v5766_v23 = vld [vmem:[%s8877_s0 + $0x7fc] sm:$0xf]  ;;  %v4588_v8 = vor.u32 %v5617_v17, %v4587_v29  ;;  %v4592_v58 = vor.u32 %v5616_v41, %v4589_v56  ;;  %v4620_v56 = vor.u32 %v5624_v47, %v4619_v50  ;;  %v4601_v50 = vld [vmem:[%s8877_s0 + $0x36c] sm:$0xf0]  ;;  %v5201_v47 = vld [vmem:[%s8877_s0 + $0x81c] sm:$0xf0] }
 0x24b   :  { %v5192_v24 = vor.u32 %v5766_v23, %v5189_v34  ;;  %v5620_v34 = vld [vmem:[%s8877_s0 + $0x368] sm:$0xf0] }
 0x24d   :  { %v7056_v60 = vpop.f32.mrf.mxu3  ;;  %v3463_v27 = vpop.f32.mrf.mxu2 }
 0x24e   :  { %9031 = vst [vmem:[#allocation88_spill] sm:$0xff] %v7056_v60  ;;  %v2460_v7 = vpop.f32.mrf.mxu0 }
 0x24f   :  { %v2959_v52 = vpop.f32.mrf.mxu1 }
 0x250   :  { %v2960_v31 = vadd.f32 %v2959_v52, %v2460_v7  ;;  %v5627_v7 = vld [vmem:[%s8877_s0 + $0x3a0] sm:$0xf0] }
 0x251   :  { %2499 = vmatmul.bf16.gmra.mxu0 %v4588_v8  ;;  %v5619_v8 = vld [vmem:[%s8877_s0 + $0x364] sm:$0xf] }
 0x252   :  { %v7058_v16 = vadd.f32 %v3458_v4, %v2960_v31  ;;  %2998 = vmatmul.bf16.gmra.mxu1 %v4592_v58  ;;  %3248 = vmatmul.bf16.gmra.mxu3 %v5192_v24  ;;  %v4599_v24 = vld [vmem:[%s8877_s0 + $0x360] sm:$0xf] }
 0x254   :  { %9032 = vst [vmem:[#allocation89_spill] sm:$0xff] %v7058_v16 }
 0x255   :  { %v7068_v17 = vpop.f32.mrf.mxu3  ;;  %v3465_v41 = vpop.f32.mrf.mxu2 }
 0x256   :  { %9033 = vst [vmem:[#allocation90_spill] sm:$0xff] %v7068_v17  ;;  %v2462_v52 = vpop.f32.mrf.mxu0 }
 0x257   :  { %v2961_v31 = vpop.f32.mrf.mxu1 }
 0x258   :  { %v2962_v4 = vadd.f32 %v2961_v31, %v2462_v52 }
 0x25a   :  { %v7070_v23 = vadd.f32 %v3460_v54, %v2962_v4  ;;  %5450 = vmatmul.msk.bf16.gmra.mxu2 %vm2021_vm0, %v4620_v56  ;;  %v5769_v54 = vld [vmem:[%s8877_s0 + $0x814] sm:$0xf]  ;;  %v4600_v56 = vor.u32 %v5620_v34, %v4599_v24  ;;  %v4604_v4 = vor.u32 %v5619_v8, %v4601_v50  ;;  %v4632_v50 = vor.u32 %v5627_v7, %v4631_v0  ;;  %v4613_v0 = vld [vmem:[%s8877_s0 + $0x384] sm:$0xf0]  ;;  %v5213_v7 = vld [vmem:[%s8877_s0 + $0x834] sm:$0xf0] }
 0x25b   :  { %v5204_v29 = vor.u32 %v5769_v54, %v5201_v47  ;;  %v5623_v47 = vld [vmem:[%s8877_s0 + $0x380] sm:$0xf0] }
 0x25d   :  { %v7093_v58 = vpop.f32.mrf.mxu3  ;;  %v3468_v52 = vpop.f32.mrf.mxu2 }
 0x25e   :  { %9034 = vst [vmem:[#allocation91_spill] sm:$0xff] %v7093_v58  ;;  %v2465_v31 = vpop.f32.mrf.mxu0 }
 0x25f   :  { %v2964_v17 = vpop.f32.mrf.mxu1 }
 0x260   :  { %v2965_v60 = vadd.f32 %v2964_v17, %v2465_v31  ;;  %v5630_v31 = vld [vmem:[%s8877_s0 + $0x3b8] sm:$0xf0] }
 0x261   :  { %2504 = vmatmul.bf16.gmra.mxu0 %v4600_v56  ;;  %v5622_v56 = vld [vmem:[%s8877_s0 + $0x37c] sm:$0xf] }
 0x262   :  { %v7095_v16 = vadd.f32 %v3463_v27, %v2965_v60  ;;  %3003 = vmatmul.bf16.gmra.mxu1 %v4604_v4  ;;  %3253 = vmatmul.bf16.gmra.mxu3 %v5204_v29  ;;  %v4611_v29 = vld [vmem:[%s8877_s0 + $0x378] sm:$0xf] }
 0x264   :  { %9035 = vst [vmem:[#allocation92_spill] sm:$0xff] %v7095_v16 }
 0x265   :  { %v7105_v34 = vpop.f32.mrf.mxu3  ;;  %v3470_v8 = vpop.f32.mrf.mxu2 }
 0x266   :  { %9036 = vst [vmem:[#allocation93_spill] sm:$0xff] %v7105_v34  ;;  %v2467_v17 = vpop.f32.mrf.mxu0 }
 0x267   :  { %v2966_v60 = vpop.f32.mrf.mxu1 }
 0x268   :  { %v2967_v27 = vadd.f32 %v2966_v60, %v2467_v17 }
 0x26a   :  { %v7107_v54 = vadd.f32 %v3465_v41, %v2967_v27  ;;  %5451 = vmatmul.msk.bf16.gmra.mxu2 %vm2021_vm0, %v4632_v50  ;;  %v5772_v41 = vld [vmem:[%s8877_s0 + $0x82c] sm:$0xf]  ;;  %v4612_v50 = vor.u32 %v5623_v47, %v4611_v29  ;;  %v4616_v27 = vor.u32 %v5622_v56, %v4613_v0  ;;  %v4644_v0 = vor.u32 %v5630_v31, %v4643_v28  ;;  %v4625_v28 = vld [vmem:[%s8877_s0 + $0x39c] sm:$0xf0]  ;;  %v5225_v31 = vld [vmem:[%s8877_s0 + $0x84c] sm:$0xf0] }
 0x26b   :  { %v5216_v24 = vor.u32 %v5772_v41, %v5213_v7  ;;  %v5626_v7 = vld [vmem:[%s8877_s0 + $0x398] sm:$0xf0] }
 0x26d   :  { %v7130_v4 = vpop.f32.mrf.mxu3  ;;  %v3473_v17 = vpop.f32.mrf.mxu2 }
 0x26e   :  { %9037 = vst [vmem:[#allocation94_spill] sm:$0xff] %v7130_v4  ;;  %v2470_v60 = vpop.f32.mrf.mxu0 }
 0x26f   :  { %v2969_v34 = vpop.f32.mrf.mxu1 }
 0x270   :  { %v2970_v58 = vadd.f32 %v2969_v34, %v2470_v60  ;;  %v5633_v60 = vld [vmem:[%s8877_s0 + $0x3d0] sm:$0xf0] }
 0x271   :  { %2509 = vmatmul.bf16.gmra.mxu0 %v4612_v50  ;;  %v5625_v50 = vld [vmem:[%s8877_s0 + $0x394] sm:$0xf] }
 0x272   :  { %v7132_v16 = vadd.f32 %v3468_v52, %v2970_v58  ;;  %3008 = vmatmul.bf16.gmra.mxu1 %v4616_v27  ;;  %3258 = vmatmul.bf16.gmra.mxu3 %v5216_v24  ;;  %v4623_v24 = vld [vmem:[%s8877_s0 + $0x390] sm:$0xf] }
 0x274   :  { %9038 = vst [vmem:[#allocation95_spill] sm:$0xff] %v7132_v16 }
 0x275   :  { %v7142_v47 = vpop.f32.mrf.mxu3  ;;  %v3475_v56 = vpop.f32.mrf.mxu2 }
 0x276   :  { %9039 = vst [vmem:[#allocation96_spill] sm:$0xff] %v7142_v47  ;;  %v2472_v34 = vpop.f32.mrf.mxu0 }
 0x277   :  { %v2971_v58 = vpop.f32.mrf.mxu1 }
 0x278   :  { %v2972_v52 = vadd.f32 %v2971_v58, %v2472_v34 }
 0x27a   :  { %v7144_v41 = vadd.f32 %v3470_v8, %v2972_v52  ;;  %5452 = vmatmul.msk.bf16.gmra.mxu2 %vm2021_vm0, %v4644_v0  ;;  %v5775_v8 = vld [vmem:[%s8877_s0 + $0x844] sm:$0xf]  ;;  %v4624_v0 = vor.u32 %v5626_v7, %v4623_v24  ;;  %v4628_v52 = vor.u32 %v5625_v50, %v4625_v28  ;;  %v4656_v28 = vor.u32 %v5633_v60, %v4655_v57  ;;  %v4637_v57 = vld [vmem:[%s8877_s0 + $0x3b4] sm:$0xf0]  ;;  %v5237_v60 = vld [vmem:[%s8877_s0 + $0x864] sm:$0xf0] }
 0x27b   :  { %v5228_v29 = vor.u32 %v5775_v8, %v5225_v31  ;;  %v5629_v31 = vld [vmem:[%s8877_s0 + $0x3b0] sm:$0xf0] }
 0x27d   :  { %v7167_v27 = vpop.f32.mrf.mxu3  ;;  %v3478_v34 = vpop.f32.mrf.mxu2 }
 0x27e   :  { %9040 = vst [vmem:[#allocation97_spill] sm:$0xff] %v7167_v27  ;;  %v2475_v58 = vpop.f32.mrf.mxu0 }
 0x27f   :  { %v2974_v47 = vpop.f32.mrf.mxu1 }
 0x280   :  { %v2975_v4 = vadd.f32 %v2974_v47, %v2475_v58  ;;  %v5636_v58 = vld [vmem:[%s8877_s0 + $0x3e8] sm:$0xf0] }
 0x281   :  { %2514 = vmatmul.bf16.gmra.mxu0 %v4624_v0  ;;  %v5628_v0 = vld [vmem:[%s8877_s0 + $0x3ac] sm:$0xf] }
 0x282   :  { %v7169_v16 = vadd.f32 %v3473_v17, %v2975_v4  ;;  %3013 = vmatmul.bf16.gmra.mxu1 %v4628_v52  ;;  %3263 = vmatmul.bf16.gmra.mxu3 %v5228_v29  ;;  %v4635_v29 = vld [vmem:[%s8877_s0 + $0x3a8] sm:$0xf] }
 0x284   :  { %9041 = vst [vmem:[#allocation98_spill] sm:$0xff] %v7169_v16 }
 0x285   :  { %v7179_v7 = vpop.f32.mrf.mxu3  ;;  %v3480_v50 = vpop.f32.mrf.mxu2 }
 0x286   :  { %9042 = vst [vmem:[#allocation99_spill] sm:$0xff] %v7179_v7  ;;  %v2477_v47 = vpop.f32.mrf.mxu0 }
 0x287   :  { %v2976_v4 = vpop.f32.mrf.mxu1 }
 0x288   :  { %v2977_v17 = vadd.f32 %v2976_v4, %v2477_v47 }
 0x28a   :  { %v7181_v8 = vadd.f32 %v3475_v56, %v2977_v17  ;;  %5453 = vmatmul.msk.bf16.gmra.mxu2 %vm2021_vm0, %v4656_v28  ;;  %v5778_v56 = vld [vmem:[%s8877_s0 + $0x85c] sm:$0xf]  ;;  %v4636_v28 = vor.u32 %v5629_v31, %v4635_v29  ;;  %v4640_v17 = vor.u32 %v5628_v0, %v4637_v57  ;;  %v4668_v57 = vor.u32 %v5636_v58, %v4667_v26  ;;  %v4649_v26 = vld [vmem:[%s8877_s0 + $0x3cc] sm:$0xf0]  ;;  %v5249_v58 = vld [vmem:[%s8877_s0 + $0x87c] sm:$0xf0] }
 0x28b   :  { %v5240_v24 = vor.u32 %v5778_v56, %v5237_v60  ;;  %v5632_v60 = vld [vmem:[%s8877_s0 + $0x3c8] sm:$0xf0] }
 0x28d   :  { %v7204_v52 = vpop.f32.mrf.mxu3  ;;  %v3483_v47 = vpop.f32.mrf.mxu2 }
 0x28e   :  { %9043 = vst [vmem:[#allocation100_spill] sm:$0xff] %v7204_v52  ;;  %v2480_v4 = vpop.f32.mrf.mxu0 }
 0x28f   :  { %v2979_v7 = vpop.f32.mrf.mxu1 }
 0x290   :  { %v2980_v27 = vadd.f32 %v2979_v7, %v2480_v4  ;;  %v5639_v4 = vld [vmem:[%s8877_s0 + $0x400] sm:$0xf0] }
 0x291   :  { %2519 = vmatmul.bf16.gmra.mxu0 %v4636_v28  ;;  %v5631_v28 = vld [vmem:[%s8877_s0 + $0x3c4] sm:$0xf] }
 0x292   :  { %v7206_v16 = vadd.f32 %v3478_v34, %v2980_v27  ;;  %3018 = vmatmul.bf16.gmra.mxu1 %v4640_v17  ;;  %3268 = vmatmul.bf16.gmra.mxu3 %v5240_v24  ;;  %v4647_v24 = vld [vmem:[%s8877_s0 + $0x3c0] sm:$0xf] }
 0x294   :  { %9044 = vst [vmem:[#allocation101_spill] sm:$0xff] %v7206_v16 }
 0x295   :  { %v7216_v31 = vpop.f32.mrf.mxu3  ;;  %v3485_v0 = vpop.f32.mrf.mxu2 }
 0x296   :  { %9045 = vst [vmem:[#allocation102_spill] sm:$0xff] %v7216_v31  ;;  %v2482_v7 = vpop.f32.mrf.mxu0 }
 0x297   :  { %v2981_v27 = vpop.f32.mrf.mxu1 }
 0x298   :  { %v2982_v34 = vadd.f32 %v2981_v27, %v2482_v7 }
 0x29a   :  { %v7218_v56 = vadd.f32 %v3480_v50, %v2982_v34  ;;  %5454 = vmatmul.msk.bf16.gmra.mxu2 %vm2021_vm0, %v4668_v57  ;;  %v5781_v50 = vld [vmem:[%s8877_s0 + $0x874] sm:$0xf]  ;;  %v4648_v57 = vor.u32 %v5632_v60, %v4647_v24  ;;  %v4652_v34 = vor.u32 %v5631_v28, %v4649_v26  ;;  %v4680_v26 = vor.u32 %v5639_v4, %v4679_v61  ;;  %v4661_v61 = vld [vmem:[%s8877_s0 + $0x3e4] sm:$0xf0]  ;;  %v5261_v4 = vld [vmem:[%s8877_s0 + $0x894] sm:$0xf0] }
 0x29b   :  { %v5252_v29 = vor.u32 %v5781_v50, %v5249_v58  ;;  %v5635_v58 = vld [vmem:[%s8877_s0 + $0x3e0] sm:$0xf0] }
 0x29d   :  { %v7241_v17 = vpop.f32.mrf.mxu3  ;;  %v3488_v7 = vpop.f32.mrf.mxu2 }
 0x29e   :  { %9046 = vst [vmem:[#allocation103_spill] sm:$0xff] %v7241_v17  ;;  %v2485_v27 = vpop.f32.mrf.mxu0 }
 0x29f   :  { %v2984_v31 = vpop.f32.mrf.mxu1 }
 0x2a0   :  { %v2985_v52 = vadd.f32 %v2984_v31, %v2485_v27  ;;  %v5642_v27 = vld [vmem:[%s8877_s0 + $0x418] sm:$0xf0] }
 0x2a1   :  { %2524 = vmatmul.bf16.gmra.mxu0 %v4648_v57  ;;  %v5634_v57 = vld [vmem:[%s8877_s0 + $0x3dc] sm:$0xf] }
 0x2a2   :  { %v7243_v16 = vadd.f32 %v3483_v47, %v2985_v52  ;;  %3023 = vmatmul.bf16.gmra.mxu1 %v4652_v34  ;;  %3273 = vmatmul.bf16.gmra.mxu3 %v5252_v29  ;;  %v4659_v29 = vld [vmem:[%s8877_s0 + $0x3d8] sm:$0xf] }
 0x2a4   :  { %9047 = vst [vmem:[#allocation104_spill] sm:$0xff] %v7243_v16 }
 0x2a5   :  { %v7253_v60 = vpop.f32.mrf.mxu3  ;;  %v3490_v28 = vpop.f32.mrf.mxu2 }
 0x2a6   :  { %9048 = vst [vmem:[#allocation105_spill] sm:$0xff] %v7253_v60  ;;  %v2487_v31 = vpop.f32.mrf.mxu0 }
 0x2a7   :  { %v2986_v52 = vpop.f32.mrf.mxu1 }
 0x2a8   :  { %v2987_v47 = vadd.f32 %v2986_v52, %v2487_v31 }
 0x2aa   :  { %v7255_v50 = vadd.f32 %v3485_v0, %v2987_v47  ;;  %5455 = vmatmul.msk.bf16.gmra.mxu2 %vm2021_vm0, %v4680_v26  ;;  %v5784_v0 = vld [vmem:[%s8877_s0 + $0x88c] sm:$0xf]  ;;  %v4660_v26 = vor.u32 %v5635_v58, %v4659_v29  ;;  %v4664_v47 = vor.u32 %v5634_v57, %v4661_v61  ;;  %v4692_v61 = vor.u32 %v5642_v27, %v4691_v39  ;;  %v4673_v39 = vld [vmem:[%s8877_s0 + $0x3fc] sm:$0xf0]  ;;  %v5273_v27 = vld [vmem:[%s8877_s0 + $0x8ac] sm:$0xf0] }
 0x2ab   :  { %v5264_v24 = vor.u32 %v5784_v0, %v5261_v4  ;;  %v5638_v4 = vld [vmem:[%s8877_s0 + $0x3f8] sm:$0xf0] }
 0x2ad   :  { %v7278_v34 = vpop.f32.mrf.mxu3  ;;  %v3493_v31 = vpop.f32.mrf.mxu2 }
 0x2ae   :  { %9049 = vst [vmem:[#allocation106_spill] sm:$0xff] %v7278_v34  ;;  %v2490_v52 = vpop.f32.mrf.mxu0 }
 0x2af   :  { %v2989_v60 = vpop.f32.mrf.mxu1 }
 0x2b0   :  { %v2990_v17 = vadd.f32 %v2989_v60, %v2490_v52  ;;  %v5645_v52 = vld [vmem:[%s8877_s0 + $0x430] sm:$0xf0] }
 0x2b1   :  { %2529 = vmatmul.bf16.gmra.mxu0 %v4660_v26  ;;  %v5637_v26 = vld [vmem:[%s8877_s0 + $0x3f4] sm:$0xf] }
 0x2b2   :  { %v7280_v16 = vadd.f32 %v3488_v7, %v2990_v17  ;;  %3028 = vmatmul.bf16.gmra.mxu1 %v4664_v47  ;;  %3278 = vmatmul.bf16.gmra.mxu3 %v5264_v24  ;;  %v4671_v24 = vld [vmem:[%s8877_s0 + $0x3f0] sm:$0xf] }
 0x2b4   :  { %9050 = vst [vmem:[#allocation107_spill] sm:$0xff] %v7280_v16 }
 0x2b5   :  { %v7290_v58 = vpop.f32.mrf.mxu3  ;;  %v3495_v57 = vpop.f32.mrf.mxu2 }
 0x2b6   :  { %9051 = vst [vmem:[#allocation108_spill] sm:$0xff] %v7290_v58  ;;  %v2492_v60 = vpop.f32.mrf.mxu0 }
 0x2b7   :  { %v2991_v17 = vpop.f32.mrf.mxu1 }
 0x2b8   :  { %v2992_v7 = vadd.f32 %v2991_v17, %v2492_v60 }
 0x2ba   :  { %v7292_v0 = vadd.f32 %v3490_v28, %v2992_v7  ;;  %5456 = vmatmul.msk.bf16.gmra.mxu2 %vm2021_vm0, %v4692_v61  ;;  %v5787_v28 = vld [vmem:[%s8877_s0 + $0x8a4] sm:$0xf]  ;;  %v4672_v61 = vor.u32 %v5638_v4, %v4671_v24  ;;  %v4676_v7 = vor.u32 %v5637_v26, %v4673_v39  ;;  %v4704_v39 = vor.u32 %v5645_v52, %v4703_v19  ;;  %v4685_v19 = vld [vmem:[%s8877_s0 + $0x414] sm:$0xf0]  ;;  %v5285_v52 = vld [vmem:[%s8877_s0 + $0x8c4] sm:$0xf0] }
 0x2bb   :  { %v5276_v29 = vor.u32 %v5787_v28, %v5273_v27  ;;  %v5641_v27 = vld [vmem:[%s8877_s0 + $0x410] sm:$0xf0] }
 0x2bd   :  { %v7315_v47 = vpop.f32.mrf.mxu3  ;;  %v3498_v60 = vpop.f32.mrf.mxu2 }
 0x2be   :  { %9052 = vst [vmem:[#allocation109_spill] sm:$0xff] %v7315_v47  ;;  %v2495_v17 = vpop.f32.mrf.mxu0 }
 0x2bf   :  { %v2994_v58 = vpop.f32.mrf.mxu1 }
 0x2c0   :  { %v2995_v34 = vadd.f32 %v2994_v58, %v2495_v17  ;;  %v5648_v17 = vld [vmem:[%s8877_s0 + $0x448] sm:$0xf0] }
 0x2c1   :  { %2534 = vmatmul.bf16.gmra.mxu0 %v4672_v61  ;;  %v5640_v61 = vld [vmem:[%s8877_s0 + $0x40c] sm:$0xf] }
 0x2c2   :  { %v7317_v16 = vadd.f32 %v3493_v31, %v2995_v34  ;;  %3033 = vmatmul.bf16.gmra.mxu1 %v4676_v7  ;;  %3283 = vmatmul.bf16.gmra.mxu3 %v5276_v29  ;;  %v4683_v29 = vld [vmem:[%s8877_s0 + $0x408] sm:$0xf] }
 0x2c4   :  { %9053 = vst [vmem:[#allocation110_spill] sm:$0xff] %v7317_v16 }
 0x2c5   :  { %v7327_v4 = vpop.f32.mrf.mxu3  ;;  %v3500_v26 = vpop.f32.mrf.mxu2 }
 0x2c6   :  { %9054 = vst [vmem:[#allocation111_spill] sm:$0xff] %v7327_v4  ;;  %v2497_v58 = vpop.f32.mrf.mxu0 }
 0x2c7   :  { %v2996_v34 = vpop.f32.mrf.mxu1 }
 0x2c8   :  { %v2997_v31 = vadd.f32 %v2996_v34, %v2497_v58 }
 0x2ca   :  { %v7329_v28 = vadd.f32 %v3495_v57, %v2997_v31  ;;  %5457 = vmatmul.msk.bf16.gmra.mxu2 %vm2021_vm0, %v4704_v39  ;;  %v5790_v57 = vld [vmem:[%s8877_s0 + $0x8bc] sm:$0xf]  ;;  %v4684_v39 = vor.u32 %v5641_v27, %v4683_v29  ;;  %v4688_v31 = vor.u32 %v5640_v61, %v4685_v19  ;;  %v4716_v19 = vor.u32 %v5648_v17, %v4715_v11  ;;  %v4697_v11 = vld [vmem:[%s8877_s0 + $0x42c] sm:$0xf0]  ;;  %v5297_v17 = vld [vmem:[%s8877_s0 + $0x8dc] sm:$0xf0] }
 0x2cb   :  { %v5288_v24 = vor.u32 %v5790_v57, %v5285_v52  ;;  %v5644_v52 = vld [vmem:[%s8877_s0 + $0x428] sm:$0xf0] }
 0x2cd   :  { %v7352_v7 = vpop.f32.mrf.mxu3  ;;  %v3503_v58 = vpop.f32.mrf.mxu2 }
 0x2ce   :  { %9055 = vst [vmem:[#allocation112_spill] sm:$0xff] %v7352_v7  ;;  %v2500_v34 = vpop.f32.mrf.mxu0 }
 0x2cf   :  { %v2999_v4 = vpop.f32.mrf.mxu1 }
 0x2d0   :  { %v3000_v47 = vadd.f32 %v2999_v4, %v2500_v34  ;;  %v5651_v34 = vld [vmem:[%s8877_s0 + $0x460] sm:$0xf0] }
 0x2d1   :  { %2539 = vmatmul.bf16.gmra.mxu0 %v4684_v39  ;;  %v5643_v39 = vld [vmem:[%s8877_s0 + $0x424] sm:$0xf] }
 0x2d2   :  { %v7354_v16 = vadd.f32 %v3498_v60, %v3000_v47  ;;  %3038 = vmatmul.bf16.gmra.mxu1 %v4688_v31  ;;  %3288 = vmatmul.bf16.gmra.mxu3 %v5288_v24  ;;  %v4695_v24 = vld [vmem:[%s8877_s0 + $0x420] sm:$0xf] }
 0x2d4   :  { %9056 = vst [vmem:[#allocation113_spill] sm:$0xff] %v7354_v16 }
 0x2d5   :  { %v7364_v27 = vpop.f32.mrf.mxu3  ;;  %v3505_v61 = vpop.f32.mrf.mxu2 }
 0x2d6   :  { %9057 = vst [vmem:[#allocation114_spill] sm:$0xff] %v7364_v27  ;;  %v2502_v4 = vpop.f32.mrf.mxu0 }
 0x2d7   :  { %v3001_v47 = vpop.f32.mrf.mxu1 }
 0x2d8   :  { %v3002_v60 = vadd.f32 %v3001_v47, %v2502_v4 }
 0x2da   :  { %v7366_v57 = vadd.f32 %v3500_v26, %v3002_v60  ;;  %5458 = vmatmul.msk.bf16.gmra.mxu2 %vm2021_vm0, %v4716_v19  ;;  %v5793_v26 = vld [vmem:[%s8877_s0 + $0x8d4] sm:$0xf]  ;;  %v4696_v19 = vor.u32 %v5644_v52, %v4695_v24  ;;  %v4700_v60 = vor.u32 %v5643_v39, %v4697_v11  ;;  %v4728_v11 = vor.u32 %v5651_v34, %v4727_v51  ;;  %v4709_v51 = vld [vmem:[%s8877_s0 + $0x444] sm:$0xf0]  ;;  %v5309_v34 = vld [vmem:[%s8877_s0 + $0x8f4] sm:$0xf0] }
 0x2db   :  { %v5300_v29 = vor.u32 %v5793_v26, %v5297_v17  ;;  %v5647_v17 = vld [vmem:[%s8877_s0 + $0x440] sm:$0xf0] }
 0x2dd   :  { %v7389_v31 = vpop.f32.mrf.mxu3  ;;  %v3508_v4 = vpop.f32.mrf.mxu2 }
 0x2de   :  { %9058 = vst [vmem:[#allocation115_spill] sm:$0xff] %v7389_v31  ;;  %v2505_v47 = vpop.f32.mrf.mxu0 }
 0x2df   :  { %v3004_v27 = vpop.f32.mrf.mxu1 }
 0x2e0   :  { %v3005_v7 = vadd.f32 %v3004_v27, %v2505_v47  ;;  %v5654_v47 = vld [vmem:[%s8877_s0 + $0x478] sm:$0xf0] }
 0x2e1   :  { %2544 = vmatmul.bf16.gmra.mxu0 %v4696_v19  ;;  %v5646_v19 = vld [vmem:[%s8877_s0 + $0x43c] sm:$0xf] }
 0x2e2   :  { %v7391_v16 = vadd.f32 %v3503_v58, %v3005_v7  ;;  %3043 = vmatmul.bf16.gmra.mxu1 %v4700_v60  ;;  %3293 = vmatmul.bf16.gmra.mxu3 %v5300_v29  ;;  %v4707_v29 = vld [vmem:[%s8877_s0 + $0x438] sm:$0xf] }
 0x2e4   :  { %9059 = vst [vmem:[#allocation116_spill] sm:$0xff] %v7391_v16 }
 0x2e5   :  { %v7401_v52 = vpop.f32.mrf.mxu3  ;;  %v3510_v39 = vpop.f32.mrf.mxu2 }
 0x2e6   :  { %9060 = vst [vmem:[#allocation117_spill] sm:$0xff] %v7401_v52  ;;  %v2507_v27 = vpop.f32.mrf.mxu0 }
 0x2e7   :  { %v3006_v7 = vpop.f32.mrf.mxu1 }
 0x2e8   :  { %v3007_v58 = vadd.f32 %v3006_v7, %v2507_v27 }
 0x2ea   :  { %v7403_v26 = vadd.f32 %v3505_v61, %v3007_v58  ;;  %5459 = vmatmul.msk.bf16.gmra.mxu2 %vm2021_vm0, %v4728_v11  ;;  %v5796_v61 = vld [vmem:[%s8877_s0 + $0x8ec] sm:$0xf]  ;;  %v4708_v11 = vor.u32 %v5647_v17, %v4707_v29  ;;  %v4712_v58 = vor.u32 %v5646_v19, %v4709_v51  ;;  %v4740_v51 = vor.u32 %v5654_v47, %v4739_v59  ;;  %v4721_v59 = vld [vmem:[%s8877_s0 + $0x45c] sm:$0xf0]  ;;  %v5321_v47 = vld [vmem:[%s8877_s0 + $0x90c] sm:$0xf0] }
 0x2eb   :  { %v5312_v24 = vor.u32 %v5796_v61, %v5309_v34  ;;  %v5650_v34 = vld [vmem:[%s8877_s0 + $0x458] sm:$0xf0] }
 0x2ed   :  { %v7426_v60 = vpop.f32.mrf.mxu3  ;;  %v3513_v27 = vpop.f32.mrf.mxu2 }
 0x2ee   :  { %9061 = vst [vmem:[#allocation118_spill] sm:$0xff] %v7426_v60  ;;  %v2510_v7 = vpop.f32.mrf.mxu0 }
 0x2ef   :  { %v3009_v52 = vpop.f32.mrf.mxu1 }
 0x2f0   :  { %v3010_v31 = vadd.f32 %v3009_v52, %v2510_v7  ;;  %v5657_v7 = vld [vmem:[%s8877_s0 + $0x490] sm:$0xf0] }
 0x2f1   :  { %2549 = vmatmul.bf16.gmra.mxu0 %v4708_v11  ;;  %v5649_v11 = vld [vmem:[%s8877_s0 + $0x454] sm:$0xf] }
 0x2f2   :  { %v7428_v16 = vadd.f32 %v3508_v4, %v3010_v31  ;;  %3048 = vmatmul.bf16.gmra.mxu1 %v4712_v58  ;;  %3298 = vmatmul.bf16.gmra.mxu3 %v5312_v24  ;;  %v4719_v24 = vld [vmem:[%s8877_s0 + $0x450] sm:$0xf] }
 0x2f4   :  { %9062 = vst [vmem:[#allocation119_spill] sm:$0xff] %v7428_v16 }
 0x2f5   :  { %v7438_v17 = vpop.f32.mrf.mxu3  ;;  %v3515_v19 = vpop.f32.mrf.mxu2 }
 0x2f6   :  { %9063 = vst [vmem:[#allocation120_spill] sm:$0xff] %v7438_v17  ;;  %v2512_v52 = vpop.f32.mrf.mxu0 }
 0x2f7   :  { %v3011_v31 = vpop.f32.mrf.mxu1 }
 0x2f8   :  { %v3012_v4 = vadd.f32 %v3011_v31, %v2512_v52 }
 0x2fa   :  { %v7440_v61 = vadd.f32 %v3510_v39, %v3012_v4  ;;  %5460 = vmatmul.msk.bf16.gmra.mxu2 %vm2021_vm0, %v4740_v51  ;;  %v5799_v39 = vld [vmem:[%s8877_s0 + $0x904] sm:$0xf]  ;;  %v4720_v51 = vor.u32 %v5650_v34, %v4719_v24  ;;  %v4724_v4 = vor.u32 %v5649_v11, %v4721_v59  ;;  %v4752_v59 = vor.u32 %v5657_v7, %v4751_v35  ;;  %v4733_v35 = vld [vmem:[%s8877_s0 + $0x474] sm:$0xf0]  ;;  %v5333_v7 = vld [vmem:[%s8877_s0 + $0x924] sm:$0xf0] }
 0x2fb   :  { %v5324_v29 = vor.u32 %v5799_v39, %v5321_v47  ;;  %v5653_v47 = vld [vmem:[%s8877_s0 + $0x470] sm:$0xf0] }
 0x2fd   :  { %v7463_v58 = vpop.f32.mrf.mxu3  ;;  %v3518_v52 = vpop.f32.mrf.mxu2 }
 0x2fe   :  { %9064 = vst [vmem:[#allocation121_spill] sm:$0xff] %v7463_v58  ;;  %v2515_v31 = vpop.f32.mrf.mxu0 }
 0x2ff   :  { %v3014_v17 = vpop.f32.mrf.mxu1 }
 0x300   :  { %v3015_v60 = vadd.f32 %v3014_v17, %v2515_v31  ;;  %v5660_v31 = vld [vmem:[%s8877_s0 + $0x4a8] sm:$0xf0] }
 0x301   :  { %2554 = vmatmul.bf16.gmra.mxu0 %v4720_v51  ;;  %v5652_v51 = vld [vmem:[%s8877_s0 + $0x46c] sm:$0xf] }
 0x302   :  { %v7465_v16 = vadd.f32 %v3513_v27, %v3015_v60  ;;  %3053 = vmatmul.bf16.gmra.mxu1 %v4724_v4  ;;  %3303 = vmatmul.bf16.gmra.mxu3 %v5324_v29  ;;  %v4731_v29 = vld [vmem:[%s8877_s0 + $0x468] sm:$0xf] }
 0x304   :  { %9065 = vst [vmem:[#allocation122_spill] sm:$0xff] %v7465_v16 }
 0x305   :  { %v7475_v34 = vpop.f32.mrf.mxu3  ;;  %v3520_v11 = vpop.f32.mrf.mxu2 }
 0x306   :  { %9066 = vst [vmem:[#allocation123_spill] sm:$0xff] %v7475_v34  ;;  %v2517_v17 = vpop.f32.mrf.mxu0 }
 0x307   :  { %v3016_v60 = vpop.f32.mrf.mxu1 }
 0x308   :  { %v3017_v27 = vadd.f32 %v3016_v60, %v2517_v17 }
 0x30a   :  { %v7477_v39 = vadd.f32 %v3515_v19, %v3017_v27  ;;  %5461 = vmatmul.msk.bf16.gmra.mxu2 %vm2021_vm0, %v4752_v59  ;;  %v5802_v19 = vld [vmem:[%s8877_s0 + $0x91c] sm:$0xf]  ;;  %v4732_v59 = vor.u32 %v5653_v47, %v4731_v29  ;;  %v4736_v27 = vor.u32 %v5652_v51, %v4733_v35  ;;  %v4764_v35 = vor.u32 %v5660_v31, %v4763_v3  ;;  %v4745_v3 = vld [vmem:[%s8877_s0 + $0x48c] sm:$0xf0] }
 0x30b   :  { %v5336_v24 = vor.u32 %v5802_v19, %v5333_v7  ;;  %v5656_v7 = vld [vmem:[%s8877_s0 + $0x488] sm:$0xf0]  ;;  %v5738_v31 = vld [vmem:[%s8877_s0 + $0x718] sm:$0xf0] }
 0x30d   :  { %v7500_v4 = vpop.f32.mrf.mxu3  ;;  %v3523_v17 = vpop.f32.mrf.mxu2 }
 0x30e   :  { %9067 = vst [vmem:[#allocation124_spill] sm:$0xff] %v7500_v4  ;;  %v2520_v60 = vpop.f32.mrf.mxu0 }
 0x30f   :  { %v3019_v34 = vpop.f32.mrf.mxu1 }
 0x310   :  { %v3020_v58 = vadd.f32 %v3019_v34, %v2520_v60  ;;  %v5663_v60 = vld [vmem:[%s8877_s0 + $0x4c0] sm:$0xf0] }
 0x311   :  { %2559 = vmatmul.bf16.gmra.mxu0 %v4732_v59  ;;  %v5655_v59 = vld [vmem:[%s8877_s0 + $0x484] sm:$0xf] }
 0x312   :  { %v7502_v16 = vadd.f32 %v3518_v52, %v3020_v58  ;;  %3058 = vmatmul.bf16.gmra.mxu1 %v4736_v27  ;;  %3308 = vmatmul.bf16.gmra.mxu3 %v5336_v24  ;;  %v4743_v24 = vld [vmem:[%s8877_s0 + $0x480] sm:$0xf] }
 0x314   :  { %9068 = vst [vmem:[#allocation125_spill] sm:$0xff] %v7502_v16 }
 0x315   :  { %v7512_v47 = vpop.f32.mrf.mxu3  ;;  %v3525_v51 = vpop.f32.mrf.mxu2 }
 0x316   :  { %9069 = vst [vmem:[#allocation126_spill] sm:$0xff] %v7512_v47  ;;  %v2522_v34 = vpop.f32.mrf.mxu0 }
 0x317   :  { %v3021_v58 = vpop.f32.mrf.mxu1 }
 0x318   :  { %v3022_v52 = vadd.f32 %v3021_v58, %v2522_v34 }
 0x31a   :  { %v7514_v19 = vadd.f32 %v3520_v11, %v3022_v52  ;;  %5462 = vmatmul.msk.bf16.gmra.mxu2 %vm2021_vm0, %v4764_v35  ;;  %v5075_v11 = vld [vmem:[%s8877_s0 + $0x710] sm:$0xf]  ;;  %v4744_v35 = vor.u32 %v5656_v7, %v4743_v24  ;;  %v4748_v52 = vor.u32 %v5655_v59, %v4745_v3 }
 0x31b   :  { %v5076_v29 = vor.u32 %v5738_v31, %v5075_v11  ;;  %v5659_v31 = vld [vmem:[%s8877_s0 + $0x4a0] sm:$0xf0] }
 0x31d   :  { %v7537_v27 = vpop.f32.mrf.mxu3  ;;  %v3528_v34 = vpop.f32.mrf.mxu2 }
 0x31e   :  { %9070 = vst [vmem:[#allocation127_spill] sm:$0xff] %v7537_v27  ;;  %v2525_v58 = vpop.f32.mrf.mxu0 }
 0x31f   :  { %v3024_v47 = vpop.f32.mrf.mxu1 }
 0x320   :  { %v3025_v4 = vadd.f32 %v3024_v47, %v2525_v58  ;;  %v5666_v58 = vld [vmem:[%s8877_s0 + $0x4d8] sm:$0xf0] }
 0x321   :  { %2564 = vmatmul.bf16.gmra.mxu0 %v4744_v35  ;;  %v5658_v35 = vld [vmem:[%s8877_s0 + $0x49c] sm:$0xf] }
 0x322   :  { %v7539_v16 = vadd.f32 %v3523_v17, %v3025_v4  ;;  %3063 = vmatmul.bf16.gmra.mxu1 %v4748_v52  ;;  %5488 = vmatmul.msk.bf16.vlgmr.msra.gmra.mxu3 %vm2021_vm0, %v5076_v29  ;;  %v4776_v4 = vor.u32 %v5663_v60, %v4775_v62  ;;  %v4755_v29 = vld [vmem:[%s8877_s0 + $0x498] sm:$0xf]  ;;  %v4757_v62 = vld [vmem:[%s8877_s0 + $0x4a4] sm:$0xf0]  ;;  %v5741_v60 = vld [vmem:[%s8877_s0 + $0x730] sm:$0xf0] }
 0x324   :  { %9071 = vst [vmem:[#allocation128_spill] sm:$0xff] %v7539_v16 }
 0x325   :  { %v7550_v7 = vpop.f32.mrf.mxu3  ;;  %v3530_v47 = vpop.f32.mrf.mxu2 }
 0x326   :  { %9072 = vst [vmem:[#allocation129_spill] sm:$0xff] %v7550_v7  ;;  %v2527_v59 = vpop.f32.mrf.mxu0 }
 0x327   :  { %v3026_v17 = vpop.f32.mrf.mxu1 }
 0x328   :  { %v3027_v3 = vadd.f32 %v3026_v17, %v2527_v59 }
 0x32a   :  { %v7552_v11 = vadd.f32 %v3525_v51, %v3027_v3  ;;  %5463 = vmatmul.msk.bf16.gmra.mxu2 %vm2021_vm0, %v4776_v4  ;;  %v5087_v51 = vld [vmem:[%s8877_s0 + $0x728] sm:$0xf]  ;;  %v4756_v4 = vor.u32 %v5659_v31, %v4755_v29  ;;  %v4760_v3 = vor.u32 %v5658_v35, %v4757_v62 }
 0x32b   :  { %v5088_v24 = vor.u32 %v5741_v60, %v5087_v51  ;;  %v5662_v60 = vld [vmem:[%s8877_s0 + $0x4b8] sm:$0xf0] }
 0x32d   :  { %v7575_v52 = vpop.f32.mrf.mxu3  ;;  %v3533_v59 = vpop.f32.mrf.mxu2 }
 0x32e   :  { %9073 = vst [vmem:[#allocation130_spill] sm:$0xff] %v7575_v52  ;;  %v2530_v17 = vpop.f32.mrf.mxu0 }
 0x32f   :  { %v3029_v7 = vpop.f32.mrf.mxu1 }
 0x330   :  { %v3030_v27 = vadd.f32 %v3029_v7, %v2530_v17  ;;  %v5669_v17 = vld [vmem:[%s8877_s0 + $0x4f0] sm:$0xf0] }
 0x331   :  { %2569 = vmatmul.bf16.gmra.mxu0 %v4756_v4  ;;  %v5661_v4 = vld [vmem:[%s8877_s0 + $0x4b4] sm:$0xf] }
 0x332   :  { %v7577_v16 = vadd.f32 %v3528_v34, %v3030_v27  ;;  %3068 = vmatmul.bf16.gmra.mxu1 %v4760_v3  ;;  %5489 = vmatmul.msk.bf16.gmra.mxu3 %vm2021_vm0, %v5088_v24  ;;  %v4788_v27 = vor.u32 %v5666_v58, %v4787_v5  ;;  %v4767_v24 = vld [vmem:[%s8877_s0 + $0x4b0] sm:$0xf]  ;;  %v4769_v5 = vld [vmem:[%s8877_s0 + $0x4bc] sm:$0xf0]  ;;  %v5744_v58 = vld [vmem:[%s8877_s0 + $0x748] sm:$0xf0] }
 0x334   :  { %9074 = vst [vmem:[#allocation131_spill] sm:$0xff] %v7577_v16 }
 0x335   :  { %v7588_v31 = vpop.f32.mrf.mxu3  ;;  %v3535_v7 = vpop.f32.mrf.mxu2 }
 0x336   :  { %9075 = vst [vmem:[#allocation132_spill] sm:$0xff] %v7588_v31  ;;  %v2532_v35 = vpop.f32.mrf.mxu0 }
 0x337   :  { %v3031_v34 = vpop.f32.mrf.mxu1 }
 0x338   :  { %v3032_v62 = vadd.f32 %v3031_v34, %v2532_v35 }
 0x33a   :  { %v7590_v51 = vadd.f32 %v3530_v47, %v3032_v62  ;;  %5464 = vmatmul.msk.bf16.gmra.mxu2 %vm2021_vm0, %v4788_v27  ;;  %v5099_v47 = vld [vmem:[%s8877_s0 + $0x740] sm:$0xf]  ;;  %v4768_v27 = vor.u32 %v5662_v60, %v4767_v24  ;;  %v4772_v62 = vor.u32 %v5661_v4, %v4769_v5 }
 0x33b   :  { %v5100_v29 = vor.u32 %v5744_v58, %v5099_v47  ;;  %v5665_v58 = vld [vmem:[%s8877_s0 + $0x4d0] sm:$0xf0] }
 0x33c   :  { %9076 = vst [vmem:[#allocation133_spill] sm:$0xff] %v7590_v51 }
 0x33d   :  { %v7613_v3 = vpop.f32.mrf.mxu3  ;;  %v3538_v35 = vpop.f32.mrf.mxu2 }
 0x33e   :  { %9077 = vst [vmem:[#allocation134_spill] sm:$0xff] %v7613_v3  ;;  %v2535_v34 = vpop.f32.mrf.mxu0 }
 0x33f   :  { %v3034_v31 = vpop.f32.mrf.mxu1 }
 0x340   :  { %v3035_v52 = vadd.f32 %v3034_v31, %v2535_v34  ;;  %v5672_v34 = vld [vmem:[%s8877_s0 + $0x508] sm:$0xf0] }
 0x341   :  { %2574 = vmatmul.bf16.gmra.mxu0 %v4768_v27  ;;  %v5664_v27 = vld [vmem:[%s8877_s0 + $0x4cc] sm:$0xf] }
 0x342   :  { %v7615_v16 = vadd.f32 %v3533_v59, %v3035_v52  ;;  %3073 = vmatmul.bf16.gmra.mxu1 %v4772_v62  ;;  %5490 = vmatmul.msk.bf16.gmra.mxu3 %vm2021_vm0, %v5100_v29  ;;  %v4800_v52 = vor.u32 %v5669_v17, %v4799_v43  ;;  %v4779_v29 = vld [vmem:[%s8877_s0 + $0x4c8] sm:$0xf]  ;;  %v4781_v43 = vld [vmem:[%s8877_s0 + $0x4d4] sm:$0xf0]  ;;  %v5747_v17 = vld [vmem:[%s8877_s0 + $0x760] sm:$0xf0] }
 0x344   :  { %9078 = vst [vmem:[#allocation135_spill] sm:$0xff] %v7615_v16 }
 0x345   :  { %v7626_v60 = vpop.f32.mrf.mxu3  ;;  %v3540_v31 = vpop.f32.mrf.mxu2 }
 0x346   :  { %9079 = vst [vmem:[#allocation136_spill] sm:$0xff] %v7626_v60  ;;  %v2537_v4 = vpop.f32.mrf.mxu0 }
 0x347   :  { %v3036_v59 = vpop.f32.mrf.mxu1 }
 0x348   :  { %v3037_v5 = vadd.f32 %v3036_v59, %v2537_v4 }
 0x34a   :  { %v7628_v47 = vadd.f32 %v3535_v7, %v3037_v5  ;;  %5465 = vmatmul.msk.bf16.gmra.mxu2 %vm2021_vm0, %v4800_v52  ;;  %v5111_v7 = vld [vmem:[%s8877_s0 + $0x758] sm:$0xf]  ;;  %v4780_v52 = vor.u32 %v5665_v58, %v4779_v29  ;;  %v4784_v5 = vor.u32 %v5664_v27, %v4781_v43 }
 0x34b   :  { %v5112_v24 = vor.u32 %v5747_v17, %v5111_v7  ;;  %v5668_v17 = vld [vmem:[%s8877_s0 + $0x4e8] sm:$0xf0] }
 0x34c   :  { %9080 = vst [vmem:[#allocation137_spill] sm:$0xff] %v7628_v47 }
 0x34d   :  { %v7651_v62 = vpop.f32.mrf.mxu3  ;;  %v3543_v4 = vpop.f32.mrf.mxu2 }
 0x34e   :  { %9081 = vst [vmem:[#allocation138_spill] sm:$0xff] %v7651_v62  ;;  %v2540_v59 = vpop.f32.mrf.mxu0 }
 0x34f   :  { %v3039_v60 = vpop.f32.mrf.mxu1 }
 0x350   :  { %v3040_v3 = vadd.f32 %v3039_v60, %v2540_v59  ;;  %v5675_v59 = vld [vmem:[%s8877_s0 + $0x520] sm:$0xf0] }
 0x351   :  { %2579 = vmatmul.bf16.gmra.mxu0 %v4780_v52  ;;  %v5667_v52 = vld [vmem:[%s8877_s0 + $0x4e4] sm:$0xf] }
 0x352   :  { %v7653_v16 = vadd.f32 %v3538_v35, %v3040_v3  ;;  %3078 = vmatmul.bf16.gmra.mxu1 %v4784_v5  ;;  %5491 = vmatmul.msk.bf16.gmra.mxu3 %vm2021_vm0, %v5112_v24  ;;  %v4812_v3 = vor.u32 %v5672_v34, %v4811_v12  ;;  %v4791_v24 = vld [vmem:[%s8877_s0 + $0x4e0] sm:$0xf]  ;;  %v4793_v12 = vld [vmem:[%s8877_s0 + $0x4ec] sm:$0xf0]  ;;  %v5750_v34 = vld [vmem:[%s8877_s0 + $0x778] sm:$0xf0] }
 0x354   :  { %9082 = vst [vmem:[#allocation139_spill] sm:$0xff] %v7653_v16 }
 0x355   :  { %v7664_v58 = vpop.f32.mrf.mxu3  ;;  %v3545_v60 = vpop.f32.mrf.mxu2 }
 0x356   :  { %9083 = vst [vmem:[#allocation140_spill] sm:$0xff] %v7664_v58  ;;  %v2542_v27 = vpop.f32.mrf.mxu0 }
 0x357   :  { %v3041_v35 = vpop.f32.mrf.mxu1 }
 0x358   :  { %v3042_v43 = vadd.f32 %v3041_v35, %v2542_v27 }
 0x35a   :  { %v7666_v7 = vadd.f32 %v3540_v31, %v3042_v43  ;;  %5466 = vmatmul.msk.bf16.gmra.mxu2 %vm2021_vm0, %v4812_v3  ;;  %v5123_v31 = vld [vmem:[%s8877_s0 + $0x770] sm:$0xf]  ;;  %v4792_v3 = vor.u32 %v5668_v17, %v4791_v24  ;;  %v4796_v43 = vor.u32 %v5667_v52, %v4793_v12 }
 0x35b   :  { %v5124_v29 = vor.u32 %v5750_v34, %v5123_v31  ;;  %v5671_v34 = vld [vmem:[%s8877_s0 + $0x500] sm:$0xf0] }
 0x35c   :  { %9084 = vst [vmem:[#allocation141_spill] sm:$0xff] %v7666_v7  ;;  %v9114_v7 = vld [vmem:[#allocation8_spill] sm:$0xff] }
 0x35d   :  { %v7689_v5 = vpop.f32.mrf.mxu3  ;;  %v3548_v27 = vpop.f32.mrf.mxu2 }
 0x35e   :  { %9085 = vst [vmem:[#allocation142_spill] sm:$0xff] %v7689_v5  ;;  %v2545_v35 = vpop.f32.mrf.mxu0 }
 0x35f   :  { %v3044_v58 = vpop.f32.mrf.mxu1 }
 0x360   :  { %v3045_v62 = vadd.f32 %v3044_v58, %v2545_v35  ;;  %v5678_v35 = vld [vmem:[%s8877_s0 + $0x538] sm:$0xf0] }
 0x361   :  { %2584 = vmatmul.bf16.gmra.mxu0 %v4792_v3  ;;  %v5670_v3 = vld [vmem:[%s8877_s0 + $0x4fc] sm:$0xf] }
 0x362   :  { %v7691_v16 = vadd.f32 %v3543_v4, %v3045_v62  ;;  %3083 = vmatmul.bf16.gmra.mxu1 %v4796_v43  ;;  %5492 = vmatmul.msk.bf16.gmra.mxu3 %vm2021_vm0, %v5124_v29  ;;  %v4824_v62 = vor.u32 %v5675_v59, %v4823_v30  ;;  %v4803_v29 = vld [vmem:[%s8877_s0 + $0x4f8] sm:$0xf]  ;;  %v4805_v30 = vld [vmem:[%s8877_s0 + $0x504] sm:$0xf0]  ;;  %v5753_v59 = vld [vmem:[%s8877_s0 + $0x790] sm:$0xf0] }
 0x364   :  { %9086 = vst [vmem:[#allocation143_spill] sm:$0xff] %v7691_v16 }
 0x365   :  { %v7702_v17 = vpop.f32.mrf.mxu3  ;;  %v3550_v58 = vpop.f32.mrf.mxu2 }
 0x366   :  { %9087 = vst [vmem:[#allocation144_spill] sm:$0xff] %v7702_v17  ;;  %v2547_v52 = vpop.f32.mrf.mxu0 }
 0x367   :  { %v3046_v4 = vpop.f32.mrf.mxu1 }
 0x368   :  { %v3047_v12 = vadd.f32 %v3046_v4, %v2547_v52 }
 0x36a   :  { %v7704_v31 = vadd.f32 %v3545_v60, %v3047_v12  ;;  %5467 = vmatmul.msk.bf16.gmra.mxu2 %vm2021_vm0, %v4824_v62  ;;  %v5135_v60 = vld [vmem:[%s8877_s0 + $0x788] sm:$0xf]  ;;  %v4804_v62 = vor.u32 %v5671_v34, %v4803_v29  ;;  %v4808_v12 = vor.u32 %v5670_v3, %v4805_v30 }
 0x36b   :  { %v5136_v24 = vor.u32 %v5753_v59, %v5135_v60  ;;  %v5674_v59 = vld [vmem:[%s8877_s0 + $0x518] sm:$0xf0] }
 0x36c   :  { %9088 = vst [vmem:[#allocation145_spill] sm:$0xff] %v7704_v31 }
 0x36d   :  { %v7727_v43 = vpop.f32.mrf.mxu3  ;;  %v3553_v52 = vpop.f32.mrf.mxu2 }
 0x36e   :  { %9089 = vst [vmem:[#allocation146_spill] sm:$0xff] %v7727_v43  ;;  %v2550_v4 = vpop.f32.mrf.mxu0 }
 0x36f   :  { %v3049_v17 = vpop.f32.mrf.mxu1 }
 0x370   :  { %v3050_v5 = vadd.f32 %v3049_v17, %v2550_v4  ;;  %v5681_v4 = vld [vmem:[%s8877_s0 + $0x550] sm:$0xf0] }
 0x371   :  { %2589 = vmatmul.bf16.gmra.mxu0 %v4804_v62  ;;  %v5673_v62 = vld [vmem:[%s8877_s0 + $0x514] sm:$0xf] }
 0x372   :  { %v7729_v16 = vadd.f32 %v3548_v27, %v3050_v5  ;;  %3088 = vmatmul.bf16.gmra.mxu1 %v4808_v12  ;;  %5493 = vmatmul.msk.bf16.gmra.mxu3 %vm2021_vm0, %v5136_v24  ;;  %v4836_v5 = vor.u32 %v5678_v35, %v4835_v10  ;;  %v4815_v24 = vld [vmem:[%s8877_s0 + $0x510] sm:$0xf]  ;;  %v4817_v10 = vld [vmem:[%s8877_s0 + $0x51c] sm:$0xf0]  ;;  %v5756_v35 = vld [vmem:[%s8877_s0 + $0x7a8] sm:$0xf0] }
 0x374   :  { %9090 = vst [vmem:[#allocation147_spill] sm:$0xff] %v7729_v16 }
 0x375   :  { %v7740_v34 = vpop.f32.mrf.mxu3  ;;  %v3555_v17 = vpop.f32.mrf.mxu2 }
 0x376   :  { %9091 = vst [vmem:[#allocation148_spill] sm:$0xff] %v7740_v34  ;;  %v2552_v3 = vpop.f32.mrf.mxu0 }
 0x377   :  { %v3051_v27 = vpop.f32.mrf.mxu1 }
 0x378   :  { %v3052_v30 = vadd.f32 %v3051_v27, %v2552_v3 }
 0x37a   :  { %v7742_v60 = vadd.f32 %v3550_v58, %v3052_v30  ;;  %5468 = vmatmul.msk.bf16.gmra.mxu2 %vm2021_vm0, %v4836_v5  ;;  %v5147_v58 = vld [vmem:[%s8877_s0 + $0x7a0] sm:$0xf]  ;;  %v4816_v5 = vor.u32 %v5674_v59, %v4815_v24  ;;  %v4820_v30 = vor.u32 %v5673_v62, %v4817_v10 }
 0x37b   :  { %v5148_v29 = vor.u32 %v5756_v35, %v5147_v58  ;;  %v5677_v35 = vld [vmem:[%s8877_s0 + $0x530] sm:$0xf0] }
 0x37c   :  { %9092 = vst [vmem:[#allocation149_spill] sm:$0xff] %v7742_v60  ;;  %v4859_v60 = vld [vmem:[%s8877_s0 + $0x560] sm:$0xf] }
 0x37d   :  { %v7765_v12 = vpop.f32.mrf.mxu3  ;;  %v3558_v3 = vpop.f32.mrf.mxu2 }
 0x37e   :  { %9093 = vst [vmem:[#allocation150_spill] sm:$0xff] %v7765_v12  ;;  %v2555_v27 = vpop.f32.mrf.mxu0 }
 0x37f   :  { %v3054_v34 = vpop.f32.mrf.mxu1 }
 0x380   :  { %v3055_v43 = vadd.f32 %v3054_v34, %v2555_v27  ;;  %v4871_v27 = vld [vmem:[%s8877_s0 + $0x578] sm:$0xf] }
 0x381   :  { %2594 = vmatmul.bf16.gmra.mxu0 %v4816_v5  ;;  %v5676_v5 = vld [vmem:[%s8877_s0 + $0x52c] sm:$0xf] }
 0x382   :  { %v7767_v16 = vadd.f32 %v3553_v52, %v3055_v43  ;;  %3093 = vmatmul.bf16.gmra.mxu1 %v4820_v30  ;;  %5494 = vmatmul.msk.bf16.gmra.mxu3 %vm2021_vm0, %v5148_v29  ;;  %v4848_v43 = vor.u32 %v5681_v4, %v4847_v1  ;;  %v4827_v29 = vld [vmem:[%s8877_s0 + $0x528] sm:$0xf]  ;;  %v4829_v1 = vld [vmem:[%s8877_s0 + $0x534] sm:$0xf0]  ;;  %v5759_v4 = vld [vmem:[%s8877_s0 + $0x7c0] sm:$0xf0] }
 0x383   :  { %v4832_v24 = vor.u32 %v5676_v5, %v4829_v1  ;;  %v5684_v30 = vld [vmem:[%s8877_s0 + $0x568] sm:$0xf0] }
 0x384   :  { %9094 = vst [vmem:[#allocation151_spill] sm:$0xff] %v7767_v16 }
 0x385   :  { %v7778_v59 = vpop.f32.mrf.mxu3  ;;  %v3560_v34 = vpop.f32.mrf.mxu2 }
 0x386   :  { %9095 = vst [vmem:[#allocation152_spill] sm:$0xff] %v7778_v59  ;;  %v2557_v62 = vpop.f32.mrf.mxu0 }
 0x387   :  { %v3056_v52 = vpop.f32.mrf.mxu1 }
 0x388   :  { %v3057_v10 = vadd.f32 %v3056_v52, %v2557_v62  ;;  %v4828_v52 = vor.u32 %v5677_v35, %v4827_v29 }
 0x38a   :  { %v7780_v58 = vadd.f32 %v3555_v17, %v3057_v10  ;;  %5469 = vmatmul.msk.bf16.gmra.mxu2 %vm2021_vm0, %v4848_v43  ;;  %v5159_v17 = vld [vmem:[%s8877_s0 + $0x7b8] sm:$0xf] }
 0x38b   :  { %v5160_v59 = vor.u32 %v5759_v4, %v5159_v17  ;;  %v5680_v4 = vld [vmem:[%s8877_s0 + $0x548] sm:$0xf0] }
 0x38c   :  { %9096 = vst [vmem:[#allocation153_spill] sm:$0xff] %v7780_v58 }
 0x38d   :  { %v7803_v62 = vpop.f32.mrf.mxu3  ;;  %v3563_v43 = vpop.f32.mrf.mxu2 }
 0x38e   :  { %9098 = vst [vmem:[#allocation154_spill] sm:$0xff] %v7803_v62  ;;  %v2560_v10 = vpop.f32.mrf.mxu0 }
 0x38f   :  { %v3059_v12 = vpop.f32.mrf.mxu1 }
 0x390   :  { %v3060_v16 = vadd.f32 %v3059_v12, %v2560_v10 }
 0x391   :  { %2599 = vmatmul.bf16.gmra.mxu0 %v4828_v52  ;;  %v5679_v52 = vld [vmem:[%s8877_s0 + $0x544] sm:$0xf] }
 0x392   :  { %v7805_v53 = vadd.f32 %v3558_v3, %v3060_v16  ;;  %3098 = vmatmul.bf16.gmra.mxu1 %v4832_v24  ;;  %5495 = vmatmul.msk.bf16.gmra.mxu3 %vm2021_vm0, %v5160_v59  ;;  %v4860_v16 = vor.u32 %v5684_v30, %v4859_v60  ;;  %v4839_v59 = vld [vmem:[%s8877_s0 + $0x540] sm:$0xf]  ;;  %v4841_v60 = vld [vmem:[%s8877_s0 + $0x54c] sm:$0xf0]  ;;  %v5762_v30 = vld [vmem:[%s8877_s0 + $0x7d8] sm:$0xf0] }
 0x394   :  { %9099 = vst [vmem:[#allocation155_spill] sm:$0xff] %v7805_v53 }
 0x395   :  { %v7816_v5 = vpop.f32.mrf.mxu3  ;;  %v3565_v12 = vpop.f32.mrf.mxu2 }
 0x396   :  { %9101 = vst [vmem:[#allocation156_spill] sm:$0xff] %v7816_v5  ;;  %v2562_v1 = vpop.f32.mrf.mxu0  ;;  %v4844_v5 = vor.u32 %v5679_v52, %v4841_v60 }
 0x397   :  { %v3061_v3 = vpop.f32.mrf.mxu1 }
 0x398   :  { %v3062_v24 = vadd.f32 %v3061_v3, %v2562_v1  ;;  %v5687_v1 = vld [vmem:[%s8877_s0 + $0x580] sm:$0xf0] }
 0x39a   :  { %v7818_v17 = vadd.f32 %v3560_v34, %v3062_v24  ;;  %5470 = vmatmul.msk.bf16.gmra.mxu2 %vm2021_vm0, %v4860_v16  ;;  %v5171_v34 = vld [vmem:[%s8877_s0 + $0x7d0] sm:$0xf]  ;;  %v4840_v24 = vor.u32 %v5680_v4, %v4839_v59 }
 0x39b   :  { %v5172_v62 = vor.u32 %v5762_v30, %v5171_v34  ;;  %v5683_v34 = vld [vmem:[%s8877_s0 + $0x560] sm:$0xf0]  ;;  %v5682_v30 = vld [vmem:[%s8877_s0 + $0x55c] sm:$0xf] }
 0x39c   :  { %9102 = vst [vmem:[#allocation157_spill] sm:$0xff] %v7818_v17 }
 0x39d   :  { %v7841_v16 = vpop.f32.mrf.mxu3  ;;  %v3568_v3 = vpop.f32.mrf.mxu2 }
 0x39e   :  { %9104 = vst [vmem:[#allocation158_spill] sm:$0xff] %v7841_v16  ;;  %v2565_v35 = vpop.f32.mrf.mxu0 }
 0x39f   :  { %v3064_v53 = vpop.f32.mrf.mxu1 }
 0x3a0   :  { %v3065_v29 = vadd.f32 %v3064_v53, %v2565_v35 }
 0x3a1   :  { %2604 = vmatmul.bf16.gmra.mxu0 %v4840_v24  ;;  %v4895_v24 = vld [vmem:[%s8877_s0 + $0x5a8] sm:$0xf] }
 0x3a2   :  { %v7843_v58 = vadd.f32 %v3563_v43, %v3065_v29  ;;  %3103 = vmatmul.bf16.gmra.mxu1 %v4844_v5  ;;  %5496 = vmatmul.msk.bf16.gmra.mxu3 %vm2021_vm0, %v5172_v62  ;;  %v4872_v43 = vor.u32 %v5687_v1, %v4871_v27  ;;  %v4851_v62 = vld [vmem:[%s8877_s0 + $0x558] sm:$0xf]  ;;  %v4853_v27 = vld [vmem:[%s8877_s0 + $0x564] sm:$0xf0]  ;;  %v5765_v1 = vld [vmem:[%s8877_s0 + $0x7f0] sm:$0xf0] }
 0x3a3   :  { %v4856_v16 = vor.u32 %v5682_v30, %v4853_v27 }
 0x3a4   :  { %9105 = vst [vmem:[#allocation159_spill] sm:$0xff] %v7843_v58 }
 0x3a5   :  { %v3570_v52 = vpop.f32.mrf.mxu2  ;;  %v7854_v60 = vpop.f32.mrf.mxu3 }
 0x3a6   :  { %v2567_v53 = vpop.f32.mrf.mxu0 }
 0x3a7   :  { %v3066_v29 = vpop.f32.mrf.mxu1 }
 0x3a8   :  { %v3067_v35 = vadd.f32 %v3066_v29, %v2567_v53  ;;  %v5690_v53 = vld [vmem:[%s8877_s0 + $0x598] sm:$0xf0] }
 0x3a9   :  { %v4884_v27 = vor.u32 %v5690_v53, %v4883_v37  ;;  %v4865_v37 = vld [vmem:[%s8877_s0 + $0x57c] sm:$0xf0] }
 0x3aa   :  { %v7856_v5 = vadd.f32 %v3565_v12, %v3067_v35  ;;  %5471 = vmatmul.msk.bf16.gmra.mxu2 %vm2021_vm0, %v4872_v43  ;;  %v5183_v12 = vld [vmem:[%s8877_s0 + $0x7e8] sm:$0xf]  ;;  %v4852_v35 = vor.u32 %v5683_v34, %v4851_v62 }
 0x3ab   :  { %v5184_v58 = vor.u32 %v5765_v1, %v5183_v12  ;;  %v5768_v12 = vld [vmem:[%s8877_s0 + $0x808] sm:$0xf0] }
 0x3ac   :  { %9107 = vst [vmem:[#allocation160_spill] sm:$0xff] %v7856_v5 }
 0x3ad   :  { %v3573_v43 = vpop.f32.mrf.mxu2  ;;  %v7879_v29 = vpop.f32.mrf.mxu3 }
 0x3ae   :  { %v2570_v4 = vpop.f32.mrf.mxu0 }
 0x3af   :  { %v3069_v59 = vpop.f32.mrf.mxu1 }
 0x3b0   :  { %v3070_v17 = vadd.f32 %v3069_v59, %v2570_v4 }
 0x3b1   :  { %2609 = vmatmul.bf16.gmra.mxu0 %v4852_v35 }
 0x3b2   :  { %v7881_v10 = vadd.f32 %v3568_v3, %v3070_v17  ;;  %3108 = vmatmul.bf16.gmra.mxu1 %v4856_v16  ;;  %5497 = vmatmul.msk.bf16.gmra.mxu3 %vm2021_vm0, %v5184_v58  ;;  %v4863_v58 = vld [vmem:[%s8877_s0 + $0x570] sm:$0xf]  ;;  %v5686_v16 = vld [vmem:[%s8877_s0 + $0x578] sm:$0xf0]  ;;  %v5685_v3 = vld [vmem:[%s8877_s0 + $0x574] sm:$0xf] }
 0x3b3   :  { %v4864_v35 = vor.u32 %v5686_v16, %v4863_v58 }
 0x3b4   :  { %9109 = vst [vmem:[#allocation161_spill] sm:$0xff] %v7881_v10 }
 0x3b5   :  { %v3575_v62 = vpop.f32.mrf.mxu2  ;;  %v7890_v34 = vpop.f32.mrf.mxu3 }
 0x3b6   :  { %v2572_v30 = vpop.f32.mrf.mxu0 }
 0x3b7   :  { %v3071_v59 = vpop.f32.mrf.mxu1 }
 0x3b8   :  { %v3072_v4 = vadd.f32 %v3071_v59, %v2572_v30 }
 0x3ba   :  { %v7892_v17 = vadd.f32 %v3570_v52, %v3072_v4  ;;  %5472 = vmatmul.msk.bf16.gmra.mxu2 %vm2021_vm0, %v4884_v27  ;;  %v5195_v52 = vld [vmem:[%s8877_s0 + $0x800] sm:$0xf]  ;;  %v4868_v27 = vor.u32 %v5685_v3, %v4865_v37 }
 0x3bb   :  { %v5196_v59 = vor.u32 %v5768_v12, %v5195_v52  ;;  %v9112_v12 = vld [vmem:[#allocation7_spill] sm:$0xff] }
 0x3bc   :  { %9110 = vst [vmem:[#allocation162_spill] sm:$0xff] %v7892_v17  ;;  %v5693_v17 = vld [vmem:[%s8877_s0 + $0x5b0] sm:$0xf0] }
 0x3bd   :  { %v3578_v1 = vpop.f32.mrf.mxu2  ;;  %v7913_v53 = vpop.f32.mrf.mxu3  ;;  %v4896_v37 = vor.u32 %v5693_v17, %v4895_v24  ;;  %v5688_v24 = vld [vmem:[%s8877_s0 + $0x58c] sm:$0xf] }
 0x3be   :  { %v2575_v30 = vpop.f32.mrf.mxu0 }
 0x3bf   :  { %v3074_v4 = vpop.f32.mrf.mxu1 }
 0x3c0   :  { %v3075_v10 = vadd.f32 %v3074_v4, %v2575_v30  ;;  %v7951_v4 = vld [vmem:[%s8878_s2] ss:$0 sm:$0xff] }
 0x3c1   :  { %2614 = vmatmul.bf16.gmra.mxu0 %v4864_v35 }
 0x3c2   :  { %v7915_v5 = vadd.f32 %v3573_v43, %v3075_v10  ;;  %3113 = vmatmul.bf16.gmra.mxu1 %v4868_v27  ;;  %5498 = vmatmul.msk.bf16.gmra.mxu3 %vm2021_vm0, %v5196_v59  ;;  %v3200_v10 = vadd.f32 %v6994_v21, %v9112_v12  ;;  %v4875_v27 = vld [vmem:[%s8877_s0 + $0x588] sm:$0xf]  ;;  %v5689_v59 = vld [vmem:[%s8877_s0 + $0x590] sm:$0xf0]  ;;  %v4877_v21 = vld [vmem:[%s8877_s0 + $0x594] sm:$0xf0]  ;;  %v9113_v12 = vmax.f32 %v6200_v40, %v7021_v14 }
 0x3c3   :  { %v4907_v40 = vld [vmem:[%s8877_s0 + $0x5c0] sm:$0xf]  ;;  %v5696_v14 = vld [vmem:[%s8877_s0 + $0x5c8] sm:$0xf0] }
 0x3c4   :  { %9111 = vst [vmem:[#allocation163_spill] sm:$0xff] %v7915_v5  ;;  %v3699_v35 = vadd.f32 %v7854_v60, %v3200_v10  ;;  %v5207_v60 = vld [vmem:[%s8877_s0 + $0x818] sm:$0xf]  ;;  %v4880_v5 = vor.u32 %v5688_v24, %v4877_v21  ;;  %v9117_v24 = vld [vmem:[#allocation87_spill] sm:$0xff] }
 0x3c5   :  { %v3580_v58 = vpop.f32.mrf.mxu2  ;;  %v7924_v16 = vpop.f32.mrf.mxu3 }
 0x3c6   :  { %v2577_v3 = vpop.f32.mrf.mxu0 }
 0x3c7   :  { %v3076_v52 = vpop.f32.mrf.mxu1 }
 0x3c8   :  { %v3077_v43 = vadd.f32 %v3076_v52, %v2577_v3  ;;  %v4876_v52 = vor.u32 %v5689_v59, %v4875_v27  ;;  %v9116_v59 = vld [vmem:[#allocation9_spill] sm:$0xff] }
 0x3c9   :  { %v3205_v21 = vadd.f32 %v9117_v24, %v9116_v59  ;;  %v9122_v59 = vld [vmem:[#allocation88_spill] sm:$0xff] }
 0x3ca   :  { %v3576_v30 = vadd.f32 %v3575_v62, %v3077_v43  ;;  %5473 = vmatmul.msk.bf16.gmra.mxu2 %vm2021_vm0, %v4896_v37  ;;  %v5771_v62 = vld [vmem:[%s8877_s0 + $0x820] sm:$0xf0] }
 0x3cb   :  { %v5208_v31 = vor.u32 %v5771_v62, %v5207_v60  ;;  %v3704_v60 = vadd.f32 %v7890_v34, %v3205_v21  ;;  %v5219_v34 = vld [vmem:[%s8877_s0 + $0x830] sm:$0xf] }
 0x3cc   :  { %v3865_v17 = vmax.f32 %v3576_v30, %v3699_v35  ;;  %v3202_v35 = vadd.f32 %v7019_v25, %v9114_v7 }
 0x3cd   :  { %v3583_v3 = vpop.f32.mrf.mxu2  ;;  %v7953_v37 = vpop.f32.mrf.mxu3 }
 0x3ce   :  { %v3914_v10 = vmax.f32 %v9113_v12, %v3865_v17  ;;  %v2580_v43 = vpop.f32.mrf.mxu0  ;;  %v3701_v47 = vadd.f32 %v7879_v29, %v3202_v35  ;;  %v4908_v29 = vor.u32 %v5696_v14, %v4907_v40  ;;  %v9118_v40 = vld [vmem:[#allocation10_spill] sm:$0xff]  ;;  %v9119_v14 = vld [vmem:[#allocation89_spill] sm:$0xff] }
 0x3cf   :  { %v3079_v2 = vpop.f32.mrf.mxu1 }
 0x3d0   :  { %v3967_v30 = vadd.f32 %v7951_v4, %v3914_v10  ;;  %v3080_v36 = vadd.f32 %v3079_v2, %v2580_v43 }
 0x3d1   :  { %2619 = vmatmul.bf16.gmra.mxu0 %v4876_v52  ;;  %v4889_v52 = vld [vmem:[%s8877_s0 + $0x5ac] sm:$0xf0] }
 0x3d2   :  { %v4016_v6 = vmax.f32 %v3967_v30, 0.0  ;;  %v3579_v51 = vadd.f32 %v3578_v1, %v3080_v36  ;;  %3118 = vmatmul.bf16.gmra.mxu1 %v4880_v5  ;;  %5499 = vmatmul.msk.bf16.gmra.mxu3 %vm2021_vm0, %v5208_v31  ;;  %v9115_v36 = vmax.f32 %v6223_v55, %v7033_v33  ;;  %v5692_v55 = vld [vmem:[%s8877_s0 + $0x5a8] sm:$0xf0]  ;;  %v5691_v33 = vld [vmem:[%s8877_s0 + $0x5a4] sm:$0xf] }
 0x3d4   :  { %v4065_v25 = vpack.c.bf16 %v4016_v6, %v4016_v6  ;;  %v3866_v7 = vmax.f32 %v3579_v51, %v3701_v47  ;;  %v4887_v47 = vld [vmem:[%s8877_s0 + $0x5a0] sm:$0xf] }
 0x3d5   :  { %v3585_v2 = vpop.f32.mrf.mxu2  ;;  %v7969_v27 = vpop.f32.mrf.mxu3  ;;  %v4888_v30 = vor.u32 %v5692_v55, %v4887_v47 }
 0x3d6   :  { %4115 = vst.msk [vmem:[%s8879_s3 + $0xc] sm:$0xf] %vm4111_vm1, %v4065_v25  ;;  %v3915_v31 = vmax.f32 %v9115_v36, %v3866_v7  ;;  %v2582_v5 = vpop.f32.mrf.mxu0  ;;  %v9120_v25 = vmax.f32 %v9118_v40, %v9119_v14  ;;  %v9125_v40 = vld [vmem:[#allocation90_spill] sm:$0xff] }
 0x3d7   :  { %v3081_v1 = vpop.f32.mrf.mxu1 }
 0x3d8   :  { %v3968_v6 = vadd.f32 %v7951_v4, %v3915_v31  ;;  %v3082_v51 = vadd.f32 %v3081_v1, %v2582_v5  ;;  %v4892_v31 = vor.u32 %v5691_v33, %v4889_v52  ;;  %v9121_v1 = vld [vmem:[#allocation11_spill] sm:$0xff] }
 0x3d9   :  { %v3207_v24 = vadd.f32 %v9122_v59, %v9121_v1  ;;  %v4901_v1 = vld [vmem:[%s8877_s0 + $0x5c4] sm:$0xf0] }
 0x3da   :  { %v4017_v62 = vmax.f32 %v3968_v6, 0.0  ;;  %v3581_v17 = vadd.f32 %v3580_v58, %v3082_v51  ;;  %5474 = vmatmul.msk.bf16.gmra.mxu2 %vm2021_vm0, %v4908_v29  ;;  %v5774_v58 = vld [vmem:[%s8877_s0 + $0x838] sm:$0xf0] }
 0x3db   :  { %v5220_v5 = vor.u32 %v5774_v58, %v5219_v34  ;;  %v3706_v51 = vadd.f32 %v7913_v53, %v3207_v24  ;;  %v9123_v53 = vmax.f32 %v6256_v18, %v7070_v23  ;;  %v5695_v18 = vld [vmem:[%s8877_s0 + $0x5c0] sm:$0xf0]  ;;  %v5694_v23 = vld [vmem:[%s8877_s0 + $0x5bc] sm:$0xf] }
 0x3dc   :  { %v4066_v12 = vpack.c.bf16 %v4017_v62, %v4017_v62  ;;  %v3867_v10 = vmax.f32 %v3581_v17, %v3704_v60  ;;  %v4919_v62 = vld [vmem:[%s8877_s0 + $0x5d8] sm:$0xf]  ;;  %v5699_v17 = vld [vmem:[%s8877_s0 + $0x5e0] sm:$0xf0] }
 0x3dd   :  { %v3588_v43 = vpop.f32.mrf.mxu2  ;;  %v8001_v35 = vpop.f32.mrf.mxu3 }
 0x3de   :  { %4116 = vst.msk [vmem:[%s8879_s3 + $0x10] sm:$0xf] %vm4111_vm1, %v4066_v12  ;;  %v3916_v7 = vmax.f32 %v9120_v25, %v3867_v10  ;;  %v2585_v36 = vpop.f32.mrf.mxu0  ;;  %v4920_v12 = vor.u32 %v5699_v17, %v4919_v62 }
 0x3df   :  { %v3084_v29 = vpop.f32.mrf.mxu1 }
 0x3e0   :  { %v3969_v21 = vadd.f32 %v7951_v4, %v3916_v7  ;;  %v3085_v6 = vadd.f32 %v3084_v29, %v2585_v36  ;;  %v4899_v36 = vld [vmem:[%s8877_s0 + $0x5b8] sm:$0xf] }
 0x3e1   :  { %2624 = vmatmul.bf16.gmra.mxu0 %v4888_v30  ;;  %v9124_v30 = vld [vmem:[#allocation12_spill] sm:$0xff] }
 0x3e2   :  { %v4018_v47 = vmax.f32 %v3969_v21, 0.0  ;;  %v3584_v60 = vadd.f32 %v3583_v3, %v3085_v6  ;;  %3123 = vmatmul.bf16.gmra.mxu1 %v4892_v31  ;;  %5500 = vmatmul.msk.bf16.gmra.mxu3 %vm2021_vm0, %v5220_v5  ;;  %v3210_v14 = vadd.f32 %v9125_v40, %v9124_v30 }
 0x3e4   :  { %v4067_v55 = vpack.c.bf16 %v4018_v47, %v4018_v47  ;;  %v3868_v33 = vmax.f32 %v3584_v60, %v3706_v51  ;;  %v3709_v31 = vadd.f32 %v7924_v16, %v3210_v14  ;;  %v5231_v16 = vld [vmem:[%s8877_s0 + $0x848] sm:$0xf]  ;;  %v4900_v51 = vor.u32 %v5695_v18, %v4899_v36  ;;  %v9126_v47 = vld [vmem:[#allocation13_spill] sm:$0xff]  ;;  %v9127_v60 = vld [vmem:[#allocation92_spill] sm:$0xff] }
 0x3e5   :  { %v3590_v52 = vpop.f32.mrf.mxu2  ;;  %v8021_v34 = vpop.f32.mrf.mxu3  ;;  %v9128_v62 = vmax.f32 %v9126_v47, %v9127_v60  ;;  %v4931_v36 = vld [vmem:[%s8877_s0 + $0x5f0] sm:$0xf] }
 0x3e6   :  { %4117 = vst.msk [vmem:[%s8879_s3 + $0x14] sm:$0xf] %vm4111_vm1, %v4067_v55  ;;  %v3917_v3 = vmax.f32 %v9123_v53, %v3868_v33  ;;  %v2587_v58 = vpop.f32.mrf.mxu0  ;;  %v4904_v33 = vor.u32 %v5694_v23, %v4901_v1 }
 0x3e7   :  { %v3086_v10 = vpop.f32.mrf.mxu1 }
 0x3e8   :  { %v3970_v25 = vadd.f32 %v7951_v4, %v3917_v3  ;;  %v3087_v7 = vadd.f32 %v3086_v10, %v2587_v58  ;;  %v9129_v58 = vld [vmem:[#allocation14_spill] sm:$0xff] }
 0x3ea   :  { %v4019_v5 = vmax.f32 %v3970_v25, 0.0  ;;  %v3586_v29 = vadd.f32 %v3585_v2, %v3087_v7  ;;  %5475 = vmatmul.msk.bf16.gmra.mxu2 %vm2021_vm0, %v4920_v12  ;;  %v5777_v2 = vld [vmem:[%s8877_s0 + $0x850] sm:$0xf0]  ;;  %v9130_v12 = vld [vmem:[#allocation91_spill] sm:$0xff] }
 0x3eb   :  { %v5232_v53 = vor.u32 %v5777_v2, %v5231_v16  ;;  %v3212_v10 = vadd.f32 %v9130_v12, %v9129_v58 }
 0x3ec   :  { %v4068_v59 = vpack.c.bf16 %v4019_v5, %v4019_v5  ;;  %v3869_v24 = vmax.f32 %v3586_v29, %v3709_v31  ;;  %v5702_v31 = vld [vmem:[%s8877_s0 + $0x5f8] sm:$0xf0] }
 0x3ed   :  { %v3593_v21 = vpop.f32.mrf.mxu2  ;;  %v8053_v6 = vpop.f32.mrf.mxu3  ;;  %v3711_v14 = vadd.f32 %v7953_v37, %v3212_v10  ;;  %v9131_v37 = vmax.f32 %v6289_v46, %v7107_v54  ;;  %v4932_v16 = vor.u32 %v5702_v31, %v4931_v36  ;;  %v5698_v46 = vld [vmem:[%s8877_s0 + $0x5d8] sm:$0xf0]  ;;  %v5697_v54 = vld [vmem:[%s8877_s0 + $0x5d4] sm:$0xf] }
 0x3ee   :  { %4118 = vst.msk [vmem:[%s8879_s3 + $0x18] sm:$0xf] %vm4111_vm1, %v4068_v59  ;;  %v3918_v17 = vmax.f32 %v9128_v62, %v3869_v24  ;;  %v2590_v55 = vpop.f32.mrf.mxu0  ;;  %v9132_v59 = vld [vmem:[#allocation15_spill] sm:$0xff]  ;;  %v9133_v24 = vld [vmem:[#allocation93_spill] sm:$0xff]  ;;  %v4911_v62 = vld [vmem:[%s8877_s0 + $0x5d0] sm:$0xf] }
 0x3ef   :  { %v3089_v3 = vpop.f32.mrf.mxu1 }
 0x3f0   :  { %v3971_v30 = vadd.f32 %v7951_v4, %v3918_v17  ;;  %v3090_v40 = vadd.f32 %v3089_v3, %v2590_v55 }
 0x3f1   :  { %2629 = vmatmul.bf16.gmra.mxu0 %v4900_v51  ;;  %v3215_v51 = vadd.f32 %v9133_v24, %v9132_v59 }
 0x3f2   :  { %v4020_v25 = vmax.f32 %v3971_v30, 0.0  ;;  %v3589_v7 = vadd.f32 %v3588_v43, %v3090_v40  ;;  %3128 = vmatmul.bf16.gmra.mxu1 %v4904_v33  ;;  %5501 = vmatmul.msk.bf16.gmra.mxu3 %vm2021_vm0, %v5232_v53  ;;  %v4913_v53 = vld [vmem:[%s8877_s0 + $0x5dc] sm:$0xf0]  ;;  %v4912_v30 = vor.u32 %v5698_v46, %v4911_v62  ;;  %v9134_v40 = vld [vmem:[#allocation16_spill] sm:$0xff] }
 0x3f3   :  { %v3714_v17 = vadd.f32 %v7969_v27, %v3215_v51  ;;  %v5243_v27 = vld [vmem:[%s8877_s0 + $0x860] sm:$0xf]  ;;  %v4916_v31 = vor.u32 %v5697_v54, %v4913_v53 }
 0x3f4   :  { %v4069_v5 = vpack.c.bf16 %v4020_v25, %v4020_v25  ;;  %v3870_v29 = vmax.f32 %v3589_v7, %v3711_v14  ;;  %v9135_v14 = vld [vmem:[#allocation95_spill] sm:$0xff] }
 0x3f5   :  { %v3595_v18 = vpop.f32.mrf.mxu2  ;;  %v8073_v23 = vpop.f32.mrf.mxu3  ;;  %v9136_v25 = vmax.f32 %v9134_v40, %v9135_v14  ;;  %v4923_v40 = vld [vmem:[%s8877_s0 + $0x5e8] sm:$0xf] }
 0x3f6   :  { %4119 = vst.msk [vmem:[%s8879_s3 + $0x1c] sm:$0xf] %vm4111_vm1, %v4069_v5  ;;  %v3919_v43 = vmax.f32 %v9131_v37, %v3870_v29  ;;  %v2592_v1 = vpop.f32.mrf.mxu0  ;;  %v9137_v37 = vld [vmem:[#allocation17_spill] sm:$0xff] }
 0x3f7   :  { %v3091_v2 = vpop.f32.mrf.mxu1 }
 0x3f8   :  { %v3972_v47 = vadd.f32 %v7951_v4, %v3919_v43  ;;  %v3092_v60 = vadd.f32 %v3091_v2, %v2592_v1  ;;  %v9138_v43 = vld [vmem:[#allocation94_spill] sm:$0xff] }
 0x3f9   :  { %v3217_v1 = vadd.f32 %v9138_v43, %v9137_v37 }
 0x3fa   :  { %v4021_v55 = vmax.f32 %v3972_v47, 0.0  ;;  %v3591_v33 = vadd.f32 %v3590_v52, %v3092_v60  ;;  %5476 = vmatmul.msk.bf16.gmra.mxu2 %vm2021_vm0, %v4932_v16  ;;  %v5780_v52 = vld [vmem:[%s8877_s0 + $0x868] sm:$0xf0]  ;;  %v4943_v47 = vld [vmem:[%s8877_s0 + $0x608] sm:$0xf] }
 0x3fb   :  { %v5244_v5 = vor.u32 %v5780_v52, %v5243_v27  ;;  %v3716_v59 = vadd.f32 %v8001_v35, %v3217_v1  ;;  %v5705_v60 = vld [vmem:[%s8877_s0 + $0x610] sm:$0xf0]  ;;  %v9139_v35 = vmax.f32 %v6322_v13, %v7144_v41  ;;  %v9140_v27 = vld [vmem:[#allocation18_spill] sm:$0xff]  ;;  %v5700_v41 = vld [vmem:[%s8877_s0 + $0x5ec] sm:$0xf] }
 0x3fc   :  { %v4070_v3 = vpack.c.bf16 %v4021_v55, %v4021_v55  ;;  %v3871_v58 = vmax.f32 %v3591_v33, %v3714_v17  ;;  %v4944_v54 = vor.u32 %v5705_v60, %v4943_v47  ;;  %v9141_v52 = vld [vmem:[#allocation96_spill] sm:$0xff]  ;;  %v9142_v1 = vld [vmem:[#allocation19_spill] sm:$0xff] }
 0x3fd   :  { %v3598_v12 = vpop.f32.mrf.mxu2  ;;  %v8105_v10 = vpop.f32.mrf.mxu3  ;;  %v5701_v13 = vld [vmem:[%s8877_s0 + $0x5f0] sm:$0xf0] }
 0x3fe   :  { %4120 = vst.msk [vmem:[%s8879_s3 + $0x20] sm:$0xf] %vm4111_vm1, %v4070_v3  ;;  %v3920_v7 = vmax.f32 %v9136_v25, %v3871_v58  ;;  %v2595_v36 = vpop.f32.mrf.mxu0  ;;  %v3220_v3 = vadd.f32 %v9141_v52, %v9140_v27  ;;  %v4924_v43 = vor.u32 %v5701_v13, %v4923_v40  ;;  %v4955_v52 = vld [vmem:[%s8877_s0 + $0x620] sm:$0xf] }
 0x3ff   :  { %v3094_v29 = vpop.f32.mrf.mxu1 }
 0x400   :  { %v3973_v16 = vadd.f32 %v7951_v4, %v3920_v7  ;;  %v3095_v2 = vadd.f32 %v3094_v29, %v2595_v36  ;;  %v3719_v14 = vadd.f32 %v8021_v34, %v3220_v3  ;;  %v4925_v36 = vld [vmem:[%s8877_s0 + $0x5f4] sm:$0xf0]  ;;  %v5708_v3 = vld [vmem:[%s8877_s0 + $0x628] sm:$0xf0] }
 0x401   :  { %2634 = vmatmul.bf16.gmra.mxu0 %v4912_v30  ;;  %v5255_v34 = vld [vmem:[%s8877_s0 + $0x878] sm:$0xf] }
 0x402   :  { %v4022_v24 = vmax.f32 %v3973_v16, 0.0  ;;  %v3594_v51 = vadd.f32 %v3593_v21, %v3095_v2  ;;  %3133 = vmatmul.bf16.gmra.mxu1 %v4916_v31  ;;  %5502 = vmatmul.msk.bf16.gmra.mxu3 %vm2021_vm0, %v5244_v5  ;;  %v9143_v16 = vld [vmem:[#allocation98_spill] sm:$0xff] }
 0x403   :  { %v9144_v2 = vmax.f32 %v9142_v1, %v9143_v16 }
 0x404   :  { %v4071_v62 = vpack.c.bf16 %v4022_v24, %v4022_v24  ;;  %v3872_v17 = vmax.f32 %v3594_v51, %v3716_v59  ;;  %v4928_v51 = vor.u32 %v5700_v41, %v4925_v36  ;;  %v9148_v41 = vld [vmem:[#allocation21_spill] sm:$0xff]  ;;  %v9149_v36 = vld [vmem:[#allocation99_spill] sm:$0xff] }
 0x405   :  { %v3600_v55 = vpop.f32.mrf.mxu2  ;;  %v8125_v33 = vpop.f32.mrf.mxu3 }
 0x406   :  { %4121 = vst.msk [vmem:[%s8879_s3 + $0x24] sm:$0xf] %vm4111_vm1, %v4071_v62  ;;  %v3921_v21 = vmax.f32 %v9139_v35, %v3872_v17  ;;  %v2597_v46 = vpop.f32.mrf.mxu0  ;;  %v9145_v62 = vld [vmem:[#allocation20_spill] sm:$0xff]  ;;  %v9146_v17 = vld [vmem:[#allocation97_spill] sm:$0xff] }
 0x407   :  { %v3096_v53 = vpop.f32.mrf.mxu1  ;;  %v3222_v35 = vadd.f32 %v9146_v17, %v9145_v62  ;;  %v9150_v62 = vld [vmem:[#allocation22_spill] sm:$0xff]  ;;  %v9151_v17 = vld [vmem:[#allocation101_spill] sm:$0xff] }
 0x408   :  { %v3974_v58 = vadd.f32 %v7951_v4, %v3921_v21  ;;  %v3097_v30 = vadd.f32 %v3096_v53, %v2597_v46 }
 0x40a   :  { %v4023_v25 = vmax.f32 %v3974_v58, 0.0  ;;  %v3596_v7 = vadd.f32 %v3595_v18, %v3097_v30  ;;  %5477 = vmatmul.msk.bf16.gmra.mxu2 %vm2021_vm0, %v4944_v54  ;;  %v5783_v18 = vld [vmem:[%s8877_s0 + $0x880] sm:$0xf0]  ;;  %v3721_v54 = vadd.f32 %v8053_v6, %v3222_v35  ;;  %v9147_v6 = vmax.f32 %v6355_v48, %v7181_v8  ;;  %v5704_v48 = vld [vmem:[%s8877_s0 + $0x608] sm:$0xf0] }
 0x40b   :  { %v5256_v47 = vor.u32 %v5783_v18, %v5255_v34  ;;  %v3225_v34 = vadd.f32 %v9149_v36, %v9148_v41  ;;  %v5703_v8 = vld [vmem:[%s8877_s0 + $0x604] sm:$0xf]  ;;  %v9152_v35 = vmax.f32 %v9150_v62, %v9151_v17  ;;  %v4949_v62 = vld [vmem:[%s8877_s0 + $0x624] sm:$0xf0] }
 0x40c   :  { %v4072_v31 = vpack.c.bf16 %v4023_v25, %v4023_v25  ;;  %v3873_v5 = vmax.f32 %v3596_v7, %v3719_v14  ;;  %v4956_v7 = vor.u32 %v5708_v3, %v4955_v52  ;;  %v9153_v52 = vld [vmem:[#allocation23_spill] sm:$0xff]  ;;  %v9154_v3 = vld [vmem:[#allocation100_spill] sm:$0xff]  ;;  %v5711_v41 = vld [vmem:[%s8877_s0 + $0x640] sm:$0xf0] }
 0x40d   :  { %v3603_v29 = vpop.f32.mrf.mxu2  ;;  %v8157_v37 = vpop.f32.mrf.mxu3 }
 0x40e   :  { %4122 = vst.msk [vmem:[%s8879_s3 + $0x28] sm:$0xf] %vm4111_vm1, %v4072_v31  ;;  %v3922_v59 = vmax.f32 %v9144_v2, %v3873_v5  ;;  %v2600_v24 = vpop.f32.mrf.mxu0  ;;  %v4935_v5 = vld [vmem:[%s8877_s0 + $0x600] sm:$0xf]  ;;  %v4937_v2 = vld [vmem:[%s8877_s0 + $0x60c] sm:$0xf0] }
 0x40f   :  { %v3099_v60 = vpop.f32.mrf.mxu1 }
 0x410   :  { %v3975_v21 = vadd.f32 %v7951_v4, %v3922_v59  ;;  %v3100_v46 = vadd.f32 %v3099_v60, %v2600_v24  ;;  %v4936_v60 = vor.u32 %v5704_v48, %v4935_v5  ;;  %v9157_v48 = vld [vmem:[#allocation102_spill] sm:$0xff] }
 0x411   :  { %2639 = vmatmul.bf16.gmra.mxu0 %v4924_v43  ;;  %v3724_v43 = vadd.f32 %v8073_v23, %v3225_v34  ;;  %v5267_v23 = vld [vmem:[%s8877_s0 + $0x890] sm:$0xf] }
 0x412   :  { %v4024_v53 = vmax.f32 %v3975_v21, 0.0  ;;  %v3599_v27 = vadd.f32 %v3598_v12, %v3100_v46  ;;  %3138 = vmatmul.bf16.gmra.mxu1 %v4928_v51  ;;  %5503 = vmatmul.msk.bf16.gmra.mxu3 %vm2021_vm0, %v5256_v47 }
 0x414   :  { %v4073_v58 = vpack.c.bf16 %v4024_v53, %v4024_v53  ;;  %v3874_v30 = vmax.f32 %v3599_v27, %v3721_v54  ;;  %v4940_v54 = vor.u32 %v5703_v8, %v4937_v2 }
 0x415   :  { %v3605_v40 = vpop.f32.mrf.mxu2  ;;  %v8177_v14 = vpop.f32.mrf.mxu3 }
 0x416   :  { %4123 = vst.msk [vmem:[%s8879_s3 + $0x2c] sm:$0xf] %vm4111_vm1, %v4073_v58  ;;  %v3923_v12 = vmax.f32 %v9147_v6, %v3874_v30  ;;  %v2602_v25 = vpop.f32.mrf.mxu0  ;;  %v3227_v58 = vadd.f32 %v9154_v3, %v9153_v52 }
 0x417   :  { %v3101_v13 = vpop.f32.mrf.mxu1 }
 0x418   :  { %v3976_v18 = vadd.f32 %v7951_v4, %v3923_v12  ;;  %v3102_v31 = vadd.f32 %v3101_v13, %v2602_v25  ;;  %v3726_v12 = vadd.f32 %v8105_v10, %v3227_v58  ;;  %v4967_v13 = vld [vmem:[%s8877_s0 + $0x638] sm:$0xf]  ;;  %v9155_v10 = vmax.f32 %v6388_v22, %v7218_v56  ;;  %v5707_v22 = vld [vmem:[%s8877_s0 + $0x620] sm:$0xf0]  ;;  %v5706_v56 = vld [vmem:[%s8877_s0 + $0x61c] sm:$0xf] }
 0x41a   :  { %v4025_v1 = vmax.f32 %v3976_v18, 0.0  ;;  %v3601_v16 = vadd.f32 %v3600_v55, %v3102_v31  ;;  %5478 = vmatmul.msk.bf16.gmra.mxu2 %vm2021_vm0, %v4956_v7  ;;  %v5786_v55 = vld [vmem:[%s8877_s0 + $0x898] sm:$0xf0] }
 0x41b   :  { %v5268_v53 = vor.u32 %v5786_v55, %v5267_v23  ;;  %v4947_v55 = vld [vmem:[%s8877_s0 + $0x618] sm:$0xf] }
 0x41c   :  { %v4074_v59 = vpack.c.bf16 %v4025_v1, %v4025_v1  ;;  %v3875_v24 = vmax.f32 %v3601_v16, %v3724_v43  ;;  %v4968_v43 = vor.u32 %v5711_v41, %v4967_v13  ;;  %v9156_v16 = vld [vmem:[#allocation24_spill] sm:$0xff] }
 0x41d   :  { %v3608_v51 = vpop.f32.mrf.mxu2  ;;  %v8209_v47 = vpop.f32.mrf.mxu3  ;;  %v3230_v8 = vadd.f32 %v9157_v48, %v9156_v16 }
 0x41e   :  { %4124 = vst.msk [vmem:[%s8879_s3 + $0x30] sm:$0xf] %vm4111_vm1, %v4074_v59  ;;  %v3924_v21 = vmax.f32 %v9152_v35, %v3875_v24  ;;  %v2605_v46 = vpop.f32.mrf.mxu0 }
 0x41f   :  { %v3104_v27 = vpop.f32.mrf.mxu1  ;;  %v3729_v59 = vadd.f32 %v8125_v33, %v3230_v8  ;;  %v5279_v33 = vld [vmem:[%s8877_s0 + $0x8a8] sm:$0xf] }
 0x420   :  { %v3977_v30 = vadd.f32 %v7951_v4, %v3924_v21  ;;  %v3105_v6 = vadd.f32 %v3104_v27, %v2605_v46  ;;  %v9159_v27 = vld [vmem:[#allocation104_spill] sm:$0xff] }
 0x421   :  { %2644 = vmatmul.bf16.gmra.mxu0 %v4936_v60 }
 0x422   :  { %v4026_v25 = vmax.f32 %v3977_v30, 0.0  ;;  %v3604_v7 = vadd.f32 %v3603_v29, %v3105_v6  ;;  %3143 = vmatmul.bf16.gmra.mxu1 %v4940_v54  ;;  %5504 = vmatmul.msk.bf16.gmra.mxu3 %vm2021_vm0, %v5268_v53  ;;  %v4948_v54 = vor.u32 %v5707_v22, %v4947_v55  ;;  %v9158_v53 = vld [vmem:[#allocation25_spill] sm:$0xff]  ;;  %v4952_v30 = vor.u32 %v5706_v56, %v4949_v62  ;;  %v4959_v62 = vld [vmem:[%s8877_s0 + $0x630] sm:$0xf] }
 0x423   :  { %v9160_v52 = vmax.f32 %v9158_v53, %v9159_v27 }
 0x424   :  { %v4075_v36 = vpack.c.bf16 %v4026_v25, %v4026_v25  ;;  %v3876_v34 = vmax.f32 %v3604_v7, %v3726_v12  ;;  %v9161_v25 = vld [vmem:[#allocation26_spill] sm:$0xff]  ;;  %v9162_v7 = vld [vmem:[#allocation103_spill] sm:$0xff] }
 0x425   :  { %v3610_v18 = vpop.f32.mrf.mxu2  ;;  %v8229_v31 = vpop.f32.mrf.mxu3  ;;  %v3232_v13 = vadd.f32 %v9162_v7, %v9161_v25 }
 0x426   :  { %4125 = vst.msk [vmem:[%s8879_s3 + $0x34] sm:$0xf] %vm4111_vm1, %v4075_v36  ;;  %v3925_v29 = vmax.f32 %v9155_v10, %v3876_v34  ;;  %v2607_v5 = vpop.f32.mrf.mxu0 }
 0x427   :  { %v3106_v1 = vpop.f32.mrf.mxu1  ;;  %v3731_v34 = vadd.f32 %v8157_v37, %v3232_v13  ;;  %v9163_v37 = vmax.f32 %v6421_v63, %v7255_v50  ;;  %v5710_v63 = vld [vmem:[%s8877_s0 + $0x638] sm:$0xf0]  ;;  %v5709_v50 = vld [vmem:[%s8877_s0 + $0x634] sm:$0xf] }
 0x428   :  { %v3978_v2 = vadd.f32 %v7951_v4, %v3925_v29  ;;  %v3107_v23 = vadd.f32 %v3106_v1, %v2607_v5  ;;  %v4979_v5 = vld [vmem:[%s8877_s0 + $0x650] sm:$0xf] }
 0x42a   :  { %v4027_v24 = vmax.f32 %v3978_v2, 0.0  ;;  %v3606_v60 = vadd.f32 %v3605_v40, %v3107_v23  ;;  %5479 = vmatmul.msk.bf16.gmra.mxu2 %vm2021_vm0, %v4968_v43  ;;  %v5789_v40 = vld [vmem:[%s8877_s0 + $0x8b0] sm:$0xf0]  ;;  %v5714_v43 = vld [vmem:[%s8877_s0 + $0x658] sm:$0xf0] }
 0x42b   :  { %v5280_v6 = vor.u32 %v5789_v40, %v5279_v33  ;;  %v4980_v23 = vor.u32 %v5714_v43, %v4979_v5 }
 0x42c   :  { %v4076_v17 = vpack.c.bf16 %v4027_v24, %v4027_v24  ;;  %v3877_v35 = vmax.f32 %v3606_v60, %v3729_v59  ;;  %v9164_v59 = vld [vmem:[#allocation27_spill] sm:$0xff]  ;;  %v9165_v24 = vld [vmem:[#allocation105_spill] sm:$0xff] }
 0x42d   :  { %v3613_v21 = vpop.f32.mrf.mxu2  ;;  %v8261_v46 = vpop.f32.mrf.mxu3  ;;  %v3235_v60 = vadd.f32 %v9165_v24, %v9164_v59 }
 0x42e   :  { %4126 = vst.msk [vmem:[%s8879_s3 + $0x38] sm:$0xf] %vm4111_vm1, %v4076_v17  ;;  %v3926_v3 = vmax.f32 %v9160_v52, %v3877_v35  ;;  %v2610_v58 = vpop.f32.mrf.mxu0  ;;  %v4961_v35 = vld [vmem:[%s8877_s0 + $0x63c] sm:$0xf0] }
 0x42f   :  { %v3109_v12 = vpop.f32.mrf.mxu1  ;;  %v3734_v33 = vadd.f32 %v8177_v14, %v3235_v60  ;;  %v5291_v14 = vld [vmem:[%s8877_s0 + $0x8c0] sm:$0xf]  ;;  %v4964_v7 = vor.u32 %v5709_v50, %v4961_v35 }
 0x430   :  { %v3979_v41 = vadd.f32 %v7951_v4, %v3926_v3  ;;  %v3110_v36 = vadd.f32 %v3109_v12, %v2610_v58  ;;  %v4960_v3 = vor.u32 %v5710_v63, %v4959_v62  ;;  %v9166_v58 = vld [vmem:[#allocation28_spill] sm:$0xff]  ;;  %v4971_v63 = vld [vmem:[%s8877_s0 + $0x648] sm:$0xf] }
 0x431   :  { %2649 = vmatmul.bf16.gmra.mxu0 %v4948_v54  ;;  %v9173_v62 = vld [vmem:[#allocation108_spill] sm:$0xff] }
 0x432   :  { %v4028_v10 = vmax.f32 %v3979_v41, 0.0  ;;  %v3609_v29 = vadd.f32 %v3608_v51, %v3110_v36  ;;  %3148 = vmatmul.bf16.gmra.mxu1 %v4952_v30  ;;  %5505 = vmatmul.msk.bf16.gmra.mxu3 %vm2021_vm0, %v5280_v6  ;;  %v9167_v30 = vld [vmem:[#allocation107_spill] sm:$0xff]  ;;  %v9169_v36 = vld [vmem:[#allocation29_spill] sm:$0xff] }
 0x433   :  { %v9168_v6 = vmax.f32 %v9166_v58, %v9167_v30 }
 0x434   :  { %v4077_v1 = vpack.c.bf16 %v4028_v10, %v4028_v10  ;;  %v3878_v16 = vmax.f32 %v3609_v29, %v3731_v34  ;;  %v9170_v34 = vld [vmem:[#allocation106_spill] sm:$0xff] }
 0x435   :  { %v3615_v48 = vpop.f32.mrf.mxu2  ;;  %v8281_v8 = vpop.f32.mrf.mxu3  ;;  %v3237_v10 = vadd.f32 %v9170_v34, %v9169_v36 }
 0x436   :  { %4127 = vst.msk [vmem:[%s8879_s3 + $0x3c] sm:$0xf] %vm4111_vm1, %v4077_v1  ;;  %v3927_v51 = vmax.f32 %v9163_v37, %v3878_v16  ;;  %v2612_v2 = vpop.f32.mrf.mxu0  ;;  %v4991_v37 = vld [vmem:[%s8877_s0 + $0x668] sm:$0xf] }
 0x437   :  { %v3111_v55 = vpop.f32.mrf.mxu1  ;;  %v3736_v43 = vadd.f32 %v8209_v47, %v3237_v10  ;;  %v9171_v47 = vmax.f32 %v6454_v45, %v7292_v0  ;;  %v5713_v45 = vld [vmem:[%s8877_s0 + $0x650] sm:$0xf0]  ;;  %v5712_v0 = vld [vmem:[%s8877_s0 + $0x64c] sm:$0xf] }
 0x438   :  { %v3980_v22 = vadd.f32 %v7951_v4, %v3927_v51  ;;  %v3112_v56 = vadd.f32 %v3111_v55, %v2612_v2  ;;  %v5717_v51 = vld [vmem:[%s8877_s0 + $0x670] sm:$0xf0]  ;;  %v4972_v30 = vor.u32 %v5713_v45, %v4971_v63 }
 0x439   :  { %v4992_v60 = vor.u32 %v5717_v51, %v4991_v37  ;;  %v9177_v10 = vld [vmem:[#allocation32_spill] sm:$0xff] }
 0x43a   :  { %v4029_v40 = vmax.f32 %v3980_v22, 0.0  ;;  %v3611_v17 = vadd.f32 %v3610_v18, %v3112_v56  ;;  %5480 = vmatmul.msk.bf16.gmra.mxu2 %vm2021_vm0, %v4980_v23  ;;  %v5792_v18 = vld [vmem:[%s8877_s0 + $0x8c8] sm:$0xf0]  ;;  %v9172_v56 = vld [vmem:[#allocation30_spill] sm:$0xff] }
 0x43b   :  { %v5292_v13 = vor.u32 %v5792_v18, %v5291_v14  ;;  %v4973_v18 = vld [vmem:[%s8877_s0 + $0x654] sm:$0xf0] }
 0x43c   :  { %v4078_v54 = vpack.c.bf16 %v4029_v40, %v4029_v40  ;;  %v3879_v53 = vmax.f32 %v3611_v17, %v3734_v33  ;;  %v3240_v33 = vadd.f32 %v9173_v62, %v9172_v56 }
 0x43d   :  { %v3618_v27 = vpop.f32.mrf.mxu2  ;;  %v8313_v52 = vpop.f32.mrf.mxu3 }
 0x43e   :  { %4128 = vst.msk [vmem:[%s8879_s3 + $0x40] sm:$0xf] %vm4111_vm1, %v4078_v54  ;;  %v3928_v12 = vmax.f32 %v9168_v6, %v3879_v53  ;;  %v2615_v25 = vpop.f32.mrf.mxu0  ;;  %v3739_v50 = vadd.f32 %v8229_v31, %v3240_v33  ;;  %v5303_v31 = vld [vmem:[%s8877_s0 + $0x8d8] sm:$0xf]  ;;  %v9174_v6 = vld [vmem:[#allocation31_spill] sm:$0xff] }
 0x43f   :  { %v3114_v41 = vpop.f32.mrf.mxu1  ;;  %v9180_v33 = vld [vmem:[#allocation33_spill] sm:$0xff] }
 0x440   :  { %v3981_v29 = vadd.f32 %v7951_v4, %v3928_v12  ;;  %v3115_v5 = vadd.f32 %v3114_v41, %v2615_v25  ;;  %v9175_v12 = vld [vmem:[#allocation110_spill] sm:$0xff]  ;;  %v4976_v41 = vor.u32 %v5712_v0, %v4973_v18  ;;  %v4985_v18 = vld [vmem:[%s8877_s0 + $0x66c] sm:$0xf0] }
 0x441   :  { %2654 = vmatmul.bf16.gmra.mxu0 %v4960_v3  ;;  %v9176_v25 = vmax.f32 %v9174_v6, %v9175_v12  ;;  %v9182_v6 = vld [vmem:[#allocation34_spill] sm:$0xff]  ;;  %v9183_v12 = vld [vmem:[#allocation113_spill] sm:$0xff] }
 0x442   :  { %v4030_v1 = vmax.f32 %v3981_v29, 0.0  ;;  %v3614_v16 = vadd.f32 %v3613_v21, %v3115_v5  ;;  %3153 = vmatmul.bf16.gmra.mxu1 %v4964_v7  ;;  %5506 = vmatmul.msk.bf16.gmra.mxu3 %vm2021_vm0, %v5292_v13  ;;  %v9178_v29 = vld [vmem:[#allocation109_spill] sm:$0xff] }
 0x443   :  { %v3242_v5 = vadd.f32 %v9178_v29, %v9177_v10  ;;  %v9185_v10 = vld [vmem:[#allocation35_spill] sm:$0xff]  ;;  %v9186_v29 = vld [vmem:[#allocation112_spill] sm:$0xff] }
 0x444   :  { %v4079_v2 = vpack.c.bf16 %v4030_v1, %v4030_v1  ;;  %v3880_v23 = vmax.f32 %v3614_v16, %v3736_v43 }
 0x445   :  { %v3620_v55 = vpop.f32.mrf.mxu2  ;;  %v8333_v59 = vpop.f32.mrf.mxu3  ;;  %v3741_v16 = vadd.f32 %v8261_v46, %v3242_v5  ;;  %v9179_v46 = vmax.f32 %v6487_v42, %v7329_v28  ;;  %v5716_v42 = vld [vmem:[%s8877_s0 + $0x668] sm:$0xf0]  ;;  %v5715_v28 = vld [vmem:[%s8877_s0 + $0x664] sm:$0xf]  ;;  %v3247_v5 = vadd.f32 %v9186_v29, %v9185_v10 }
 0x446   :  { %4129 = vst.msk [vmem:[%s8879_s3 + $0x44] sm:$0xf] %vm4111_vm1, %v4079_v2  ;;  %v3929_v21 = vmax.f32 %v9171_v47, %v3880_v23  ;;  %v2617_v24 = vpop.f32.mrf.mxu0  ;;  %v5003_v2 = vld [vmem:[%s8877_s0 + $0x680] sm:$0xf]  ;;  %v5720_v23 = vld [vmem:[%s8877_s0 + $0x688] sm:$0xf0] }
 0x447   :  { %v3116_v22 = vpop.f32.mrf.mxu1  ;;  %v5004_v56 = vor.u32 %v5720_v23, %v5003_v2  ;;  %v5015_v2 = vld [vmem:[%s8877_s0 + $0x698] sm:$0xf]  ;;  %v5723_v23 = vld [vmem:[%s8877_s0 + $0x6a0] sm:$0xf0] }
 0x448   :  { %v3982_v40 = vadd.f32 %v7951_v4, %v3929_v21  ;;  %v3117_v17 = vadd.f32 %v3116_v22, %v2617_v24 }
 0x44a   :  { %v4031_v35 = vmax.f32 %v3982_v40, 0.0  ;;  %v3616_v14 = vadd.f32 %v3615_v48, %v3117_v17  ;;  %5481 = vmatmul.msk.bf16.gmra.mxu2 %vm2021_vm0, %v4992_v60  ;;  %v5795_v48 = vld [vmem:[%s8877_s0 + $0x8e0] sm:$0xf0]  ;;  %v9181_v40 = vld [vmem:[#allocation111_spill] sm:$0xff] }
 0x44b   :  { %v5304_v36 = vor.u32 %v5795_v48, %v5303_v31  ;;  %v3245_v17 = vadd.f32 %v9181_v40, %v9180_v33  ;;  %v9188_v33 = vld [vmem:[#allocation36_spill] sm:$0xff]  ;;  %v9189_v40 = vld [vmem:[#allocation114_spill] sm:$0xff] }
 0x44c   :  { %v4080_v54 = vpack.c.bf16 %v4031_v35, %v4031_v35  ;;  %v3881_v53 = vmax.f32 %v3616_v14, %v3739_v50  ;;  %v4983_v35 = vld [vmem:[%s8877_s0 + $0x660] sm:$0xf] }
 0x44d   :  { %v3623_v3 = vpop.f32.mrf.mxu2  ;;  %v8365_v58 = vpop.f32.mrf.mxu3  ;;  %v3744_v14 = vadd.f32 %v8281_v8, %v3245_v17  ;;  %v5315_v8 = vld [vmem:[%s8877_s0 + $0x8f0] sm:$0xf]  ;;  %v3250_v17 = vadd.f32 %v9189_v40, %v9188_v33 }
 0x44e   :  { %4130 = vst.msk [vmem:[%s8879_s3 + $0x48] sm:$0xf] %vm4111_vm1, %v4080_v54  ;;  %v3930_v7 = vmax.f32 %v9176_v25, %v3881_v53  ;;  %v2620_v13 = vpop.f32.mrf.mxu0  ;;  %v9184_v25 = vmax.f32 %v9182_v6, %v9183_v12 }
 0x44f   :  { %v3119_v34 = vpop.f32.mrf.mxu1 }
 0x450   :  { %v3983_v43 = vadd.f32 %v7951_v4, %v3930_v7  ;;  %v3120_v1 = vadd.f32 %v3119_v34, %v2620_v13 }
 0x451   :  { %2659 = vmatmul.bf16.gmra.mxu0 %v4972_v30  ;;  %v4984_v30 = vor.u32 %v5716_v42, %v4983_v35  ;;  %v4995_v35 = vld [vmem:[%s8877_s0 + $0x678] sm:$0xf]  ;;  %v4997_v42 = vld [vmem:[%s8877_s0 + $0x684] sm:$0xf0] }
 0x452   :  { %v4032_v37 = vmax.f32 %v3983_v43, 0.0  ;;  %v3619_v51 = vadd.f32 %v3618_v27, %v3120_v1  ;;  %3158 = vmatmul.bf16.gmra.mxu1 %v4976_v41  ;;  %5507 = vmatmul.msk.bf16.gmra.mxu3 %vm2021_vm0, %v5304_v36  ;;  %v4988_v41 = vor.u32 %v5715_v28, %v4985_v18 }
 0x454   :  { %v4081_v47 = vpack.c.bf16 %v4032_v37, %v4032_v37  ;;  %v3882_v21 = vmax.f32 %v3619_v51, %v3741_v16  ;;  %v3746_v16 = vadd.f32 %v8313_v52, %v3247_v5  ;;  %v9187_v52 = vmax.f32 %v6520_v44, %v7366_v57  ;;  %v5719_v44 = vld [vmem:[%s8877_s0 + $0x680] sm:$0xf0]  ;;  %v5718_v57 = vld [vmem:[%s8877_s0 + $0x67c] sm:$0xf] }
 0x455   :  { %v3625_v24 = vpop.f32.mrf.mxu2  ;;  %v8385_v60 = vpop.f32.mrf.mxu3 }
 0x456   :  { %4131 = vst.msk [vmem:[%s8879_s3 + $0x4c] sm:$0xf] %vm4111_vm1, %v4081_v47  ;;  %v3931_v27 = vmax.f32 %v9179_v46, %v3882_v21  ;;  %v2622_v22 = vpop.f32.mrf.mxu0 }
 0x457   :  { %v3121_v62 = vpop.f32.mrf.mxu1 }
 0x458   :  { %v3984_v63 = vadd.f32 %v7951_v4, %v3931_v27  ;;  %v3122_v50 = vadd.f32 %v3121_v62, %v2622_v22 }
 0x45a   :  { %v4033_v45 = vmax.f32 %v3984_v63, 0.0  ;;  %v3621_v0 = vadd.f32 %v3620_v55, %v3122_v50  ;;  %5482 = vmatmul.msk.bf16.gmra.mxu2 %vm2021_vm0, %v5004_v56  ;;  %v5798_v55 = vld [vmem:[%s8877_s0 + $0x8f8] sm:$0xf0]  ;;  %v5016_v56 = vor.u32 %v5723_v23, %v5015_v2 }
 0x45b   :  { %v5316_v36 = vor.u32 %v5798_v55, %v5315_v8 }
 0x45c   :  { %v4082_v31 = vpack.c.bf16 %v4033_v45, %v4033_v45  ;;  %v3883_v48 = vmax.f32 %v3621_v0, %v3744_v14  ;;  %v3749_v14 = vadd.f32 %v8333_v59, %v3250_v17  ;;  %v5327_v59 = vld [vmem:[%s8877_s0 + $0x908] sm:$0xf] }
 0x45d   :  { %v3628_v54 = vpop.f32.mrf.mxu2  ;;  %v8417_v53 = vpop.f32.mrf.mxu3 }
 0x45e   :  { %4132 = vst.msk [vmem:[%s8879_s3 + $0x50] sm:$0xf] %vm4111_vm1, %v4082_v31  ;;  %v3932_v7 = vmax.f32 %v9184_v25, %v3883_v48  ;;  %v2625_v13 = vpop.f32.mrf.mxu0  ;;  %v4996_v31 = vor.u32 %v5719_v44, %v4995_v35  ;;  %v9190_v48 = vld [vmem:[#allocation37_spill] sm:$0xff] }
 0x45f   :  { %v3124_v34 = vpop.f32.mrf.mxu1 }
 0x460   :  { %v3985_v43 = vadd.f32 %v7951_v4, %v3932_v7  ;;  %v3125_v1 = vadd.f32 %v3124_v34, %v2625_v13  ;;  %v5000_v7 = vor.u32 %v5718_v57, %v4997_v42  ;;  %v9194_v34 = vld [vmem:[#allocation115_spill] sm:$0xff] }
 0x461   :  { %2664 = vmatmul.bf16.gmra.mxu0 %v4984_v30  ;;  %v9191_v30 = vld [vmem:[#allocation116_spill] sm:$0xff] }
 0x462   :  { %v4034_v37 = vmax.f32 %v3985_v43, 0.0  ;;  %v3624_v51 = vadd.f32 %v3623_v3, %v3125_v1  ;;  %3163 = vmatmul.bf16.gmra.mxu1 %v4988_v41  ;;  %5508 = vmatmul.msk.bf16.gmra.mxu3 %vm2021_vm0, %v5316_v36  ;;  %v9192_v6 = vmax.f32 %v9190_v48, %v9191_v30  ;;  %v9193_v36 = vld [vmem:[#allocation38_spill] sm:$0xff] }
 0x463   :  { %v3252_v10 = vadd.f32 %v9194_v34, %v9193_v36 }
 0x464   :  { %v4083_v47 = vpack.c.bf16 %v4034_v37, %v4034_v37  ;;  %v3884_v21 = vmax.f32 %v3624_v51, %v3746_v16  ;;  %v5027_v37 = vld [vmem:[%s8877_s0 + $0x6b0] sm:$0xf]  ;;  %v5726_v51 = vld [vmem:[%s8877_s0 + $0x6b8] sm:$0xf0] }
 0x465   :  { %v3630_v46 = vpop.f32.mrf.mxu2  ;;  %v8437_v27 = vpop.f32.mrf.mxu3  ;;  %v3751_v43 = vadd.f32 %v8365_v58, %v3252_v10  ;;  %v9195_v58 = vmax.f32 %v6553_v15, %v7403_v26  ;;  %v5722_v15 = vld [vmem:[%s8877_s0 + $0x698] sm:$0xf0]  ;;  %v5721_v26 = vld [vmem:[%s8877_s0 + $0x694] sm:$0xf] }
 0x466   :  { %4133 = vst.msk [vmem:[%s8879_s3 + $0x54] sm:$0xf] %vm4111_vm1, %v4083_v47  ;;  %v3933_v3 = vmax.f32 %v9187_v52, %v3884_v21  ;;  %v2627_v22 = vpop.f32.mrf.mxu0 }
 0x467   :  { %v3126_v62 = vpop.f32.mrf.mxu1 }
 0x468   :  { %v3986_v63 = vadd.f32 %v7951_v4, %v3933_v3  ;;  %v3127_v50 = vadd.f32 %v3126_v62, %v2627_v22  ;;  %v5028_v3 = vor.u32 %v5726_v51, %v5027_v37  ;;  %v9197_v62 = vld [vmem:[#allocation117_spill] sm:$0xff] }
 0x46a   :  { %v4035_v45 = vmax.f32 %v3986_v63, 0.0  ;;  %v3626_v0 = vadd.f32 %v3625_v24, %v3127_v50  ;;  %5483 = vmatmul.msk.bf16.gmra.mxu2 %vm2021_vm0, %v5016_v56  ;;  %v5801_v24 = vld [vmem:[%s8877_s0 + $0x910] sm:$0xf0]  ;;  %v9196_v56 = vld [vmem:[#allocation39_spill] sm:$0xff]  ;;  %v5007_v63 = vld [vmem:[%s8877_s0 + $0x690] sm:$0xf] }
 0x46b   :  { %v5328_v13 = vor.u32 %v5801_v24, %v5327_v59  ;;  %v3255_v33 = vadd.f32 %v9197_v62, %v9196_v56  ;;  %v5008_v59 = vor.u32 %v5722_v15, %v5007_v63  ;;  %v9198_v24 = vld [vmem:[#allocation40_spill] sm:$0xff]  ;;  %v9207_v15 = vld [vmem:[#allocation122_spill] sm:$0xff] }
 0x46c   :  { %v4084_v28 = vpack.c.bf16 %v4035_v45, %v4035_v45  ;;  %v3885_v18 = vmax.f32 %v3626_v0, %v3749_v14  ;;  %v5009_v45 = vld [vmem:[%s8877_s0 + $0x69c] sm:$0xf0] }
 0x46d   :  { %v3633_v8 = vpop.f32.mrf.mxu2  ;;  %v8469_v55 = vpop.f32.mrf.mxu3  ;;  %v3754_v50 = vadd.f32 %v8385_v60, %v3255_v33  ;;  %v5339_v60 = vld [vmem:[%s8877_s0 + $0x920] sm:$0xf]  ;;  %v5012_v30 = vor.u32 %v5721_v26, %v5009_v45 }
 0x46e   :  { %4134 = vst.msk [vmem:[%s8879_s3 + $0x58] sm:$0xf] %vm4111_vm1, %v4084_v28  ;;  %v3934_v12 = vmax.f32 %v9192_v6, %v3885_v18  ;;  %v2630_v25 = vpop.f32.mrf.mxu0  ;;  %v9199_v28 = vld [vmem:[#allocation119_spill] sm:$0xff] }
 0x46f   :  { %v3129_v41 = vpop.f32.mrf.mxu1  ;;  %v9200_v18 = vmax.f32 %v9198_v24, %v9199_v28  ;;  %v9210_v24 = vld [vmem:[#allocation121_spill] sm:$0xff] }
 0x470   :  { %v3987_v29 = vadd.f32 %v7951_v4, %v3934_v12  ;;  %v3130_v5 = vadd.f32 %v3129_v41, %v2630_v25  ;;  %v9201_v25 = vld [vmem:[#allocation41_spill] sm:$0xff] }
 0x471   :  { %2669 = vmatmul.bf16.gmra.mxu0 %v4996_v31 }
 0x472   :  { %v4036_v1 = vmax.f32 %v3987_v29, 0.0  ;;  %v3629_v16 = vadd.f32 %v3628_v54, %v3130_v5  ;;  %3168 = vmatmul.bf16.gmra.mxu1 %v5000_v7  ;;  %5509 = vmatmul.msk.bf16.gmra.mxu3 %vm2021_vm0, %v5328_v13  ;;  %v9202_v7 = vld [vmem:[#allocation118_spill] sm:$0xff]  ;;  %v5039_v5 = vld [vmem:[%s8877_s0 + $0x6c8] sm:$0xf] }
 0x473   :  { %v3257_v13 = vadd.f32 %v9202_v7, %v9201_v25  ;;  %v5732_v25 = vld [vmem:[%s8877_s0 + $0x6e8] sm:$0xf0] }
 0x474   :  { %v4085_v2 = vpack.c.bf16 %v4036_v1, %v4036_v1  ;;  %v3886_v23 = vmax.f32 %v3629_v16, %v3751_v43  ;;  %v5729_v43 = vld [vmem:[%s8877_s0 + $0x6d0] sm:$0xf0] }
 0x475   :  { %v3635_v47 = vpop.f32.mrf.mxu2  ;;  %v8489_v21 = vpop.f32.mrf.mxu3  ;;  %v3756_v34 = vadd.f32 %v8417_v53, %v3257_v13  ;;  %v9203_v53 = vmax.f32 %v6586_v38, %v7440_v61  ;;  %v5019_v38 = vld [vmem:[%s8877_s0 + $0x6a8] sm:$0xf]  ;;  %v5725_v61 = vld [vmem:[%s8877_s0 + $0x6b0] sm:$0xf0] }
 0x476   :  { %4135 = vst.msk [vmem:[%s8879_s3 + $0x5c] sm:$0xf] %vm4111_vm1, %v4085_v2  ;;  %v3935_v54 = vmax.f32 %v9195_v58, %v3886_v23  ;;  %v2632_v52 = vpop.f32.mrf.mxu0  ;;  %v5040_v2 = vor.u32 %v5729_v43, %v5039_v5  ;;  %v9204_v58 = vld [vmem:[#allocation42_spill] sm:$0xff]  ;;  %v9213_v5 = vld [vmem:[#allocation123_spill] sm:$0xff] }
 0x477   :  { %v3131_v22 = vpop.f32.mrf.mxu1 }
 0x478   :  { %v3988_v40 = vadd.f32 %v7951_v4, %v3935_v54  ;;  %v3132_v17 = vadd.f32 %v3131_v22, %v2632_v52  ;;  %v9205_v54 = vld [vmem:[#allocation120_spill] sm:$0xff] }
 0x479   :  { %v3260_v52 = vadd.f32 %v9205_v54, %v9204_v58 }
 0x47a   :  { %v4037_v35 = vmax.f32 %v3988_v40, 0.0  ;;  %v3631_v14 = vadd.f32 %v3630_v46, %v3132_v17  ;;  %5484 = vmatmul.msk.bf16.gmra.mxu2 %vm2021_vm0, %v5028_v3  ;;  %v5804_v46 = vld [vmem:[%s8877_s0 + $0x928] sm:$0xf0]  ;;  %v8555_v3 = vld [vmem:[%s8878_s2] ss:$0 sm:$0xff] }
 0x47b   :  { %v5340_v6 = vor.u32 %v5804_v46, %v5339_v60  ;;  %v3759_v62 = vadd.f32 %v8437_v27, %v3260_v52  ;;  %v5724_v17 = vld [vmem:[%s8877_s0 + $0x6ac] sm:$0xf]  ;;  %v5021_v27 = vld [vmem:[%s8877_s0 + $0x6b4] sm:$0xf0] }
 0x47c   :  { %v4086_v0 = vpack.c.bf16 %v4037_v35, %v4037_v35  ;;  %v3887_v44 = vmax.f32 %v3631_v14, %v3754_v50  ;;  %v5020_v35 = vor.u32 %v5725_v61, %v5019_v38  ;;  %v9206_v14 = vld [vmem:[#allocation43_spill] sm:$0xff]  ;;  %v5024_v46 = vor.u32 %v5724_v17, %v5021_v27  ;;  %v9218_v27 = vld [vmem:[#allocation124_spill] sm:$0xff] }
 0x47d   :  { %v3638_v57 = vpop.f32.mrf.mxu2  ;;  %v8521_v42 = vpop.f32.mrf.mxu3  ;;  %v9208_v26 = vmax.f32 %v9206_v14, %v9207_v15  ;;  %v9217_v17 = vld [vmem:[#allocation47_spill] sm:$0xff] }
 0x47e   :  { %4136 = vst.msk [vmem:[%s8879_s3 + $0x60] sm:$0xf] %vm4111_vm1, %v4086_v0  ;;  %v3936_v31 = vmax.f32 %v9200_v18, %v3887_v44  ;;  %v2635_v48 = vpop.f32.mrf.mxu0 }
 0x47f   :  { %v3134_v12 = vpop.f32.mrf.mxu1 }
 0x480   :  { %v3989_v41 = vadd.f32 %v7951_v4, %v3936_v31  ;;  %v3135_v36 = vadd.f32 %v3134_v12, %v2635_v48  ;;  %v5051_v12 = vld [vmem:[%s8877_s0 + $0x6e0] sm:$0xf] }
 0x481   :  { %2674 = vmatmul.bf16.gmra.mxu0 %v5008_v59  ;;  %v9209_v59 = vld [vmem:[#allocation44_spill] sm:$0xff] }
 0x482   :  { %v4038_v10 = vmax.f32 %v3989_v41, 0.0  ;;  %v3634_v29 = vadd.f32 %v3633_v8, %v3135_v36  ;;  %3173 = vmatmul.bf16.gmra.mxu1 %v5012_v30  ;;  %5510 = vmatmul.msk.bf16.gmra.mxu3 %vm2021_vm0, %v5340_v6  ;;  %v3262_v28 = vadd.f32 %v9210_v24, %v9209_v59 }
 0x484   :  { %v4087_v1 = vpack.c.bf16 %v4038_v10, %v4038_v10  ;;  %v3888_v16 = vmax.f32 %v3634_v29, %v3756_v34  ;;  %v3761_v48 = vadd.f32 %v8469_v55, %v3262_v28  ;;  %v9211_v55 = vmax.f32 %v6619_v9, %v7477_v39  ;;  %v9212_v29 = vld [vmem:[#allocation45_spill] sm:$0xff]  ;;  %v5031_v9 = vld [vmem:[%s8877_s0 + $0x6c0] sm:$0xf]  ;;  %v5728_v39 = vld [vmem:[%s8877_s0 + $0x6c8] sm:$0xf0] }
 0x485   :  { %v3640_v4 = vpop.f32.mrf.mxu2  ;;  %v8541_v37 = vpop.f32.mrf.mxu3  ;;  %v5052_v34 = vor.u32 %v5732_v25, %v5051_v12  ;;  %v3265_v43 = vadd.f32 %v9213_v5, %v9212_v29  ;;  %v5032_v52 = vor.u32 %v5728_v39, %v5031_v9  ;;  %v9222_v5 = vld [vmem:[#allocation49_spill] sm:$0xff]  ;;  %v9225_v9 = vld [vmem:[#allocation50_spill] sm:$0xff]  ;;  %v9226_v39 = vld [vmem:[#allocation127_spill] sm:$0xff] }
 0x486   :  { %4137 = vst.msk [vmem:[%s8879_s3 + $0x64] sm:$0xf] %vm4111_vm1, %v4087_v1  ;;  %v3937_v8 = vmax.f32 %v9203_v53, %v3888_v16  ;;  %v2637_v51 = vpop.f32.mrf.mxu0 }
 0x487   :  { %v3136_v23 = vpop.f32.mrf.mxu1 }
 0x488   :  { %v3990_v22 = vadd.f32 %v8555_v3, %v3937_v8  ;;  %v3137_v56 = vadd.f32 %v3136_v23, %v2637_v51  ;;  %v3764_v8 = vadd.f32 %v8489_v21, %v3265_v43  ;;  %v5727_v23 = vld [vmem:[%s8877_s0 + $0x6c4] sm:$0xf]  ;;  %v5033_v21 = vld [vmem:[%s8877_s0 + $0x6cc] sm:$0xf0] }
 0x489   :  { %v5036_v38 = vor.u32 %v5727_v23, %v5033_v21  ;;  %v9223_v43 = vld [vmem:[#allocation128_spill] sm:$0xff]  ;;  %v3272_v23 = vadd.f32 %v9226_v39, %v9225_v9  ;;  %v9240_v39 = vld [vmem:[#allocation135_spill] sm:$0xff] }
 0x48a   :  { %v4039_v33 = vmax.f32 %v3990_v22, 0.0  ;;  %v3636_v40 = vadd.f32 %v3635_v47, %v3137_v56  ;;  %5485 = vmatmul.msk.bf16.gmra.mxu2 %vm2021_vm0, %v5040_v2  ;;  %v9214_v22 = vld [vmem:[#allocation46_spill] sm:$0xff]  ;;  %v9215_v56 = vld [vmem:[#allocation125_spill] sm:$0xff] }
 0x48c   :  { %v4088_v63 = vpack.c.bf16 %v4039_v33, %v4039_v33  ;;  %v3889_v47 = vmax.f32 %v3636_v40, %v3759_v62  ;;  %v9216_v62 = vmax.f32 %v9214_v22, %v9215_v56 }
 0x48d   :  { %v3643_v50 = vpop.f32.mrf.mxu2  ;;  %v8579_v0 = vpop.f32.mrf.mxu3 }
 0x48e   :  { %4138 = vst.msk [vmem:[%s8879_s3 + $0x68] sm:$0xf] %vm4111_vm1, %v4088_v63  ;;  %v3938_v45 = vmax.f32 %v9208_v26, %v3889_v47  ;;  %v2640_v60 = vpop.f32.mrf.mxu0  ;;  %v3267_v63 = vadd.f32 %v9218_v27, %v9217_v17 }
 0x48f   :  { %v3139_v44 = vpop.f32.mrf.mxu1 }
 0x490   :  { %v3991_v18 = vadd.f32 %v8555_v3, %v3938_v45  ;;  %v3140_v31 = vadd.f32 %v3139_v44, %v2640_v60  ;;  %v3766_v14 = vadd.f32 %v8521_v42, %v3267_v63  ;;  %v5063_v60 = vld [vmem:[%s8877_s0 + $0x6f8] sm:$0xf]  ;;  %v9219_v42 = vmax.f32 %v6652_v20, %v7514_v19  ;;  %v5731_v19 = vld [vmem:[%s8877_s0 + $0x6e0] sm:$0xf0]  ;;  %v9228_v63 = vld [vmem:[#allocation51_spill] sm:$0xff] }
 0x491   :  { %2679 = vmatmul.bf16.gmra.mxu0 %v5020_v35  ;;  %v5043_v20 = vld [vmem:[%s8877_s0 + $0x6d8] sm:$0xf] }
 0x492   :  { %v4040_v30 = vmax.f32 %v3991_v18, 0.0  ;;  %v3639_v6 = vadd.f32 %v3638_v57, %v3140_v31  ;;  %3178 = vmatmul.bf16.gmra.mxu1 %v5024_v46  ;;  %v5735_v46 = vld [vmem:[%s8877_s0 + $0x700] sm:$0xf0]  ;;  %v5044_v29 = vor.u32 %v5731_v19, %v5043_v20  ;;  %v9235_v20 = vld [vmem:[#allocation133_spill] sm:$0xff] }
 0x493   :  { %v5064_v18 = vor.u32 %v5735_v46, %v5063_v60  ;;  %v9236_v19 = vmax.f32 %v6718_v49, %v9235_v20  ;;  %v9239_v49 = vld [vmem:[#allocation55_spill] sm:$0xff] }
 0x494   :  { %v4089_v7 = vpack.c.bf16 %v4040_v30, %v4040_v30  ;;  %v3890_v13 = vmax.f32 %v3639_v6, %v3761_v48  ;;  %v9220_v48 = vld [vmem:[#allocation48_spill] sm:$0xff]  ;;  %v9221_v30 = vld [vmem:[#allocation126_spill] sm:$0xff] }
 0x495   :  { %v3645_v41 = vpop.f32.mrf.mxu2  ;;  %v8601_v53 = vpop.f32.mrf.mxu3  ;;  %v3270_v6 = vadd.f32 %v9221_v30, %v9220_v48 }
 0x496   :  { %4139 = vst.msk [vmem:[%s8879_s3 + $0x6c] sm:$0xf] %vm4111_vm1, %v4089_v7  ;;  %v3939_v57 = vmax.f32 %v9211_v55, %v3890_v13  ;;  %v2642_v36 = vpop.f32.mrf.mxu0 }
 0x497   :  { %v3141_v10 = vpop.f32.mrf.mxu1  ;;  %v3769_v7 = vadd.f32 %v8541_v37, %v3270_v6  ;;  %v5045_v37 = vld [vmem:[%s8877_s0 + $0x6e4] sm:$0xf0] }
 0x498   :  { %v3992_v1 = vadd.f32 %v8555_v3, %v3939_v57  ;;  %v3142_v16 = vadd.f32 %v3141_v10, %v2642_v36  ;;  %v5730_v57 = vld [vmem:[%s8877_s0 + $0x6dc] sm:$0xf] }
 0x49a   :  { %v4041_v51 = vmax.f32 %v3992_v1, 0.0  ;;  %v3641_v2 = vadd.f32 %v3640_v4, %v3142_v16  ;;  %5486 = vmatmul.msk.bf16.gmra.mxu2 %vm2021_vm0, %v5052_v34  ;;  %v9224_v1 = vmax.f32 %v9222_v5, %v9223_v43 }
 0x49c   :  { %v4090_v58 = vpack.c.bf16 %v4041_v51, %v4041_v51  ;;  %v3891_v4 = vmax.f32 %v3641_v2, %v3764_v8  ;;  %v5048_v51 = vor.u32 %v5730_v57, %v5045_v37 }
 0x49d   :  { %v3648_v54 = vpop.f32.mrf.mxu2  ;;  %v8628_v45 = vpop.f32.mrf.mxu3 }
 0x49e   :  { %4140 = vst.msk [vmem:[%s8879_s3 + $0x70] sm:$0xf] %vm4111_vm1, %v4090_v58  ;;  %v3940_v33 = vmax.f32 %v9216_v62, %v3891_v4  ;;  %v2645_v40 = vpop.f32.mrf.mxu0  ;;  %v3771_v4 = vadd.f32 %v8579_v0, %v3272_v23  ;;  %v9229_v0 = vld [vmem:[#allocation129_spill] sm:$0xff]  ;;  %v9241_v23 = vmax.f32 %v9239_v49, %v9240_v39 }
 0x49f   :  { %v3144_v61 = vpop.f32.mrf.mxu1 }
 0x4a0   :  { %v3993_v47 = vadd.f32 %v8555_v3, %v3940_v33  ;;  %v3145_v35 = vadd.f32 %v3144_v61, %v2645_v40  ;;  %v9227_v40 = vmax.f32 %v6685_v32, %v7552_v11  ;;  %v9230_v32 = vld [vmem:[#allocation52_spill] sm:$0xff]  ;;  %v9231_v11 = vld [vmem:[#allocation131_spill] sm:$0xff] }
 0x4a1   :  { %2684 = vmatmul.bf16.gmra.mxu0 %v5032_v52 }
 0x4a2   :  { %v4042_v15 = vmax.f32 %v3993_v47, 0.0  ;;  %v3644_v26 = vadd.f32 %v3643_v50, %v3145_v35  ;;  %3183 = vmatmul.bf16.gmra.mxu1 %v5036_v38  ;;  %v3275_v47 = vadd.f32 %v9229_v0, %v9228_v63 }
 0x4a4   :  { %v4091_v44 = vpack.c.bf16 %v4042_v15, %v4042_v15  ;;  %v3892_v59 = vmax.f32 %v3644_v26, %v3766_v14  ;;  %v3774_v14 = vadd.f32 %v8601_v53, %v3275_v47  ;;  %v9244_v47 = vld [vmem:[#allocation57_spill] sm:$0xff] }
 0x4a5   :  { %v3650_v24 = vpop.f32.mrf.mxu2  ;;  %v3778_v34 = vpop.f32.mrf.mxu3 }
 0x4a6   :  { %4141 = vst.msk [vmem:[%s8879_s3 + $0x74] sm:$0xf] %vm4111_vm1, %v4091_v44  ;;  %v3941_v50 = vmax.f32 %v9219_v42, %v3892_v59  ;;  %v2647_v28 = vpop.f32.mrf.mxu0  ;;  %v9232_v59 = vmax.f32 %v9230_v32, %v9231_v11 }
 0x4a7   :  { %v3146_v31 = vpop.f32.mrf.mxu1 }
 0x4a8   :  { %v3994_v12 = vadd.f32 %v8555_v3, %v3941_v50  ;;  %v3147_v25 = vadd.f32 %v3146_v31, %v2647_v28  ;;  %v9234_v31 = vld [vmem:[#allocation130_spill] sm:$0xff] }
 0x4aa   :  { %v4043_v13 = vmax.f32 %v3994_v12, 0.0  ;;  %v3646_v55 = vadd.f32 %v3645_v41, %v3147_v25  ;;  %5487 = vmatmul.msk.bf16.gmra.mxu2 %vm2021_vm0, %v5064_v18  ;;  %v9233_v18 = vld [vmem:[#allocation53_spill] sm:$0xff] }
 0x4ab   :  { %v3277_v48 = vadd.f32 %v9234_v31, %v9233_v18  ;;  %v9249_v31 = vld [vmem:[#allocation59_spill] sm:$0xff] }
 0x4ac   :  { %v4092_v36 = vpack.c.bf16 %v4043_v13, %v4043_v13  ;;  %v3893_v41 = vmax.f32 %v3646_v55, %v3769_v7 }
 0x4ad   :  { %v3653_v10 = vpop.f32.mrf.mxu2  ;;  %v3780_v17 = vpop.f32.mrf.mxu3  ;;  %v3776_v6 = vadd.f32 %v8628_v45, %v3277_v48  ;;  %v9250_v48 = vld [vmem:[#allocation139_spill] sm:$0xff] }
 0x4ae   :  { %4142 = vst.msk [vmem:[%s8879_s3 + $0x78] sm:$0xf] %vm4111_vm1, %v4092_v36  ;;  %v3942_v16 = vmax.f32 %v9224_v1, %v3893_v41  ;;  %v2650_v8 = vpop.f32.mrf.mxu0  ;;  %v9237_v41 = vld [vmem:[#allocation54_spill] sm:$0xff] }
 0x4af   :  { %v3149_v2 = vpop.f32.mrf.mxu1 }
 0x4b0   :  { %v3995_v21 = vadd.f32 %v8555_v3, %v3942_v16  ;;  %v3150_v58 = vadd.f32 %v3149_v2, %v2650_v8 }
 0x4b1   :  { %2689 = vmatmul.bf16.gmra.mxu0 %v5044_v29  ;;  %v9238_v29 = vld [vmem:[#allocation132_spill] sm:$0xff] }
 0x4b2   :  { %v4044_v52 = vmax.f32 %v3995_v21, 0.0  ;;  %v3649_v22 = vadd.f32 %v3648_v54, %v3150_v58  ;;  %3188 = vmatmul.bf16.gmra.mxu1 %v5048_v51  ;;  %v3280_v5 = vadd.f32 %v9238_v29, %v9237_v41 }
 0x4b4   :  { %v4093_v56 = vpack.c.bf16 %v4044_v52, %v4044_v52  ;;  %v3894_v62 = vmax.f32 %v3649_v22, %v3771_v4  ;;  %v3779_v43 = vadd.f32 %v3778_v34, %v3280_v5  ;;  %v9242_v52 = vld [vmem:[#allocation56_spill] sm:$0xff]  ;;  %v9243_v22 = vld [vmem:[#allocation134_spill] sm:$0xff]  ;;  %v9254_v5 = vld [vmem:[#allocation61_spill] sm:$0xff] }
 0x4b5   :  { %v3655_v33 = vpop.f32.mrf.mxu2  ;;  %v3783_v30 = vpop.f32.mrf.mxu3  ;;  %v3282_v34 = vadd.f32 %v9243_v22, %v9242_v52 }
 0x4b6   :  { %4143 = vst.msk [vmem:[%s8879_s3 + $0x7c] sm:$0xf] %vm4111_vm1, %v4093_v56  ;;  %v3943_v38 = vmax.f32 %v9227_v40, %v3894_v62  ;;  %v2652_v61 = vpop.f32.mrf.mxu0 }
 0x4b7   :  { %v3151_v27 = vpop.f32.mrf.mxu1 }
 0x4b8   :  { %v3996_v54 = vadd.f32 %v8555_v3, %v3943_v38  ;;  %v3152_v35 = vadd.f32 %v3151_v27, %v2652_v61 }
 0x4ba   :  { %v4045_v15 = vmax.f32 %v3996_v54, 0.0  ;;  %v3651_v26 = vadd.f32 %v3650_v24, %v3152_v35  ;;  %v9245_v54 = vld [vmem:[#allocation137_spill] sm:$0xff] }
 0x4bb   :  { %v9246_v35 = vmax.f32 %v9244_v47, %v9245_v54 }
 0x4bc   :  { %v4094_v60 = vpack.c.bf16 %v4045_v15, %v4045_v15  ;;  %v3895_v46 = vmax.f32 %v3651_v26, %v3774_v14 }
 0x4bd   :  { %v3658_v44 = vpop.f32.mrf.mxu2  ;;  %v3785_v8 = vpop.f32.mrf.mxu3 }
 0x4be   :  { %4144 = vst.msk [vmem:[%s8879_s3 + $0x80] sm:$0xf] %vm4111_vm1, %v4094_v60  ;;  %v3944_v42 = vmax.f32 %v9232_v59, %v3895_v46  ;;  %v2655_v50 = vpop.f32.mrf.mxu0  ;;  %v9247_v60 = vld [vmem:[#allocation58_spill] sm:$0xff]  ;;  %v9248_v46 = vld [vmem:[#allocation136_spill] sm:$0xff] }
 0x4bf   :  { %v3154_v28 = vpop.f32.mrf.mxu1 }
 0x4c0   :  { %v3997_v53 = vadd.f32 %v8555_v3, %v3944_v42  ;;  %v3155_v24 = vadd.f32 %v3154_v28, %v2655_v50 }
 0x4c2   :  { %v4046_v12 = vmax.f32 %v3997_v53, 0.0  ;;  %v3654_v25 = vadd.f32 %v3653_v10, %v3155_v24  ;;  %v9251_v53 = vmax.f32 %v9249_v31, %v9250_v48 }
 0x4c4   :  { %v4095_v7 = vpack.c.bf16 %v4046_v12, %v4046_v12  ;;  %v3896_v13 = vmax.f32 %v3654_v25, %v3776_v6 }
 0x4c5   :  { %v3660_v55 = vpop.f32.mrf.mxu2  ;;  %v3788_v63 = vpop.f32.mrf.mxu3 }
 0x4c6   :  { %4145 = vst.msk [vmem:[%s8879_s3 + $0x84] sm:$0xf] %vm4111_vm1, %v4095_v7  ;;  %v3945_v57 = vmax.f32 %v9236_v19, %v3896_v13  ;;  %v2657_v37 = vpop.f32.mrf.mxu0  ;;  %v9252_v7 = vld [vmem:[#allocation60_spill] sm:$0xff]  ;;  %v9253_v13 = vld [vmem:[#allocation138_spill] sm:$0xff] }
 0x4c7   :  { %v3156_v36 = vpop.f32.mrf.mxu1 }
 0x4c8   :  { %v3998_v45 = vadd.f32 %v8555_v3, %v3945_v57  ;;  %v3157_v10 = vadd.f32 %v3156_v36, %v2657_v37 }
 0x4ca   :  { %v4047_v1 = vmax.f32 %v3998_v45, 0.0  ;;  %v3656_v16 = vadd.f32 %v3655_v33, %v3157_v10  ;;  %v3781_v33 = vadd.f32 %v3780_v17, %v3282_v34  ;;  %v3285_v17 = vadd.f32 %v9248_v46, %v9247_v60  ;;  %v9255_v45 = vld [vmem:[#allocation141_spill] sm:$0xff]  ;;  %v9259_v34 = vld [vmem:[#allocation63_spill] sm:$0xff] }
 0x4cb   :  { %v9256_v10 = vmax.f32 %v9254_v5, %v9255_v45 }
 0x4cc   :  { %v4096_v51 = vpack.c.bf16 %v4047_v1, %v4047_v1  ;;  %v3897_v2 = vmax.f32 %v3656_v16, %v3779_v43  ;;  %v3784_v11 = vadd.f32 %v3783_v30, %v3285_v17  ;;  %v3287_v30 = vadd.f32 %v9253_v13, %v9252_v7  ;;  %v9264_v17 = vld [vmem:[#allocation65_spill] sm:$0xff] }
 0x4cd   :  { %v3663_v9 = vpop.f32.mrf.mxu2  ;;  %v3790_v12 = vpop.f32.mrf.mxu3 }
 0x4ce   :  { %4146 = vst.msk [vmem:[%s8879_s3 + $0x88] sm:$0xf] %vm4111_vm1, %v4096_v51  ;;  %v3946_v21 = vmax.f32 %v9241_v23, %v3897_v2  ;;  %v2660_v58 = vpop.f32.mrf.mxu0  ;;  %v3786_v19 = vadd.f32 %v3785_v8, %v3287_v30  ;;  %v9257_v51 = vld [vmem:[#allocation62_spill] sm:$0xff]  ;;  %v9258_v2 = vld [vmem:[#allocation140_spill] sm:$0xff]  ;;  %v9269_v30 = vld [vmem:[#allocation67_spill] sm:$0xff] }
 0x4cf   :  { %v3159_v4 = vpop.f32.mrf.mxu1  ;;  %v3290_v49 = vadd.f32 %v9258_v2, %v9257_v51 }
 0x4d0   :  { %v3999_v56 = vadd.f32 %v8555_v3, %v3946_v21  ;;  %v3160_v62 = vadd.f32 %v3159_v4, %v2660_v58 }
 0x4d1   :  { %v3789_v23 = vadd.f32 %v3788_v63, %v3290_v49  ;;  %v9274_v49 = vld [vmem:[#allocation69_spill] sm:$0xff] }
 0x4d2   :  { %v4048_v40 = vmax.f32 %v3999_v56, 0.0  ;;  %v3659_v38 = vadd.f32 %v3658_v44, %v3160_v62  ;;  %v9260_v56 = vld [vmem:[#allocation143_spill] sm:$0xff] }
 0x4d3   :  { %v9261_v62 = vmax.f32 %v9259_v34, %v9260_v56 }
 0x4d4   :  { %v4097_v61 = vpack.c.bf16 %v4048_v40, %v4048_v40  ;;  %v3898_v27 = vmax.f32 %v3659_v38, %v3781_v33 }
 0x4d5   :  { %v3665_v0 = vpop.f32.mrf.mxu2  ;;  %v3793_v39 = vpop.f32.mrf.mxu3 }
 0x4d6   :  { %4147 = vst.msk [vmem:[%s8879_s3 + $0x8c] sm:$0xf] %vm4111_vm1, %v4097_v61  ;;  %v3947_v14 = vmax.f32 %v9246_v35, %v3898_v27  ;;  %v2662_v15 = vpop.f32.mrf.mxu0  ;;  %v9262_v61 = vld [vmem:[#allocation64_spill] sm:$0xff]  ;;  %v9263_v27 = vld [vmem:[#allocation142_spill] sm:$0xff] }
 0x4d7   :  { %v3161_v26 = vpop.f32.mrf.mxu1  ;;  %v3292_v47 = vadd.f32 %v9263_v27, %v9262_v61 }
 0x4d8   :  { %v4000_v44 = vadd.f32 %v8555_v3, %v3947_v14  ;;  %v3162_v32 = vadd.f32 %v3161_v26, %v2662_v15 }
 0x4d9   :  { %v3791_v54 = vadd.f32 %v3790_v12, %v3292_v47  ;;  %v9279_v47 = vld [vmem:[#allocation71_spill] sm:$0xff] }
 0x4da   :  { %v4049_v59 = vmax.f32 %v4000_v44, 0.0  ;;  %v3661_v42 = vadd.f32 %v3660_v55, %v3162_v32  ;;  %v9265_v44 = vld [vmem:[#allocation145_spill] sm:$0xff] }
 0x4db   :  { %v9266_v32 = vmax.f32 %v9264_v17, %v9265_v44 }
 0x4dc   :  { %v4098_v50 = vpack.c.bf16 %v4049_v59, %v4049_v59  ;;  %v3899_v28 = vmax.f32 %v3661_v42, %v3784_v11 }
 0x4dd   :  { %v3668_v18 = vpop.f32.mrf.mxu2  ;;  %v3795_v15 = vpop.f32.mrf.mxu3 }
 0x4de   :  { %4148 = vst.msk [vmem:[%s8879_s3 + $0x90] sm:$0xf] %vm4111_vm1, %v4098_v50  ;;  %v3948_v24 = vmax.f32 %v9251_v53, %v3899_v28  ;;  %v2665_v6 = vpop.f32.mrf.mxu0  ;;  %v9267_v50 = vld [vmem:[#allocation66_spill] sm:$0xff]  ;;  %v9268_v28 = vld [vmem:[#allocation144_spill] sm:$0xff] }
 0x4df   :  { %v3164_v25 = vpop.f32.mrf.mxu1  ;;  %v3295_v31 = vadd.f32 %v9268_v28, %v9267_v50 }
 0x4e0   :  { %v4001_v55 = vadd.f32 %v8555_v3, %v3948_v24  ;;  %v3165_v20 = vadd.f32 %v3164_v25, %v2665_v6 }
 0x4e1   :  { %v3794_v53 = vadd.f32 %v3793_v39, %v3295_v31  ;;  %v9284_v31 = vld [vmem:[#allocation73_spill] sm:$0xff] }
 0x4e2   :  { %v4050_v57 = vmax.f32 %v4001_v55, 0.0  ;;  %v3664_v37 = vadd.f32 %v3663_v9, %v3165_v20  ;;  %v9270_v55 = vld [vmem:[#allocation147_spill] sm:$0xff] }
 0x4e3   :  { %v9271_v20 = vmax.f32 %v9269_v30, %v9270_v55 }
 0x4e4   :  { %v4099_v36 = vpack.c.bf16 %v4050_v57, %v4050_v57  ;;  %v3900_v41 = vmax.f32 %v3664_v37, %v3786_v19 }
 0x4e5   :  { %v3670_v29 = vpop.f32.mrf.mxu2  ;;  %v3798_v7 = vpop.f32.mrf.mxu3 }
 0x4e6   :  { %4149 = vst.msk [vmem:[%s8879_s3 + $0x94] sm:$0xf] %vm4111_vm1, %v4099_v36  ;;  %v3949_v43 = vmax.f32 %v9256_v10, %v3900_v41  ;;  %v2667_v1 = vpop.f32.mrf.mxu0  ;;  %v9272_v36 = vld [vmem:[#allocation68_spill] sm:$0xff]  ;;  %v9273_v41 = vld [vmem:[#allocation146_spill] sm:$0xff] }
 0x4e7   :  { %v3166_v16 = vpop.f32.mrf.mxu1  ;;  %v3297_v5 = vadd.f32 %v9273_v41, %v9272_v36 }
 0x4e8   :  { %v4002_v8 = vadd.f32 %v8555_v3, %v3949_v43  ;;  %v3167_v9 = vadd.f32 %v3166_v16, %v2667_v1 }
 0x4e9   :  { %v3796_v10 = vadd.f32 %v3795_v15, %v3297_v5  ;;  %v9282_v15 = vld [vmem:[#allocation72_spill] sm:$0xff]  ;;  %v9289_v5 = vld [vmem:[#allocation75_spill] sm:$0xff] }
 0x4ea   :  { %v4051_v21 = vmax.f32 %v4002_v8, 0.0  ;;  %v3666_v58 = vadd.f32 %v3665_v0, %v3167_v9  ;;  %v9275_v8 = vld [vmem:[#allocation149_spill] sm:$0xff] }
 0x4eb   :  { %v9276_v9 = vmax.f32 %v9274_v49, %v9275_v8 }
 0x4ec   :  { %v4100_v4 = vpack.c.bf16 %v4051_v21, %v4051_v21  ;;  %v3901_v52 = vmax.f32 %v3666_v58, %v3789_v23 }
 0x4ed   :  { %v3673_v22 = vpop.f32.mrf.mxu2  ;;  %v3800_v21 = vpop.f32.mrf.mxu3 }
 0x4ee   :  { %4150 = vst.msk [vmem:[%s8879_s3 + $0x98] sm:$0xf] %vm4111_vm1, %v4100_v4  ;;  %v3950_v33 = vmax.f32 %v9261_v62, %v3901_v52  ;;  %v2670_v40 = vpop.f32.mrf.mxu0  ;;  %v9277_v4 = vld [vmem:[#allocation70_spill] sm:$0xff]  ;;  %v9278_v52 = vld [vmem:[#allocation148_spill] sm:$0xff] }
 0x4ef   :  { %v3169_v38 = vpop.f32.mrf.mxu1  ;;  %v3300_v34 = vadd.f32 %v9278_v52, %v9277_v4 }
 0x4f0   :  { %v4003_v63 = vadd.f32 %v8555_v3, %v3950_v33  ;;  %v3170_v0 = vadd.f32 %v3169_v38, %v2670_v40 }
 0x4f1   :  { %v3799_v62 = vadd.f32 %v3798_v7, %v3300_v34  ;;  %v9294_v34 = vld [vmem:[#allocation77_spill] sm:$0xff] }
 0x4f2   :  { %v4052_v35 = vmax.f32 %v4003_v63, 0.0  ;;  %v3669_v14 = vadd.f32 %v3668_v18, %v3170_v0  ;;  %v9280_v63 = vld [vmem:[#allocation151_spill] sm:$0xff] }
 0x4f3   :  { %v9281_v0 = vmax.f32 %v9279_v47, %v9280_v63 }
 0x4f4   :  { %v4101_v26 = vpack.c.bf16 %v4052_v35, %v4052_v35  ;;  %v3902_v60 = vmax.f32 %v3669_v14, %v3791_v54 }
 0x4f5   :  { %v3675_v46 = vpop.f32.mrf.mxu2  ;;  %v3803_v44 = vpop.f32.mrf.mxu3 }
 0x4f6   :  { %4151 = vst.msk [vmem:[%s8879_s3 + $0x9c] sm:$0xf] %vm4111_vm1, %v4101_v26  ;;  %v3951_v11 = vmax.f32 %v9266_v32, %v3902_v60  ;;  %v2672_v59 = vpop.f32.mrf.mxu0  ;;  %v9283_v26 = vld [vmem:[#allocation150_spill] sm:$0xff] }
 0x4f7   :  { %v3171_v42 = vpop.f32.mrf.mxu1  ;;  %v3302_v60 = vadd.f32 %v9283_v26, %v9282_v15  ;;  %v9300_v15 = vld [vmem:[#allocation82_spill] sm:$0xff] }
 0x4f8   :  { %v4004_v18 = vadd.f32 %v8555_v3, %v3951_v11  ;;  %v3172_v48 = vadd.f32 %v3171_v42, %v2672_v59 }
 0x4f9   :  { %v3801_v32 = vadd.f32 %v3800_v21, %v3302_v60 }
 0x4fa   :  { %v4053_v24 = vmax.f32 %v4004_v18, 0.0  ;;  %v3671_v6 = vadd.f32 %v3670_v29, %v3172_v48  ;;  %v9285_v18 = vld [vmem:[#allocation153_spill] sm:$0xff] }
 0x4fb   :  { %v9286_v48 = vmax.f32 %v9284_v31, %v9285_v18 }
 0x4fc   :  { %v4102_v12 = vpack.c.bf16 %v4053_v24, %v4053_v24  ;;  %v3903_v25 = vmax.f32 %v3671_v6, %v3794_v53 }
 0x4fd   :  { %v3678_v13 = vpop.f32.mrf.mxu2 }
 0x4fe   :  { %4152 = vst.msk [vmem:[%s8879_s3 + $0xa0] sm:$0xf] %vm4111_vm1, %v4102_v12  ;;  %v3952_v19 = vmax.f32 %v9271_v20, %v3903_v25  ;;  %v2675_v57 = vpop.f32.mrf.mxu0  ;;  %v9287_v12 = vld [vmem:[#allocation74_spill] sm:$0xff]  ;;  %v9288_v25 = vld [vmem:[#allocation152_spill] sm:$0xff] }
 0x4ff   :  { %v3174_v37 = vpop.f32.mrf.mxu1  ;;  %v3305_v7 = vadd.f32 %v9288_v25, %v9287_v12 }
 0x500   :  { %v4005_v29 = vadd.f32 %v8555_v3, %v3952_v19  ;;  %v3175_v45 = vadd.f32 %v3174_v37, %v2675_v57  ;;  %v3805_v57 = vpop.f32.mrf.mxu3 }
 0x501   :  { %v3804_v55 = vadd.f32 %v3803_v44, %v3305_v7  ;;  %v9301_v44 = vld [vmem:[#allocation79_spill] sm:$0xff] }
 0x502   :  { %v4054_v43 = vmax.f32 %v4005_v29, 0.0  ;;  %v3674_v1 = vadd.f32 %v3673_v22, %v3175_v45  ;;  %v9290_v29 = vld [vmem:[#allocation155_spill] sm:$0xff] }
 0x503   :  { %v9291_v45 = vmax.f32 %v9289_v5, %v9290_v29 }
 0x504   :  { %v4103_v16 = vpack.c.bf16 %v4054_v43, %v4054_v43  ;;  %v3904_v51 = vmax.f32 %v3674_v1, %v3796_v10 }
 0x505   :  { %v3680_v2 = vpop.f32.mrf.mxu2 }
 0x506   :  { %4153 = vst.msk [vmem:[%s8879_s3 + $0xa4] sm:$0xf] %vm4111_vm1, %v4103_v16  ;;  %v3953_v39 = vmax.f32 %v9276_v9, %v3904_v51  ;;  %v2677_v23 = vpop.f32.mrf.mxu0  ;;  %v9292_v16 = vld [vmem:[#allocation76_spill] sm:$0xff]  ;;  %v9293_v51 = vld [vmem:[#allocation154_spill] sm:$0xff] }
 0x507   :  { %v3176_v58 = vpop.f32.mrf.mxu1  ;;  %v3307_v49 = vadd.f32 %v9293_v51, %v9292_v16  ;;  %v9312_v16 = vld [vmem:[#allocation81_spill] sm:$0xff]  ;;  %v9313_v51 = vld [vmem:[#allocation160_spill] sm:$0xff] }
 0x508   :  { %v4006_v22 = vadd.f32 %v8555_v3, %v3953_v39  ;;  %v3177_v56 = vadd.f32 %v3176_v58, %v2677_v23  ;;  %v3808_v4 = vpop.f32.mrf.mxu3 }
 0x509   :  { %v3806_v9 = vadd.f32 %v3805_v57, %v3307_v49  ;;  %v9314_v49 = vmax.f32 %v9312_v16, %v9313_v51 }
 0x50a   :  { %v4055_v33 = vmax.f32 %v4006_v22, 0.0  ;;  %v3676_v40 = vadd.f32 %v3675_v46, %v3177_v56  ;;  %v9295_v22 = vld [vmem:[#allocation157_spill] sm:$0xff] }
 0x50b   :  { %v9296_v56 = vmax.f32 %v9294_v34, %v9295_v22  ;;  %v9316_v22 = vld [vmem:[#allocation6_spill] sm:$0xff] }
 0x50c   :  { %v4104_v38 = vpack.c.bf16 %v4055_v33, %v4055_v33  ;;  %v3905_v61 = vmax.f32 %v3676_v40, %v3799_v62 }
 0x50d   :  { %v3683_v27 = vpop.f32.mrf.mxu2 }
 0x50e   :  { %4154 = vst.msk [vmem:[%s8879_s3 + $0xa8] sm:$0xf] %vm4111_vm1, %v4104_v38  ;;  %v3954_v54 = vmax.f32 %v9281_v0, %v3905_v61  ;;  %v2680_v35 = vpop.f32.mrf.mxu0  ;;  %v9297_v38 = vld [vmem:[#allocation78_spill] sm:$0xff]  ;;  %v9298_v61 = vld [vmem:[#allocation156_spill] sm:$0xff] }
 0x50f   :  { %v3179_v14 = vpop.f32.mrf.mxu1  ;;  %v3310_v47 = vadd.f32 %v9298_v61, %v9297_v38 }
 0x510   :  { %v4007_v17 = vadd.f32 %v8555_v3, %v3954_v54  ;;  %v3180_v46 = vadd.f32 %v3179_v14, %v2680_v35  ;;  %v9299_v14 = vld [vmem:[#allocation3_spill] sm:$0xff]  ;;  %v3810_v31 = vpop.f32.mrf.mxu3 }
 0x511   :  { %v3809_v0 = vadd.f32 %v3808_v4, %v3310_v47  ;;  %v3195_v26 = vadd.f32 %v9300_v15, %v9299_v14  ;;  %v9319_v47 = vld [vmem:[#allocation161_spill] sm:$0xff] }
 0x512   :  { %v4056_v11 = vmax.f32 %v4007_v17, 0.0  ;;  %v3679_v59 = vadd.f32 %v3678_v13, %v3180_v46 }
 0x514   :  { %v4105_v42 = vpack.c.bf16 %v4056_v11, %v4056_v11  ;;  %v3906_v50 = vmax.f32 %v3679_v59, %v3801_v32  ;;  %v9302_v32 = vld [vmem:[#allocation159_spill] sm:$0xff] }
 0x515   :  { %v3685_v28 = vpop.f32.mrf.mxu2  ;;  %v9303_v11 = vmax.f32 %v9301_v44, %v9302_v32 }
 0x516   :  { %4155 = vst.msk [vmem:[%s8879_s3 + $0xac] sm:$0xf] %vm4111_vm1, %v4105_v42  ;;  %v3955_v53 = vmax.f32 %v9286_v48, %v3906_v50  ;;  %v2682_v24 = vpop.f32.mrf.mxu0  ;;  %v9305_v48 = vld [vmem:[#allocation158_spill] sm:$0xff] }
 0x517   :  { %v3181_v6 = vpop.f32.mrf.mxu1 }
 0x518   :  { %v4008_v30 = vadd.f32 %v8555_v3, %v3955_v53  ;;  %v3182_v13 = vadd.f32 %v3181_v6, %v2682_v24  ;;  %v9306_v6 = vld [vmem:[#allocation162_spill] sm:$0xff] }
 0x51a   :  { %v4057_v20 = vmax.f32 %v4008_v30, 0.0  ;;  %v3681_v19 = vadd.f32 %v3680_v2, %v3182_v13  ;;  %v9307_v13 = vld [vmem:[#allocation4_spill] sm:$0xff] }
 0x51c   :  { %v4106_v37 = vpack.c.bf16 %v4057_v20, %v4057_v20  ;;  %v3907_v36 = vmax.f32 %v3681_v19, %v3804_v55  ;;  %v9308_v55 = vld [vmem:[#allocation85_spill] sm:$0xff] }
 0x51d   :  { %v3688_v41 = vpop.f32.mrf.mxu2  ;;  %v9309_v20 = vmax.f32 %v9307_v13, %v9308_v55 }
 0x51e   :  { %4156 = vst.msk [vmem:[%s8879_s3 + $0xb0] sm:$0xf] %vm4111_vm1, %v4106_v37  ;;  %v3956_v10 = vmax.f32 %v9291_v45, %v3907_v36  ;;  %v2685_v43 = vpop.f32.mrf.mxu0  ;;  %v9310_v37 = vld [vmem:[#allocation5_spill] sm:$0xff]  ;;  %v9311_v36 = vld [vmem:[#allocation84_spill] sm:$0xff] }
 0x51f   :  { %v3184_v1 = vpop.f32.mrf.mxu1  ;;  %v3197_v5 = vadd.f32 %v9311_v36, %v9310_v37 }
 0x520   :  { %v4009_v2 = vadd.f32 %v8555_v3, %v3956_v10  ;;  %v3185_v8 = vadd.f32 %v3184_v1, %v2685_v43 }
 0x522   :  { %v4058_v39 = vmax.f32 %v4009_v2, 0.0  ;;  %v3684_v23 = vadd.f32 %v3683_v27, %v3185_v8 }
 0x524   :  { %v4107_v21 = vpack.c.bf16 %v4058_v39, %v4058_v39  ;;  %v3908_v58 = vmax.f32 %v3684_v23, %v3806_v9 }
 0x525   :  { %v3690_v52 = vpop.f32.mrf.mxu2 }
 0x526   :  { %4157 = vst.msk [vmem:[%s8879_s3 + $0xb4] sm:$0xf] %vm4111_vm1, %v4107_v21  ;;  %v3957_v62 = vmax.f32 %v9296_v56, %v3908_v58  ;;  %v2687_v33 = vpop.f32.mrf.mxu0  ;;  %v9315_v21 = vld [vmem:[#allocation163_spill] sm:$0xff]  ;;  %v9317_v56 = vld [vmem:[#allocation86_spill] sm:$0xff] }
 0x527   :  { %v3186_v40 = vpop.f32.mrf.mxu1 }
 0x528   :  { %v4010_v27 = vadd.f32 %v8555_v3, %v3957_v62  ;;  %v3187_v63 = vadd.f32 %v3186_v40, %v2687_v33  ;;  %v9318_v62 = vmax.f32 %v9316_v22, %v9317_v56 }
 0x52a   :  { %v4059_v54 = vmax.f32 %v4010_v27, 0.0  ;;  %v3686_v35 = vadd.f32 %v3685_v28, %v3187_v63  ;;  %v9304_v28 = vld [vmem:[#allocation80_spill] sm:$0xff] }
 0x52b   :  { %v3312_v53 = vadd.f32 %v9305_v48, %v9304_v28 }
 0x52c   :  { %v4108_v60 = vpack.c.bf16 %v4059_v54, %v4059_v54  ;;  %v3909_v17 = vmax.f32 %v3686_v35, %v3809_v0  ;;  %v9320_v0 = vld [vmem:[#allocation2_spill] sm:$0xff]  ;;  %v9321_v54 = vld [vmem:[#allocation83_spill] sm:$0xff] }
 0x52d   :  { %v3693_v46 = vpop.f32.mrf.mxu2  ;;  %v3811_v7 = vadd.f32 %v3810_v31, %v3312_v53  ;;  %v9322_v35 = vmax.f32 %v9320_v0, %v9321_v54 }
 0x52e   :  { %4158 = vst.msk [vmem:[%s8879_s3 + $0xb8] sm:$0xf] %vm4111_vm1, %v4108_v60  ;;  %v3958_v59 = vmax.f32 %v9303_v11, %v3909_v17  ;;  %v3694_v42 = vadd.f32 %v3693_v46, %v3195_v26  ;;  %v2690_v50 = vpop.f32.mrf.mxu0 }
 0x52f   :  { %v3189_v18 = vpop.f32.mrf.mxu1 }
 0x530   :  { %v4011_v24 = vadd.f32 %v8555_v3, %v3958_v59  ;;  %v3863_v12 = vmax.f32 %v9306_v6, %v3694_v42  ;;  %v3190_v25 = vadd.f32 %v3189_v18, %v2690_v50 }
 0x532   :  { %v4060_v30 = vmax.f32 %v4011_v24, 0.0  ;;  %v3912_v19 = vmax.f32 %v9309_v20, %v3863_v12  ;;  %v3689_v57 = vadd.f32 %v3688_v41, %v3190_v25 }
 0x534   :  { %v4109_v29 = vpack.c.bf16 %v4060_v30, %v4060_v30  ;;  %v3965_v45 = vadd.f32 %v8555_v3, %v3912_v19  ;;  %v3910_v10 = vmax.f32 %v3689_v57, %v3811_v7 }
 0x535   :  { %v3695_v43 = vpop.f32.mrf.mxu2 }
 0x536   :  { %4159 = vst.msk [vmem:[%s8879_s3 + $0xbc] sm:$0xf] %vm4111_vm1, %v4109_v29  ;;  %v4014_v1 = vmax.f32 %v3965_v45, 0.0  ;;  %v3959_v2 = vmax.f32 %v9314_v49, %v3910_v10  ;;  %v3696_v8 = vadd.f32 %v3695_v43, %v3197_v5  ;;  %v2692_v41 = vpop.f32.mrf.mxu0 }
 0x537   :  { %v3191_v9 = vpop.f32.mrf.mxu1 }
 0x538   :  { %v4063_v39 = vpack.c.bf16 %v4014_v1, %v4014_v1  ;;  %v4012_v23 = vadd.f32 %v8555_v3, %v3959_v2  ;;  %v3864_v58 = vmax.f32 %v9315_v21, %v3696_v8  ;;  %v3192_v4 = vadd.f32 %v3191_v9, %v2692_v41 }
 0x53a   :  { %4113 = vst.msk [vmem:[%s8879_s3 + $0x4] sm:$0xf] %vm4111_vm1, %v4063_v39  ;;  %v4061_v34 = vmax.f32 %v4012_v23, 0.0  ;;  %v3913_v33 = vmax.f32 %v9318_v62, %v3864_v58  ;;  %v3691_v40 = vadd.f32 %v3690_v52, %v3192_v4 }
 0x53c   :  { %v4110_v38 = vpack.c.bf16 %v4061_v34, %v4061_v34  ;;  %v3966_v61 = vadd.f32 %v8555_v3, %v3913_v33  ;;  %v3862_v27 = vmax.f32 %v9319_v47, %v3691_v40 }
 0x53e   :  { %4160 = vst.msk [vmem:[%s8879_s3 + $0xc0] sm:$0xf] %vm4111_vm1, %v4110_v38  ;;  %v4015_v63 = vmax.f32 %v3966_v61, 0.0  ;;  %v3911_v14 = vmax.f32 %v9322_v35, %v3862_v27 }
 0x540   :  { %v4064_v15 = vpack.c.bf16 %v4015_v63, %v4015_v63  ;;  %v3964_v26 = vadd.f32 %v8555_v3, %v3911_v14 }
 0x542   :  { %4114 = vst.msk [vmem:[%s8879_s3 + $0x8] sm:$0xf] %vm4111_vm1, %v4064_v15  ;;  %v4013_v52 = vmax.f32 %v3964_v26, 0.0 }
 0x544   :  { %v4062_v60 = vpack.c.bf16 %v4013_v52, %v4013_v52 }
 0x546   :  { %4112 = vst.msk [vmem:[%s8879_s3] sm:$0xf] %vm4111_vm1, %v4062_v60 }

// kernel: asthecitiy_forward.6
= control target key start
LH: loop header
LB: loop body
LE: loop exit
PB: predicated region body
PF: predicated region fallthrough
CT: control target
= control target key end

     0   :  { %vm861_vm0 = vcmask 523264   ;;  %s3127_s1 = inlined_call_operand.vmem [shape: bf16[576,128], index: 1, kind: input, shape index: {}]   ;;  %s3128_s0 = inlined_call_operand.vmem [shape: bf16[288,576], index: 0, kind: input, shape index: {}]   ;;  %s3129_s2 = inlined_call_operand.vmem [shape: f32[1,128], index: 2, kind: input, shape index: {}]   ;;  %s3130_s3 = inlined_call_operand.vmem [shape: bf16[72,128], index: 3, kind: output, shape index: {}]  }
   0x1   :  { %v2101_v0 = vld [vmem:[%s3127_s1 + $0x38] sm:$0xff]  ;;  %v2100_v1 = vld [vmem:[%s3127_s1 + $0x30] sm:$0xff]  ;;  %v2099_v2 = vld [vmem:[%s3127_s1 + $0x28] sm:$0xff] }
   0x2   :  { %2153 = vmatpush.bf16.msra.mxu1 %v2101_v0  ;;  %2154 = vmatpush.bf16.msra.mxu2 %v2101_v0  ;;  %v2098_v3 = vld [vmem:[%s3127_s1 + $0x20] sm:$0xff]  ;;  %v2097_v4 = vld [vmem:[%s3127_s1 + $0x18] sm:$0xff]  ;;  %v2096_v5 = vld [vmem:[%s3127_s1 + $0x10] sm:$0xff] }
   0x3   :  { %916 = vmatpush.bf16.msra.mxu0 %v2101_v0  ;;  %2155 = vmatpush.bf16.msra.mxu3 %v2101_v0  ;;  %v2095_v6 = vld [vmem:[%s3127_s1 + $0x8] sm:$0xff]  ;;  %v2094_v7 = vld [vmem:[%s3127_s1] sm:$0xff]  ;;  %v2031_v9 = vld [vmem:[%s3128_s0 + $0xd8] sm:$0xf0] }
   0x4   :  { %v1584_v8 = vld [vmem:[%s3128_s0 + $0xc8] sm:$0xf]  ;;  %v1684_v10 = vld [vmem:[%s3128_s0 + $0x190] sm:$0xf]  ;;  %v2056_v11 = vld [vmem:[%s3128_s0 + $0x1a0] sm:$0xf0] }
   0x5   :  { %v2117_v12 = vld [vmem:[%s3127_s1 + $0xb8] sm:$0xff]  ;;  %v1484_v13 = vld [vmem:[%s3128_s0] sm:$0xf]  ;;  %v2006_v14 = vld [vmem:[%s3128_s0 + $0x10] sm:$0xf0]  ;;  %v1585_v17 = vor.u32 %v2031_v9, %v1584_v8  ;;  %v1685_v18 = vor.u32 %v2056_v11, %v1684_v10 }
   0x6   :  { %2156 = vmatpush.bf16.msra.mxu1 %v2100_v1  ;;  %2157 = vmatpush.bf16.msra.mxu2 %v2100_v1  ;;  %v2109_v15 = vld [vmem:[%s3127_s1 + $0x78] sm:$0xff]  ;;  %v1485_v19 = vor.u32 %v2006_v14, %v1484_v13  ;;  %v2081_v21 = vld [vmem:[%s3128_s0 + $0x268] sm:$0xf0]  ;;  %v2116_v22 = vld [vmem:[%s3127_s1 + $0xb0] sm:$0xff] }
   0x7   :  { %917 = vmatpush.bf16.msra.mxu0 %v2100_v1  ;;  %2158 = vmatpush.bf16.msra.mxu3 %v2100_v1  ;;  %v2129_v16 = vld [vmem:[%s3127_s1 + $0x118] sm:$0xff]  ;;  %v2108_v23 = vld [vmem:[%s3127_s1 + $0x70] sm:$0xff]  ;;  %v2115_v27 = vld [vmem:[%s3127_s1 + $0xa8] sm:$0xff] }
   0x8   :  { %v1784_v20 = vld [vmem:[%s3128_s0 + $0x258] sm:$0xf]  ;;  %v2128_v24 = vld [vmem:[%s3127_s1 + $0x110] sm:$0xff]  ;;  %v2107_v28 = vld [vmem:[%s3127_s1 + $0x68] sm:$0xff] }
   0x9   :  { %v1785_v25 = vor.u32 %v2081_v21, %v1784_v20  ;;  %v2125_v26 = vld [vmem:[%s3127_s1 + $0xf8] sm:$0xff]  ;;  %v2124_v29 = vld [vmem:[%s3127_s1 + $0xf0] sm:$0xff]  ;;  %v2114_v30 = vld [vmem:[%s3127_s1 + $0xa0] sm:$0xff] }
   0xa   :  { %2159 = vmatpush.bf16.msra.mxu1 %v2099_v2  ;;  %2160 = vmatpush.bf16.msra.mxu2 %v2099_v2  ;;  %v2106_v31 = vld [vmem:[%s3127_s1 + $0x60] sm:$0xff]  ;;  %v1604_v32 = vld [vmem:[%s3128_s0 + $0xf0] sm:$0xf]  ;;  %v1704_v34 = vld [vmem:[%s3128_s0 + $0x1b8] sm:$0xf] }
   0xb   :  { %918 = vmatpush.bf16.msra.mxu0 %v2099_v2  ;;  %2161 = vmatpush.bf16.msra.mxu3 %v2099_v2  ;;  %v2036_v33 = vld [vmem:[%s3128_s0 + $0x100] sm:$0xf0]  ;;  %v2061_v35 = vld [vmem:[%s3128_s0 + $0x1c8] sm:$0xf0]  ;;  %v1504_v37 = vld [vmem:[%s3128_s0 + $0x28] sm:$0xf] }
   0xc   :  { %v2123_v36 = vld [vmem:[%s3127_s1 + $0xe8] sm:$0xff]  ;;  %v2011_v38 = vld [vmem:[%s3128_s0 + $0x38] sm:$0xf0]  ;;  %v1605_v41 = vor.u32 %v2036_v33, %v1604_v32  ;;  %v1705_v42 = vor.u32 %v2061_v35, %v1704_v34  ;;  %v1804_v44 = vld [vmem:[%s3128_s0 + $0x280] sm:$0xf] }
   0xd   :  { %v2113_v39 = vld [vmem:[%s3127_s1 + $0x98] sm:$0xff]  ;;  %v1505_v43 = vor.u32 %v2011_v38, %v1504_v37  ;;  %v2086_v45 = vld [vmem:[%s3128_s0 + $0x290] sm:$0xf0]  ;;  %v2127_v48 = vld [vmem:[%s3127_s1 + $0x108] sm:$0xff] }
   0xe   :  { %2162 = vmatpush.bf16.msra.mxu1 %v2098_v3  ;;  %2163 = vmatpush.bf16.msra.mxu2 %v2098_v3  ;;  %v2105_v40 = vld [vmem:[%s3127_s1 + $0x58] sm:$0xff]  ;;  %v1805_v46 = vor.u32 %v2086_v45, %v1804_v44  ;;  %v2112_v47 = vld [vmem:[%s3127_s1 + $0x90] sm:$0xff]  ;;  %v2122_v49 = vld [vmem:[%s3127_s1 + $0xe0] sm:$0xff] }
   0xf   :  { %919 = vmatpush.bf16.msra.mxu0 %v2098_v3  ;;  %2164 = vmatpush.bf16.msra.mxu3 %v2098_v3  ;;  %v2104_v50 = vld [vmem:[%s3127_s1 + $0x50] sm:$0xff]  ;;  %v2111_v51 = vld [vmem:[%s3127_s1 + $0x88] sm:$0xff]  ;;  %v2121_v52 = vld [vmem:[%s3127_s1 + $0xd8] sm:$0xff] }
  0x10   :  { %v1624_v53 = vld [vmem:[%s3128_s0 + $0x118] sm:$0xf]  ;;  %v2041_v54 = vld [vmem:[%s3128_s0 + $0x128] sm:$0xf0]  ;;  %v1724_v55 = vld [vmem:[%s3128_s0 + $0x1e0] sm:$0xf] }
  0x11   :  { %v2066_v56 = vld [vmem:[%s3128_s0 + $0x1f0] sm:$0xf0]  ;;  %v1524_v58 = vld [vmem:[%s3128_s0 + $0x50] sm:$0xf]  ;;  %v2016_v59 = vld [vmem:[%s3128_s0 + $0x60] sm:$0xf0]  ;;  %v1625_v60 = vor.u32 %v2041_v54, %v1624_v53 }
  0x12   :  { %2165 = vmatpush.bf16.msra.mxu1 %v2097_v4  ;;  %2166 = vmatpush.bf16.msra.mxu2 %v2097_v4  ;;  %v2120_v57 = vld [vmem:[%s3127_s1 + $0xd0] sm:$0xff]  ;;  %v1725_v61 = vor.u32 %v2066_v56, %v1724_v55  ;;  %v1525_v62 = vor.u32 %v2016_v59, %v1524_v58  ;;  %v1824_v63 = vld [vmem:[%s3128_s0 + $0x2a8] sm:$0xf]  ;;  %v2091_v0 = vld [vmem:[%s3128_s0 + $0x2b8] sm:$0xf0] }
  0x13   :  { %920 = vmatpush.bf16.msra.mxu0 %v2097_v4  ;;  %2167 = vmatpush.bf16.msra.mxu3 %v2097_v4  ;;  %v1825_v1 = vor.u32 %v2091_v0, %v1824_v63  ;;  %v2103_v2 = vld [vmem:[%s3127_s1 + $0x48] sm:$0xff]  ;;  %v2110_v4 = vld [vmem:[%s3127_s1 + $0x80] sm:$0xff]  ;;  %v2046_v9 = vld [vmem:[%s3128_s0 + $0x150] sm:$0xf0] }
  0x14   :  { %v2119_v3 = vld [vmem:[%s3127_s1 + $0xc8] sm:$0xff]  ;;  %v1644_v8 = vld [vmem:[%s3128_s0 + $0x140] sm:$0xf]  ;;  %v2071_v11 = vld [vmem:[%s3128_s0 + $0x218] sm:$0xf0] }
  0x15   :  { %v1744_v10 = vld [vmem:[%s3128_s0 + $0x208] sm:$0xf]  ;;  %v2021_v13 = vld [vmem:[%s3128_s0 + $0x88] sm:$0xf0]  ;;  %v1645_v14 = vor.u32 %v2046_v9, %v1644_v8  ;;  %v2051_v21 = vld [vmem:[%s3128_s0 + $0x178] sm:$0xf0] }
  0x16   :  { %2168 = vmatpush.bf16.msra.mxu1 %v2096_v5  ;;  %2169 = vmatpush.bf16.msra.mxu2 %v2096_v5  ;;  %v1664_v20 = vld [vmem:[%s3128_s0 + $0x168] sm:$0xf]  ;;  %v2004_v32 = vld [vmem:[%s3128_s0 + $0x4] sm:$0xf]  ;;  %v1486_v33 = vld [vmem:[%s3128_s0 + $0x14] sm:$0xf0] }
  0x17   :  { %921 = vmatpush.bf16.msra.mxu0 %v2096_v5  ;;  %2170 = vmatpush.bf16.msra.mxu3 %v2096_v5  ;;  %v2126_v5 = vld [vmem:[%s3127_s1 + $0x100] sm:$0xff]  ;;  %v1492_v34 = vld [vmem:[%s3128_s0 + $0x8] sm:$0xf]  ;;  %v2007_v35 = vld [vmem:[%s3128_s0 + $0x18] sm:$0xf0]  ;;  %v1489_v38 = vor.u32 %v2004_v32, %v1486_v33 }
  0x18   :  { %v2008_v37 = vld [vmem:[%s3128_s0 + $0x20] sm:$0xf0]  ;;  %v2009_v44 = vld [vmem:[%s3128_s0 + $0x2c] sm:$0xf]  ;;  %v1506_v45 = vld [vmem:[%s3128_s0 + $0x3c] sm:$0xf0] }
  0x19   :  { %v2020_v53 = vld [vmem:[%s3128_s0 + $0x84] sm:$0xf]  ;;  %v1554_v54 = vld [vmem:[%s3128_s0 + $0x94] sm:$0xf0]  ;;  %v2014_v56 = vld [vmem:[%s3128_s0 + $0x54] sm:$0xf] }
  0x1a   :  { %2171 = vmatpush.bf16.msra.mxu1 %v2095_v6  ;;  %2172 = vmatpush.bf16.msra.mxu2 %v2095_v6  ;;  %v1557_v55 = vor.u32 %v2020_v53, %v1554_v54  ;;  %v1532_v58 = vld [vmem:[%s3128_s0 + $0x58] sm:$0xf]  ;;  %v2017_v59 = vld [vmem:[%s3128_s0 + $0x68] sm:$0xf0]  ;;  %v1560_v8 = vld [vmem:[%s3128_s0 + $0x88] sm:$0xf] }
  0x1b   :  { %922 = vmatpush.bf16.msra.mxu0 %v2095_v6  ;;  %2173 = vmatpush.bf16.msra.mxu3 %v2095_v6  ;;  %v2102_v6 = vld [vmem:[%s3127_s1 + $0x40] sm:$0xff]  ;;  %v1533_v63 = vor.u32 %v2017_v59, %v1532_v58  ;;  %v2023_v9 = vld [vmem:[%s3128_s0 + $0x98] sm:$0xf0]  ;;  %v1634_v54 = vld [vmem:[%s3128_s0 + $0x134] sm:$0xf0] }
  0x1c   :  { %v2035_v33 = vld [vmem:[%s3128_s0 + $0xfc] sm:$0xf]  ;;  %v2040_v53 = vld [vmem:[%s3128_s0 + $0x124] sm:$0xf] }
  0x1e   :  { %2174 = vmatpush.bf16.msra.mxu1 %v2094_v7  ;;  %2175 = vmatpush.bf16.msra.mxu2 %v2094_v7 }
  0x1f   :  { %923 = vmatpush.bf16.msra.mxu0 %v2094_v7  ;;  %2176 = vmatpush.bf16.msra.mxu3 %v2094_v7  ;;  %v2118_v7 = vld [vmem:[%s3127_s1 + $0xc0] sm:$0xff] }
  0x21   :  { %949 = vmatmul.bf16.vlgmr.msra.gmra.mxu1 %v1585_v17  ;;  %974 = vmatmul.bf16.vlgmr.msra.gmra.mxu2 %v1685_v18  ;;  %v2005_v17 = vld [vmem:[%s3128_s0 + $0xc] sm:$0xf]  ;;  %v1494_v18 = vld [vmem:[%s3128_s0 + $0x1c] sm:$0xf0] }
  0x22   :  { %1114 = vmatpush.bf16.msrb.mxu2 %v2117_v12  ;;  %1015 = vmatpush.bf16.msrb.mxu1 %v2109_v15  ;;  %v1544_v12 = vld [vmem:[%s3128_s0 + $0x78] sm:$0xf]  ;;  %v1745_v15 = vor.u32 %v2071_v11, %v1744_v10 }
  0x23   :  { %1316 = vmatpush.bf16.msrb.mxu0 %v2129_v16  ;;  %999 = vmatmul.bf16.vlgmr.msra.gmra.mxu3 %v1785_v25  ;;  %v1545_v16 = vor.u32 %v2021_v13, %v1544_v12  ;;  %v2026_v25 = vld [vmem:[%s3128_s0 + $0xb0] sm:$0xf0]  ;;  %v1561_v13 = vor.u32 %v2023_v9, %v1560_v8  ;;  %v2045_v9 = vld [vmem:[%s3128_s0 + $0x14c] sm:$0xf] }
  0x24   :  { %924 = vmatmul.bf16.vlgmr.msra.gmra.mxu0 %v1485_v19  ;;  %1213 = vmatpush.bf16.msrb.mxu3 %v2125_v26  ;;  %v1497_v19 = vor.u32 %v2005_v17, %v1494_v18  ;;  %v1665_v26 = vor.u32 %v2051_v21, %v1664_v20 }
  0x26   :  { %1115 = vmatpush.bf16.msrb.mxu2 %v2116_v22  ;;  %1016 = vmatpush.bf16.msrb.mxu1 %v2108_v23  ;;  %v1764_v22 = vld [vmem:[%s3128_s0 + $0x230] sm:$0xf]  ;;  %v2076_v23 = vld [vmem:[%s3128_s0 + $0x240] sm:$0xf0] }
  0x27   :  { %1317 = vmatpush.bf16.msrb.mxu0 %v2128_v24  ;;  %v1564_v24 = vld [vmem:[%s3128_s0 + $0xa0] sm:$0xf] }
  0x28   :  { %1214 = vmatpush.bf16.msrb.mxu3 %v2124_v29  ;;  %v2010_v29 = vld [vmem:[%s3128_s0 + $0x34] sm:$0xf] }
  0x2a   :  { %1116 = vmatpush.bf16.msrb.mxu2 %v2115_v27  ;;  %1017 = vmatpush.bf16.msrb.mxu1 %v2107_v28  ;;  %v1765_v27 = vor.u32 %v2076_v23, %v1764_v22  ;;  %v1565_v28 = vor.u32 %v2026_v25, %v1564_v24  ;;  %v2024_v22 = vld [vmem:[%s3128_s0 + $0xa4] sm:$0xf]  ;;  %v1566_v23 = vld [vmem:[%s3128_s0 + $0xb4] sm:$0xf0]  ;;  %v1572_v24 = vld [vmem:[%s3128_s0 + $0xa8] sm:$0xf] }
  0x2b   :  { %1318 = vmatpush.bf16.msrb.mxu0 %v2127_v48  ;;  %v1520_v48 = vld [vmem:[%s3128_s0 + $0x38] sm:$0xf]  ;;  %v2027_v25 = vld [vmem:[%s3128_s0 + $0xb8] sm:$0xf0] }
  0x2c   :  { %1215 = vmatpush.bf16.msrb.mxu3 %v2123_v36  ;;  %v1500_v36 = vld [vmem:[%s3128_s0 + $0x10] sm:$0xf] }
  0x2e   :  { %1117 = vmatpush.bf16.msrb.mxu2 %v2114_v30  ;;  %1018 = vmatpush.bf16.msrb.mxu1 %v2106_v31  ;;  %v1514_v30 = vld [vmem:[%s3128_s0 + $0x44] sm:$0xf0] }
  0x2f   :  { %1319 = vmatpush.bf16.msrb.mxu0 %v2126_v5  ;;  %v1517_v31 = vor.u32 %v2010_v29, %v1514_v30  ;;  %v1546_v5 = vld [vmem:[%s3128_s0 + $0x8c] sm:$0xf0]  ;;  %v1569_v29 = vor.u32 %v2024_v22, %v1566_v23  ;;  %v1573_v30 = vor.u32 %v2027_v25, %v1572_v24  ;;  %v2039_v24 = vld [vmem:[%s3128_s0 + $0x11c] sm:$0xf] }
  0x30   :  { %1216 = vmatpush.bf16.msrb.mxu3 %v2122_v49  ;;  %v2013_v49 = vld [vmem:[%s3128_s0 + $0x48] sm:$0xf0]  ;;  %v1626_v25 = vld [vmem:[%s3128_s0 + $0x12c] sm:$0xf0] }
  0x31   :  { %954 = vmatmul.bf16.gmra.mxu1 %v1605_v41  ;;  %979 = vmatmul.bf16.gmra.mxu2 %v1705_v42  ;;  %v2015_v41 = vld [vmem:[%s3128_s0 + $0x5c] sm:$0xf]  ;;  %v1534_v42 = vld [vmem:[%s3128_s0 + $0x6c] sm:$0xf0] }
  0x32   :  { %1118 = vmatpush.bf16.msrb.mxu2 %v2113_v39  ;;  %1019 = vmatpush.bf16.msrb.mxu1 %v2105_v40  ;;  %v1493_v39 = vor.u32 %v2007_v35, %v1492_v34  ;;  %v1501_v40 = vor.u32 %v2008_v37, %v1500_v36  ;;  %v1614_v34 = vld [vmem:[%s3128_s0 + $0x10c] sm:$0xf0] }
  0x33   :  { %1004 = vmatmul.bf16.gmra.mxu3 %v1805_v46  ;;  %v1512_v46 = vld [vmem:[%s3128_s0 + $0x30] sm:$0xf]  ;;  %v1617_v37 = vor.u32 %v2035_v33, %v1614_v34  ;;  %v1629_v33 = vor.u32 %v2039_v24, %v1626_v25 }
  0x34   :  { %929 = vmatmul.bf16.gmra.mxu0 %v1505_v43  ;;  %1217 = vmatpush.bf16.msrb.mxu3 %v2121_v52  ;;  %v1537_v43 = vor.u32 %v2015_v41, %v1534_v42  ;;  %v1521_v52 = vor.u32 %v2013_v49, %v1520_v48  ;;  %v2029_v42 = vld [vmem:[%s3128_s0 + $0xcc] sm:$0xf] }
  0x36   :  { %1119 = vmatpush.bf16.msrb.mxu2 %v2112_v47  ;;  %1020 = vmatpush.bf16.msrb.mxu1 %v2104_v50  ;;  %v2012_v47 = vld [vmem:[%s3128_s0 + $0x40] sm:$0xf0]  ;;  %v1509_v50 = vor.u32 %v2009_v44, %v1506_v45  ;;  %v1592_v44 = vld [vmem:[%s3128_s0 + $0xd0] sm:$0xf] }
  0x37   :  { %v2032_v45 = vld [vmem:[%s3128_s0 + $0xe0] sm:$0xf0] }
  0x38   :  { %1218 = vmatpush.bf16.msrb.mxu3 %v2120_v57  ;;  %v1526_v57 = vld [vmem:[%s3128_s0 + $0x64] sm:$0xf0] }
  0x3a   :  { %1120 = vmatpush.bf16.msrb.mxu2 %v2111_v51  ;;  %1021 = vmatpush.bf16.msrb.mxu1 %v2103_v2  ;;  %v1513_v51 = vor.u32 %v2012_v47, %v1512_v46  ;;  %v1574_v2 = vld [vmem:[%s3128_s0 + $0xbc] sm:$0xf0]  ;;  %v1600_v46 = vld [vmem:[%s3128_s0 + $0xd8] sm:$0xf]  ;;  %v2033_v47 = vld [vmem:[%s3128_s0 + $0xe8] sm:$0xf0] }
  0x3c   :  { %1219 = vmatpush.bf16.msrb.mxu3 %v2119_v3 }
  0x3e   :  { %1121 = vmatpush.bf16.msrb.mxu2 %v2110_v4  ;;  %1022 = vmatpush.bf16.msrb.mxu1 %v2102_v6  ;;  %v2019_v4 = vld [vmem:[%s3128_s0 + $0x7c] sm:$0xf]  ;;  %v1552_v6 = vld [vmem:[%s3128_s0 + $0x80] sm:$0xf] }
  0x3f   :  { %v1549_v10 = vor.u32 %v2019_v4, %v1546_v5 }
  0x40   :  { %1220 = vmatpush.bf16.msrb.mxu3 %v2118_v7  ;;  %v2022_v7 = vld [vmem:[%s3128_s0 + $0x90] sm:$0xf0] }
  0x41   :  { %959 = vmatmul.bf16.gmra.mxu1 %v1625_v60  ;;  %984 = vmatmul.bf16.gmra.mxu2 %v1725_v61  ;;  %v1540_v60 = vld [vmem:[%s3128_s0 + $0x60] sm:$0xf]  ;;  %v2018_v61 = vld [vmem:[%s3128_s0 + $0x70] sm:$0xf0]  ;;  %v1553_v11 = vor.u32 %v2022_v7, %v1552_v6 }
  0x42   :  { %v1541_v0 = vor.u32 %v2018_v61, %v1540_v60 }
  0x43   :  { %1009 = vmatmul.bf16.gmra.mxu3 %v1825_v1  ;;  %v2025_v1 = vld [vmem:[%s3128_s0 + $0xac] sm:$0xf] }
  0x44   :  { %934 = vmatmul.bf16.gmra.mxu0 %v1525_v62  ;;  %v1529_v62 = vor.u32 %v2014_v56, %v1526_v57  ;;  %v1577_v3 = vor.u32 %v2025_v1, %v1574_v2  ;;  %v1637_v57 = vor.u32 %v2040_v53, %v1634_v54  ;;  %v2037_v1 = vld [vmem:[%s3128_s0 + $0x108] sm:$0xf0]  ;;  %v1620_v2 = vld [vmem:[%s3128_s0 + $0x100] sm:$0xf]  ;;  %v2044_v54 = vld [vmem:[%s3128_s0 + $0x144] sm:$0xf] }
  0x51   :  { %964 = vmatmul.bf16.gmra.mxu1 %v1645_v14  ;;  %989 = vmatmul.bf16.gmra.mxu2 %v1745_v15  ;;  %v2030_v14 = vld [vmem:[%s3128_s0 + $0xd4] sm:$0xf]  ;;  %v1594_v15 = vld [vmem:[%s3128_s0 + $0xe4] sm:$0xf0] }
  0x52   :  { %v1597_v17 = vor.u32 %v2030_v14, %v1594_v15 }
  0x53   :  { %1221 = vmatmul.bf16.vlgmr.msrb.gmra.mxu3 %v1497_v19 }
  0x54   :  { %939 = vmatmul.bf16.gmra.mxu0 %v1545_v16 }
  0x61   :  { %969 = vmatmul.bf16.gmra.mxu1 %v1665_v26  ;;  %994 = vmatmul.bf16.gmra.mxu2 %v1765_v27  ;;  %v1580_v26 = vld [vmem:[%s3128_s0 + $0xb0] sm:$0xf]  ;;  %v2028_v27 = vld [vmem:[%s3128_s0 + $0xc0] sm:$0xf0] }
  0x62   :  { %v1581_v32 = vor.u32 %v2028_v27, %v1580_v26  ;;  %v1632_v26 = vld [vmem:[%s3128_s0 + $0x120] sm:$0xf]  ;;  %v2042_v27 = vld [vmem:[%s3128_s0 + $0x130] sm:$0xf0] }
  0x63   :  { %1226 = vmatmul.bf16.gmra.mxu3 %v1517_v31  ;;  %v1633_v34 = vor.u32 %v2042_v27, %v1632_v26 }
  0x64   :  { %944 = vmatmul.bf16.gmra.mxu0 %v1565_v28 }
  0x71   :  { %1023 = vmatmul.bf16.vlgmr.msrb.gmra.mxu1 %v1489_v38  ;;  %1122 = vmatmul.bf16.vlgmr.msrb.gmra.mxu2 %v1493_v39 }
  0x73   :  { %1231 = vmatmul.bf16.gmra.mxu3 %v1537_v43  ;;  %v1586_v43 = vld [vmem:[%s3128_s0 + $0xdc] sm:$0xf0] }
  0x74   :  { %1986 = vmatmul.msk.bf16.vlgmr.msrb.gmra.mxu0 %vm861_vm0, %v1501_v40  ;;  %v1589_v49 = vor.u32 %v2029_v42, %v1586_v43  ;;  %v2050_v43 = vld [vmem:[%s3128_s0 + $0x174] sm:$0xf] }
  0x81   :  { %1028 = vmatmul.bf16.gmra.mxu1 %v1509_v50  ;;  %1127 = vmatmul.bf16.gmra.mxu2 %v1513_v51  ;;  %v1593_v50 = vor.u32 %v2032_v45, %v1592_v44  ;;  %v1674_v44 = vld [vmem:[%s3128_s0 + $0x184] sm:$0xf0] }
  0x83   :  { %1236 = vmatmul.bf16.gmra.mxu3 %v1557_v55 }
  0x84   :  { %1987 = vmatmul.msk.bf16.gmra.mxu0 %vm861_vm0, %v1521_v52  ;;  %v1601_v52 = vor.u32 %v2033_v47, %v1600_v46  ;;  %v1677_v47 = vor.u32 %v2050_v43, %v1674_v44  ;;  %v2049_v44 = vld [vmem:[%s3128_s0 + $0x16c] sm:$0xf] }
  0x91   :  { %1033 = vmatmul.bf16.gmra.mxu1 %v1529_v62  ;;  %1132 = vmatmul.bf16.gmra.mxu2 %v1533_v63  ;;  %v2034_v62 = vld [vmem:[%s3128_s0 + $0xf4] sm:$0xf]  ;;  %v1606_v63 = vld [vmem:[%s3128_s0 + $0x104] sm:$0xf0] }
  0x92   :  { %v1609_v5 = vor.u32 %v2034_v62, %v1606_v63  ;;  %v1652_v62 = vld [vmem:[%s3128_s0 + $0x148] sm:$0xf]  ;;  %v2047_v63 = vld [vmem:[%s3128_s0 + $0x158] sm:$0xf0] }
  0x93   :  { %1241 = vmatmul.bf16.gmra.mxu3 %v1577_v3  ;;  %v2038_v3 = vld [vmem:[%s3128_s0 + $0x110] sm:$0xf0] }
  0x94   :  { %1988 = vmatmul.msk.bf16.gmra.mxu0 %vm861_vm0, %v1541_v0  ;;  %v1612_v0 = vld [vmem:[%s3128_s0 + $0xf8] sm:$0xf]  ;;  %v1621_v8 = vor.u32 %v2038_v3, %v1620_v2 }
  0x95   :  { %v1613_v6 = vor.u32 %v2037_v1, %v1612_v0  ;;  %v1660_v0 = vld [vmem:[%s3128_s0 + $0x150] sm:$0xf]  ;;  %v2048_v1 = vld [vmem:[%s3128_s0 + $0x160] sm:$0xf0] }
  0x9e   :  { %v2519_v12 = vpop.f32.mrf.mxu1 }
  0xa1   :  { %v2527_v16 = vpop.f32.mrf.mxu0  ;;  %1038 = vmatmul.bf16.gmra.mxu1 %v1549_v10  ;;  %1137 = vmatmul.bf16.gmra.mxu2 %v1553_v11  ;;  %v1654_v10 = vld [vmem:[%s3128_s0 + $0x15c] sm:$0xf0] }
  0xa2   :  { %v1657_v14 = vor.u32 %v2045_v9, %v1654_v10  ;;  %v2055_v9 = vld [vmem:[%s3128_s0 + $0x19c] sm:$0xf]  ;;  %v1694_v10 = vld [vmem:[%s3128_s0 + $0x1ac] sm:$0xf0] }
  0xa3   :  { %1246 = vmatmul.bf16.gmra.mxu3 %v1597_v17  ;;  %v1697_v25 = vor.u32 %v2055_v9, %v1694_v10 }
  0xa4   :  { %1989 = vmatmul.msk.bf16.gmra.mxu0 %vm861_vm0, %v1561_v13  ;;  %v2530_v18 = vpop.f32.mrf.mxu2 }
  0xa6   :  { %v2532_v19 = vpop.f32.mrf.mxu1  ;;  %v2536_v21 = vpop.f32.mrf.mxu3 }
  0xa9   :  { %v2534_v20 = vpop.f32.mrf.mxu0 }
  0xac   :  { %v2556_v28 = vpop.f32.mrf.mxu2 }
  0xae   :  { %v2558_v31 = vpop.f32.mrf.mxu1  ;;  %v2568_v36 = vpop.f32.mrf.mxu3 }
  0xb1   :  { %v2566_v35 = vpop.f32.mrf.mxu0  ;;  %1043 = vmatmul.bf16.gmra.mxu1 %v1569_v29  ;;  %1142 = vmatmul.bf16.gmra.mxu2 %v1573_v30  ;;  %v1640_v29 = vld [vmem:[%s3128_s0 + $0x128] sm:$0xf]  ;;  %v2043_v30 = vld [vmem:[%s3128_s0 + $0x138] sm:$0xf0] }
  0xb2   :  { %v1641_v42 = vor.u32 %v2043_v30, %v1640_v29 }
  0xb3   :  { %1251 = vmatmul.bf16.gmra.mxu3 %v1617_v37 }
  0xb4   :  { %1990 = vmatmul.msk.bf16.gmra.mxu0 %vm861_vm0, %v1581_v32  ;;  %v2571_v38 = vpop.f32.mrf.mxu2 }
  0xb6   :  { %v2573_v39 = vpop.f32.mrf.mxu1  ;;  %v2577_v41 = vpop.f32.mrf.mxu3 }
  0xb9   :  { %v2575_v40 = vpop.f32.mrf.mxu0 }
  0xbc   :  { %v2597_v48 = vpop.f32.mrf.mxu2 }
  0xbe   :  { %v2599_v51 = vpop.f32.mrf.mxu1  ;;  %v2609_v56 = vpop.f32.mrf.mxu3 }
  0xc1   :  { %v2607_v55 = vpop.f32.mrf.mxu0  ;;  %1048 = vmatmul.bf16.gmra.mxu1 %v1589_v49  ;;  %1147 = vmatmul.bf16.gmra.mxu2 %v1593_v50 }
  0xc3   :  { %1256 = vmatmul.bf16.gmra.mxu3 %v1637_v57  ;;  %v1646_v57 = vld [vmem:[%s3128_s0 + $0x154] sm:$0xf0] }
  0xc4   :  { %1991 = vmatmul.msk.bf16.gmra.mxu0 %vm861_vm0, %v1601_v52  ;;  %v2612_v58 = vpop.f32.mrf.mxu2  ;;  %v1649_v3 = vor.u32 %v2044_v54, %v1646_v57  ;;  %v1680_v57 = vld [vmem:[%s3128_s0 + $0x178] sm:$0xf] }
  0xc6   :  { %v2614_v59 = vpop.f32.mrf.mxu1  ;;  %v2618_v61 = vpop.f32.mrf.mxu3 }
  0xc9   :  { %v2616_v60 = vpop.f32.mrf.mxu0 }
  0xcc   :  { %v2638_v4 = vpop.f32.mrf.mxu2 }
  0xce   :  { %v2640_v7 = vpop.f32.mrf.mxu1  ;;  %v2650_v13 = vpop.f32.mrf.mxu3 }
  0xd1   :  { %v2648_v11 = vpop.f32.mrf.mxu0  ;;  %1053 = vmatmul.bf16.gmra.mxu1 %v1609_v5  ;;  %1152 = vmatmul.bf16.gmra.mxu2 %v1613_v6  ;;  %v1653_v5 = vor.u32 %v2047_v63, %v1652_v62  ;;  %v2053_v62 = vld [vmem:[%s3128_s0 + $0x188] sm:$0xf0] }
  0xd3   :  { %1261 = vmatmul.bf16.gmra.mxu3 %v1657_v14 }
  0xd4   :  { %1992 = vmatmul.msk.bf16.gmra.mxu0 %vm861_vm0, %v1621_v8  ;;  %v2653_v15 = vpop.f32.mrf.mxu2  ;;  %v1661_v8 = vor.u32 %v2048_v1, %v1660_v0 }
  0xd6   :  { %v2655_v17 = vpop.f32.mrf.mxu1  ;;  %v1222_v23 = vpop.f32.mrf.mxu3 }
  0xd9   :  { %v2657_v22 = vpop.f32.mrf.mxu0 }
  0xdc   :  { %v2677_v32 = vpop.f32.mrf.mxu2 }
  0xde   :  { %v2679_v37 = vpop.f32.mrf.mxu1  ;;  %v1224_v46 = vpop.f32.mrf.mxu3 }
  0xe1   :  { %v2687_v45 = vpop.f32.mrf.mxu0  ;;  %1058 = vmatmul.bf16.gmra.mxu1 %v1629_v33  ;;  %1157 = vmatmul.bf16.gmra.mxu2 %v1633_v34 }
  0xe3   :  { %1266 = vmatmul.bf16.gmra.mxu3 %v1677_v47  ;;  %v1666_v47 = vld [vmem:[%s3128_s0 + $0x17c] sm:$0xf0] }
  0xe4   :  { %1993 = vmatmul.msk.bf16.gmra.mxu0 %vm861_vm0, %v1641_v42  ;;  %v2690_v49 = vpop.f32.mrf.mxu2  ;;  %v1669_v1 = vor.u32 %v2049_v44, %v1666_v47 }
  0xe6   :  { %v2692_v50 = vpop.f32.mrf.mxu1  ;;  %v1227_v53 = vpop.f32.mrf.mxu3 }
  0xe9   :  { %v2694_v52 = vpop.f32.mrf.mxu0 }
  0xec   :  { %v2714_v2 = vpop.f32.mrf.mxu2 }
  0xee   :  { %v1024_v6 = vpop.f32.mrf.mxu1  ;;  %v1229_v24 = vpop.f32.mrf.mxu3 }
  0xef   :  { %v1025_v26 = vadd.f32 %v1024_v6, %v2527_v16  ;;  %v1672_v16 = vld [vmem:[%s3128_s0 + $0x170] sm:$0xf]  ;;  %v1681_v6 = vor.u32 %v2053_v62, %v1680_v57  ;;  %v1700_v57 = vld [vmem:[%s3128_s0 + $0x1a0] sm:$0xf]  ;;  %v2058_v62 = vld [vmem:[%s3128_s0 + $0x1b0] sm:$0xf0] }
  0xf1   :  { %v1321_v14 = vpop.f32.mrf.mxu0  ;;  %1063 = vmatmul.bf16.gmra.mxu1 %v1649_v3  ;;  %1162 = vmatmul.bf16.gmra.mxu2 %v1653_v5 }
  0xf3   :  { %1271 = vmatmul.bf16.gmra.mxu3 %v1697_v25 }
  0xf4   :  { %1994 = vmatmul.msk.bf16.gmra.mxu0 %vm861_vm0, %v1661_v8  ;;  %v1123_v27 = vpop.f32.mrf.mxu2  ;;  %v2060_v8 = vld [vmem:[%s3128_s0 + $0x1c4] sm:$0xf] }
  0xf5   :  { %v1124_v29 = vadd.f32 %v1123_v27, %v1025_v26 }
  0xf6   :  { %v1026_v30 = vpop.f32.mrf.mxu1  ;;  %v1232_v42 = vpop.f32.mrf.mxu3 }
  0xf7   :  { %v1223_v33 = vadd.f32 %v1222_v23, %v1124_v29  ;;  %v2052_v23 = vld [vmem:[%s3128_s0 + $0x180] sm:$0xf0]  ;;  %v1027_v54 = vadd.f32 %v1026_v30, %v2534_v20  ;;  %v1714_v20 = vld [vmem:[%s3128_s0 + $0x1d4] sm:$0xf0] }
  0xf8   :  { %v1673_v3 = vor.u32 %v2052_v23, %v1672_v16  ;;  %v1717_v26 = vor.u32 %v2060_v8, %v1714_v20  ;;  %v2065_v8 = vld [vmem:[%s3128_s0 + $0x1ec] sm:$0xf] }
  0xf9   :  { %v1323_v34 = vpop.f32.mrf.mxu0  ;;  %v2724_v43 = vadd.f32 %v1321_v14, %v1223_v33 }
  0xfc   :  { %v1125_v63 = vpop.f32.mrf.mxu2 }
  0xfd   :  { %v1126_v0 = vadd.f32 %v1125_v63, %v1027_v54 }
  0xfe   :  { %v1029_v5 = vpop.f32.mrf.mxu1  ;;  %v1234_v14 = vpop.f32.mrf.mxu3 }
  0xff   :  { %v1225_v9 = vadd.f32 %v1224_v46, %v1126_v0  ;;  %v1030_v27 = vadd.f32 %v1029_v5, %v2566_v35  ;;  %v2054_v46 = vld [vmem:[%s3128_s0 + $0x194] sm:$0xf]  ;;  %v1692_v35 = vld [vmem:[%s3128_s0 + $0x198] sm:$0xf] }
 0x101   :  { %v1326_v10 = vpop.f32.mrf.mxu0  ;;  %v2751_v25 = vadd.f32 %v1323_v34, %v1225_v9  ;;  %1068 = vmatmul.bf16.gmra.mxu1 %v1669_v1  ;;  %1167 = vmatmul.bf16.gmra.mxu2 %v1673_v3  ;;  %v1686_v34 = vld [vmem:[%s3128_s0 + $0x1a4] sm:$0xf0] }
 0x102   :  { %v1689_v1 = vor.u32 %v2054_v46, %v1686_v34 }
 0x103   :  { %1276 = vmatmul.bf16.gmra.mxu3 %v1717_v26 }
 0x104   :  { %1995 = vmatmul.msk.bf16.gmra.mxu0 %vm861_vm0, %v1681_v6  ;;  %v1128_v29 = vpop.f32.mrf.mxu2  ;;  %v1701_v6 = vor.u32 %v2058_v62, %v1700_v57  ;;  %v1720_v57 = vld [vmem:[%s3128_s0 + $0x1c8] sm:$0xf]  ;;  %v2063_v62 = vld [vmem:[%s3128_s0 + $0x1d8] sm:$0xf0] }
 0x105   :  { %v1129_v30 = vadd.f32 %v1128_v29, %v1030_v27 }
 0x106   :  { %v1031_v33 = vpop.f32.mrf.mxu1  ;;  %v1237_v16 = vpop.f32.mrf.mxu3 }
 0x107   :  { %v1228_v44 = vadd.f32 %v1227_v53, %v1129_v30  ;;  %v2057_v53 = vld [vmem:[%s3128_s0 + $0x1a8] sm:$0xf0]  ;;  %v1032_v54 = vadd.f32 %v1031_v33, %v2575_v40  ;;  %v1734_v40 = vld [vmem:[%s3128_s0 + $0x1fc] sm:$0xf0] }
 0x108   :  { %v1693_v3 = vor.u32 %v2057_v53, %v1692_v35  ;;  %v1737_v27 = vor.u32 %v2065_v8, %v1734_v40  ;;  %v2070_v8 = vld [vmem:[%s3128_s0 + $0x214] sm:$0xf] }
 0x109   :  { %v1328_v47 = vpop.f32.mrf.mxu0  ;;  %v2755_v23 = vadd.f32 %v1326_v10, %v1228_v44 }
 0x10c   :  { %v1130_v63 = vpop.f32.mrf.mxu2 }
 0x10d   :  { %v1131_v0 = vadd.f32 %v1130_v63, %v1032_v54 }
 0x10e   :  { %v1034_v5 = vpop.f32.mrf.mxu1  ;;  %v1239_v10 = vpop.f32.mrf.mxu3 }
 0x10f   :  { %v1230_v20 = vadd.f32 %v1229_v24, %v1131_v0  ;;  %v1035_v29 = vadd.f32 %v1034_v5, %v2607_v55  ;;  %v2059_v24 = vld [vmem:[%s3128_s0 + $0x1bc] sm:$0xf]  ;;  %v1712_v55 = vld [vmem:[%s3128_s0 + $0x1c0] sm:$0xf] }
 0x111   :  { %v1331_v9 = vpop.f32.mrf.mxu0  ;;  %v2782_v26 = vadd.f32 %v1328_v47, %v1230_v20  ;;  %1073 = vmatmul.bf16.gmra.mxu1 %v1689_v1  ;;  %1172 = vmatmul.bf16.gmra.mxu2 %v1693_v3  ;;  %v1706_v47 = vld [vmem:[%s3128_s0 + $0x1cc] sm:$0xf0] }
 0x112   :  { %v1709_v1 = vor.u32 %v2059_v24, %v1706_v47 }
 0x113   :  { %1281 = vmatmul.bf16.gmra.mxu3 %v1737_v27 }
 0x114   :  { %1996 = vmatmul.msk.bf16.gmra.mxu0 %vm861_vm0, %v1701_v6  ;;  %v1133_v30 = vpop.f32.mrf.mxu2  ;;  %v1721_v6 = vor.u32 %v2063_v62, %v1720_v57  ;;  %v1740_v57 = vld [vmem:[%s3128_s0 + $0x1f0] sm:$0xf]  ;;  %v2068_v62 = vld [vmem:[%s3128_s0 + $0x200] sm:$0xf0] }
 0x115   :  { %v1134_v33 = vadd.f32 %v1133_v30, %v1035_v29 }
 0x116   :  { %v1036_v44 = vpop.f32.mrf.mxu1  ;;  %v1242_v35 = vpop.f32.mrf.mxu3 }
 0x117   :  { %v1233_v46 = vadd.f32 %v1232_v42, %v1134_v33  ;;  %v2062_v42 = vld [vmem:[%s3128_s0 + $0x1d0] sm:$0xf0]  ;;  %v1037_v54 = vadd.f32 %v1036_v44, %v2616_v60  ;;  %v1754_v60 = vld [vmem:[%s3128_s0 + $0x224] sm:$0xf0] }
 0x118   :  { %v1713_v3 = vor.u32 %v2062_v42, %v1712_v55  ;;  %v1757_v29 = vor.u32 %v2070_v8, %v1754_v60  ;;  %v1726_v42 = vld [vmem:[%s3128_s0 + $0x1f4] sm:$0xf0]  ;;  %v2075_v8 = vld [vmem:[%s3128_s0 + $0x23c] sm:$0xf] }
 0x119   :  { %v1333_v34 = vpop.f32.mrf.mxu0  ;;  %v2786_v53 = vadd.f32 %v1331_v9, %v1233_v46 }
 0x11c   :  { %v1135_v63 = vpop.f32.mrf.mxu2 }
 0x11d   :  { %v1136_v0 = vadd.f32 %v1135_v63, %v1037_v54 }
 0x11e   :  { %v1039_v5 = vpop.f32.mrf.mxu1  ;;  %v1244_v9 = vpop.f32.mrf.mxu3 }
 0x11f   :  { %v1235_v40 = vadd.f32 %v1234_v14, %v1136_v0  ;;  %v1040_v30 = vadd.f32 %v1039_v5, %v2648_v11  ;;  %v1732_v11 = vld [vmem:[%s3128_s0 + $0x1e8] sm:$0xf] }
 0x121   :  { %v1336_v20 = vpop.f32.mrf.mxu0  ;;  %v2813_v27 = vadd.f32 %v1333_v34, %v1235_v40  ;;  %1078 = vmatmul.bf16.gmra.mxu1 %v1709_v1  ;;  %1177 = vmatmul.bf16.gmra.mxu2 %v1713_v3  ;;  %v2064_v34 = vld [vmem:[%s3128_s0 + $0x1e4] sm:$0xf] }
 0x122   :  { %v1729_v1 = vor.u32 %v2064_v34, %v1726_v42 }
 0x123   :  { %1286 = vmatmul.bf16.gmra.mxu3 %v1757_v29 }
 0x124   :  { %1997 = vmatmul.msk.bf16.gmra.mxu0 %vm861_vm0, %v1721_v6  ;;  %v1138_v33 = vpop.f32.mrf.mxu2  ;;  %v1741_v6 = vor.u32 %v2068_v62, %v1740_v57  ;;  %v1760_v57 = vld [vmem:[%s3128_s0 + $0x218] sm:$0xf]  ;;  %v2073_v62 = vld [vmem:[%s3128_s0 + $0x228] sm:$0xf0] }
 0x125   :  { %v1139_v44 = vadd.f32 %v1138_v33, %v1040_v30 }
 0x126   :  { %v1041_v46 = vpop.f32.mrf.mxu1  ;;  %v2817_v55 = vpop.f32.mrf.mxu3 }
 0x127   :  { %v1238_v24 = vadd.f32 %v1237_v16, %v1139_v44  ;;  %v2067_v16 = vld [vmem:[%s3128_s0 + $0x1f8] sm:$0xf0]  ;;  %v1042_v54 = vadd.f32 %v1041_v46, %v2657_v22  ;;  %v1774_v22 = vld [vmem:[%s3128_s0 + $0x24c] sm:$0xf0] }
 0x128   :  { %v1733_v3 = vor.u32 %v2067_v16, %v1732_v11  ;;  %v1777_v30 = vor.u32 %v2075_v8, %v1774_v22  ;;  %v1746_v16 = vld [vmem:[%s3128_s0 + $0x21c] sm:$0xf0]  ;;  %v2080_v8 = vld [vmem:[%s3128_s0 + $0x264] sm:$0xf] }
 0x129   :  { %v1338_v47 = vpop.f32.mrf.mxu0  ;;  %v2819_v14 = vadd.f32 %v1336_v20, %v1238_v24 }
 0x12c   :  { %v1140_v63 = vpop.f32.mrf.mxu2 }
 0x12d   :  { %v1141_v0 = vadd.f32 %v1140_v63, %v1042_v54 }
 0x12e   :  { %v1044_v5 = vpop.f32.mrf.mxu1  ;;  %v2846_v20 = vpop.f32.mrf.mxu3 }
 0x12f   :  { %v1240_v60 = vadd.f32 %v1239_v10, %v1141_v0  ;;  %v1045_v33 = vadd.f32 %v1044_v5, %v2687_v45  ;;  %v1752_v45 = vld [vmem:[%s3128_s0 + $0x210] sm:$0xf] }
 0x131   :  { %v1341_v40 = vpop.f32.mrf.mxu0  ;;  %v2848_v29 = vadd.f32 %v1338_v47, %v1240_v60  ;;  %1083 = vmatmul.bf16.gmra.mxu1 %v1729_v1  ;;  %1182 = vmatmul.bf16.gmra.mxu2 %v1733_v3  ;;  %v2069_v47 = vld [vmem:[%s3128_s0 + $0x20c] sm:$0xf] }
 0x132   :  { %v1749_v1 = vor.u32 %v2069_v47, %v1746_v16 }
 0x133   :  { %1291 = vmatmul.bf16.gmra.mxu3 %v1777_v30 }
 0x134   :  { %1998 = vmatmul.msk.bf16.gmra.mxu0 %vm861_vm0, %v1741_v6  ;;  %v1143_v44 = vpop.f32.mrf.mxu2  ;;  %v1761_v6 = vor.u32 %v2073_v62, %v1760_v57 }
 0x135   :  { %v1144_v46 = vadd.f32 %v1143_v44, %v1045_v33 }
 0x136   :  { %v1046_v24 = vpop.f32.mrf.mxu1  ;;  %v2852_v11 = vpop.f32.mrf.mxu3 }
 0x137   :  { %v1243_v34 = vadd.f32 %v1242_v35, %v1144_v46  ;;  %v2072_v35 = vld [vmem:[%s3128_s0 + $0x220] sm:$0xf0]  ;;  %v1047_v54 = vadd.f32 %v1046_v24, %v2694_v52  ;;  %v1794_v52 = vld [vmem:[%s3128_s0 + $0x274] sm:$0xf0] }
 0x138   :  { %v1753_v3 = vor.u32 %v2072_v35, %v1752_v45  ;;  %v1797_v33 = vor.u32 %v2080_v8, %v1794_v52  ;;  %v2074_v35 = vld [vmem:[%s3128_s0 + $0x234] sm:$0xf] }
 0x139   :  { %v1343_v42 = vpop.f32.mrf.mxu0  ;;  %v2854_v10 = vadd.f32 %v1341_v40, %v1243_v34 }
 0x13c   :  { %v1145_v63 = vpop.f32.mrf.mxu2 }
 0x13d   :  { %v1146_v0 = vadd.f32 %v1145_v63, %v1047_v54  ;;  %v1766_v54 = vld [vmem:[%s3128_s0 + $0x244] sm:$0xf0]  ;;  %v1780_v63 = vld [vmem:[%s3128_s0 + $0x240] sm:$0xf] }
 0x13e   :  { %v1049_v5 = vpop.f32.mrf.mxu1  ;;  %v2881_v40 = vpop.f32.mrf.mxu3 }
 0x13f   :  { %v1245_v22 = vadd.f32 %v1244_v9, %v1146_v0  ;;  %v1050_v46 = vadd.f32 %v1049_v5, %v2519_v12  ;;  %v1772_v12 = vld [vmem:[%s3128_s0 + $0x238] sm:$0xf]  ;;  %v2078_v0 = vld [vmem:[%s3128_s0 + $0x250] sm:$0xf0]  ;;  %v1769_v5 = vor.u32 %v2074_v35, %v1766_v54 }
 0x140   :  { %v1781_v52 = vor.u32 %v2078_v0, %v1780_v63  ;;  %v2079_v63 = vld [vmem:[%s3128_s0 + $0x25c] sm:$0xf]  ;;  %v1786_v0 = vld [vmem:[%s3128_s0 + $0x26c] sm:$0xf0] }
 0x141   :  { %v1346_v60 = vpop.f32.mrf.mxu0  ;;  %v2883_v30 = vadd.f32 %v1343_v42, %v1245_v22  ;;  %1088 = vmatmul.bf16.gmra.mxu1 %v1749_v1  ;;  %1187 = vmatmul.bf16.gmra.mxu2 %v1753_v3  ;;  %v2085_v22 = vld [vmem:[%s3128_s0 + $0x28c] sm:$0xf] }
 0x143   :  { %v1411_v44 = vmax.f32 %v2724_v43, %v2883_v30  ;;  %1296 = vmatmul.bf16.gmra.mxu3 %v1797_v33 }
 0x144   :  { %1999 = vmatmul.msk.bf16.gmra.mxu0 %vm861_vm0, %v1761_v6  ;;  %v1148_v24 = vpop.f32.mrf.mxu2 }
 0x145   :  { %v1149_v34 = vadd.f32 %v1148_v24, %v1050_v46 }
 0x146   :  { %v1051_v47 = vpop.f32.mrf.mxu1  ;;  %v2890_v45 = vpop.f32.mrf.mxu3 }
 0x147   :  { %v1248_v9 = vadd.f32 %v2817_v55, %v1149_v34  ;;  %v2077_v55 = vld [vmem:[%s3128_s0 + $0x248] sm:$0xf0]  ;;  %v1052_v62 = vadd.f32 %v1051_v47, %v2532_v19  ;;  %v1814_v19 = vld [vmem:[%s3128_s0 + $0x29c] sm:$0xf0] }
 0x148   :  { %v1773_v6 = vor.u32 %v2077_v55, %v1772_v12  ;;  %v1817_v34 = vor.u32 %v2085_v22, %v1814_v19  ;;  %v1789_v22 = vor.u32 %v2079_v63, %v1786_v0 }
 0x149   :  { %v1348_v16 = vpop.f32.mrf.mxu0  ;;  %v2892_v42 = vadd.f32 %v1346_v60, %v1248_v9 }
 0x14b   :  { %v1412_v57 = vmax.f32 %v2751_v25, %v2892_v42 }
 0x14c   :  { %v1150_v1 = vpop.f32.mrf.mxu2 }
 0x14d   :  { %v1151_v3 = vadd.f32 %v1150_v1, %v1052_v62 }
 0x14e   :  { %v1054_v8 = vpop.f32.mrf.mxu1  ;;  %v2922_v46 = vpop.f32.mrf.mxu3 }
 0x14f   :  { %v1250_v60 = vadd.f32 %v2846_v20, %v1151_v3  ;;  %v1055_v9 = vadd.f32 %v1054_v8, %v2558_v31  ;;  %v1792_v31 = vld [vmem:[%s3128_s0 + $0x260] sm:$0xf] }
 0x151   :  { %v1351_v33 = vpop.f32.mrf.mxu0  ;;  %v2924_v24 = vadd.f32 %v1348_v16, %v1250_v60  ;;  %1093 = vmatmul.bf16.gmra.mxu1 %v1769_v5  ;;  %1192 = vmatmul.bf16.gmra.mxu2 %v1773_v6  ;;  %v1800_v5 = vld [vmem:[%s3128_s0 + $0x268] sm:$0xf]  ;;  %v2083_v6 = vld [vmem:[%s3128_s0 + $0x278] sm:$0xf0] }
 0x153   :  { %v1413_v47 = vmax.f32 %v2755_v23, %v2924_v24  ;;  %1301 = vmatmul.bf16.gmra.mxu3 %v1817_v34  ;;  %v2090_v34 = vld [vmem:[%s3128_s0 + $0x2b4] sm:$0xf] }
 0x154   :  { %2000 = vmatmul.msk.bf16.gmra.mxu0 %vm861_vm0, %v1781_v52  ;;  %v1153_v35 = vpop.f32.mrf.mxu2 }
 0x155   :  { %v1154_v54 = vadd.f32 %v1153_v35, %v1055_v9 }
 0x156   :  { %v1056_v12 = vpop.f32.mrf.mxu1  ;;  %v1262_v62 = vpop.f32.mrf.mxu3 }
 0x157   :  { %v1253_v20 = vadd.f32 %v2852_v11, %v1154_v54  ;;  %v2082_v11 = vld [vmem:[%s3128_s0 + $0x270] sm:$0xf0]  ;;  %v1057_v3 = vadd.f32 %v1056_v12, %v2573_v39  ;;  %v1834_v39 = vld [vmem:[%s3128_s0 + $0x2c4] sm:$0xf0] }
 0x158   :  { %v1793_v19 = vor.u32 %v2082_v11, %v1792_v31 }
 0x159   :  { %v1353_v55 = vpop.f32.mrf.mxu0  ;;  %v2931_v16 = vadd.f32 %v1351_v33, %v1253_v20  ;;  %v1801_v33 = vor.u32 %v2083_v6, %v1800_v5  ;;  %v1837_v20 = vor.u32 %v2090_v34, %v1834_v39 }
 0x15b   :  { %v1414_v1 = vmax.f32 %v2782_v26, %v2931_v16 }
 0x15c   :  { %v1155_v8 = vpop.f32.mrf.mxu2 }
 0x15d   :  { %v1156_v52 = vadd.f32 %v1155_v8, %v1057_v3  ;;  %v2084_v8 = vld [vmem:[%s3128_s0 + $0x284] sm:$0xf] }
 0x15e   :  { %v1059_v60 = vpop.f32.mrf.mxu1  ;;  %v1264_v54 = vpop.f32.mrf.mxu3 }
 0x15f   :  { %v1255_v9 = vadd.f32 %v2881_v40, %v1156_v52  ;;  %v1060_v0 = vadd.f32 %v1059_v60, %v2599_v51  ;;  %v1806_v52 = vld [vmem:[%s3128_s0 + $0x294] sm:$0xf0]  ;;  %v1812_v51 = vld [vmem:[%s3128_s0 + $0x288] sm:$0xf]  ;;  %v1820_v60 = vld [vmem:[%s3128_s0 + $0x290] sm:$0xf] }
 0x161   :  { %v1356_v35 = vpop.f32.mrf.mxu0  ;;  %v2961_v12 = vadd.f32 %v1353_v55, %v1255_v9  ;;  %1098 = vmatmul.bf16.gmra.mxu1 %v1789_v22  ;;  %1197 = vmatmul.bf16.gmra.mxu2 %v1793_v19  ;;  %v1809_v9 = vor.u32 %v2084_v8, %v1806_v52 }
 0x163   :  { %1306 = vmatmul.bf16.gmra.mxu3 %v1837_v20  ;;  %v3131_v26 = vmax.f32 %v2786_v53, %v2961_v12 }
 0x164   :  { %2001 = vmatmul.msk.bf16.gmra.mxu0 %vm861_vm0, %v1801_v33  ;;  %v1158_v31 = vpop.f32.mrf.mxu2  ;;  %v2088_v33 = vld [vmem:[%s3128_s0 + $0x2a0] sm:$0xf0] }
 0x165   :  { %v1159_v11 = vadd.f32 %v1158_v31, %v1060_v0  ;;  %v1821_v0 = vor.u32 %v2088_v33, %v1820_v60  ;;  %v1826_v33 = vld [vmem:[%s3128_s0 + $0x2bc] sm:$0xf0] }
 0x166   :  { %v1061_v3 = vpop.f32.mrf.mxu1  ;;  %v1267_v6 = vpop.f32.mrf.mxu3 }
 0x167   :  { %v1258_v40 = vadd.f32 %v2890_v45, %v1159_v11  ;;  %v2087_v45 = vld [vmem:[%s3128_s0 + $0x298] sm:$0xf0]  ;;  %v1062_v19 = vadd.f32 %v1061_v3, %v2614_v59 }
 0x169   :  { %v1358_v5 = vpop.f32.mrf.mxu0  ;;  %v2968_v55 = vadd.f32 %v1356_v35, %v1258_v40  ;;  %v1813_v35 = vor.u32 %v2087_v45, %v1812_v51 }
 0x16c   :  { %v1160_v34 = vpop.f32.mrf.mxu2 }
 0x16d   :  { %v1161_v39 = vadd.f32 %v1160_v34, %v1062_v19 }
 0x16e   :  { %v1064_v20 = vpop.f32.mrf.mxu1  ;;  %v1269_v40 = vpop.f32.mrf.mxu3 }
 0x16f   :  { %v1260_v31 = vadd.f32 %v2922_v46, %v1161_v39  ;;  %v1065_v3 = vadd.f32 %v1064_v20, %v2640_v7  ;;  %v1832_v7 = vld [vmem:[%s3128_s0 + $0x2b0] sm:$0xf] }
 0x171   :  { %v1361_v11 = vpop.f32.mrf.mxu0  ;;  %v2992_v22 = vadd.f32 %v1358_v5, %v1260_v31  ;;  %1103 = vmatmul.bf16.gmra.mxu1 %v1809_v9  ;;  %1202 = vmatmul.bf16.gmra.mxu2 %v1813_v35  ;;  %v2089_v5 = vld [vmem:[%s3128_s0 + $0x2ac] sm:$0xf]  ;;  %v1840_v9 = vld [vmem:[%s3128_s0 + $0x2b8] sm:$0xf] }
 0x172   :  { %v2093_v35 = vld [vmem:[%s3128_s0 + $0x2c8] sm:$0xf0]  ;;  %v1829_v31 = vor.u32 %v2089_v5, %v1826_v33 }
 0x174   :  { %2002 = vmatmul.msk.bf16.gmra.mxu0 %vm861_vm0, %v1821_v0  ;;  %v1163_v19 = vpop.f32.mrf.mxu2 }
 0x175   :  { %v1164_v8 = vadd.f32 %v1163_v19, %v1065_v3  ;;  %v1841_v19 = vor.u32 %v2093_v35, %v1840_v9 }
 0x176   :  { %v1066_v52 = vpop.f32.mrf.mxu1  ;;  %v1272_v60 = vpop.f32.mrf.mxu3 }
 0x177   :  { %v1263_v51 = vadd.f32 %v1262_v62, %v1164_v8  ;;  %v2092_v62 = vld [vmem:[%s3128_s0 + $0x2c0] sm:$0xf0]  ;;  %v1067_v39 = vadd.f32 %v1066_v52, %v2655_v17 }
 0x179   :  { %v1363_v45 = vpop.f32.mrf.mxu0  ;;  %v2998_v46 = vadd.f32 %v1361_v11, %v1263_v51  ;;  %v1833_v11 = vor.u32 %v2092_v62, %v1832_v7 }
 0x17c   :  { %v1165_v20 = vpop.f32.mrf.mxu2 }
 0x17d   :  { %v1166_v0 = vadd.f32 %v1165_v20, %v1067_v39 }
 0x17e   :  { %v1069_v3 = vpop.f32.mrf.mxu1  ;;  %v1274_v17 = vpop.f32.mrf.mxu3 }
 0x17f   :  { %v1265_v8 = vadd.f32 %v1264_v54, %v1166_v0  ;;  %v1070_v34 = vadd.f32 %v1069_v3, %v2679_v37 }
 0x181   :  { %v1366_v51 = vpop.f32.mrf.mxu0  ;;  %v3021_v59 = vadd.f32 %v1363_v45, %v1265_v8  ;;  %1108 = vmatmul.bf16.gmra.mxu1 %v1829_v31  ;;  %1207 = vmatmul.bf16.gmra.mxu2 %v1833_v11 }
 0x183   :  { %v1419_v52 = vmax.f32 %v2854_v10, %v3021_v59 }
 0x184   :  { %2003 = vmatmul.msk.bf16.gmra.mxu0 %vm861_vm0, %v1841_v19  ;;  %v1168_v63 = vpop.f32.mrf.mxu2 }
 0x185   :  { %v1169_v39 = vadd.f32 %v1168_v63, %v1070_v34 }
 0x186   :  { %v1071_v5 = vpop.f32.mrf.mxu1  ;;  %v1277_v9 = vpop.f32.mrf.mxu3 }
 0x187   :  { %v1268_v33 = vadd.f32 %v1267_v6, %v1169_v39  ;;  %v1072_v54 = vadd.f32 %v1071_v5, %v2692_v50 }
 0x189   :  { %v1368_v7 = vpop.f32.mrf.mxu0  ;;  %v3027_v62 = vadd.f32 %v1366_v51, %v1268_v33 }
 0x18c   :  { %v1170_v45 = vpop.f32.mrf.mxu2 }
 0x18d   :  { %v1171_v35 = vadd.f32 %v1170_v45, %v1072_v54 }
 0x18e   :  { %v1074_v20 = vpop.f32.mrf.mxu1  ;;  %v1279_v34 = vpop.f32.mrf.mxu3 }
 0x18f   :  { %v1270_v0 = vadd.f32 %v1269_v40, %v1171_v35  ;;  %v1075_v19 = vadd.f32 %v1074_v20, %v2530_v18 }
 0x191   :  { %v1371_v31 = vpop.f32.mrf.mxu0  ;;  %v3030_v11 = vadd.f32 %v1368_v7, %v1270_v0 }
 0x194   :  { %v1173_v37 = vpop.f32.mrf.mxu2 }
 0x195   :  { %v1174_v3 = vadd.f32 %v1173_v37, %v1075_v19 }
 0x196   :  { %v1076_v63 = vpop.f32.mrf.mxu1  ;;  %v1282_v45 = vpop.f32.mrf.mxu3 }
 0x197   :  { %v1273_v6 = vadd.f32 %v1272_v60, %v1174_v3  ;;  %v1077_v50 = vadd.f32 %v1076_v63, %v2556_v28 }
 0x199   :  { %v1373_v8 = vpop.f32.mrf.mxu0  ;;  %v3033_v51 = vadd.f32 %v1371_v31, %v1273_v6 }
 0x19c   :  { %v1175_v39 = vpop.f32.mrf.mxu2 }
 0x19d   :  { %v1176_v5 = vadd.f32 %v1175_v39, %v1077_v50 }
 0x19e   :  { %v1079_v33 = vpop.f32.mrf.mxu1  ;;  %v1284_v31 = vpop.f32.mrf.mxu3 }
 0x19f   :  { %v1275_v54 = vadd.f32 %v1274_v17, %v1176_v5  ;;  %v1080_v18 = vadd.f32 %v1079_v33, %v2571_v38 }
 0x1a1   :  { %v1376_v40 = vpop.f32.mrf.mxu0  ;;  %v3036_v7 = vadd.f32 %v1373_v8, %v1275_v54 }
 0x1a4   :  { %v1178_v35 = vpop.f32.mrf.mxu2 }
 0x1a5   :  { %v1179_v20 = vadd.f32 %v1178_v35, %v1080_v18 }
 0x1a6   :  { %v1081_v0 = vpop.f32.mrf.mxu1  ;;  %v1287_v5 = vpop.f32.mrf.mxu3 }
 0x1a7   :  { %v1278_v19 = vadd.f32 %v1277_v9, %v1179_v20  ;;  %v1082_v28 = vadd.f32 %v1081_v0, %v2597_v48 }
 0x1a9   :  { %v1378_v60 = vpop.f32.mrf.mxu0  ;;  %v3039_v37 = vadd.f32 %v1376_v40, %v1278_v19 }
 0x1ac   :  { %v1180_v3 = vpop.f32.mrf.mxu2 }
 0x1ad   :  { %v1181_v63 = vadd.f32 %v1180_v3, %v1082_v28 }
 0x1ae   :  { %v1084_v6 = vpop.f32.mrf.mxu1  ;;  %v1289_v19 = vpop.f32.mrf.mxu3 }
 0x1af   :  { %v1280_v17 = vadd.f32 %v1279_v34, %v1181_v63  ;;  %v1085_v8 = vadd.f32 %v1084_v6, %v2612_v58 }
 0x1b1   :  { %v1381_v50 = vpop.f32.mrf.mxu0  ;;  %v3042_v39 = vadd.f32 %v1378_v60, %v1280_v17 }
 0x1b4   :  { %v1183_v38 = vpop.f32.mrf.mxu2 }
 0x1b5   :  { %v1184_v33 = vadd.f32 %v1183_v38, %v1085_v8 }
 0x1b6   :  { %v1086_v54 = vpop.f32.mrf.mxu1  ;;  %v1292_v8 = vpop.f32.mrf.mxu3 }
 0x1b7   :  { %v1283_v9 = vadd.f32 %v1282_v45, %v1184_v33  ;;  %v1087_v35 = vadd.f32 %v1086_v54, %v2638_v4 }
 0x1b9   :  { %v1383_v18 = vpop.f32.mrf.mxu0  ;;  %v3045_v40 = vadd.f32 %v1381_v50, %v1283_v9 }
 0x1bc   :  { %v1185_v48 = vpop.f32.mrf.mxu2 }
 0x1bd   :  { %v1186_v20 = vadd.f32 %v1185_v48, %v1087_v35 }
 0x1be   :  { %v1089_v0 = vpop.f32.mrf.mxu1 }
 0x1bf   :  { %v1285_v34 = vadd.f32 %v1284_v31, %v1186_v20  ;;  %v1090_v58 = vadd.f32 %v1089_v0, %v2653_v15 }
 0x1c1   :  { %v1386_v28 = vpop.f32.mrf.mxu0  ;;  %v3048_v60 = vadd.f32 %v1383_v18, %v1285_v34  ;;  %v1294_v18 = vpop.f32.mrf.mxu3 }
 0x1c4   :  { %v1188_v3 = vpop.f32.mrf.mxu2 }
 0x1c5   :  { %v1189_v63 = vadd.f32 %v1188_v3, %v1090_v58 }
 0x1c6   :  { %v1091_v6 = vpop.f32.mrf.mxu1 }
 0x1c7   :  { %v1288_v17 = vadd.f32 %v1287_v5, %v1189_v63  ;;  %v1092_v4 = vadd.f32 %v1091_v6, %v2677_v32 }
 0x1c9   :  { %v1388_v45 = vpop.f32.mrf.mxu0  ;;  %v3051_v50 = vadd.f32 %v1386_v28, %v1288_v17  ;;  %v1297_v63 = vpop.f32.mrf.mxu3 }
 0x1cc   :  { %v1190_v38 = vpop.f32.mrf.mxu2 }
 0x1cd   :  { %v1191_v33 = vadd.f32 %v1190_v38, %v1092_v4 }
 0x1ce   :  { %v1094_v54 = vpop.f32.mrf.mxu1 }
 0x1cf   :  { %v1290_v9 = vadd.f32 %v1289_v19, %v1191_v33  ;;  %v1095_v15 = vadd.f32 %v1094_v54, %v2690_v49  ;;  %v3062_v19 = vld [vmem:[%s3129_s2] ss:$0 sm:$0xff] }
 0x1d1   :  { %v1391_v31 = vpop.f32.mrf.mxu0  ;;  %v1389_v35 = vadd.f32 %v1388_v45, %v1290_v9 }
 0x1d3   :  { %v1420_v48 = vmax.f32 %v3027_v62, %v1389_v35 }
 0x1d4   :  { %v1193_v20 = vpop.f32.mrf.mxu2 }
 0x1d5   :  { %v1429_v5 = vmax.f32 %v1411_v44, %v1420_v48  ;;  %v1194_v0 = vadd.f32 %v1193_v20, %v1095_v15 }
 0x1d6   :  { %v1096_v34 = vpop.f32.mrf.mxu1 }
 0x1d7   :  { %v1293_v28 = vadd.f32 %v1292_v8, %v1194_v0  ;;  %v1097_v62 = vadd.f32 %v1096_v34, %v2714_v2  ;;  %v1442_v6 = vadd.f32 %v3062_v19, %v1429_v5 }
 0x1d9   :  { %v1393_v32 = vpop.f32.mrf.mxu0  ;;  %v1392_v58 = vadd.f32 %v1391_v31, %v1293_v28  ;;  %v1451_v4 = vmax.f32 %v1442_v6, 0.0  ;;  %v1299_v31 = vpop.f32.mrf.mxu3 }
 0x1db   :  { %v1421_v3 = vmax.f32 %v3030_v11, %v1392_v58 }
 0x1dc   :  { %v1195_v49 = vpop.f32.mrf.mxu2 }
 0x1dd   :  { %v1430_v43 = vmax.f32 %v1412_v57, %v1421_v3  ;;  %v1196_v30 = vadd.f32 %v1195_v49, %v1097_v62 }
 0x1de   :  { %v1099_v44 = vpop.f32.mrf.mxu1 }
 0x1df   :  { %v1443_v17 = vadd.f32 %v3062_v19, %v1430_v43  ;;  %v1295_v45 = vadd.f32 %v1294_v18, %v1196_v30  ;;  %v1100_v54 = vadd.f32 %v1099_v44, %v2536_v21 }
 0x1e1   :  { %v1396_v8 = vpop.f32.mrf.mxu0  ;;  %v1452_v38 = vmax.f32 %v1443_v17, 0.0  ;;  %v1394_v33 = vadd.f32 %v1393_v32, %v1295_v45  ;;  %v1302_v34 = vpop.f32.mrf.mxu3 }
 0x1e3   :  { %v2133_v11 = vpack.c.bf16 %v1452_v38, %v1451_v4  ;;  %v1422_v2 = vmax.f32 %v3033_v51, %v1394_v33 }
 0x1e4   :  { %v1198_v9 = vpop.f32.mrf.mxu2 }
 0x1e5   :  { %2134 = vst [vmem:[%s3130_s3] sm:$0xff] %v2133_v11   ;;  %v1431_v25 = vmax.f32 %v1413_v47, %v1422_v2  ;;  %v1199_v42 = vadd.f32 %v1198_v9, %v1100_v54 }
 0x1e6   :  { %v1101_v57 = vpop.f32.mrf.mxu1 }
 0x1e7   :  { %v1298_v35 = vadd.f32 %v1297_v63, %v1199_v42  ;;  %v1102_v51 = vadd.f32 %v1101_v57, %v2568_v36  ;;  %v1444_v20 = vadd.f32 %v3062_v19, %v1431_v25 }
 0x1e9   :  { %v1398_v18 = vpop.f32.mrf.mxu0  ;;  %v1397_v48 = vadd.f32 %v1396_v8, %v1298_v35  ;;  %v1453_v28 = vmax.f32 %v1444_v20, 0.0  ;;  %v1304_v30 = vpop.f32.mrf.mxu3  ;;  %v3132_v8 = vmax.f32 %v2813_v27, %v2968_v55  ;;  %v3133_v27 = vmax.f32 %v2819_v14, %v2992_v22 }
 0x1eb   :  { %v1423_v15 = vmax.f32 %v3036_v7, %v1397_v48 }
 0x1ec   :  { %v1200_v21 = vpop.f32.mrf.mxu2 }
 0x1ed   :  { %v1432_v5 = vmax.f32 %v1414_v1, %v1423_v15  ;;  %v1201_v0 = vadd.f32 %v1200_v21, %v1102_v51  ;;  %v3134_v21 = vmax.f32 %v2848_v29, %v2998_v46 }
 0x1ee   :  { %v1104_v23 = vpop.f32.mrf.mxu1 }
 0x1ef   :  { %v1445_v24 = vadd.f32 %v3062_v19, %v1432_v5  ;;  %v1300_v47 = vadd.f32 %v1299_v31, %v1201_v0  ;;  %v1105_v62 = vadd.f32 %v1104_v23, %v2577_v41 }
 0x1f1   :  { %v1454_v32 = vmax.f32 %v1445_v24, 0.0  ;;  %v1399_v58 = vadd.f32 %v1398_v18, %v1300_v47  ;;  %v1401_v3 = vpop.f32.mrf.mxu0  ;;  %v1307_v25 = vpop.f32.mrf.mxu3 }
 0x1f3   :  { %v2138_v7 = vpack.c.bf16 %v1454_v32, %v1453_v28  ;;  %v1424_v36 = vmax.f32 %v3039_v37, %v1399_v58 }
 0x1f4   :  { %v1203_v49 = vpop.f32.mrf.mxu2 }
 0x1f5   :  { %2150 = vst [vmem:[%s3130_s3 + $0x8] sm:$0xff] %v2138_v7   ;;  %v1433_v16 = vmax.f32 %v3131_v26, %v1424_v36  ;;  %v1204_v1 = vadd.f32 %v1203_v49, %v1105_v62 }
 0x1f6   :  { %v1106_v63 = vpop.f32.mrf.mxu1 }
 0x1f7   :  { %v1303_v6 = vadd.f32 %v1302_v34, %v1204_v1  ;;  %v1107_v37 = vadd.f32 %v1106_v63, %v2609_v56  ;;  %v1446_v45 = vadd.f32 %v3062_v19, %v1433_v16 }
 0x1f9   :  { %v1402_v43 = vadd.f32 %v1401_v3, %v1303_v6  ;;  %v1403_v17 = vpop.f32.mrf.mxu0  ;;  %v1455_v11 = vmax.f32 %v1446_v45, 0.0  ;;  %v1309_v0 = vpop.f32.mrf.mxu3 }
 0x1fb   :  { %v1425_v44 = vmax.f32 %v3042_v39, %v1402_v43 }
 0x1fc   :  { %v1205_v41 = vpop.f32.mrf.mxu2 }
 0x1fd   :  { %v1434_v4 = vmax.f32 %v3132_v8, %v1425_v44  ;;  %v1206_v38 = vadd.f32 %v1205_v41, %v1107_v37 }
 0x1fe   :  { %v1109_v53 = vpop.f32.mrf.mxu1 }
 0x1ff   :  { %v1447_v12 = vadd.f32 %v3062_v19, %v1434_v4  ;;  %v1305_v33 = vadd.f32 %v1304_v30, %v1206_v38  ;;  %v1110_v56 = vadd.f32 %v1109_v53, %v2618_v61 }
 0x201   :  { %v1456_v2 = vmax.f32 %v1447_v12, 0.0  ;;  %v1404_v54 = vadd.f32 %v1403_v17, %v1305_v33  ;;  %v1406_v31 = vpop.f32.mrf.mxu0 }
 0x203   :  { %v2143_v9 = vpack.c.bf16 %v1456_v2, %v1455_v11  ;;  %v1426_v39 = vmax.f32 %v3045_v40, %v1404_v54 }
 0x204   :  { %v1208_v42 = vpop.f32.mrf.mxu2 }
 0x205   :  { %2151 = vst [vmem:[%s3130_s3 + $0x10] sm:$0xff] %v2143_v9   ;;  %v1435_v55 = vmax.f32 %v3133_v27, %v1426_v39  ;;  %v1209_v57 = vadd.f32 %v1208_v42, %v1110_v56 }
 0x206   :  { %v1111_v18 = vpop.f32.mrf.mxu1 }
 0x207   :  { %v1308_v35 = vadd.f32 %v1307_v25, %v1209_v57  ;;  %v1112_v40 = vadd.f32 %v1111_v18, %v2650_v13  ;;  %v1448_v51 = vadd.f32 %v3062_v19, %v1435_v55 }
 0x209   :  { %v1407_v48 = vadd.f32 %v1406_v31, %v1308_v35  ;;  %v1408_v23 = vpop.f32.mrf.mxu0  ;;  %v1457_v24 = vmax.f32 %v1448_v51, 0.0 }
 0x20b   :  { %v1427_v15 = vmax.f32 %v3048_v60, %v1407_v48 }
 0x20c   :  { %v1210_v61 = vpop.f32.mrf.mxu2 }
 0x20d   :  { %v1436_v20 = vmax.f32 %v3134_v21, %v1427_v15  ;;  %v1211_v5 = vadd.f32 %v1210_v61, %v1112_v40 }
 0x20f   :  { %v1449_v14 = vadd.f32 %v3062_v19, %v1436_v20  ;;  %v1310_v22 = vadd.f32 %v1309_v0, %v1211_v5 }
 0x211   :  { %v1458_v47 = vmax.f32 %v1449_v14, 0.0  ;;  %v1409_v34 = vadd.f32 %v1408_v23, %v1310_v22 }
 0x213   :  { %v2148_v28 = vpack.c.bf16 %v1458_v47, %v1457_v24  ;;  %v1428_v60 = vmax.f32 %v3051_v50, %v1409_v34 }
 0x215   :  { %2152 = vst [vmem:[%s3130_s3 + $0x18] sm:$0xff] %v2148_v28   ;;  %v1437_v13 = vmax.f32 %v1419_v52, %v1428_v60 }
 0x217   :  { %v1450_v29 = vadd.f32 %v3062_v19, %v1437_v13 }
 0x219   :  { %v1459_v46 = vmax.f32 %v1450_v29, 0.0 }
 0x21b   :  { %v1468_v32 = vpack.c.bf16 %v1459_v46, %v1459_v46 }
 0x21d   :  { %1477 = vst [vmem:[%s3130_s3 + $0x20] sm:$0xf] %v1468_v32 }

// kernel: asthecitiy_forward.7
= control target key start
LH: loop header
LB: loop body
LE: loop exit
PB: predicated region body
PF: predicated region fallthrough
CT: control target
= control target key end

     0   :  { %10 = vsyncpa [#allocation4], 0  ;;  %s2536_s18 = smov 0   ;;  %s2949_s0 = inlined_call_operand.vmem [shape: bf16[2,4608], index: 0, kind: input, shape index: {}]   ;;  %s2950_s1 = inlined_call_operand.vmem [shape: bf16[4608,256], index: 1, kind: input, shape index: {}]   ;;  %s2951_s2 = inlined_call_operand.vmem [shape: f32[1,256], index: 2, kind: input, shape index: {}]   ;;  %s2952_s3 = inlined_call_operand.vmem [shape: bf16[256,2], index: 3, kind: input, shape index: {}]   ;;  %s2953_s4 = inlined_call_operand.vmem [shape: f32[1,2], index: 4, kind: input, shape index: {}]   ;;  %s2954_s5 = inlined_call_operand.hbm [shape: f32[2,2], index: 5, kind: output, shape index: {}]  }
   0x1 LB: > { %s2542_s19 = sadd.s32 4294967295, %s2502_s18   ;;  %p1632_p0 = scmp.ge.s32.totalorder %s2502_s18, 1  ;;  %s2502_s18 = sphi %s2536_s18, %s16_s18  }
   0x2   : > { %p195_p1 = scmp.lt.s32.totalorder %s2502_s18, 5 }
   0x4   : > { %p196_p2 = pnand %p1632_p0, %p195_p1 }
   0x5   : > { %s223_s20 = smul.u32 (!%p196_p2), 9, %s2542_s19  ;;  %p1635_p5 = scmp.ne.s32.totalorder (!%p196_p2), %s2542_s19, 0 }
   0x6   : > { %199 = sbr.rel (%p196_p2) target bundleno = 514 (0x202), region = 40 }
   0x7   : > { %s228_s21 = smul.u32 (!%p196_p2), 144, %s2542_s19  ;;  %p224_p3 = scmp.lt.s32.totalorder (!%p196_p2), %s223_s20, 35 }
   0x9   : > { %p229_p4 = scmp.lt.s32.totalorder (!%p196_p2), %s228_s21, 575 }
   0xb   : > { %s2956_s20 = smov (!%p224_p3, %s223_s20), 35  ;;  %s2958_s21 = smov (!%p229_p4, %s228_s21), 575 }
   0xc   : > { %s2551_s24 = scalar_lea.vmem %s2949_s0, %s2956_s20  ;;  %s2282_s25 = sshll.u32 %s2958_s21, 3 }
   0xd   : > { %s2556_s28 = scalar_lea.vmem %s2950_s1, %s2282_s25  ;;  %238 = sbr.rel (%p1635_p5) target bundleno = 20 (0x14), region = 44 }
  0x12   : > { %v2504_v0 = vmov 0.0  }
  0x13   : > { %239 = vst [vmem:[#allocation2] sm:$0xf] %v2504_v0 }
  0x14 PF: > { %v1694_v1 = vld [vmem:[%s2556_s28 + $0x70] sm:$0xf]  ;;  %v2298_v2 = vld [vmem:[%s2556_s28 + $0x74] sm:$0xf0]  ;;  %v1686_v12 = vld [vmem:[%s2556_s28 + $0x60] sm:$0xf] }
  0x15   : > { %v1758_v3 = vld [vmem:[%s2556_s28 + $0xf0] sm:$0xf]  ;;  %v1695_v4 = vor.u32 %v2298_v2, %v1694_v1  ;;  %v2314_v5 = vld [vmem:[%s2556_s28 + $0xf4] sm:$0xf0]  ;;  %v2296_v14 = vld [vmem:[%s2556_s28 + $0x64] sm:$0xf0] }
  0x16   : > { %v1822_v6 = vld [vmem:[%s2556_s28 + $0x170] sm:$0xf]  ;;  %v2330_v7 = vld [vmem:[%s2556_s28 + $0x174] sm:$0xf0]  ;;  %v1759_v8 = vor.u32 %v2314_v5, %v1758_v3  ;;  %v1750_v15 = vld [vmem:[%s2556_s28 + $0xe0] sm:$0xf]  ;;  %v1687_v17 = vor.u32 %v2296_v14, %v1686_v12 }
  0x17   : > { %v1823_v9 = vor.u32 %v2330_v7, %v1822_v6  ;;  %v1886_v10 = vld [vmem:[%s2556_s28 + $0x1f0] sm:$0xf]  ;;  %v2346_v11 = vld [vmem:[%s2556_s28 + $0x1f4] sm:$0xf0]  ;;  %1129 = vmatpush.bf16.msra.mxu0 %v1695_v4  ;;  %v2312_v16 = vld [vmem:[%s2556_s28 + $0xe4] sm:$0xf0] }
  0x18   : > { %v1887_v13 = vor.u32 %v2346_v11, %v1886_v10  ;;  %1142 = vmatpush.bf16.msra.mxu1 %v1759_v8  ;;  %v1751_v18 = vor.u32 %v2312_v16, %v1750_v15  ;;  %v1814_v19 = vld [vmem:[%s2556_s28 + $0x160] sm:$0xf]  ;;  %v2328_v20 = vld [vmem:[%s2556_s28 + $0x164] sm:$0xf0]  ;;  %v1678_v24 = vld [vmem:[%s2556_s28 + $0x50] sm:$0xf] }
  0x19   : > { %1155 = vmatpush.bf16.msra.mxu2 %v1823_v9  ;;  %v1878_v21 = vld [vmem:[%s2556_s28 + $0x1e0] sm:$0xf]  ;;  %v1815_v22 = vor.u32 %v2328_v20, %v1814_v19  ;;  %v2344_v23 = vld [vmem:[%s2556_s28 + $0x1e4] sm:$0xf0]  ;;  %v2294_v25 = vld [vmem:[%s2556_s28 + $0x54] sm:$0xf0] }
  0x1a   : > { %1168 = vmatpush.bf16.msra.mxu3 %v1887_v13  ;;  %v1879_v26 = vor.u32 %v2344_v23, %v1878_v21  ;;  %v1742_v27 = vld [vmem:[%s2556_s28 + $0xd0] sm:$0xf]  ;;  %v2310_v28 = vld [vmem:[%s2556_s28 + $0xd4] sm:$0xf0]  ;;  %v1679_v30 = vor.u32 %v2294_v25, %v1678_v24  ;;  %v1670_v36 = vld [vmem:[%s2556_s28 + $0x40] sm:$0xf] }
  0x1b   : > { %v1806_v29 = vld [vmem:[%s2556_s28 + $0x150] sm:$0xf]  ;;  %1130 = vmatpush.bf16.msra.mxu0 %v1687_v17  ;;  %v2326_v31 = vld [vmem:[%s2556_s28 + $0x154] sm:$0xf0]  ;;  %v1743_v34 = vor.u32 %v2310_v28, %v1742_v27  ;;  %v2292_v37 = vld [vmem:[%s2556_s28 + $0x44] sm:$0xf0] }
  0x1c   : > { %v1870_v32 = vld [vmem:[%s2556_s28 + $0x1d0] sm:$0xf]  ;;  %v2342_v33 = vld [vmem:[%s2556_s28 + $0x1d4] sm:$0xf0]  ;;  %1143 = vmatpush.bf16.msra.mxu1 %v1751_v18  ;;  %v1807_v35 = vor.u32 %v2326_v31, %v1806_v29  ;;  %v1734_v38 = vld [vmem:[%s2556_s28 + $0xc0] sm:$0xf]  ;;  %v1671_v45 = vor.u32 %v2292_v37, %v1670_v36 }
  0x1d   : > { %1156 = vmatpush.bf16.msra.mxu2 %v1815_v22  ;;  %v1871_v39 = vor.u32 %v2342_v33, %v1870_v32  ;;  %v2308_v40 = vld [vmem:[%s2556_s28 + $0xc4] sm:$0xf0]  ;;  %v1798_v41 = vld [vmem:[%s2556_s28 + $0x140] sm:$0xf]  ;;  %v1662_v48 = vld [vmem:[%s2556_s28 + $0x30] sm:$0xf] }
  0x1e   : > { %1169 = vmatpush.bf16.msra.mxu3 %v1879_v26  ;;  %v2324_v42 = vld [vmem:[%s2556_s28 + $0x144] sm:$0xf0]  ;;  %v1862_v43 = vld [vmem:[%s2556_s28 + $0x1c0] sm:$0xf]  ;;  %v1735_v46 = vor.u32 %v2308_v40, %v1734_v38  ;;  %v2290_v49 = vld [vmem:[%s2556_s28 + $0x34] sm:$0xf0] }
  0x1f   : > { %v2340_v44 = vld [vmem:[%s2556_s28 + $0x1c4] sm:$0xf0]  ;;  %1131 = vmatpush.bf16.msra.mxu0 %v1679_v30  ;;  %v1799_v47 = vor.u32 %v2324_v42, %v1798_v41  ;;  %v1726_v50 = vld [vmem:[%s2556_s28 + $0xb0] sm:$0xf]  ;;  %v2306_v52 = vld [vmem:[%s2556_s28 + $0xb4] sm:$0xf0]  ;;  %v1663_v57 = vor.u32 %v2290_v49, %v1662_v48 }
  0x20   : > { %1144 = vmatpush.bf16.msra.mxu1 %v1743_v34  ;;  %v1863_v51 = vor.u32 %v2340_v44, %v1862_v43  ;;  %v1790_v53 = vld [vmem:[%s2556_s28 + $0x130] sm:$0xf]  ;;  %v2322_v54 = vld [vmem:[%s2556_s28 + $0x134] sm:$0xf0]  ;;  %v1727_v58 = vor.u32 %v2306_v52, %v1726_v50  ;;  %v1654_v60 = vld [vmem:[%s2556_s28 + $0x20] sm:$0xf] }
  0x21   : > { %1157 = vmatpush.bf16.msra.mxu2 %v1807_v35  ;;  %v1854_v55 = vld [vmem:[%s2556_s28 + $0x1b0] sm:$0xf]  ;;  %v2338_v56 = vld [vmem:[%s2556_s28 + $0x1b4] sm:$0xf0]  ;;  %v1791_v59 = vor.u32 %v2322_v54, %v1790_v53  ;;  %v2288_v61 = vld [vmem:[%s2556_s28 + $0x24] sm:$0xf0] }
  0x22   : > { %1170 = vmatpush.bf16.msra.mxu3 %v1871_v39  ;;  %v1718_v62 = vld [vmem:[%s2556_s28 + $0xa0] sm:$0xf]  ;;  %v1855_v63 = vor.u32 %v2338_v56, %v1854_v55  ;;  %v2304_v0 = vld [vmem:[%s2556_s28 + $0xa4] sm:$0xf0]  ;;  %v1655_v5 = vor.u32 %v2288_v61, %v1654_v60  ;;  %v1646_v8 = vld [vmem:[%s2556_s28 + $0x10] sm:$0xf] }
  0x23   : > { %1132 = vmatpush.bf16.msra.mxu0 %v1671_v45  ;;  %v1782_v1 = vld [vmem:[%s2556_s28 + $0x120] sm:$0xf]  ;;  %v2320_v2 = vld [vmem:[%s2556_s28 + $0x124] sm:$0xf0]  ;;  %v1719_v6 = vor.u32 %v2304_v0, %v1718_v62  ;;  %v2286_v9 = vld [vmem:[%s2556_s28 + $0x14] sm:$0xf0] }
  0x24   : > { %1145 = vmatpush.bf16.msra.mxu1 %v1735_v46  ;;  %v1846_v3 = vld [vmem:[%s2556_s28 + $0x1a0] sm:$0xf]  ;;  %v2336_v4 = vld [vmem:[%s2556_s28 + $0x1a4] sm:$0xf0]  ;;  %v1783_v7 = vor.u32 %v2320_v2, %v1782_v1  ;;  %v1710_v10 = vld [vmem:[%s2556_s28 + $0x90] sm:$0xf]  ;;  %v1647_v17 = vor.u32 %v2286_v9, %v1646_v8 }
  0x25   : > { %1158 = vmatpush.bf16.msra.mxu2 %v1799_v47  ;;  %v1847_v11 = vor.u32 %v2336_v4, %v1846_v3  ;;  %v2302_v12 = vld [vmem:[%s2556_s28 + $0x94] sm:$0xf0]  ;;  %v1774_v13 = vld [vmem:[%s2556_s28 + $0x110] sm:$0xf]  ;;  %v1638_v18 = vld [vmem:[%s2556_s28] sm:$0xf] }
  0x26   : > { %1171 = vmatpush.bf16.msra.mxu3 %v1863_v51  ;;  %v2318_v14 = vld [vmem:[%s2556_s28 + $0x114] sm:$0xf0]  ;;  %v1838_v15 = vld [vmem:[%s2556_s28 + $0x190] sm:$0xf]  ;;  %v2284_v19 = vld [vmem:[%s2556_s28 + $0x4] sm:$0xf0]  ;;  %v1711_v20 = vor.u32 %v2302_v12, %v1710_v10 }
  0x27   : > { %1133 = vmatpush.bf16.msra.mxu0 %v1663_v57  ;;  %v2334_v16 = vld [vmem:[%s2556_s28 + $0x194] sm:$0xf0]  ;;  %v1775_v21 = vor.u32 %v2318_v14, %v1774_v13  ;;  %v1702_v22 = vld [vmem:[%s2556_s28 + $0x80] sm:$0xf]  ;;  %v2300_v23 = vld [vmem:[%s2556_s28 + $0x84] sm:$0xf0]  ;;  %v1639_v32 = vor.u32 %v2284_v19, %v1638_v18 }
  0x28   : > { %1146 = vmatpush.bf16.msra.mxu1 %v1727_v58  ;;  %v1766_v24 = vld [vmem:[%s2556_s28 + $0x100] sm:$0xf]  ;;  %v1839_v25 = vor.u32 %v2334_v16, %v1838_v15  ;;  %v2316_v26 = vld [vmem:[%s2556_s28 + $0x104] sm:$0xf0]  ;;  %v1950_v27 = vld [vmem:[%s2556_s28 + $0x270] sm:$0xf]  ;;  %v1703_v36 = vor.u32 %v2300_v23, %v1702_v22 }
  0x29   : > { %1159 = vmatpush.bf16.msra.mxu2 %v1791_v59  ;;  %v2362_v28 = vld [vmem:[%s2556_s28 + $0x274] sm:$0xf0]  ;;  %v2014_v29 = vld [vmem:[%s2556_s28 + $0x2f0] sm:$0xf]  ;;  %v1830_v34 = vld [vmem:[%s2556_s28 + $0x180] sm:$0xf]  ;;  %v1767_v37 = vor.u32 %v2316_v26, %v1766_v24 }
  0x2a   : > { %1172 = vmatpush.bf16.msra.mxu3 %v1855_v63  ;;  %v2378_v30 = vld [vmem:[%s2556_s28 + $0x2f4] sm:$0xf0]  ;;  %v2078_v31 = vld [vmem:[%s2556_s28 + $0x370] sm:$0xf]  ;;  %v2332_v35 = vld [vmem:[%s2556_s28 + $0x184] sm:$0xf0]  ;;  %v1951_v40 = vor.u32 %v2362_v28, %v1950_v27 }
  0x2b   : > { %1134 = vmatpush.bf16.msra.mxu0 %v1655_v5  ;;  %v2394_v33 = vld [vmem:[%s2556_s28 + $0x374] sm:$0xf0]  ;;  %v2142_v38 = vld [vmem:[%s2556_s28 + $0x3f0] sm:$0xf]  ;;  %v2015_v41 = vor.u32 %v2378_v30, %v2014_v29  ;;  %v1942_v42 = vld [vmem:[%s2556_s28 + $0x260] sm:$0xf]  ;;  %v1831_v44 = vor.u32 %v2332_v35, %v1830_v34 }
  0x2c   : > { %1147 = vmatpush.bf16.msra.mxu1 %v1719_v6  ;;  %v2410_v39 = vld [vmem:[%s2556_s28 + $0x3f4] sm:$0xf0]  ;;  %v2079_v43 = vor.u32 %v2394_v33, %v2078_v31  ;;  %v2360_v45 = vld [vmem:[%s2556_s28 + $0x264] sm:$0xf0]  ;;  %v2006_v46 = vld [vmem:[%s2556_s28 + $0x2e0] sm:$0xf] }
  0x2d   : > { %1160 = vmatpush.bf16.msra.mxu2 %v1783_v7  ;;  %v2376_v47 = vld [vmem:[%s2556_s28 + $0x2e4] sm:$0xf0]  ;;  %v2143_v48 = vor.u32 %v2410_v39, %v2142_v38  ;;  %v2070_v49 = vld [vmem:[%s2556_s28 + $0x360] sm:$0xf]  ;;  %v1943_v53 = vor.u32 %v2360_v45, %v1942_v42  ;;  %v1934_v55 = vld [vmem:[%s2556_s28 + $0x250] sm:$0xf] }
  0x2e   : > { %1173 = vmatpush.bf16.msra.mxu3 %v1847_v11  ;;  %v2392_v50 = vld [vmem:[%s2556_s28 + $0x364] sm:$0xf0]  ;;  %v2134_v51 = vld [vmem:[%s2556_s28 + $0x3e0] sm:$0xf]  ;;  %v2007_v54 = vor.u32 %v2376_v47, %v2006_v46  ;;  %v2358_v56 = vld [vmem:[%s2556_s28 + $0x254] sm:$0xf0] }
  0x2f   : > { %1135 = vmatpush.bf16.msra.mxu0 %v1647_v17  ;;  %v2408_v52 = vld [vmem:[%s2556_s28 + $0x3e4] sm:$0xf0]  ;;  %v241_v57 = vld [vmem:[%s2551_s24] sm:$0xff]  ;;  %v2071_v58 = vor.u32 %v2392_v50, %v2070_v49  ;;  %v1998_v59 = vld [vmem:[%s2556_s28 + $0x2d0] sm:$0xf]  ;;  %v1935_v2 = vor.u32 %v2358_v56, %v1934_v55  ;;  %vm1366_vm0 = vcmask 1041408  }
  0x30   : > { %1148 = vmatpush.bf16.msra.mxu1 %v1711_v20  ;;  %v2374_v60 = vld [vmem:[%s2556_s28 + $0x2d4] sm:$0xf0]  ;;  %388 = vst [vmem:[#allocation1] ss:$9 sm:$0xff] %v241_v57  ;;  %v2135_v61 = vor.u32 %v2408_v52, %v2134_v51  ;;  %v2062_v62 = vld [vmem:[%s2556_s28 + $0x350] sm:$0xf] }
  0x31   : > { %1161 = vmatpush.bf16.msra.mxu2 %v1775_v21  ;;  %v2390_v63 = vld [vmem:[%s2556_s28 + $0x354] sm:$0xf0]  ;;  %v2126_v0 = vld [vmem:[%s2556_s28 + $0x3d0] sm:$0xf]  ;;  %v1999_v3 = vor.u32 %v2374_v60, %v1998_v59  ;;  %v1926_v4 = vld [vmem:[%s2556_s28 + $0x240] sm:$0xf] }
  0x32   : > { %1174 = vmatpush.bf16.msra.mxu3 %v1839_v25  ;;  %v2406_v1 = vld [vmem:[%s2556_s28 + $0x3d4] sm:$0xf0]  ;;  %v2063_v5 = vor.u32 %v2390_v63, %v2062_v62  ;;  %v2356_v6 = vld [vmem:[%s2556_s28 + $0x244] sm:$0xf0]  ;;  %v1990_v7 = vld [vmem:[%s2556_s28 + $0x2c0] sm:$0xf] }
  0x33   : > { %1136 = vmatpush.bf16.msra.mxu0 %v1639_v32  ;;  %v2372_v8 = vld [vmem:[%s2556_s28 + $0x2c4] sm:$0xf0]  ;;  %v2127_v9 = vor.u32 %v2406_v1, %v2126_v0  ;;  %v2054_v10 = vld [vmem:[%s2556_s28 + $0x340] sm:$0xf]  ;;  %v1918_v14 = vld [vmem:[%s2556_s28 + $0x230] sm:$0xf]  ;;  %v1927_v16 = vor.u32 %v2356_v6, %v1926_v4 }
  0x34   : > { %1149 = vmatpush.bf16.msra.mxu1 %v1703_v36  ;;  %v2388_v11 = vld [vmem:[%s2556_s28 + $0x344] sm:$0xf0]  ;;  %v2118_v12 = vld [vmem:[%s2556_s28 + $0x3c0] sm:$0xf]  ;;  %v2354_v15 = vld [vmem:[%s2556_s28 + $0x234] sm:$0xf0]  ;;  %v1991_v17 = vor.u32 %v2372_v8, %v1990_v7 }
  0x35   : > { %1162 = vmatpush.bf16.msra.mxu2 %v1767_v37  ;;  %v2404_v13 = vld [vmem:[%s2556_s28 + $0x3c4] sm:$0xf0]  ;;  %v2055_v21 = vor.u32 %v2388_v11, %v2054_v10  ;;  %v1982_v22 = vld [vmem:[%s2556_s28 + $0x2b0] sm:$0xf]  ;;  %v2370_v23 = vld [vmem:[%s2556_s28 + $0x2b4] sm:$0xf0]  ;;  %v1919_v30 = vor.u32 %v2354_v15, %v1918_v14 }
  0x36   : > { %1175 = vmatpush.bf16.msra.mxu3 %v1831_v44  ;;  %v2119_v25 = vor.u32 %v2404_v13, %v2118_v12  ;;  %v2046_v26 = vld [vmem:[%s2556_s28 + $0x330] sm:$0xf]  ;;  %v2386_v27 = vld [vmem:[%s2556_s28 + $0x334] sm:$0xf0]  ;;  %v1983_v31 = vor.u32 %v2370_v23, %v1982_v22  ;;  %v1910_v32 = vld [vmem:[%s2556_s28 + $0x220] sm:$0xf] }
  0x37   : > { %1181 = vmatpush.bf16.msrb.mxu0 %v1951_v40  ;;  %v2658_v18 = vld [vmem:[#allocation1 + $0x12] sm:$0xff]  ;;  %v2660_v19 = vld [vmem:[#allocation1] sm:$0xff]  ;;  %v2667_v24 = vld [vmem:[#allocation1 + $0x9] sm:$0xff]  ;;  %v2047_v33 = vor.u32 %v2386_v27, %v2046_v26  ;;  %p2212_p6 = scmp.ne.s32.totalorder %s2542_s19, 3 }
  0x38   : > { %1194 = vmatpush.bf16.msrb.mxu1 %v2015_v41  ;;  %v2662_v20 = vld [vmem:[#allocation1 + $0x1b] sm:$0xff]  ;;  %1137 = vmatmul.bf16.vlgmr.msra.gmra.mxu0 %v2660_v19  ;;  %v2110_v28 = vld [vmem:[%s2556_s28 + $0x3b0] sm:$0xf]  ;;  %v2352_v34 = vld [vmem:[%s2556_s28 + $0x224] sm:$0xf0] }
  0x39   : > { %1207 = vmatpush.bf16.msrb.mxu2 %v2079_v43  ;;  %1176 = vmatmul.bf16.vlgmr.msra.gmra.mxu3 %v2662_v20  ;;  %v2402_v29 = vld [vmem:[%s2556_s28 + $0x3b4] sm:$0xf0]  ;;  %v1974_v35 = vld [vmem:[%s2556_s28 + $0x2a0] sm:$0xf]  ;;  %v2368_v36 = vld [vmem:[%s2556_s28 + $0x2a4] sm:$0xf0]  ;;  %v1911_v44 = vor.u32 %v2352_v34, %v1910_v32 }
  0x3a   : > { %1220 = vmatpush.bf16.msrb.mxu3 %v2143_v48  ;;  %1163 = vmatmul.bf16.vlgmr.msra.gmra.mxu2 %v2658_v18  ;;  %v2111_v37 = vor.u32 %v2402_v29, %v2110_v28  ;;  %v2038_v38 = vld [vmem:[%s2556_s28 + $0x320] sm:$0xf]  ;;  %v2384_v39 = vld [vmem:[%s2556_s28 + $0x324] sm:$0xf0]  ;;  %v1902_v42 = vld [vmem:[%s2556_s28 + $0x210] sm:$0xf]  ;;  %v1975_v45 = vor.u32 %v2368_v36, %v1974_v35 }
  0x3b   : > { %1182 = vmatpush.bf16.msrb.mxu0 %v1943_v53  ;;  %1150 = vmatmul.bf16.vlgmr.msra.gmra.mxu1 %v2667_v24  ;;  %v2102_v40 = vld [vmem:[%s2556_s28 + $0x3a0] sm:$0xf]  ;;  %v2400_v41 = vld [vmem:[%s2556_s28 + $0x3a4] sm:$0xf0]  ;;  %v2350_v43 = vld [vmem:[%s2556_s28 + $0x214] sm:$0xf0]  ;;  %v2039_v49 = vor.u32 %v2384_v39, %v2038_v38 }
  0x3c   : > { %1195 = vmatpush.bf16.msrb.mxu1 %v2007_v54  ;;  %v1966_v46 = vld [vmem:[%s2556_s28 + $0x290] sm:$0xf]  ;;  %v2366_v47 = vld [vmem:[%s2556_s28 + $0x294] sm:$0xf0]  ;;  %v2692_v52 = vld [vmem:[#allocation1 + $0x24] sm:$0xff]  ;;  %v2103_v53 = vor.u32 %v2400_v41, %v2102_v40  ;;  %v1903_v59 = vor.u32 %v2350_v43, %v1902_v42 }
  0x3d   : > { %1208 = vmatpush.bf16.msrb.mxu2 %v2071_v58  ;;  %v2030_v48 = vld [vmem:[%s2556_s28 + $0x310] sm:$0xf]  ;;  %v2382_v50 = vld [vmem:[%s2556_s28 + $0x314] sm:$0xf0]  ;;  %v2694_v54 = vld [vmem:[#allocation1 + $0x3f] sm:$0xff]  ;;  %v1967_v60 = vor.u32 %v2366_v47, %v1966_v46 }
  0x3e   : > { %1221 = vmatpush.bf16.msrb.mxu3 %v2135_v61  ;;  %v2690_v51 = vld [vmem:[#allocation1 + $0x36] sm:$0xff]  ;;  %v242_v55 = vld [vmem:[%s2551_s24 + $0x8] sm:$0x1]  ;;  %v2697_v56 = vld [vmem:[#allocation1 + $0x2d] sm:$0xff]  ;;  %v2031_v0 = vor.u32 %v2382_v50, %v2030_v48 }
  0x3f   : > { %1183 = vmatpush.bf16.msrb.mxu0 %v1935_v2  ;;  %v2094_v57 = vld [vmem:[%s2556_s28 + $0x390] sm:$0xf]  ;;  %v2398_v58 = vld [vmem:[%s2556_s28 + $0x394] sm:$0xf0]  ;;  %398 = vst [vmem:[#allocation1] ss:$9 sm:$0xff] %v242_v55 }
  0x40   : > { %1196 = vmatpush.bf16.msrb.mxu1 %v1999_v3  ;;  %v1894_v61 = vld [vmem:[%s2556_s28 + $0x200] sm:$0xf]  ;;  %v2348_v62 = vld [vmem:[%s2556_s28 + $0x204] sm:$0xf0]  ;;  %v2095_v4 = vor.u32 %v2398_v58, %v2094_v57  ;;  %v2426_v6 = vld [vmem:[%s2556_s28 + $0x474] sm:$0xf0] }
  0x41   : > { %1209 = vmatpush.bf16.msrb.mxu2 %v2063_v5  ;;  %v1958_v63 = vld [vmem:[%s2556_s28 + $0x280] sm:$0xf]  ;;  %v2364_v1 = vld [vmem:[%s2556_s28 + $0x284] sm:$0xf0]  ;;  %v2206_v5 = vld [vmem:[%s2556_s28 + $0x470] sm:$0xf]  ;;  %v1895_v11 = vor.u32 %v2348_v62, %v1894_v61 }
  0x42   : > { %1222 = vmatpush.bf16.msrb.mxu3 %v2127_v9  ;;  %v2022_v2 = vld [vmem:[%s2556_s28 + $0x300] sm:$0xf]  ;;  %v2380_v3 = vld [vmem:[%s2556_s28 + $0x304] sm:$0xf0]  ;;  %v2297_v7 = vld [vmem:[%s2556_s28 + $0x74] sm:$0xf]  ;;  %v1959_v12 = vor.u32 %v2364_v1, %v1958_v63 }
  0x43   : > { %1184 = vmatpush.bf16.msrb.mxu0 %v1927_v16  ;;  %v1696_v8 = vld [vmem:[%s2556_s28 + $0x78] sm:$0xf0]  ;;  %v2313_v9 = vld [vmem:[%s2556_s28 + $0xf4] sm:$0xf]  ;;  %v2086_v13 = vld [vmem:[%s2556_s28 + $0x380] sm:$0xf]  ;;  %v2023_v15 = vor.u32 %v2380_v3, %v2022_v2  ;;  %v2207_v16 = vor.u32 %v2426_v6, %v2206_v5 }
  0x44   : > { %1197 = vmatpush.bf16.msrb.mxu1 %v1991_v17  ;;  %v1760_v10 = vld [vmem:[%s2556_s28 + $0xf8] sm:$0xf0]  ;;  %v2396_v14 = vld [vmem:[%s2556_s28 + $0x384] sm:$0xf0]  ;;  %v2329_v17 = vld [vmem:[%s2556_s28 + $0x174] sm:$0xf]  ;;  %v1699_v22 = vor.u32 %v2297_v7, %v1696_v8 }
  0x45   : > { %1210 = vmatpush.bf16.msrb.mxu2 %v2055_v21  ;;  %v1824_v21 = vld [vmem:[%s2556_s28 + $0x178] sm:$0xf0]  ;;  %v1763_v23 = vor.u32 %v2313_v9, %v1760_v10  ;;  %v2424_v26 = vld [vmem:[%s2556_s28 + $0x464] sm:$0xf0]  ;;  %v2295_v27 = vld [vmem:[%s2556_s28 + $0x64] sm:$0xf]  ;;  %v2087_v28 = vor.u32 %v2396_v14, %v2086_v13 }
  0x46   : > { %1223 = vmatpush.bf16.msrb.mxu3 %v2119_v25  ;;  %v2198_v25 = vld [vmem:[%s2556_s28 + $0x460] sm:$0xf]  ;;  %v1688_v29 = vld [vmem:[%s2556_s28 + $0x68] sm:$0xf0]  ;;  %v1827_v32 = vor.u32 %v2329_v17, %v1824_v21  ;;  %v2327_v34 = vld [vmem:[%s2556_s28 + $0x164] sm:$0xf] }
  0x47   : > { %1185 = vmatpush.bf16.msrb.mxu0 %v1919_v30  ;;  %v2311_v30 = vld [vmem:[%s2556_s28 + $0xe4] sm:$0xf]  ;;  %v1816_v35 = vld [vmem:[%s2556_s28 + $0x168] sm:$0xf0]  ;;  %v1691_v36 = vor.u32 %v2295_v27, %v1688_v29  ;;  %v2190_v38 = vld [vmem:[%s2556_s28 + $0x450] sm:$0xf] }
  0x48   : > { %1198 = vmatpush.bf16.msrb.mxu1 %v1983_v31  ;;  %v1752_v31 = vld [vmem:[%s2556_s28 + $0xe8] sm:$0xf0]  ;;  %v2422_v39 = vld [vmem:[%s2556_s28 + $0x454] sm:$0xf0]  ;;  %v2293_v40 = vld [vmem:[%s2556_s28 + $0x54] sm:$0xf] }
  0x49   : > { %1211 = vmatpush.bf16.msrb.mxu2 %v2047_v33  ;;  %v2199_v33 = vor.u32 %v2424_v26, %v2198_v25  ;;  %v1680_v41 = vld [vmem:[%s2556_s28 + $0x58] sm:$0xf0]  ;;  %v2309_v42 = vld [vmem:[%s2556_s28 + $0xd4] sm:$0xf]  ;;  %v2182_v50 = vld [vmem:[%s2556_s28 + $0x440] sm:$0xf] }
  0x4a   : > { %1224 = vmatpush.bf16.msrb.mxu3 %v2111_v37  ;;  %v1755_v37 = vor.u32 %v2311_v30, %v1752_v31  ;;  %v1744_v43 = vld [vmem:[%s2556_s28 + $0xd8] sm:$0xf0]  ;;  %v2325_v46 = vld [vmem:[%s2556_s28 + $0x154] sm:$0xf]  ;;  %v1683_v48 = vor.u32 %v2293_v40, %v1680_v41  ;;  %v2291_v55 = vld [vmem:[%s2556_s28 + $0x44] sm:$0xf] }
  0x4b   : > { %1186 = vmatpush.bf16.msrb.mxu0 %v1911_v44  ;;  %v1819_v44 = vor.u32 %v2327_v34, %v1816_v35  ;;  %v1808_v47 = vld [vmem:[%s2556_s28 + $0x158] sm:$0xf0]  ;;  %v1672_v57 = vld [vmem:[%s2556_s28 + $0x48] sm:$0xf0]  ;;  %v2307_v58 = vld [vmem:[%s2556_s28 + $0xc4] sm:$0xf] }
  0x4c   : > { %1199 = vmatpush.bf16.msrb.mxu1 %v1975_v45  ;;  %v2191_v45 = vor.u32 %v2422_v39, %v2190_v38  ;;  %v2323_v62 = vld [vmem:[%s2556_s28 + $0x144] sm:$0xf]  ;;  %v1800_v63 = vld [vmem:[%s2556_s28 + $0x148] sm:$0xf0]  ;;  %v2174_v2 = vld [vmem:[%s2556_s28 + $0x430] sm:$0xf] }
  0x4d   : > { %1212 = vmatpush.bf16.msrb.mxu2 %v2039_v49  ;;  %v1747_v49 = vor.u32 %v2309_v42, %v1744_v43  ;;  %v2418_v3 = vld [vmem:[%s2556_s28 + $0x434] sm:$0xf0]  ;;  %v1664_v5 = vld [vmem:[%s2556_s28 + $0x38] sm:$0xf0]  ;;  %v2305_v6 = vld [vmem:[%s2556_s28 + $0xb4] sm:$0xf]  ;;  %v1803_v8 = vor.u32 %v2323_v62, %v1800_v63 }
  0x4e   : > { %1225 = vmatpush.bf16.msrb.mxu3 %v2103_v53  ;;  %v2420_v53 = vld [vmem:[%s2556_s28 + $0x444] sm:$0xf0]  ;;  %v1728_v7 = vld [vmem:[%s2556_s28 + $0xb8] sm:$0xf0]  ;;  %v2175_v9 = vor.u32 %v2418_v3, %v2174_v2  ;;  %v2321_v10 = vld [vmem:[%s2556_s28 + $0x134] sm:$0xf] }
  0x4f   : > { %1187 = vmatpush.bf16.msrb.mxu0 %v1903_v59  ;;  %v1736_v59 = vld [vmem:[%s2556_s28 + $0xc8] sm:$0xf0]  ;;  %v2183_v61 = vor.u32 %v2420_v53, %v2182_v50  ;;  %v1731_v13 = vor.u32 %v2305_v6, %v1728_v7  ;;  %v2166_v14 = vld [vmem:[%s2556_s28 + $0x420] sm:$0xf]  ;;  %v2303_v21 = vld [vmem:[%s2556_s28 + $0xa4] sm:$0xf] }
  0x50   : > { %1200 = vmatpush.bf16.msrb.mxu1 %v1967_v60  ;;  %v1811_v60 = vor.u32 %v2325_v46, %v1808_v47  ;;  %v1739_v1 = vor.u32 %v2307_v58, %v1736_v59  ;;  %v1656_v17 = vld [vmem:[%s2556_s28 + $0x28] sm:$0xf0]  ;;  %v2319_v26 = vld [vmem:[%s2556_s28 + $0x124] sm:$0xf]  ;;  %v2158_v30 = vld [vmem:[%s2556_s28 + $0x410] sm:$0xf] }
  0x51   : > { %1213 = vmatpush.bf16.msrb.mxu2 %v2031_v0  ;;  %v1675_v0 = vor.u32 %v2291_v55, %v1672_v57  ;;  %v1784_v27 = vld [vmem:[%s2556_s28 + $0x128] sm:$0xf0]  ;;  %v2414_v31 = vld [vmem:[%s2556_s28 + $0x414] sm:$0xf0]  ;;  %v2301_v34 = vld [vmem:[%s2556_s28 + $0x94] sm:$0xf] }
  0x52   : > { %1226 = vmatpush.bf16.msrb.mxu3 %v2095_v4  ;;  %v2289_v4 = vld [vmem:[%s2556_s28 + $0x34] sm:$0xf]  ;;  %v1712_v35 = vld [vmem:[%s2556_s28 + $0x98] sm:$0xf0]  ;;  %v2150_v40 = vld [vmem:[%s2556_s28 + $0x400] sm:$0xf] }
  0x53   : > { %1188 = vmatpush.bf16.msrb.mxu0 %v1895_v11  ;;  %v1792_v11 = vld [vmem:[%s2556_s28 + $0x138] sm:$0xf0]  ;;  %v2317_v38 = vld [vmem:[%s2556_s28 + $0x114] sm:$0xf]  ;;  %v1715_v42 = vor.u32 %v2301_v34, %v1712_v35  ;;  %v2412_v43 = vld [vmem:[%s2556_s28 + $0x404] sm:$0xf0] }
  0x54   : > { %1201 = vmatpush.bf16.msrb.mxu1 %v1959_v12  ;;  %v1667_v12 = vor.u32 %v2289_v4, %v1664_v5  ;;  %v1776_v39 = vld [vmem:[%s2556_s28 + $0x118] sm:$0xf0]  ;;  %v2299_v46 = vld [vmem:[%s2556_s28 + $0x84] sm:$0xf]  ;;  %v1704_v47 = vld [vmem:[%s2556_s28 + $0x88] sm:$0xf0]  ;;  %v2151_v57 = vor.u32 %v2412_v43, %v2150_v40 }
  0x55   : > { %1214 = vmatpush.bf16.msrb.mxu2 %v2023_v15  ;;  %v2416_v15 = vld [vmem:[%s2556_s28 + $0x424] sm:$0xf0]  ;;  %v1888_v50 = vld [vmem:[%s2556_s28 + $0x1f8] sm:$0xf0]  ;;  %v2361_v53 = vld [vmem:[%s2556_s28 + $0x274] sm:$0xf] }
  0x56   : > { %1227 = vmatpush.bf16.msrb.mxu3 %v2087_v28  ;;  %1189 = vmatmul.bf16.vlgmr.msrb.gmra.mxu0 %v2692_v52  ;;  %v2167_v25 = vor.u32 %v2416_v15, %v2166_v14  ;;  %v1952_v55 = vld [vmem:[%s2556_s28 + $0x278] sm:$0xf0]  ;;  %v2377_v58 = vld [vmem:[%s2556_s28 + $0x2f4] sm:$0xf]  ;;  %v2315_v62 = vld [vmem:[%s2556_s28 + $0x104] sm:$0xf] }
  0x57   : > { %1233 = vmatpush.bf16.msra.mxu0 %v2207_v16  ;;  %1202 = vmatmul.bf16.vlgmr.msrb.gmra.mxu1 %v2697_v56  ;;  %v2287_v16 = vld [vmem:[%s2556_s28 + $0x24] sm:$0xf]  ;;  %v2016_v59 = vld [vmem:[%s2556_s28 + $0x2f8] sm:$0xf0]  ;;  %v1768_v63 = vld [vmem:[%s2556_s28 + $0x108] sm:$0xf0] }
  0x58   : > { %1246 = vmatpush.bf16.msra.mxu1 %v1699_v22  ;;  %1215 = vmatmul.bf16.vlgmr.msrb.gmra.mxu2 %v2690_v51  ;;  %v1720_v22 = vld [vmem:[%s2556_s28 + $0xa8] sm:$0xf0]  ;;  %v1659_v28 = vor.u32 %v2287_v16, %v1656_v17  ;;  %v2393_v2 = vld [vmem:[%s2556_s28 + $0x374] sm:$0xf]  ;;  %v2080_v3 = vld [vmem:[%s2556_s28 + $0x378] sm:$0xf0]  ;;  %v2019_v5 = vor.u32 %v2377_v58, %v2016_v59 }
  0x59   : > { %1259 = vmatpush.bf16.msra.mxu2 %v1763_v23  ;;  %1228 = vmatmul.bf16.vlgmr.msrb.gmra.mxu3 %v2694_v54  ;;  %v1795_v23 = vor.u32 %v2321_v10, %v1792_v11  ;;  %v1723_v29 = vor.u32 %v2303_v21, %v1720_v22  ;;  %v2343_v4 = vld [vmem:[%s2556_s28 + $0x1e4] sm:$0xf]  ;;  %v1880_v6 = vld [vmem:[%s2556_s28 + $0x1e8] sm:$0xf0]  ;;  %v1771_v10 = vor.u32 %v2315_v62, %v1768_v63  ;;  %v2341_v21 = vld [vmem:[%s2556_s28 + $0x1d4] sm:$0xf] }
  0x5a   : > { %1272 = vmatpush.bf16.msra.mxu3 %v1827_v32  ;;  %v2285_v32 = vld [vmem:[%s2556_s28 + $0x14] sm:$0xf]  ;;  %v2359_v7 = vld [vmem:[%s2556_s28 + $0x264] sm:$0xf]  ;;  %v1883_v14 = vor.u32 %v2343_v4, %v1880_v6  ;;  %v2072_v17 = vld [vmem:[%s2556_s28 + $0x368] sm:$0xf0] }
  0x5b   : > { %1234 = vmatpush.bf16.msra.mxu0 %v2199_v33  ;;  %v1648_v33 = vld [vmem:[%s2556_s28 + $0x18] sm:$0xf0]  ;;  %v2375_v11 = vld [vmem:[%s2556_s28 + $0x2e4] sm:$0xf]  ;;  %v2056_v43 = vld [vmem:[%s2556_s28 + $0x348] sm:$0xf0] }
  0x5c   : > { %1247 = vmatpush.bf16.msra.mxu1 %v1691_v36  ;;  %v1787_v36 = vor.u32 %v2319_v26, %v1784_v27  ;;  %v1651_v41 = vor.u32 %v2285_v32, %v1648_v33  ;;  %v2391_v16 = vld [vmem:[%s2556_s28 + $0x364] sm:$0xf]  ;;  %v1936_v26 = vld [vmem:[%s2556_s28 + $0x258] sm:$0xf0]  ;;  %v2373_v27 = vld [vmem:[%s2556_s28 + $0x2d4] sm:$0xf] }
  0x5d   : > { %1260 = vmatpush.bf16.msra.mxu2 %v1755_v37  ;;  %v2159_v37 = vor.u32 %v2414_v31, %v2158_v30  ;;  %v2389_v32 = vld [vmem:[%s2556_s28 + $0x354] sm:$0xf]  ;;  %v2064_v33 = vld [vmem:[%s2556_s28 + $0x358] sm:$0xf0]  ;;  %v2339_v34 = vld [vmem:[%s2556_s28 + $0x1c4] sm:$0xf] }
  0x5e   : > { %1273 = vmatpush.bf16.msra.mxu3 %v1819_v44  ;;  %v2283_v44 = vld [vmem:[%s2556_s28 + $0x4] sm:$0xf]  ;;  %v2048_v58 = vld [vmem:[%s2556_s28 + $0x338] sm:$0xf0]  ;;  %v1912_v63 = vld [vmem:[%s2556_s28 + $0x228] sm:$0xf0] }
  0x5f   : > { %1235 = vmatpush.bf16.msra.mxu0 %v2191_v45  ;;  %v1640_v45 = vld [vmem:[%s2556_s28 + $0x8] sm:$0xf0]  ;;  %v2335_v59 = vld [vmem:[%s2556_s28 + $0x1a4] sm:$0xf] }
  0x60   : > { %1248 = vmatpush.bf16.msra.mxu1 %v1683_v48  ;;  %v2345_v48 = vld [vmem:[%s2556_s28 + $0x1f4] sm:$0xf]  ;;  %v2351_v62 = vld [vmem:[%s2556_s28 + $0x224] sm:$0xf]  ;;  %v2040_v6 = vld [vmem:[%s2556_s28 + $0x328] sm:$0xf0] }
  0x61   : > { %1261 = vmatpush.bf16.msra.mxu2 %v1747_v49  ;;  %v1779_v49 = vor.u32 %v2317_v38, %v1776_v39  ;;  %v1992_v38 = vld [vmem:[%s2556_s28 + $0x2c8] sm:$0xf0]  ;;  %v2067_v39 = vor.u32 %v2389_v32, %v2064_v33  ;;  %v1915_v4 = vor.u32 %v2351_v62, %v1912_v63  ;;  %v2144_v32 = vld [vmem:[%s2556_s28 + $0x3f8] sm:$0xf0]  ;;  %v2417_v62 = vld [vmem:[%s2556_s28 + $0x434] sm:$0xf] }
  0x62   : > { %1274 = vmatpush.bf16.msra.mxu3 %v1811_v60  ;;  %v1643_v60 = vor.u32 %v2283_v44, %v1640_v45  ;;  %v2337_v44 = vld [vmem:[%s2556_s28 + $0x1b4] sm:$0xf] }
  0x63   : > { %1236 = vmatpush.bf16.msra.mxu0 %v2183_v61  ;;  %v1707_v61 = vor.u32 %v2299_v46, %v1704_v47  ;;  %v2353_v46 = vld [vmem:[%s2556_s28 + $0x234] sm:$0xf]  ;;  %v1920_v47 = vld [vmem:[%s2556_s28 + $0x238] sm:$0xf0] }
  0x64   : > { %1249 = vmatpush.bf16.msra.mxu1 %v1675_v0  ;;  %v1891_v0 = vor.u32 %v2345_v48, %v1888_v50  ;;  %v2369_v48 = vld [vmem:[%s2556_s28 + $0x2b4] sm:$0xf] }
  0x65   : > { %1262 = vmatpush.bf16.msra.mxu2 %v1739_v1  ;;  %v1955_v1 = vor.u32 %v2361_v53, %v1952_v55  ;;  %v1923_v55 = vor.u32 %v2353_v46, %v1920_v47  ;;  %v2405_v47 = vld [vmem:[%s2556_s28 + $0x3d4] sm:$0xf] }
  0x66   : > { %1275 = vmatpush.bf16.msra.mxu3 %v1803_v8  ;;  %v1944_v8 = vld [vmem:[%s2556_s28 + $0x268] sm:$0xf0] }
  0x67   : > { %1237 = vmatpush.bf16.msra.mxu0 %v2175_v9  ;;  %v2789_v9 = vld [vmem:[#allocation1] sm:$0xff]  ;;  %v1947_v15 = vor.u32 %v2359_v7, %v1944_v8  ;;  %v2333_v7 = vld [vmem:[%s2556_s28 + $0x194] sm:$0xf] }
  0x68   : > { %1250 = vmatpush.bf16.msra.mxu1 %v1667_v12  ;;  %v2008_v12 = vld [vmem:[%s2556_s28 + $0x2e8] sm:$0xf0] }
  0x69   : > { %1263 = vmatpush.bf16.msra.mxu2 %v1731_v13  ;;  %v2083_v13 = vor.u32 %v2393_v2, %v2080_v3  ;;  %v2011_v22 = vor.u32 %v2375_v11, %v2008_v12  ;;  %v2349_v11 = vld [vmem:[%s2556_s28 + $0x214] sm:$0xf]  ;;  %v1904_v12 = vld [vmem:[%s2556_s28 + $0x218] sm:$0xf0] }
  0x6a   : > { %1276 = vmatpush.bf16.msra.mxu3 %v1795_v23  ;;  %v1872_v23 = vld [vmem:[%s2556_s28 + $0x1d8] sm:$0xf0] }
  0x6b   : > { %1238 = vmatpush.bf16.msra.mxu0 %v2167_v25  ;;  %v2357_v25 = vld [vmem:[%s2556_s28 + $0x254] sm:$0xf]  ;;  %v1875_v30 = vor.u32 %v2341_v21, %v1872_v23  ;;  %v1907_v21 = vor.u32 %v2349_v11, %v1904_v12  ;;  %v2331_v23 = vld [vmem:[%s2556_s28 + $0x184] sm:$0xf]  ;;  %v2160_v11 = vld [vmem:[%s2556_s28 + $0x418] sm:$0xf0] }
  0x6c   : > { %1251 = vmatpush.bf16.msra.mxu1 %v1659_v28  ;;  %v2000_v28 = vld [vmem:[%s2556_s28 + $0x2d8] sm:$0xf0]  ;;  %v1939_v31 = vor.u32 %v2357_v25, %v1936_v26  ;;  %v1832_v25 = vld [vmem:[%s2556_s28 + $0x188] sm:$0xf0] }
  0x6d   : > { %1264 = vmatpush.bf16.msra.mxu2 %v1723_v29  ;;  %v2075_v29 = vor.u32 %v2391_v16, %v2072_v17  ;;  %v2003_v35 = vor.u32 %v2373_v27, %v2000_v28  ;;  %v2381_v16 = vld [vmem:[%s2556_s28 + $0x314] sm:$0xf]  ;;  %v2347_v27 = vld [vmem:[%s2556_s28 + $0x204] sm:$0xf]  ;;  %v1896_v28 = vld [vmem:[%s2556_s28 + $0x208] sm:$0xf0] }
  0x6e   : > { %1277 = vmatpush.bf16.msra.mxu3 %v1787_v36  ;;  %v1864_v36 = vld [vmem:[%s2556_s28 + $0x1c8] sm:$0xf0] }
  0x6f   : > { %1239 = vmatpush.bf16.msra.mxu0 %v2159_v37  ;;  %v1928_v37 = vld [vmem:[%s2556_s28 + $0x248] sm:$0xf0]  ;;  %v1867_v40 = vor.u32 %v2339_v34, %v1864_v36  ;;  %v2425_v34 = vld [vmem:[%s2556_s28 + $0x474] sm:$0xf]  ;;  %v1835_v36 = vor.u32 %v2331_v23, %v1832_v25 }
  0x70   : > { %1252 = vmatpush.bf16.msra.mxu1 %v1651_v41 }
  0x71   : > { %1265 = vmatpush.bf16.msra.mxu2 %v1715_v42  ;;  %v2387_v42 = vld [vmem:[%s2556_s28 + $0x344] sm:$0xf] }
  0x72   : > { %1278 = vmatpush.bf16.msra.mxu3 %v1779_v49  ;;  %v1984_v49 = vld [vmem:[%s2556_s28 + $0x2b8] sm:$0xf0]  ;;  %v2059_v50 = vor.u32 %v2387_v42, %v2056_v43  ;;  %v2136_v42 = vld [vmem:[%s2556_s28 + $0x3e8] sm:$0xf0] }
  0x73   : > { %1240 = vmatpush.bf16.msra.mxu0 %v2151_v57  ;;  %v2385_v57 = vld [vmem:[%s2556_s28 + $0x334] sm:$0xf] }
  0x74   : > { %1253 = vmatpush.bf16.msra.mxu1 %v1643_v60  ;;  %v1987_v60 = vor.u32 %v2369_v48, %v1984_v49  ;;  %v2051_v2 = vor.u32 %v2385_v57, %v2048_v58  ;;  %v2128_v48 = vld [vmem:[%s2556_s28 + $0x3d8] sm:$0xf0]  ;;  %v2421_v49 = vld [vmem:[%s2556_s28 + $0x454] sm:$0xf]  ;;  %v2403_v57 = vld [vmem:[%s2556_s28 + $0x3c4] sm:$0xf] }
  0x75   : > { %1266 = vmatpush.bf16.msra.mxu2 %v1707_v61  ;;  %v1848_v61 = vld [vmem:[%s2556_s28 + $0x1a8] sm:$0xf0] }
  0x76   : > { %1241 = vmatmul.bf16.vlgmr.msra.gmra.mxu0 %v2789_v9  ;;  %1279 = vmatpush.bf16.msra.mxu3 %v1771_v10  ;;  %v1851_v3 = vor.u32 %v2335_v59, %v1848_v61  ;;  %v1840_v10 = vld [vmem:[%s2556_s28 + $0x198] sm:$0xf0]  ;;  %v2120_v58 = vld [vmem:[%s2556_s28 + $0x3c8] sm:$0xf0] }
  0x77   : > { %1285 = vmatpush.bf16.msrb.mxu0 %v1891_v0  ;;  %1254 = vmatmul.bf16.vlgmr.msra.gmra.mxu1 %v2660_v19  ;;  %v2371_v19 = vld [vmem:[%s2556_s28 + $0x2c4] sm:$0xf]  ;;  %v1843_v17 = vor.u32 %v2333_v7, %v1840_v10  ;;  %v2184_v59 = vld [vmem:[%s2556_s28 + $0x448] sm:$0xf0]  ;;  %v2112_v61 = vld [vmem:[%s2556_s28 + $0x3b8] sm:$0xf0] }
  0x78   : > { %1298 = vmatpush.bf16.msrb.mxu1 %v1955_v1  ;;  %1267 = vmatmul.bf16.vlgmr.msra.gmra.mxu2 %v2667_v24  ;;  %v2355_v24 = vld [vmem:[%s2556_s28 + $0x244] sm:$0xf]  ;;  %v1995_v45 = vor.u32 %v2371_v19, %v1992_v38  ;;  %v1976_v1 = vld [vmem:[%s2556_s28 + $0x2a8] sm:$0xf0]  ;;  %v2397_v7 = vld [vmem:[%s2556_s28 + $0x394] sm:$0xf] }
  0x79   : > { %1311 = vmatpush.bf16.msrb.mxu2 %v2019_v5  ;;  %1280 = vmatmul.bf16.vlgmr.msra.gmra.mxu3 %v2658_v18  ;;  %v1931_v41 = vor.u32 %v2355_v24, %v1928_v37  ;;  %v1856_v18 = vld [vmem:[%s2556_s28 + $0x1b8] sm:$0xf0]  ;;  %v2367_v0 = vld [vmem:[%s2556_s28 + $0x2a4] sm:$0xf]  ;;  %v1899_v24 = vor.u32 %v2347_v27, %v1896_v28  ;;  %v2024_v19 = vld [vmem:[%s2556_s28 + $0x308] sm:$0xf0] }
  0x7a   : > { %1324 = vmatpush.bf16.msrb.mxu3 %v2083_v13  ;;  %v1859_v53 = vor.u32 %v2337_v44, %v1856_v18  ;;  %v2383_v5 = vld [vmem:[%s2556_s28 + $0x324] sm:$0xf]  ;;  %v1979_v8 = vor.u32 %v2367_v0, %v1976_v1  ;;  %v2365_v13 = vld [vmem:[%s2556_s28 + $0x294] sm:$0xf] }
  0x7b   : > { %1286 = vmatpush.bf16.msrb.mxu0 %v1883_v14  ;;  %v1968_v14 = vld [vmem:[%s2556_s28 + $0x298] sm:$0xf0]  ;;  %v2379_v37 = vld [vmem:[%s2556_s28 + $0x304] sm:$0xf]  ;;  %v2413_v10 = vld [vmem:[%s2556_s28 + $0x414] sm:$0xf] }
  0x7c   : > { %1299 = vmatpush.bf16.msrb.mxu1 %v1947_v15  ;;  %v2043_v15 = vor.u32 %v2383_v5, %v2040_v6  ;;  %v1971_v26 = vor.u32 %v2365_v13, %v1968_v14  ;;  %v2027_v43 = vor.u32 %v2379_v37, %v2024_v19  ;;  %v2423_v44 = vld [vmem:[%s2556_s28 + $0x464] sm:$0xf]  ;;  %v2163_v13 = vor.u32 %v2413_v10, %v2160_v11 }
  0x7d   : > { %1312 = vmatpush.bf16.msrb.mxu2 %v2011_v22  ;;  %v2032_v22 = vld [vmem:[%s2556_s28 + $0x318] sm:$0xf0]  ;;  %v2399_v1 = vld [vmem:[%s2556_s28 + $0x3a4] sm:$0xf] }
  0x7e   : > { %1325 = vmatpush.bf16.msrb.mxu3 %v2075_v29  ;;  %v2363_v29 = vld [vmem:[%s2556_s28 + $0x284] sm:$0xf]  ;;  %v2035_v33 = vor.u32 %v2381_v16, %v2032_v22 }
  0x7f   : > { %1287 = vmatpush.bf16.msrb.mxu0 %v1875_v30  ;;  %v1960_v30 = vld [vmem:[%s2556_s28 + $0x288] sm:$0xf0]  ;;  %v2395_v14 = vld [vmem:[%s2556_s28 + $0x384] sm:$0xf] }
  0x80   : > { %1300 = vmatpush.bf16.msrb.mxu1 %v1939_v31  ;;  %v2409_v31 = vld [vmem:[%s2556_s28 + $0x3f4] sm:$0xf]  ;;  %v1963_v38 = vor.u32 %v2363_v29, %v1960_v30  ;;  %v2411_v16 = vld [vmem:[%s2556_s28 + $0x404] sm:$0xf] }
  0x81   : > { %1313 = vmatpush.bf16.msrb.mxu2 %v2003_v35  ;;  %v2208_v35 = vld [vmem:[%s2556_s28 + $0x478] sm:$0xf0] }
  0x82   : > { %1326 = vmatpush.bf16.msrb.mxu3 %v2067_v39  ;;  %v2147_v39 = vor.u32 %v2409_v31, %v2144_v32 }
  0x83   : > { %1288 = vmatpush.bf16.msrb.mxu0 %v1867_v40  ;;  %v2211_v40 = vor.u32 %v2425_v34, %v2208_v35 }
  0x84   : > { %1301 = vmatpush.bf16.msrb.mxu1 %v1931_v41  ;;  %v2407_v41 = vld [vmem:[%s2556_s28 + $0x3e4] sm:$0xf] }
  0x85   : > { %1314 = vmatpush.bf16.msrb.mxu2 %v1995_v45  ;;  %v2200_v45 = vld [vmem:[%s2556_s28 + $0x468] sm:$0xf0]  ;;  %v2139_v18 = vor.u32 %v2407_v41, %v2136_v42 }
  0x86   : > { %1327 = vmatpush.bf16.msrb.mxu3 %v2059_v50  ;;  %v2203_v46 = vor.u32 %v2423_v44, %v2200_v45  ;;  %v2192_v50 = vld [vmem:[%s2556_s28 + $0x458] sm:$0xf0] }
  0x87   : > { %1289 = vmatpush.bf16.msrb.mxu0 %v1859_v53  ;;  %v2131_v53 = vor.u32 %v2405_v47, %v2128_v48 }
  0x88   : > { %1302 = vmatpush.bf16.msrb.mxu1 %v1923_v55  ;;  %v2195_v55 = vor.u32 %v2421_v49, %v2192_v50 }
  0x89   : > { %1315 = vmatpush.bf16.msrb.mxu2 %v1987_v60  ;;  %v2401_v60 = vld [vmem:[%s2556_s28 + $0x3b4] sm:$0xf] }
  0x8a   : > { %1328 = vmatpush.bf16.msrb.mxu3 %v2051_v2  ;;  %v2115_v63 = vor.u32 %v2401_v60, %v2112_v61  ;;  %v2104_v2 = vld [vmem:[%s2556_s28 + $0x3a8] sm:$0xf0] }
  0x8b   : > { %1290 = vmatpush.bf16.msrb.mxu0 %v1851_v3  ;;  %v2415_v3 = vld [vmem:[%s2556_s28 + $0x424] sm:$0xf]  ;;  %v2107_v5 = vor.u32 %v2399_v1, %v2104_v2 }
  0x8c   : > { %1303 = vmatpush.bf16.msrb.mxu1 %v1915_v4  ;;  %v2168_v4 = vld [vmem:[%s2556_s28 + $0x428] sm:$0xf0] }
  0x8d   : > { %1316 = vmatpush.bf16.msrb.mxu2 %v1979_v8  ;;  %v2171_v6 = vor.u32 %v2415_v3, %v2168_v4  ;;  %v2096_v8 = vld [vmem:[%s2556_s28 + $0x398] sm:$0xf0] }
  0x8e   : > { %1329 = vmatpush.bf16.msrb.mxu3 %v2043_v15  ;;  %v2099_v12 = vor.u32 %v2397_v7, %v2096_v8  ;;  %v2088_v15 = vld [vmem:[%s2556_s28 + $0x388] sm:$0xf0] }
  0x8f   : > { %1291 = vmatpush.bf16.msrb.mxu0 %v1843_v17  ;;  %v2152_v17 = vld [vmem:[%s2556_s28 + $0x408] sm:$0xf0] }
  0x90   : > { %1304 = vmatpush.bf16.msrb.mxu1 %v1907_v21  ;;  %v2091_v21 = vor.u32 %v2395_v14, %v2088_v15  ;;  %v2155_v22 = vor.u32 %v2411_v16, %v2152_v17 }
  0x91   : > { %1317 = vmatpush.bf16.msrb.mxu2 %v1971_v26 }
  0x92   : > { %1330 = vmatpush.bf16.msrb.mxu3 %v2035_v33 }
  0x93   : > { %1292 = vmatpush.bf16.msrb.mxu0 %v1835_v36 }
  0x94   : > { %1305 = vmatpush.bf16.msrb.mxu1 %v1899_v24 }
  0x95   : > { %1318 = vmatpush.bf16.msrb.mxu2 %v1963_v38 }
  0x96   : > { %1331 = vmatpush.bf16.msrb.mxu3 %v2027_v43  ;;  %1293 = vmatmul.bf16.vlgmr.msrb.gmra.mxu0 %v2662_v20  ;;  %v2419_v20 = vld [vmem:[%s2556_s28 + $0x444] sm:$0xf] }
  0x97   : > { %1337 = vmatpush.bf16.msra.mxu0 %v2147_v39  ;;  %1306 = vmatmul.bf16.vlgmr.msrb.gmra.mxu1 %v2692_v52  ;;  %v2187_v52 = vor.u32 %v2419_v20, %v2184_v59 }
  0x98   : > { %1350 = vmatpush.bf16.msra.mxu1 %v2211_v40  ;;  %1319 = vmatmul.bf16.vlgmr.msrb.gmra.mxu2 %v2697_v56  ;;  %v2123_v56 = vor.u32 %v2403_v57, %v2120_v58 }
  0x99   : > { %1332 = vmatmul.bf16.vlgmr.msrb.gmra.mxu3 %v2690_v51  ;;  %v2176_v51 = vld [vmem:[%s2556_s28 + $0x438] sm:$0xf0] }
  0x9a   : > { %v2179_v0 = vor.u32 %v2417_v62, %v2176_v51 }
  0x9b   : > { %1338 = vmatpush.bf16.msra.mxu0 %v2139_v18 }
  0x9c   : > { %1351 = vmatpush.bf16.msra.mxu1 %v2203_v46 }
  0x9f   : > { %1339 = vmatpush.bf16.msra.mxu0 %v2131_v53 }
  0xa0   : > { %1352 = vmatpush.bf16.msra.mxu1 %v2195_v55 }
  0xa3   : > { %1340 = vmatpush.bf16.msra.mxu0 %v2123_v56 }
  0xa4   : > { %1353 = vmatpush.bf16.msra.mxu1 %v2187_v52 }
  0xa7   : > { %1341 = vmatpush.bf16.msra.mxu0 %v2115_v63 }
  0xa8   : > { %1354 = vmatpush.bf16.msra.mxu1 %v2179_v0 }
  0xab   : > { %1342 = vmatpush.bf16.msra.mxu0 %v2107_v5  ;;  %v240_v5 = vld [vmem:[#allocation2] sm:$0xf] }
  0xac   : > { %1355 = vmatpush.bf16.msra.mxu1 %v2171_v6 }
  0xaf   : > { %1343 = vmatpush.bf16.msra.mxu0 %v2099_v12 }
  0xb0   : > { %1356 = vmatpush.bf16.msra.mxu1 %v2163_v13 }
  0xb3   : > { %1344 = vmatpush.bf16.msra.mxu0 %v2091_v21 }
  0xb4   : > { %1357 = vmatpush.bf16.msra.mxu1 %v2155_v22 }
  0xb5   : > { %v1138_v23 = vpop.f32.mrf.mxu0 }
  0xb6   : > { %1345 = vmatmul.bf16.vlgmr.msra.gmra.mxu0 %v2694_v54 }
  0xb7   : > { %1358 = vmatmul.bf16.vlgmr.msra.gmra.mxu1 %v2789_v9 }
  0xb8   : > { %v1151_v25 = vpop.f32.mrf.mxu1 }
  0xb9   : > { %v1152_v26 = vadd.f32 %v1151_v25, %v1138_v23 }
  0xbc   : > { %v1177_v29 = vpop.f32.mrf.mxu3 }
  0xbd   : > { %v1164_v27 = vpop.f32.mrf.mxu2  ;;  %v1140_v30 = vpop.f32.mrf.mxu0 }
  0xbe   : > { %v1165_v28 = vadd.f32 %v1164_v27, %v1152_v26 }
  0xc0   : > { %v1178_v31 = vadd.f32 %v1177_v29, %v1165_v28  ;;  %v1153_v32 = vpop.f32.mrf.mxu1 }
  0xc4   : > { %v1179_v34 = vpop.f32.mrf.mxu3 }
  0xc5   : > { %v1166_v33 = vpop.f32.mrf.mxu2 }
  0xd3   : > { %v1190_v35 = vpop.f32.mrf.mxu0 }
  0xd4   : > { %v1191_v36 = vadd.f32 %v1190_v35, %v1178_v31  ;;  %v1203_v24 = vpop.f32.mrf.mxu1 }
  0xd6   : > { %v1204_v37 = vadd.f32 %v1203_v24, %v1191_v36 }
  0xdb   : > { %v1216_v19 = vpop.f32.mrf.mxu2  ;;  %v1192_v54 = vpop.f32.mrf.mxu0 }
  0xdc   : > { %v1217_v38 = vadd.f32 %v1216_v19, %v1204_v37  ;;  %v1229_v39 = vpop.f32.mrf.mxu3  ;;  %v1205_v9 = vpop.f32.mrf.mxu1 }
  0xde   : > { %v1230_v40 = vadd.f32 %v1229_v39, %v1217_v38 }
  0xe3   : > { %v1218_v41 = vpop.f32.mrf.mxu2 }
  0xe4   : > { %v1231_v42 = vpop.f32.mrf.mxu3 }
  0xf3   : > { %v1242_v43 = vpop.f32.mrf.mxu0 }
  0xf4   : > { %v1255_v44 = vpop.f32.mrf.mxu1  ;;  %v1243_v4 = vadd.f32 %v1242_v43, %v1230_v40 }
  0xfb   : > { %v1268_v45 = vpop.f32.mrf.mxu2  ;;  %v1244_v18 = vpop.f32.mrf.mxu0 }
  0xfc   : > { %v1281_v46 = vpop.f32.mrf.mxu3  ;;  %v1257_v47 = vpop.f32.mrf.mxu1  ;;  %v1269_v57 = vadd.f32 %v1268_v45, %v1255_v44 }
  0xfe   : > { %v1282_v56 = vadd.f32 %v1281_v46, %v1269_v57 }
 0x103   : > { %v1270_v48 = vpop.f32.mrf.mxu2 }
 0x104   : > { %v1283_v49 = vpop.f32.mrf.mxu3 }
 0x113   : > { %v1294_v50 = vpop.f32.mrf.mxu0 }
 0x114   : > { %v1307_v53 = vpop.f32.mrf.mxu1  ;;  %v1295_v60 = vadd.f32 %v1294_v50, %v1282_v56 }
 0x116   : > { %v1308_v62 = vadd.f32 %v1307_v53, %v1295_v60 }
 0x11b   : > { %v1320_v55 = vpop.f32.mrf.mxu2  ;;  %v1296_v58 = vpop.f32.mrf.mxu0 }
 0x11c   : > { %v1333_v20 = vpop.f32.mrf.mxu3  ;;  %v1309_v59 = vpop.f32.mrf.mxu1  ;;  %v1321_v51 = vadd.f32 %v1320_v55, %v1308_v62 }
 0x11e   : > { %v1334_v63 = vadd.f32 %v1333_v20, %v1321_v51 }
 0x123   : > { %v1322_v52 = vpop.f32.mrf.mxu2 }
 0x124   : > { %v1335_v61 = vpop.f32.mrf.mxu3 }
 0x133   : > { %v1346_v0 = vpop.f32.mrf.mxu0 }
 0x134   : > { %v1347_v1 = vadd.f32 %v1346_v0, %v1334_v63  ;;  %v1359_v2 = vpop.f32.mrf.mxu1 }
 0x136   : > { %v1360_v3 = vadd.f32 %v1359_v2, %v1347_v1 }
 0x138   : > { %v1365_v6 = vrot.slane %v1360_v3, 6 }
 0x139   : > { %1374 = sbr.rel (%p2212_p6) target bundleno = 509 (0x1fd), region = 48 }
 0x13a   : > { %v1367_v7 = vsel %vm1366_vm0, %v1243_v4, %v1365_v6 }
 0x13b   : > { %v1369_v8 = vadd.f32 %v1367_v7, %v240_v5  ;;  %v1348_v10 = vpop.f32.mrf.mxu0 }
 0x13c   : > { %v1361_v11 = vpop.f32.mrf.mxu1 }
 0x13d   : > { %1370 = vst [vmem:[#allocation2] sm:$0xf] %v1369_v8 }
 0x13e   : > { %v2434_v12 = vld [vmem:[%s2952_s3 + $0x38] sm:$0xff]  ;;  %v2433_v14 = vld [vmem:[%s2952_s3 + $0x30] sm:$0xff]  ;;  %v1376_v16 = vld [vmem:[%s2951_s2] sm:$0x3]  ;;  %vm1570_vm4 = vcmask 9216  }
 0x13f   : > { %v2442_v13 = vld [vmem:[%s2952_s3 + $0x78] sm:$0xff]  ;;  %1525 = vmatpush.bf16.msra.mxu0 %v2434_v12  ;;  %v2441_v15 = vld [vmem:[%s2952_s3 + $0x70] sm:$0xff]  ;;  %v2432_v17 = vld [vmem:[%s2952_s3 + $0x28] sm:$0xff]  ;;  %v1378_v22 = vperm.slane %v1376_v16, 0  ;;  %v1379_v23 = vperm.slane %v1376_v16, 1 }
 0x140   : > { %1538 = vmatpush.bf16.msra.mxu1 %v2442_v13  ;;  %v2440_v21 = vld [vmem:[%s2952_s3 + $0x68] sm:$0xff]  ;;  %v2431_v27 = vld [vmem:[%s2952_s3 + $0x20] sm:$0xff]  ;;  %v2430_v32 = vld [vmem:[%s2952_s3 + $0x18] sm:$0xff] }
 0x141   : > { %v1380_v26 = vrot.slane %v1379_v23, 6  ;;  %v2439_v28 = vld [vmem:[%s2952_s3 + $0x60] sm:$0xff]  ;;  %v2438_v33 = vld [vmem:[%s2952_s3 + $0x58] sm:$0xff]  ;;  %v2429_v34 = vld [vmem:[%s2952_s3 + $0x10] sm:$0xff] }
 0x142   : > { %v2437_v35 = vld [vmem:[%s2952_s3 + $0x50] sm:$0xff]  ;;  %v2428_v36 = vld [vmem:[%s2952_s3 + $0x8] sm:$0xff]  ;;  %v2427_v37 = vld [vmem:[%s2952_s3] sm:$0xff] }
 0x143   : > { %1526 = vmatpush.bf16.msra.mxu0 %v2433_v14  ;;  %v1381_v29 = vsel %vm1366_vm0, %v1378_v22, %v1380_v26  ;;  %v2436_v24 = vld [vmem:[%s2952_s3 + $0x48] sm:$0xff]  ;;  %v2435_v19 = vld [vmem:[%s2952_s3 + $0x40] sm:$0xff] }
 0x144   : > { %1539 = vmatpush.bf16.msra.mxu1 %v2441_v15  ;;  %v1375_v25 = vld [vmem:[#allocation2] sm:$0xf]  ;;  %v2459_v40 = vld [vmem:[%s2953_s4] ss:$0 sm:$0xff] }
 0x145   : > { %v1383_v30 = vadd.f32 %v1381_v29, %v1375_v25 }
 0x147   : > { %1527 = vmatpush.bf16.msra.mxu0 %v2432_v17  ;;  %v1384_v31 = vmax.f32 %v1383_v30, 0.0 }
 0x148   : > { %1540 = vmatpush.bf16.msra.mxu1 %v2440_v21 }
 0x149   : > { %1386 = vst [vmem:[#allocation1] ss:$4 sm:$0xff] %v1384_v31 }
 0x14b   : > { %1528 = vmatpush.bf16.msra.mxu0 %v2431_v27 }
 0x14c   : > { %1541 = vmatpush.bf16.msra.mxu1 %v2439_v28 }
 0x14f   : > { %1529 = vmatpush.bf16.msra.mxu0 %v2430_v32 }
 0x150   : > { %1542 = vmatpush.bf16.msra.mxu1 %v2438_v33  ;;  %v1387_v38 = vld.sshfl [vmem:[#allocation1] sm:$0xff pattern:$0x73625140]  ;;  %v1388_v54 = vld.sshfl [vmem:[#allocation1 + $0x8] sm:$0xff pattern:$0x73625140] }
 0x151   : > { %v1391_v39 = vpack.c.bf16 %v1387_v38, %v1387_v38  ;;  %v1392_v9 = vpack.c.bf16 %v1388_v54, %v1388_v54 }
 0x153   : > { %1530 = vmatpush.bf16.msra.mxu0 %v2429_v34 }
 0x154   : > { %1543 = vmatpush.bf16.msra.mxu1 %v2437_v35 }
 0x157   : > { %1531 = vmatpush.bf16.msra.mxu0 %v2428_v36 }
 0x158   : > { %1544 = vmatpush.bf16.msra.mxu1 %v2436_v24 }
 0x15b   : > { %1532 = vmatpush.bf16.msra.mxu0 %v2427_v37 }
 0x15c   : > { %1545 = vmatpush.bf16.msra.mxu1 %v2435_v19 }
 0x15e   : > { %1533 = vmatmul.bf16.vlgmr.msra.gmra.mxu0 %v1391_v39 }
 0x15f   : > { %1546 = vmatmul.bf16.vlgmr.msra.gmra.mxu1 %v1392_v9 }
 0x1db   : > { %v1534_v41 = vpop.f32.mrf.mxu0 }
 0x1dc   : > { %v1547_v42 = vpop.f32.mrf.mxu1  ;;  %v1535_v43 = vadd.f32 %v2459_v40, %v1534_v41 }
 0x1de   : > { %v1548_v44 = vadd.f32 %v1547_v42, %v1535_v43 }
 0x1e0   : > { %v2277_v45 = vmul.f32 -1.442695, %v1548_v44 }
 0x1e2   : > { %2460 = vpow2.f32 %v2277_v45 }
 0x1e3   : > { %v1536_v18 = vpop.f32.mrf.mxu0 }
 0x1e4   : > { %v1549_v46 = vpop.f32.mrf.mxu1 }
 0x1e8   : > { %v2461_v47 = vpop.eup %2460 }
 0x1e9   : > { %v1554_v48 = vadd.f32 1.0, %v2461_v47 }
 0x1eb   : > { %2462 = vrcp.f32 %v1554_v48  ;;  %v1566_v55 = vand.u32 2147483648, %v1554_v48  ;;  %v1564_v58 = vand.u32 2147483647, %v1554_v48  ;;  %vm1560_vm2 = vweird.f32 %v1554_v48 }
 0x1ed   : > { %v1567_v59 = vor.u32 1.1754944e-38, %v1566_v55  ;;  %vm1565_vm5 = vcmp.eq.f32.partialorder %v1564_v58, 8.507059e+37 }
 0x1f1   : > { %v2463_v49 = vpop.eup %2462 }
 0x1f2   : > { %v1556_v50 = vmul.f32 %v2463_v49, %v1554_v48  ;;  %vm1561_vm1 = vweird.f32 %v2463_v49 }
 0x1f3   : > { %vm1562_vm3 = vmor %vm1560_vm2, %vm1561_vm1 }
 0x1f4   : > { %v1557_v53 = vsub.f32 1.0, %v1556_v50 }
 0x1f6   : > { %v1558_v57 = vmul.f32 %v2463_v49, %v1557_v53 }
 0x1f8   : > { %v1559_v20 = vadd.f32 %v2463_v49, %v1558_v57 }
 0x1fa   : > { %v1563_v56 = vsel %vm1562_vm3, %v2463_v49, %v1559_v20 }
 0x1fb   : > { %v1568_v52 = vsel %vm1565_vm5, %v1567_v59, %v1563_v56 }
 0x1fc   : > { %1571 = vst.msk [vmem:[#allocation3] sm:$0x3] %vm1570_vm4, %v1568_v52 }
 0x1fd PF: > { %p2447_p7 = scmp.eq.s32.totalorder %s2542_s19, 3  ;;  %s2505_s17 = smov [#allocation3]  }
 0x1fe   : > { %s1578_s20 = sshll.u32 %s2505_s17, 4  ;;  %s1580_s23 = sshll.u32 %s2954_s5, 4  ;;  %s1579_s20 = int_to_ptr.vmem [resolvable:$true] %s1578_s20  ;;  %s1581_s23 = int_to_ptr.hbm [resolvable:$true] %s1580_s23 }
 0x1ff   : > { %2444 = dma.vmem_to_hbm [thread:$0]  (%p2447_p7), %s1579_s20, 32, %s1581_s23, [#allocation4]  }
 0x200   : > { %2497 = dma.done.wait (%p2447_p7), [#allocation4], 32  }
 0x201   : > { %2499 = vsyncadd (%p2447_p7), [#allocation4], 4294967264 }
 0x202 PF: > { %s16_s18 = sadd.s32 1, %s2502_s18  }
 0x203   : > { %p13_p8 = scmp.ge.s32.totalorder %s16_s18, 6  }
 0x205   :  { %15 = sbr.rel (!%p13_p8) target bundleno = 1 (0x1), region = 78 }
 0x20a   :  { %1594 = vsyncpa [#allocation4], 1 }
 0x20b   :  { %1596 = vsyncpa [#allocation4 + $0x1], 1 }

</bundles_post_ra>
